<compile_context>
chip_gen: v7x
topology: tpu7x:2x2x1
jax: 0.10.0
libtpu: 0.0.40
codegen_flags: <defaults>
</compile_context>

<pallas_src>
import numpy as np
import jax
import jax.numpy as jnp
from jax.experimental import pallas as pl
from jax.experimental.pallas import tpu as pltpu

_EPS = 1e-5


# ----------------------------------------------------------------------------
# small helpers (static / trace-time)
# ----------------------------------------------------------------------------
def _round_up(v, m):
    return (v + m - 1) // m * m


def _lane_pad(l):
    return max(_round_up(l, 128), 128)


def _pad_last(x, L):
    l = x.shape[-1]
    if l == L:
        return x
    cfg = [(0, 0)] * (x.ndim - 1) + [(0, L - l)]
    return jnp.pad(x, cfg)


def _shift_lanes(x, s):
    """result[..., p] = x[..., (p + s) mod L]  (s is a static Python int)."""
    L = x.shape[-1]
    s = s % L
    if s == 0:
        return x
    return jnp.concatenate([x[..., s:], x[..., :s]], axis=-1)


def _apply_act(y, activation):
    if activation == "relu":
        return jnp.maximum(y, 0.0)
    if activation == "tanh":
        return jnp.tanh(y)
    return y


# tap lists: each tap = (weight_index, input_phase_index, flattened_shift)
def _conv_s1_taps(wp):
    """3x3, stride 1, pad 1, computed on the zero-ringed padded grid."""
    return [[(kh * 3 + kw, 0, (kh - 1) * wp + (kw - 1))
             for kh in range(3) for kw in range(3)]]


def _conv_s2_taps(wq):
    """3x3, stride 2, pad 1, on a 2x2 space-to-depth phase split of the padded input."""
    return [[(kh * 3 + kw, (kh % 2) * 2 + (kw % 2), (kh // 2) * wq + (kw // 2))
             for kh in range(3) for kw in range(3)]]


def _convT_taps(pad, ring, gw):
    """ConvTranspose 3x3 stride 2 as 4 output phases computed on the input grid."""
    phases = []
    for a in (0, 1):
        for b in (0, 1):
            taps = []
            for kh in range(3):
                if (a + pad - kh) % 2:
                    continue
                dh = (a + pad - kh) // 2 + ring
                for kw in range(3):
                    if (b + pad - kw) % 2:
                        continue
                    dw = (b + pad - kw) // 2 + ring
                    taps.append((kh * 3 + kw, 0, dh * gw + dw))
            phases.append(taps)
    return phases


def _grid_mask(gh, gw, h0, h1, w0, w1, L):
    m = np.zeros((gh, gw), np.float32)
    m[h0:h1, w0:w1] = 1.0
    out = np.zeros((L,), np.float32)
    out[:gh * gw] = m.reshape(-1)
    return out


# ----------------------------------------------------------------------------
# Kernel A: generic fused conv layer  (9-tap matmuls -> masked IN -> act)
# ----------------------------------------------------------------------------
def _make_conv_kernel(taps_per_phase, apply_norm, activation, nvalid, has_mask):
    nout = len(taps_per_phase)
    assert (not apply_norm) or has_mask

    def kernel(*refs):
        if has_mask:
            x_ref, w_ref, m_ref, o_ref = refs
        else:
            x_ref, w_ref, o_ref = refs
        nin, cin, L = x_ref.shape
        cout = w_ref.shape[1]

        xs = [x_ref[p] for p in range(nin)]  # bf16 (cin, L) slabs

        accs = []
        for taps in taps_per_phase:
            acc = jnp.zeros((cout, L), jnp.float32)
            for (t, ph, s) in taps:
                acc = acc + jnp.dot(w_ref[t], _shift_lanes(xs[ph], s),
                                    preferred_element_type=jnp.float32)
            accs.append(acc)

        masks = None
        if has_mask:
            m_all = m_ref[...]
            masks = [m_all[i:i + 1, :] for i in range(nout)]

        if apply_norm:
            inv_n = 1.0 / float(nvalid)
            s1 = None
            s2 = None
            for i in range(nout):
                ym = accs[i] * masks[i]
                a = jnp.sum(ym, axis=1, keepdims=True)
                b = jnp.sum(ym * accs[i], axis=1, keepdims=True)
                s1 = a if s1 is None else s1 + a
                s2 = b if s2 is None else s2 + b
            mean = s1 * inv_n
            var = jnp.maximum(s2 * inv_n - mean * mean, 0.0)
            inv_std = jax.lax.rsqrt(var + _EPS)
            accs = [(acc - mean) * inv_std for acc in accs]

        for i in range(nout):
            y = _apply_act(accs[i], activation)
            if masks is not None:
                y = y * masks[i]            # keep an exact zero padding ring
            o_ref[i] = y.astype(o_ref.dtype)

    return kernel


def _conv_layer(x, w_stack, mask, *, taps_per_phase, apply_norm, activation,
                nvalid=1, out_dtype=jnp.bfloat16):
    N, nin, cin, L = x.shape
    ntap, cout, _ = w_stack.shape
    nout = len(taps_per_phase)
    has_mask = mask is not None

    kernel = _make_conv_kernel(taps_per_phase, apply_norm, activation,
                               nvalid, has_mask)

    in_specs = [
        pl.BlockSpec((None, nin, cin, L), lambda n: (n, 0, 0, 0)),
        pl.BlockSpec((ntap, cout, cin), lambda n: (0, 0, 0)),
    ]
    args = [x, w_stack]
    if has_mask:
        in_specs.append(pl.BlockSpec((nout, L), lambda n: (0, 0)))
        args.append(mask)

    total_taps = sum(len(t) for t in taps_per_phase)
    cost = pl.CostEstimate(
        flops=int(2 * N * total_taps * cout * cin * L),
        transcendentals=int(N * nout * cout * L) if activation == "tanh" else 0,
        bytes_accessed=int(x.size * x.dtype.itemsize + w_stack.size * 2
                           + N * nout * cout * L * jnp.dtype(out_dtype).itemsize),
    )

    return pl.pallas_call(
        kernel,
        out_shape=jax.ShapeDtypeStruct((N, nout, cout, L), out_dtype),
        grid=(N,),
        in_specs=in_specs,
        out_specs=pl.BlockSpec((None, nout, cout, L), lambda n: (n, 0, 0, 0)),
        compiler_params=pltpu.CompilerParams(dimension_semantics=("parallel",)),
        cost_estimate=cost,
    )(*args)


# ----------------------------------------------------------------------------
# Kernel B: both residual blocks + ConvTranspose "up1", fully fused in VMEM
# ----------------------------------------------------------------------------
def _make_res_up_kernel(res_taps, up_taps_per_phase, nvalid_res, nvalid_up):
    def kernel(x_ref, w_res_ref, w_up_ref, m_res_ref, m_up_ref, o_ref):
        cf, L = x_ref.shape
        cup = w_up_ref.shape[1]

        m_res = m_res_ref[...]                       # (1, L) f32, valid interior
        inv_n_res = 1.0 / float(nvalid_res)

        def conv_in_relu(h_f32, conv_idx, residual):
            hb = h_f32.astype(jnp.bfloat16)
            acc = jnp.zeros((cf, L), jnp.float32)
            for (t, s) in res_taps:
                acc = acc + jnp.dot(w_res_ref[conv_idx, t], _shift_lanes(hb, s),
                                    preferred_element_type=jnp.float32)
            ym = acc * m_res
            mean = jnp.sum(ym, axis=1, keepdims=True) * inv_n_res
            var = jnp.maximum(
                jnp.sum(ym * acc, axis=1, keepdims=True) * inv_n_res - mean * mean,
                0.0)
            acc = (acc - mean) * jax.lax.rsqrt(var + _EPS)
            if residual is not None:
                acc = acc + residual
            return jnp.maximum(acc, 0.0) * m_res     # ReLU + keep zero ring

        x0 = x_ref[...].astype(jnp.float32) * m_res
        h1 = conv_in_relu(x0, 0, None)               # res block 1
        h2 = conv_in_relu(h1, 1, x0)
        h3 = conv_in_relu(h2, 2, None)               # res block 2
        h4 = conv_in_relu(h3, 3, h2)

        # up1: ConvTranspose(4nf -> 2nf, k3, s2) as 4 output phases
        hb = h4.astype(jnp.bfloat16)
        m_up = m_up_ref[...]                         # (4, L)
        inv_n_up = 1.0 / float(nvalid_up)
        phases = []
        s1 = None
        s2 = None
        for i, taps in enumerate(up_taps_per_phase):
            acc = jnp.zeros((cup, L), jnp.float32)
            for (t, s) in taps:
                acc = acc + jnp.dot(w_up_ref[t], _shift_lanes(hb, s),
                                    preferred_element_type=jnp.float32)
            mi = m_up[i:i + 1, :]
            ym = acc * mi
            a = jnp.sum(ym, axis=1, keepdims=True)
            b = jnp.sum(ym * acc, axis=1, keepdims=True)
            s1 = a if s1 is None else s1 + a
            s2 = b if s2 is None else s2 + b
            phases.append(acc)
        mean = s1 * inv_n_up
        var = jnp.maximum(s2 * inv_n_up - mean * mean, 0.0)
        inv_std = jax.lax.rsqrt(var + _EPS)
        for i in range(4):
            y = jnp.maximum((phases[i] - mean) * inv_std, 0.0) * m_up[i:i + 1, :]
            o_ref[i] = y.astype(o_ref.dtype)

    return kernel


def _res_up_layer(x, w_res, w_up, m_res, m_up, *, res_taps, up_taps_per_phase,
                  nvalid_res, nvalid_up):
    N, cf, L = x.shape
    cup = w_up.shape[1]
    kernel = _make_res_up_kernel(res_taps, up_taps_per_phase,
                                 nvalid_res, nvalid_up)
    cost = pl.CostEstimate(
        flops=int(2 * N * L * cf * (4 * 9 * cf + 9 * cup)),
        transcendentals=0,
        bytes_accessed=int(x.size * 2 + w_res.size * 2 + w_up.size * 2
                           + N * 4 * cup * L * 2),
    )
    return pl.pallas_call(
        kernel,
        out_shape=jax.ShapeDtypeStruct((N, 4, cup, L), jnp.bfloat16),
        grid=(N,),
        in_specs=[
            pl.BlockSpec((None, cf, L), lambda n: (n, 0, 0)),
            pl.BlockSpec(w_res.shape, lambda n: (0, 0, 0, 0)),
            pl.BlockSpec(w_up.shape, lambda n: (0, 0, 0)),
            pl.BlockSpec(m_res.shape, lambda n: (0, 0)),
            pl.BlockSpec(m_up.shape, lambda n: (0, 0)),
        ],
        out_specs=pl.BlockSpec((None, 4, cup, L), lambda n: (n, 0, 0, 0)),
        compiler_params=pltpu.CompilerParams(dimension_semantics=("parallel",)),
        cost_estimate=cost,
    )(x, w_res, w_up, m_res, m_up)


# ----------------------------------------------------------------------------
# JAX glue: phase split / interleave / padding (cheap, never 9x inflated)
# ----------------------------------------------------------------------------
def _phase_split(x):
    """(N, C, H, W) -> (N, 4, C, (H//2)*(W//2)), phase order (0,0),(0,1),(1,0),(1,1)."""
    N, C = x.shape[0], x.shape[1]
    ph = jnp.stack([x[:, :, a::2, b::2] for a in (0, 1) for b in (0, 1)], axis=1)
    return ph.reshape(N, 4, C, -1)


def _interleave(phases4, n, c, hout, wout, gh, gw):
    """(N, 4, C, Lpad) output phases on a (gh, gw) grid -> (N, C, hout, wout)."""
    out = jnp.zeros((n, c, hout, wout), phases4.dtype)
    idx = 0
    for a in (0, 1):
        for b in (0, 1):
            mh = (hout + 1 - a) // 2
            mw = (wout + 1 - b) // 2
            ph = phases4[:, idx, :, :gh * gw].reshape(n, c, gh, gw)[:, :, :mh, :mw]
            out = out.at[:, :, a::2, b::2].set(ph)
            idx += 1
    return out


def _conv_tap_stack(w):   # torch Conv2d (Cout, Cin, 3, 3) -> (9, Cout, Cin) bf16
    return jnp.transpose(w, (2, 3, 0, 1)).reshape(9, w.shape[0], w.shape[1]) \
              .astype(jnp.bfloat16)


def _convT_tap_stack(w):  # torch ConvTranspose2d (Cin, Cout, 3, 3) -> (9, Cout, Cin) bf16
    return jnp.transpose(w, (2, 3, 1, 0)).reshape(9, w.shape[1], w.shape[0]) \
              .astype(jnp.bfloat16)


# ----------------------------------------------------------------------------
# Parameters (deterministic synthetic init, torch weight layouts)
# ----------------------------------------------------------------------------
def init_params(key, nc=3, nf=8, nout=1):
    def conv_w(k, cout, cin):
        scale = 1.0 / np.sqrt(cin * 9)
        return jax.random.normal(k, (cout, cin, 3, 3), jnp.float32) * scale

    def convt_w(k, cin, cout):
        scale = 1.0 / np.sqrt(cin * 9)
        return jax.random.normal(k, (cin, cout, 3, 3), jnp.float32) * scale

    ks = jax.random.split(key, 9)
    return {
        "first": conv_w(ks[0], nf, nc),
        "down1": conv_w(ks[1], nf * 2, nf),
        "down2": conv_w(ks[2], nf * 4, nf * 2),
        "r1c1": conv_w(ks[3], nf * 4, nf * 4),
        "r1c2": conv_w(ks[4], nf * 4, nf * 4),
        "r2c1": conv_w(ks[5], nf * 4, nf * 4),
        "r2c2": conv_w(ks[6], nf * 4, nf * 4),
        "up1": convt_w(ks[7], nf * 4, nf * 2),
        "up2": convt_w(ks[8], nf * 2, nout),
    }


# ----------------------------------------------------------------------------
# GenS2M forward (NCHW in -> NCHW out, matching the PyTorch module)
# ----------------------------------------------------------------------------
def gen_s2m_forward(x_nchw, params):
    N, nc, H, W = x_nchw.shape
    assert H % 4 == 0 and W % 4 == 0, "H, W must be divisible by 4"

    nf = params["first"].shape[0]
    n_out = params["up2"].shape[1]

    # ---- static geometry -------------------------------------------------
    hp, wp = H + 2, W + 2                       # padded grid for first conv
    l1 = _lane_pad(hp * wp)
    h1v, w1v = H // 2, W // 2                   # down1 valid output
    hq1, wq1 = hp // 2, wp // 2                 # down1 phase grid
    l2 = _lane_pad(hq1 * wq1)
    h2v, w2v = H // 4, W // 4                   # down2 valid output
    hq2, wq2 = (h1v + 2) // 2, (w1v + 2) // 2   # down2 phase grid
    l3 = _lane_pad(hq2 * wq2)
    gh_r, gw_r = h2v + 2, w2v + 2               # res-block / up1 grid (zero ring)
    l4 = _lane_pad(gh_r * gw_r)
    hu1, wu1 = 2 * h2v + 1, 2 * w2v + 1         # up1 output
    l5 = _lane_pad(hu1 * wu1)
    hu2, wu2 = 2 * hu1 - 2, 2 * wu1 - 2         # up2 output (== H, W)

    # ---- masks (valid-region indicators on each compute grid) -------------
    m_first = jnp.asarray(_grid_mask(hp, wp, 1, H + 1, 1, W + 1, l1))[None]
    m_d1 = jnp.asarray(_grid_mask(hq1, wq1, 0, h1v, 0, w1v, l2))[None]
    m_d2 = jnp.asarray(_grid_mask(hq2, wq2, 0, h2v, 0, w2v, l3))[None]
    m_res = jnp.asarray(_grid_mask(gh_r, gw_r, 1, h2v + 1, 1, w2v + 1, l4))[None]
    m_up1 = jnp.asarray(np.stack([
        _grid_mask(gh_r, gw_r, 0, (hu1 + 1 - a) // 2, 0, (wu1 + 1 - b) // 2, l4)
        for a in (0, 1) for b in (0, 1)]))

    # ---- weights as per-tap stacks (bf16) ---------------------------------
    w_first = _conv_tap_stack(params["first"])
    w_d1 = _conv_tap_stack(params["down1"])
    w_d2 = _conv_tap_stack(params["down2"])
    w_res = jnp.stack([_conv_tap_stack(params[k])
                       for k in ("r1c1", "r1c2", "r2c1", "r2c2")])
    w_up1 = _convT_tap_stack(params["up1"])
    w_up2 = _convT_tap_stack(params["up2"])

    x = x_nchw.astype(jnp.float32)

    # first_block: Conv(nc->nf, s1, p1) + IN + ReLU
    xp = jnp.pad(x, ((0, 0), (0, 0), (1, 1), (1, 1))).reshape(N, 1, nc, hp * wp)
    xp = _pad_last(xp, l1).astype(jnp.bfloat16)
    y1 = _conv_layer(xp, w_first, m_first,
                     taps_per_phase=_conv_s1_taps(wp),
                     apply_norm=True, activation="relu", nvalid=H * W)

    # downsample 1: Conv(nf->2nf, s2, p1) + IN + ReLU
    a1 = y1[:, 0, :, :hp * wp].reshape(N, nf, hp, wp)
    x2 = _pad_last(_phase_split(a1), l2)
    y2 = _conv_layer(x2, w_d1, m_d1,
                     taps_per_phase=_conv_s2_taps(wq1),
                     apply_norm=True, activation="relu", nvalid=h1v * w1v)

    # downsample 2: Conv(2nf->4nf, s2, p1) + IN + ReLU
    a2 = y2[:, 0, :, :hq1 * wq1].reshape(N, 2 * nf, hq1, wq1)[:, :, :h1v, :w1v]
    a2 = jnp.pad(a2, ((0, 0), (0, 0), (1, 1), (1, 1)))
    x3 = _pad_last(_phase_split(a2), l3)
    y3 = _conv_layer(x3, w_d2, m_d2,
                     taps_per_phase=_conv_s2_taps(wq2),
                     apply_norm=True, activation="relu", nvalid=h2v * w2v)

    # residual blocks (x2) + up1 (ConvT 4nf->2nf, s2) fused in one call
    a3 = y3[:, 0, :, :hq2 * wq2].reshape(N, 4 * nf, hq2, wq2)[:, :, :h2v, :w2v]
    a3 = jnp.pad(a3, ((0, 0), (0, 0), (1, 1), (1, 1)))
    a3 = _pad_last(a3.reshape(N, 4 * nf, gh_r * gw_r), l4)
    res_taps = [(t, s) for (t, _, s) in _conv_s1_taps(gw_r)[0]]
    up1_taps = [[(t, s) for (t, _, s) in taps] for taps in _convT_taps(0, 1, gw_r)]
    y4 = _res_up_layer(a3, w_res, w_up1, m_res, m_up1,
                       res_taps=res_taps, up_taps_per_phase=up1_taps,
                       nvalid_res=h2v * w2v, nvalid_up=hu1 * wu1)

    # interleave up1 output phases -> (N, 2nf, hu1, wu1)
    u1 = _interleave(y4, N, 2 * nf, hu1, wu1, gh_r, gw_r)

    # up2: ConvT(2nf->nout, s2, p2, op1) + Tanh
    x5 = _pad_last(u1.reshape(N, 1, 2 * nf, hu1 * wu1), l5)
    y5 = _conv_layer(x5, w_up2, None,
                     taps_per_phase=_convT_taps(2, 0, wu1),
                     apply_norm=False, activation="tanh",
                     out_dtype=jnp.float32)

    return _interleave(y5, N, n_out, hu2, wu2, hu1, wu1)   # (N, nout, H, W) f32


if __name__ == "__main__":
    key = jax.random.PRNGKey(0)
    k_x, k_p = jax.random.split(key)

    N, NC, H, W = 2, 3, 16, 16
    NF, NOUT = 8, 1

    x = jax.random.normal(k_x, (N, NC, H, W), jnp.float32)
    params = init_params(k_p, nc=NC, nf=NF, nout=NOUT)

    fwd = jax.jit(gen_s2m_forward)
    out = jax.block_until_ready(fwd(x, params))

    assert out.shape == (N, NOUT, H, W), out.shape
    assert bool(jnp.all(jnp.isfinite(out)))
    assert bool(jnp.all(jnp.abs(out) <= 1.0 + 1e-6))   # tanh output range
    print("KERNEL_OK")
</pallas_src>

<mosaic_0001>
module attributes {stable_mosaic.version = 11 : i64} {
  func.func @kernel(%arg0: i32, %arg1: memref<1x1x3x384xbf16, #tpu.memory_space<vmem>>, %arg2: memref<9x8x3xbf16, #tpu.memory_space<vmem>>, %arg3: memref<1x384xf32, #tpu.memory_space<vmem>>, %arg4: memref<1x1x8x384xbf16, #tpu.memory_space<vmem>>) attributes {dimension_semantics = [#tpu.dimension_semantics<parallel>], iteration_bounds = array<i64: 2>, scalar_prefetch = 0 : i64, scratch_operands = 0 : i64, tpu.core_type = #tpu.core_type<tc>, window_params = [{transform_indices = @transform_0, window_bounds = array<i64: 1, 1, 3, 384>}, {pipeline_mode = #tpu.pipeline_mode<synchronous>, transform_indices = @transform_1, window_bounds = array<i64: 9, 8, 3>}, {pipeline_mode = #tpu.pipeline_mode<synchronous>, transform_indices = @transform_2, window_bounds = array<i64: 1, 384>}, {transform_indices = @transform_3, window_bounds = array<i64: 1, 1, 8, 384>}]} {
    %c0 = arith.constant 0 : index
    %c0_0 = arith.constant 0 : index
    %c0_1 = arith.constant 0 : index
    %c0_2 = arith.constant 0 : index
    %0 = vector.load %arg1[%c0, %c0_0, %c0_1, %c0_2] : memref<1x1x3x384xbf16, #tpu.memory_space<vmem>>, vector<1x1x3x384xbf16>
    %1 = vector.shape_cast %0 : vector<1x1x3x384xbf16> to vector<3x384xbf16>
    %cst = arith.constant 0.000000e+00 : f32
    %2 = vector.broadcast %cst : f32 to vector<8x384xf32>
    %c0_3 = arith.constant 0 : index
    %c0_4 = arith.constant 0 : index
    %c0_5 = arith.constant 0 : index
    %3 = vector.load %arg2[%c0_3, %c0_4, %c0_5] : memref<9x8x3xbf16, #tpu.memory_space<vmem>>, vector<1x8x3xbf16>
    %4 = vector.shape_cast %3 : vector<1x8x3xbf16> to vector<8x3xbf16>
    %5 = vector.extract_strided_slice %1 {offsets = [0, 365], sizes = [3, 19], strides = [1, 1]} : vector<3x384xbf16> to vector<3x19xbf16>
    %6 = vector.extract_strided_slice %1 {offsets = [0, 0], sizes = [3, 365], strides = [1, 1]} : vector<3x384xbf16> to vector<3x365xbf16>
    %7 = tpu.concatenate %5, %6 in 1 : vector<3x19xbf16>, vector<3x365xbf16> -> vector<3x384xbf16>
    %cst_6 = arith.constant dense<0.000000e+00> : vector<8x384xf32>
    %8 = tpu.matmul %4, %7, %cst_6 {dimension_numbers = #tpu.dot_dimension_numbers<[1], [0], [0], [1], [0, 0, 1, 1], [], []>} : vector<8x3xbf16>, vector<3x384xbf16>, vector<8x384xf32> -> vector<8x384xf32>
    %9 = arith.addf %2, %8 : vector<8x384xf32>
    %c1 = arith.constant 1 : index
    %c0_7 = arith.constant 0 : index
    %c0_8 = arith.constant 0 : index
    %10 = vector.load %arg2[%c1, %c0_7, %c0_8] : memref<9x8x3xbf16, #tpu.memory_space<vmem>>, vector<1x8x3xbf16>
    %11 = vector.shape_cast %10 : vector<1x8x3xbf16> to vector<8x3xbf16>
    %12 = vector.extract_strided_slice %1 {offsets = [0, 366], sizes = [3, 18], strides = [1, 1]} : vector<3x384xbf16> to vector<3x18xbf16>
    %13 = vector.extract_strided_slice %1 {offsets = [0, 0], sizes = [3, 366], strides = [1, 1]} : vector<3x384xbf16> to vector<3x366xbf16>
    %14 = tpu.concatenate %12, %13 in 1 : vector<3x18xbf16>, vector<3x366xbf16> -> vector<3x384xbf16>
    %cst_9 = arith.constant dense<0.000000e+00> : vector<8x384xf32>
    %15 = tpu.matmul %11, %14, %cst_9 {dimension_numbers = #tpu.dot_dimension_numbers<[1], [0], [0], [1], [0, 0, 1, 1], [], []>} : vector<8x3xbf16>, vector<3x384xbf16>, vector<8x384xf32> -> vector<8x384xf32>
    %16 = arith.addf %9, %15 : vector<8x384xf32>
    %c2 = arith.constant 2 : index
    %c0_10 = arith.constant 0 : index
    %c0_11 = arith.constant 0 : index
    %17 = vector.load %arg2[%c2, %c0_10, %c0_11] : memref<9x8x3xbf16, #tpu.memory_space<vmem>>, vector<1x8x3xbf16>
    %18 = vector.shape_cast %17 : vector<1x8x3xbf16> to vector<8x3xbf16>
    %19 = vector.extract_strided_slice %1 {offsets = [0, 367], sizes = [3, 17], strides = [1, 1]} : vector<3x384xbf16> to vector<3x17xbf16>
    %20 = vector.extract_strided_slice %1 {offsets = [0, 0], sizes = [3, 367], strides = [1, 1]} : vector<3x384xbf16> to vector<3x367xbf16>
    %21 = tpu.concatenate %19, %20 in 1 : vector<3x17xbf16>, vector<3x367xbf16> -> vector<3x384xbf16>
    %cst_12 = arith.constant dense<0.000000e+00> : vector<8x384xf32>
    %22 = tpu.matmul %18, %21, %cst_12 {dimension_numbers = #tpu.dot_dimension_numbers<[1], [0], [0], [1], [0, 0, 1, 1], [], []>} : vector<8x3xbf16>, vector<3x384xbf16>, vector<8x384xf32> -> vector<8x384xf32>
    %23 = arith.addf %16, %22 : vector<8x384xf32>
    %c3 = arith.constant 3 : index
    %c0_13 = arith.constant 0 : index
    %c0_14 = arith.constant 0 : index
    %24 = vector.load %arg2[%c3, %c0_13, %c0_14] : memref<9x8x3xbf16, #tpu.memory_space<vmem>>, vector<1x8x3xbf16>
    %25 = vector.shape_cast %24 : vector<1x8x3xbf16> to vector<8x3xbf16>
    %26 = vector.extract_strided_slice %1 {offsets = [0, 383], sizes = [3, 1], strides = [1, 1]} : vector<3x384xbf16> to vector<3x1xbf16>
    %27 = vector.extract_strided_slice %1 {offsets = [0, 0], sizes = [3, 383], strides = [1, 1]} : vector<3x384xbf16> to vector<3x383xbf16>
    %28 = tpu.concatenate %26, %27 in 1 : vector<3x1xbf16>, vector<3x383xbf16> -> vector<3x384xbf16>
    %cst_15 = arith.constant dense<0.000000e+00> : vector<8x384xf32>
    %29 = tpu.matmul %25, %28, %cst_15 {dimension_numbers = #tpu.dot_dimension_numbers<[1], [0], [0], [1], [0, 0, 1, 1], [], []>} : vector<8x3xbf16>, vector<3x384xbf16>, vector<8x384xf32> -> vector<8x384xf32>
    %30 = arith.addf %23, %29 : vector<8x384xf32>
    %c4 = arith.constant 4 : index
    %c0_16 = arith.constant 0 : index
    %c0_17 = arith.constant 0 : index
    %31 = vector.load %arg2[%c4, %c0_16, %c0_17] : memref<9x8x3xbf16, #tpu.memory_space<vmem>>, vector<1x8x3xbf16>
    %32 = vector.shape_cast %31 : vector<1x8x3xbf16> to vector<8x3xbf16>
    %cst_18 = arith.constant dense<0.000000e+00> : vector<8x384xf32>
    %33 = tpu.matmul %32, %1, %cst_18 {dimension_numbers = #tpu.dot_dimension_numbers<[1], [0], [0], [1], [0, 0, 1, 1], [], []>} : vector<8x3xbf16>, vector<3x384xbf16>, vector<8x384xf32> -> vector<8x384xf32>
    %34 = arith.addf %30, %33 : vector<8x384xf32>
    %c5 = arith.constant 5 : index
    %c0_19 = arith.constant 0 : index
    %c0_20 = arith.constant 0 : index
    %35 = vector.load %arg2[%c5, %c0_19, %c0_20] : memref<9x8x3xbf16, #tpu.memory_space<vmem>>, vector<1x8x3xbf16>
    %36 = vector.shape_cast %35 : vector<1x8x3xbf16> to vector<8x3xbf16>
    %37 = vector.extract_strided_slice %1 {offsets = [0, 1], sizes = [3, 383], strides = [1, 1]} : vector<3x384xbf16> to vector<3x383xbf16>
    %38 = vector.extract_strided_slice %1 {offsets = [0, 0], sizes = [3, 1], strides = [1, 1]} : vector<3x384xbf16> to vector<3x1xbf16>
    %39 = tpu.concatenate %37, %38 in 1 : vector<3x383xbf16>, vector<3x1xbf16> -> vector<3x384xbf16>
    %cst_21 = arith.constant dense<0.000000e+00> : vector<8x384xf32>
    %40 = tpu.matmul %36, %39, %cst_21 {dimension_numbers = #tpu.dot_dimension_numbers<[1], [0], [0], [1], [0, 0, 1, 1], [], []>} : vector<8x3xbf16>, vector<3x384xbf16>, vector<8x384xf32> -> vector<8x384xf32>
    %41 = arith.addf %34, %40 : vector<8x384xf32>
    %c6 = arith.constant 6 : index
    %c0_22 = arith.constant 0 : index
    %c0_23 = arith.constant 0 : index
    %42 = vector.load %arg2[%c6, %c0_22, %c0_23] : memref<9x8x3xbf16, #tpu.memory_space<vmem>>, vector<1x8x3xbf16>
    %43 = vector.shape_cast %42 : vector<1x8x3xbf16> to vector<8x3xbf16>
    %44 = vector.extract_strided_slice %1 {offsets = [0, 17], sizes = [3, 367], strides = [1, 1]} : vector<3x384xbf16> to vector<3x367xbf16>
    %45 = vector.extract_strided_slice %1 {offsets = [0, 0], sizes = [3, 17], strides = [1, 1]} : vector<3x384xbf16> to vector<3x17xbf16>
    %46 = tpu.concatenate %44, %45 in 1 : vector<3x367xbf16>, vector<3x17xbf16> -> vector<3x384xbf16>
    %cst_24 = arith.constant dense<0.000000e+00> : vector<8x384xf32>
    %47 = tpu.matmul %43, %46, %cst_24 {dimension_numbers = #tpu.dot_dimension_numbers<[1], [0], [0], [1], [0, 0, 1, 1], [], []>} : vector<8x3xbf16>, vector<3x384xbf16>, vector<8x384xf32> -> vector<8x384xf32>
    %48 = arith.addf %41, %47 : vector<8x384xf32>
    %c7 = arith.constant 7 : index
    %c0_25 = arith.constant 0 : index
    %c0_26 = arith.constant 0 : index
    %49 = vector.load %arg2[%c7, %c0_25, %c0_26] : memref<9x8x3xbf16, #tpu.memory_space<vmem>>, vector<1x8x3xbf16>
    %50 = vector.shape_cast %49 : vector<1x8x3xbf16> to vector<8x3xbf16>
    %51 = vector.extract_strided_slice %1 {offsets = [0, 18], sizes = [3, 366], strides = [1, 1]} : vector<3x384xbf16> to vector<3x366xbf16>
    %52 = vector.extract_strided_slice %1 {offsets = [0, 0], sizes = [3, 18], strides = [1, 1]} : vector<3x384xbf16> to vector<3x18xbf16>
    %53 = tpu.concatenate %51, %52 in 1 : vector<3x366xbf16>, vector<3x18xbf16> -> vector<3x384xbf16>
    %cst_27 = arith.constant dense<0.000000e+00> : vector<8x384xf32>
    %54 = tpu.matmul %50, %53, %cst_27 {dimension_numbers = #tpu.dot_dimension_numbers<[1], [0], [0], [1], [0, 0, 1, 1], [], []>} : vector<8x3xbf16>, vector<3x384xbf16>, vector<8x384xf32> -> vector<8x384xf32>
    %55 = arith.addf %48, %54 : vector<8x384xf32>
    %c8 = arith.constant 8 : index
    %c0_28 = arith.constant 0 : index
    %c0_29 = arith.constant 0 : index
    %56 = vector.load %arg2[%c8, %c0_28, %c0_29] : memref<9x8x3xbf16, #tpu.memory_space<vmem>>, vector<1x8x3xbf16>
    %57 = vector.shape_cast %56 : vector<1x8x3xbf16> to vector<8x3xbf16>
    %58 = vector.extract_strided_slice %1 {offsets = [0, 19], sizes = [3, 365], strides = [1, 1]} : vector<3x384xbf16> to vector<3x365xbf16>
    %59 = vector.extract_strided_slice %1 {offsets = [0, 0], sizes = [3, 19], strides = [1, 1]} : vector<3x384xbf16> to vector<3x19xbf16>
    %60 = tpu.concatenate %58, %59 in 1 : vector<3x365xbf16>, vector<3x19xbf16> -> vector<3x384xbf16>
    %cst_30 = arith.constant dense<0.000000e+00> : vector<8x384xf32>
    %61 = tpu.matmul %57, %60, %cst_30 {dimension_numbers = #tpu.dot_dimension_numbers<[1], [0], [0], [1], [0, 0, 1, 1], [], []>} : vector<8x3xbf16>, vector<3x384xbf16>, vector<8x384xf32> -> vector<8x384xf32>
    %62 = arith.addf %55, %61 : vector<8x384xf32>
    %c0_31 = arith.constant 0 : index
    %c0_32 = arith.constant 0 : index
    %63 = vector.load %arg3[%c0_31, %c0_32] : memref<1x384xf32, #tpu.memory_space<vmem>>, vector<1x384xf32>
    %64 = vector.broadcast %63 : vector<1x384xf32> to vector<8x384xf32>
    %65 = arith.mulf %62, %64 : vector<8x384xf32>
    %cst_33 = arith.constant dense<0.000000e+00> : vector<8xf32>
    %66 = vector.multi_reduction <add>, %65, %cst_33 [1] : vector<8x384xf32> to vector<8xf32>
    %67 = vector.shape_cast %66 : vector<8xf32> to vector<8x1xf32>
    %68 = arith.mulf %65, %62 : vector<8x384xf32>
    %cst_34 = arith.constant dense<0.000000e+00> : vector<8xf32>
    %69 = vector.multi_reduction <add>, %68, %cst_34 [1] : vector<8x384xf32> to vector<8xf32>
    %70 = vector.shape_cast %69 : vector<8xf32> to vector<8x1xf32>
    %cst_35 = arith.constant 3.906250e-03 : f32
    %71 = vector.broadcast %cst_35 : f32 to vector<8x1xf32>
    %72 = arith.mulf %67, %71 : vector<8x1xf32>
    %cst_36 = arith.constant 3.906250e-03 : f32
    %73 = vector.broadcast %cst_36 : f32 to vector<8x1xf32>
    %74 = arith.mulf %70, %73 : vector<8x1xf32>
    %75 = arith.mulf %72, %72 : vector<8x1xf32>
    %76 = arith.subf %74, %75 : vector<8x1xf32>
    %cst_37 = arith.constant 0.000000e+00 : f32
    %77 = vector.broadcast %cst_37 : f32 to vector<8x1xf32>
    %78 = arith.maximumf %76, %77 : vector<8x1xf32>
    %cst_38 = arith.constant 9.99999974E-6 : f32
    %79 = vector.broadcast %cst_38 : f32 to vector<8x1xf32>
    %80 = arith.addf %78, %79 : vector<8x1xf32>
    %81 = math.rsqrt %80 : vector<8x1xf32>
    %82 = vector.broadcast %72 : vector<8x1xf32> to vector<8x384xf32>
    %83 = arith.subf %62, %82 : vector<8x384xf32>
    %84 = vector.broadcast %81 : vector<8x1xf32> to vector<8x384xf32>
    %85 = arith.mulf %83, %84 : vector<8x384xf32>
    %cst_39 = arith.constant 0.000000e+00 : f32
    %86 = vector.broadcast %cst_39 : f32 to vector<8x384xf32>
    %87 = arith.maximumf %85, %86 : vector<8x384xf32>
    %88 = vector.broadcast %63 : vector<1x384xf32> to vector<8x384xf32>
    %89 = arith.mulf %87, %88 : vector<8x384xf32>
    %90 = arith.truncf %89 : vector<8x384xf32> to vector<8x384xbf16>
    %c0_40 = arith.constant 0 : index
    %c0_41 = arith.constant 0 : index
    %c0_42 = arith.constant 0 : index
    %c0_43 = arith.constant 0 : index
    %91 = vector.load %arg4[%c0_40, %c0_41, %c0_42, %c0_43] : memref<1x1x8x384xbf16, #tpu.memory_space<vmem>>, vector<1x1x8x384xbf16>
    %92 = vector.shape_cast %91 : vector<1x1x8x384xbf16> to vector<8x384xbf16>
    %93 = vector.shape_cast %90 : vector<8x384xbf16> to vector<1x1x8x384xbf16>
    tpu.vector_store %arg4[%c0_40, %c0_41, %c0_42, %c0_43], %93 {strides = array<i32>} : memref<1x1x8x384xbf16, #tpu.memory_space<vmem>>, vector<1x1x8x384xbf16>,
    return
  }
  func.func @transform_0(%arg0: i32) -> (i32, i32, i32, i32) {
    %c0_i32 = arith.constant 0 : i32
    %c0_i32_0 = arith.constant 0 : i32
    %c0_i32_1 = arith.constant 0 : i32
    %c0_i32_2 = arith.constant 0 : i32
    return %arg0, %c0_i32, %c0_i32_0, %c0_i32_1 : i32, i32, i32, i32
  }
  func.func @transform_1(%arg0: i32) -> (i32, i32, i32) {
    %c0_i32 = arith.constant 0 : i32
    %c0_i32_0 = arith.constant 0 : i32
    %c0_i32_1 = arith.constant 0 : i32
    %c0_i32_2 = arith.constant 0 : i32
    return %c0_i32, %c0_i32_0, %c0_i32_1 : i32, i32, i32
  }
  func.func @transform_2(%arg0: i32) -> (i32, i32) {
    %c0_i32 = arith.constant 0 : i32
    %c0_i32_0 = arith.constant 0 : i32
    %c0_i32_1 = arith.constant 0 : i32
    return %c0_i32, %c0_i32_0 : i32, i32
  }
  func.func @transform_3(%arg0: i32) -> (i32, i32, i32, i32) {
    %c0_i32 = arith.constant 0 : i32
    %c0_i32_0 = arith.constant 0 : i32
    %c0_i32_1 = arith.constant 0 : i32
    %c0_i32_2 = arith.constant 0 : i32
    return %arg0, %c0_i32, %c0_i32_0, %c0_i32_1 : i32, i32, i32, i32
  }
}

module attributes {stable_mosaic.version = 11 : i64} {
  func.func @kernel(%arg0: i32, %arg1: memref<1x4x8x128xbf16, #tpu.memory_space<vmem>>, %arg2: memref<9x16x8xbf16, #tpu.memory_space<vmem>>, %arg3: memref<1x128xf32, #tpu.memory_space<vmem>>, %arg4: memref<1x1x16x128xbf16, #tpu.memory_space<vmem>>) attributes {dimension_semantics = [#tpu.dimension_semantics<parallel>], iteration_bounds = array<i64: 2>, scalar_prefetch = 0 : i64, scratch_operands = 0 : i64, tpu.core_type = #tpu.core_type<tc>, window_params = [{transform_indices = @transform_0, window_bounds = array<i64: 1, 4, 8, 128>}, {pipeline_mode = #tpu.pipeline_mode<synchronous>, transform_indices = @transform_1, window_bounds = array<i64: 9, 16, 8>}, {pipeline_mode = #tpu.pipeline_mode<synchronous>, transform_indices = @transform_2, window_bounds = array<i64: 1, 128>}, {transform_indices = @transform_3, window_bounds = array<i64: 1, 1, 16, 128>}]} {
    %c0 = arith.constant 0 : index
    %c0_0 = arith.constant 0 : index
    %c0_1 = arith.constant 0 : index
    %c0_2 = arith.constant 0 : index
    %0 = vector.load %arg1[%c0, %c0_0, %c0_1, %c0_2] : memref<1x4x8x128xbf16, #tpu.memory_space<vmem>>, vector<1x1x8x128xbf16>
    %1 = vector.shape_cast %0 : vector<1x1x8x128xbf16> to vector<8x128xbf16>
    %c0_3 = arith.constant 0 : index
    %c1 = arith.constant 1 : index
    %c0_4 = arith.constant 0 : index
    %c0_5 = arith.constant 0 : index
    %2 = vector.load %arg1[%c0_3, %c1, %c0_4, %c0_5] : memref<1x4x8x128xbf16, #tpu.memory_space<vmem>>, vector<1x1x8x128xbf16>
    %3 = vector.shape_cast %2 : vector<1x1x8x128xbf16> to vector<8x128xbf16>
    %c0_6 = arith.constant 0 : index
    %c2 = arith.constant 2 : index
    %c0_7 = arith.constant 0 : index
    %c0_8 = arith.constant 0 : index
    %4 = vector.load %arg1[%c0_6, %c2, %c0_7, %c0_8] : memref<1x4x8x128xbf16, #tpu.memory_space<vmem>>, vector<1x1x8x128xbf16>
    %5 = vector.shape_cast %4 : vector<1x1x8x128xbf16> to vector<8x128xbf16>
    %c0_9 = arith.constant 0 : index
    %c3 = arith.constant 3 : index
    %c0_10 = arith.constant 0 : index
    %c0_11 = arith.constant 0 : index
    %6 = vector.load %arg1[%c0_9, %c3, %c0_10, %c0_11] : memref<1x4x8x128xbf16, #tpu.memory_space<vmem>>, vector<1x1x8x128xbf16>
    %7 = vector.shape_cast %6 : vector<1x1x8x128xbf16> to vector<8x128xbf16>
    %cst = arith.constant 0.000000e+00 : f32
    %8 = vector.broadcast %cst : f32 to vector<16x128xf32>
    %c0_12 = arith.constant 0 : index
    %c0_13 = arith.constant 0 : index
    %c0_14 = arith.constant 0 : index
    %9 = vector.load %arg2[%c0_12, %c0_13, %c0_14] : memref<9x16x8xbf16, #tpu.memory_space<vmem>>, vector<1x16x8xbf16>
    %10 = vector.shape_cast %9 : vector<1x16x8xbf16> to vector<16x8xbf16>
    %cst_15 = arith.constant dense<0.000000e+00> : vector<16x128xf32>
    %11 = tpu.matmul %10, %1, %cst_15 {dimension_numbers = #tpu.dot_dimension_numbers<[1], [0], [0], [1], [0, 0, 1, 1], [], []>} : vector<16x8xbf16>, vector<8x128xbf16>, vector<16x128xf32> -> vector<16x128xf32>
    %12 = arith.addf %8, %11 : vector<16x128xf32>
    %c1_16 = arith.constant 1 : index
    %c0_17 = arith.constant 0 : index
    %c0_18 = arith.constant 0 : index
    %13 = vector.load %arg2[%c1_16, %c0_17, %c0_18] : memref<9x16x8xbf16, #tpu.memory_space<vmem>>, vector<1x16x8xbf16>
    %14 = vector.shape_cast %13 : vector<1x16x8xbf16> to vector<16x8xbf16>
    %cst_19 = arith.constant dense<0.000000e+00> : vector<16x128xf32>
    %15 = tpu.matmul %14, %3, %cst_19 {dimension_numbers = #tpu.dot_dimension_numbers<[1], [0], [0], [1], [0, 0, 1, 1], [], []>} : vector<16x8xbf16>, vector<8x128xbf16>, vector<16x128xf32> -> vector<16x128xf32>
    %16 = arith.addf %12, %15 : vector<16x128xf32>
    %c2_20 = arith.constant 2 : index
    %c0_21 = arith.constant 0 : index
    %c0_22 = arith.constant 0 : index
    %17 = vector.load %arg2[%c2_20, %c0_21, %c0_22] : memref<9x16x8xbf16, #tpu.memory_space<vmem>>, vector<1x16x8xbf16>
    %18 = vector.shape_cast %17 : vector<1x16x8xbf16> to vector<16x8xbf16>
    %19 = vector.extract_strided_slice %1 {offsets = [0, 1], sizes = [8, 127], strides = [1, 1]} : vector<8x128xbf16> to vector<8x127xbf16>
    %20 = vector.extract_strided_slice %1 {offsets = [0, 0], sizes = [8, 1], strides = [1, 1]} : vector<8x128xbf16> to vector<8x1xbf16>
    %21 = tpu.concatenate %19, %20 in 1 : vector<8x127xbf16>, vector<8x1xbf16> -> vector<8x128xbf16>
    %cst_23 = arith.constant dense<0.000000e+00> : vector<16x128xf32>
    %22 = tpu.matmul %18, %21, %cst_23 {dimension_numbers = #tpu.dot_dimension_numbers<[1], [0], [0], [1], [0, 0, 1, 1], [], []>} : vector<16x8xbf16>, vector<8x128xbf16>, vector<16x128xf32> -> vector<16x128xf32>
    %23 = arith.addf %16, %22 : vector<16x128xf32>
    %c3_24 = arith.constant 3 : index
    %c0_25 = arith.constant 0 : index
    %c0_26 = arith.constant 0 : index
    %24 = vector.load %arg2[%c3_24, %c0_25, %c0_26] : memref<9x16x8xbf16, #tpu.memory_space<vmem>>, vector<1x16x8xbf16>
    %25 = vector.shape_cast %24 : vector<1x16x8xbf16> to vector<16x8xbf16>
    %cst_27 = arith.constant dense<0.000000e+00> : vector<16x128xf32>
    %26 = tpu.matmul %25, %5, %cst_27 {dimension_numbers = #tpu.dot_dimension_numbers<[1], [0], [0], [1], [0, 0, 1, 1], [], []>} : vector<16x8xbf16>, vector<8x128xbf16>, vector<16x128xf32> -> vector<16x128xf32>
    %27 = arith.addf %23, %26 : vector<16x128xf32>
    %c4 = arith.constant 4 : index
    %c0_28 = arith.constant 0 : index
    %c0_29 = arith.constant 0 : index
    %28 = vector.load %arg2[%c4, %c0_28, %c0_29] : memref<9x16x8xbf16, #tpu.memory_space<vmem>>, vector<1x16x8xbf16>
    %29 = vector.shape_cast %28 : vector<1x16x8xbf16> to vector<16x8xbf16>
    %cst_30 = arith.constant dense<0.000000e+00> : vector<16x128xf32>
    %30 = tpu.matmul %29, %7, %cst_30 {dimension_numbers = #tpu.dot_dimension_numbers<[1], [0], [0], [1], [0, 0, 1, 1], [], []>} : vector<16x8xbf16>, vector<8x128xbf16>, vector<16x128xf32> -> vector<16x128xf32>
    %31 = arith.addf %27, %30 : vector<16x128xf32>
    %c5 = arith.constant 5 : index
    %c0_31 = arith.constant 0 : index
    %c0_32 = arith.constant 0 : index
    %32 = vector.load %arg2[%c5, %c0_31, %c0_32] : memref<9x16x8xbf16, #tpu.memory_space<vmem>>, vector<1x16x8xbf16>
    %33 = vector.shape_cast %32 : vector<1x16x8xbf16> to vector<16x8xbf16>
    %34 = vector.extract_strided_slice %5 {offsets = [0, 1], sizes = [8, 127], strides = [1, 1]} : vector<8x128xbf16> to vector<8x127xbf16>
    %35 = vector.extract_strided_slice %5 {offsets = [0, 0], sizes = [8, 1], strides = [1, 1]} : vector<8x128xbf16> to vector<8x1xbf16>
    %36 = tpu.concatenate %34, %35 in 1 : vector<8x127xbf16>, vector<8x1xbf16> -> vector<8x128xbf16>
    %cst_33 = arith.constant dense<0.000000e+00> : vector<16x128xf32>
    %37 = tpu.matmul %33, %36, %cst_33 {dimension_numbers = #tpu.dot_dimension_numbers<[1], [0], [0], [1], [0, 0, 1, 1], [], []>} : vector<16x8xbf16>, vector<8x128xbf16>, vector<16x128xf32> -> vector<16x128xf32>
    %38 = arith.addf %31, %37 : vector<16x128xf32>
    %c6 = arith.constant 6 : index
    %c0_34 = arith.constant 0 : index
    %c0_35 = arith.constant 0 : index
    %39 = vector.load %arg2[%c6, %c0_34, %c0_35] : memref<9x16x8xbf16, #tpu.memory_space<vmem>>, vector<1x16x8xbf16>
    %40 = vector.shape_cast %39 : vector<1x16x8xbf16> to vector<16x8xbf16>
    %41 = vector.extract_strided_slice %1 {offsets = [0, 9], sizes = [8, 119], strides = [1, 1]} : vector<8x128xbf16> to vector<8x119xbf16>
    %42 = vector.extract_strided_slice %1 {offsets = [0, 0], sizes = [8, 9], strides = [1, 1]} : vector<8x128xbf16> to vector<8x9xbf16>
    %43 = tpu.concatenate %41, %42 in 1 : vector<8x119xbf16>, vector<8x9xbf16> -> vector<8x128xbf16>
    %cst_36 = arith.constant dense<0.000000e+00> : vector<16x128xf32>
    %44 = tpu.matmul %40, %43, %cst_36 {dimension_numbers = #tpu.dot_dimension_numbers<[1], [0], [0], [1], [0, 0, 1, 1], [], []>} : vector<16x8xbf16>, vector<8x128xbf16>, vector<16x128xf32> -> vector<16x128xf32>
    %45 = arith.addf %38, %44 : vector<16x128xf32>
    %c7 = arith.constant 7 : index
    %c0_37 = arith.constant 0 : index
    %c0_38 = arith.constant 0 : index
    %46 = vector.load %arg2[%c7, %c0_37, %c0_38] : memref<9x16x8xbf16, #tpu.memory_space<vmem>>, vector<1x16x8xbf16>
    %47 = vector.shape_cast %46 : vector<1x16x8xbf16> to vector<16x8xbf16>
    %48 = vector.extract_strided_slice %3 {offsets = [0, 9], sizes = [8, 119], strides = [1, 1]} : vector<8x128xbf16> to vector<8x119xbf16>
    %49 = vector.extract_strided_slice %3 {offsets = [0, 0], sizes = [8, 9], strides = [1, 1]} : vector<8x128xbf16> to vector<8x9xbf16>
    %50 = tpu.concatenate %48, %49 in 1 : vector<8x119xbf16>, vector<8x9xbf16> -> vector<8x128xbf16>
    %cst_39 = arith.constant dense<0.000000e+00> : vector<16x128xf32>
    %51 = tpu.matmul %47, %50, %cst_39 {dimension_numbers = #tpu.dot_dimension_numbers<[1], [0], [0], [1], [0, 0, 1, 1], [], []>} : vector<16x8xbf16>, vector<8x128xbf16>, vector<16x128xf32> -> vector<16x128xf32>
    %52 = arith.addf %45, %51 : vector<16x128xf32>
    %c8 = arith.constant 8 : index
    %c0_40 = arith.constant 0 : index
    %c0_41 = arith.constant 0 : index
    %53 = vector.load %arg2[%c8, %c0_40, %c0_41] : memref<9x16x8xbf16, #tpu.memory_space<vmem>>, vector<1x16x8xbf16>
    %54 = vector.shape_cast %53 : vector<1x16x8xbf16> to vector<16x8xbf16>
    %55 = vector.extract_strided_slice %1 {offsets = [0, 10], sizes = [8, 118], strides = [1, 1]} : vector<8x128xbf16> to vector<8x118xbf16>
    %56 = vector.extract_strided_slice %1 {offsets = [0, 0], sizes = [8, 10], strides = [1, 1]} : vector<8x128xbf16> to vector<8x10xbf16>
    %57 = tpu.concatenate %55, %56 in 1 : vector<8x118xbf16>, vector<8x10xbf16> -> vector<8x128xbf16>
    %cst_42 = arith.constant dense<0.000000e+00> : vector<16x128xf32>
    %58 = tpu.matmul %54, %57, %cst_42 {dimension_numbers = #tpu.dot_dimension_numbers<[1], [0], [0], [1], [0, 0, 1, 1], [], []>} : vector<16x8xbf16>, vector<8x128xbf16>, vector<16x128xf32> -> vector<16x128xf32>
    %59 = arith.addf %52, %58 : vector<16x128xf32>
    %c0_43 = arith.constant 0 : index
    %c0_44 = arith.constant 0 : index
    %60 = vector.load %arg3[%c0_43, %c0_44] : memref<1x128xf32, #tpu.memory_space<vmem>>, vector<1x128xf32>
    %61 = vector.broadcast %60 : vector<1x128xf32> to vector<16x128xf32>
    %62 = arith.mulf %59, %61 : vector<16x128xf32>
    %cst_45 = arith.constant dense<0.000000e+00> : vector<16xf32>
    %63 = vector.multi_reduction <add>, %62, %cst_45 [1] : vector<16x128xf32> to vector<16xf32>
    %64 = vector.shape_cast %63 : vector<16xf32> to vector<16x1xf32>
    %65 = arith.mulf %62, %59 : vector<16x128xf32>
    %cst_46 = arith.constant dense<0.000000e+00> : vector<16xf32>
    %66 = vector.multi_reduction <add>, %65, %cst_46 [1] : vector<16x128xf32> to vector<16xf32>
    %67 = vector.shape_cast %66 : vector<16xf32> to vector<16x1xf32>
    %cst_47 = arith.constant 1.562500e-02 : f32
    %68 = vector.broadcast %cst_47 : f32 to vector<16x1xf32>
    %69 = arith.mulf %64, %68 : vector<16x1xf32>
    %cst_48 = arith.constant 1.562500e-02 : f32
    %70 = vector.broadcast %cst_48 : f32 to vector<16x1xf32>
    %71 = arith.mulf %67, %70 : vector<16x1xf32>
    %72 = arith.mulf %69, %69 : vector<16x1xf32>
    %73 = arith.subf %71, %72 : vector<16x1xf32>
    %cst_49 = arith.constant 0.000000e+00 : f32
    %74 = vector.broadcast %cst_49 : f32 to vector<16x1xf32>
    %75 = arith.maximumf %73, %74 : vector<16x1xf32>
    %cst_50 = arith.constant 9.99999974E-6 : f32
    %76 = vector.broadcast %cst_50 : f32 to vector<16x1xf32>
    %77 = arith.addf %75, %76 : vector<16x1xf32>
    %78 = math.rsqrt %77 : vector<16x1xf32>
    %79 = vector.broadcast %69 : vector<16x1xf32> to vector<16x128xf32>
    %80 = arith.subf %59, %79 : vector<16x128xf32>
    %81 = vector.broadcast %78 : vector<16x1xf32> to vector<16x128xf32>
    %82 = arith.mulf %80, %81 : vector<16x128xf32>
    %cst_51 = arith.constant 0.000000e+00 : f32
    %83 = vector.broadcast %cst_51 : f32 to vector<16x128xf32>
    %84 = arith.maximumf %82, %83 : vector<16x128xf32>
    %85 = vector.broadcast %60 : vector<1x128xf32> to vector<16x128xf32>
    %86 = arith.mulf %84, %85 : vector<16x128xf32>
    %87 = arith.truncf %86 : vector<16x128xf32> to vector<16x128xbf16>
    %c0_52 = arith.constant 0 : index
    %c0_53 = arith.constant 0 : index
    %c0_54 = arith.constant 0 : index
    %c0_55 = arith.constant 0 : index
    %88 = vector.load %arg4[%c0_52, %c0_53, %c0_54, %c0_55] : memref<1x1x16x128xbf16, #tpu.memory_space<vmem>>, vector<1x1x16x128xbf16>
    %89 = vector.shape_cast %88 : vector<1x1x16x128xbf16> to vector<16x128xbf16>
    %90 = vector.shape_cast %87 : vector<16x128xbf16> to vector<1x1x16x128xbf16>
    tpu.vector_store %arg4[%c0_52, %c0_53, %c0_54, %c0_55], %90 {strides = array<i32>} : memref<1x1x16x128xbf16, #tpu.memory_space<vmem>>, vector<1x1x16x128xbf16>,
    return
  }
  func.func @transform_0(%arg0: i32) -> (i32, i32, i32, i32) {
    %c0_i32 = arith.constant 0 : i32
    %c0_i32_0 = arith.constant 0 : i32
    %c0_i32_1 = arith.constant 0 : i32
    %c0_i32_2 = arith.constant 0 : i32
    return %arg0, %c0_i32, %c0_i32_0, %c0_i32_1 : i32, i32, i32, i32
  }
  func.func @transform_1(%arg0: i32) -> (i32, i32, i32) {
    %c0_i32 = arith.constant 0 : i32
    %c0_i32_0 = arith.constant 0 : i32
    %c0_i32_1 = arith.constant 0 : i32
    %c0_i32_2 = arith.constant 0 : i32
    return %c0_i32, %c0_i32_0, %c0_i32_1 : i32, i32, i32
  }
  func.func @transform_2(%arg0: i32) -> (i32, i32) {
    %c0_i32 = arith.constant 0 : i32
    %c0_i32_0 = arith.constant 0 : i32
    %c0_i32_1 = arith.constant 0 : i32
    return %c0_i32, %c0_i32_0 : i32, i32
  }
  func.func @transform_3(%arg0: i32) -> (i32, i32, i32, i32) {
    %c0_i32 = arith.constant 0 : i32
    %c0_i32_0 = arith.constant 0 : i32
    %c0_i32_1 = arith.constant 0 : i32
    %c0_i32_2 = arith.constant 0 : i32
    return %arg0, %c0_i32, %c0_i32_0, %c0_i32_1 : i32, i32, i32, i32
  }
}

module attributes {stable_mosaic.version = 11 : i64} {
  func.func @kernel(%arg0: i32, %arg1: memref<1x4x16x128xbf16, #tpu.memory_space<vmem>>, %arg2: memref<9x32x16xbf16, #tpu.memory_space<vmem>>, %arg3: memref<1x128xf32, #tpu.memory_space<vmem>>, %arg4: memref<1x1x32x128xbf16, #tpu.memory_space<vmem>>) attributes {dimension_semantics = [#tpu.dimension_semantics<parallel>], iteration_bounds = array<i64: 2>, scalar_prefetch = 0 : i64, scratch_operands = 0 : i64, tpu.core_type = #tpu.core_type<tc>, window_params = [{transform_indices = @transform_0, window_bounds = array<i64: 1, 4, 16, 128>}, {pipeline_mode = #tpu.pipeline_mode<synchronous>, transform_indices = @transform_1, window_bounds = array<i64: 9, 32, 16>}, {pipeline_mode = #tpu.pipeline_mode<synchronous>, transform_indices = @transform_2, window_bounds = array<i64: 1, 128>}, {transform_indices = @transform_3, window_bounds = array<i64: 1, 1, 32, 128>}]} {
    %c0 = arith.constant 0 : index
    %c0_0 = arith.constant 0 : index
    %c0_1 = arith.constant 0 : index
    %c0_2 = arith.constant 0 : index
    %0 = vector.load %arg1[%c0, %c0_0, %c0_1, %c0_2] : memref<1x4x16x128xbf16, #tpu.memory_space<vmem>>, vector<1x1x16x128xbf16>
    %1 = vector.shape_cast %0 : vector<1x1x16x128xbf16> to vector<16x128xbf16>
    %c0_3 = arith.constant 0 : index
    %c1 = arith.constant 1 : index
    %c0_4 = arith.constant 0 : index
    %c0_5 = arith.constant 0 : index
    %2 = vector.load %arg1[%c0_3, %c1, %c0_4, %c0_5] : memref<1x4x16x128xbf16, #tpu.memory_space<vmem>>, vector<1x1x16x128xbf16>
    %3 = vector.shape_cast %2 : vector<1x1x16x128xbf16> to vector<16x128xbf16>
    %c0_6 = arith.constant 0 : index
    %c2 = arith.constant 2 : index
    %c0_7 = arith.constant 0 : index
    %c0_8 = arith.constant 0 : index
    %4 = vector.load %arg1[%c0_6, %c2, %c0_7, %c0_8] : memref<1x4x16x128xbf16, #tpu.memory_space<vmem>>, vector<1x1x16x128xbf16>
    %5 = vector.shape_cast %4 : vector<1x1x16x128xbf16> to vector<16x128xbf16>
    %c0_9 = arith.constant 0 : index
    %c3 = arith.constant 3 : index
    %c0_10 = arith.constant 0 : index
    %c0_11 = arith.constant 0 : index
    %6 = vector.load %arg1[%c0_9, %c3, %c0_10, %c0_11] : memref<1x4x16x128xbf16, #tpu.memory_space<vmem>>, vector<1x1x16x128xbf16>
    %7 = vector.shape_cast %6 : vector<1x1x16x128xbf16> to vector<16x128xbf16>
    %cst = arith.constant 0.000000e+00 : f32
    %8 = vector.broadcast %cst : f32 to vector<32x128xf32>
    %c0_12 = arith.constant 0 : index
    %c0_13 = arith.constant 0 : index
    %c0_14 = arith.constant 0 : index
    %9 = vector.load %arg2[%c0_12, %c0_13, %c0_14] : memref<9x32x16xbf16, #tpu.memory_space<vmem>>, vector<1x32x16xbf16>
    %10 = vector.shape_cast %9 : vector<1x32x16xbf16> to vector<32x16xbf16>
    %cst_15 = arith.constant dense<0.000000e+00> : vector<32x128xf32>
    %11 = tpu.matmul %10, %1, %cst_15 {dimension_numbers = #tpu.dot_dimension_numbers<[1], [0], [0], [1], [0, 0, 1, 1], [], []>} : vector<32x16xbf16>, vector<16x128xbf16>, vector<32x128xf32> -> vector<32x128xf32>
    %12 = arith.addf %8, %11 : vector<32x128xf32>
    %c1_16 = arith.constant 1 : index
    %c0_17 = arith.constant 0 : index
    %c0_18 = arith.constant 0 : index
    %13 = vector.load %arg2[%c1_16, %c0_17, %c0_18] : memref<9x32x16xbf16, #tpu.memory_space<vmem>>, vector<1x32x16xbf16>
    %14 = vector.shape_cast %13 : vector<1x32x16xbf16> to vector<32x16xbf16>
    %cst_19 = arith.constant dense<0.000000e+00> : vector<32x128xf32>
    %15 = tpu.matmul %14, %3, %cst_19 {dimension_numbers = #tpu.dot_dimension_numbers<[1], [0], [0], [1], [0, 0, 1, 1], [], []>} : vector<32x16xbf16>, vector<16x128xbf16>, vector<32x128xf32> -> vector<32x128xf32>
    %16 = arith.addf %12, %15 : vector<32x128xf32>
    %c2_20 = arith.constant 2 : index
    %c0_21 = arith.constant 0 : index
    %c0_22 = arith.constant 0 : index
    %17 = vector.load %arg2[%c2_20, %c0_21, %c0_22] : memref<9x32x16xbf16, #tpu.memory_space<vmem>>, vector<1x32x16xbf16>
    %18 = vector.shape_cast %17 : vector<1x32x16xbf16> to vector<32x16xbf16>
    %19 = vector.extract_strided_slice %1 {offsets = [0, 1], sizes = [16, 127], strides = [1, 1]} : vector<16x128xbf16> to vector<16x127xbf16>
    %20 = vector.extract_strided_slice %1 {offsets = [0, 0], sizes = [16, 1], strides = [1, 1]} : vector<16x128xbf16> to vector<16x1xbf16>
    %21 = tpu.concatenate %19, %20 in 1 : vector<16x127xbf16>, vector<16x1xbf16> -> vector<16x128xbf16>
    %cst_23 = arith.constant dense<0.000000e+00> : vector<32x128xf32>
    %22 = tpu.matmul %18, %21, %cst_23 {dimension_numbers = #tpu.dot_dimension_numbers<[1], [0], [0], [1], [0, 0, 1, 1], [], []>} : vector<32x16xbf16>, vector<16x128xbf16>, vector<32x128xf32> -> vector<32x128xf32>
    %23 = arith.addf %16, %22 : vector<32x128xf32>
    %c3_24 = arith.constant 3 : index
    %c0_25 = arith.constant 0 : index
    %c0_26 = arith.constant 0 : index
    %24 = vector.load %arg2[%c3_24, %c0_25, %c0_26] : memref<9x32x16xbf16, #tpu.memory_space<vmem>>, vector<1x32x16xbf16>
    %25 = vector.shape_cast %24 : vector<1x32x16xbf16> to vector<32x16xbf16>
    %cst_27 = arith.constant dense<0.000000e+00> : vector<32x128xf32>
    %26 = tpu.matmul %25, %5, %cst_27 {dimension_numbers = #tpu.dot_dimension_numbers<[1], [0], [0], [1], [0, 0, 1, 1], [], []>} : vector<32x16xbf16>, vector<16x128xbf16>, vector<32x128xf32> -> vector<32x128xf32>
    %27 = arith.addf %23, %26 : vector<32x128xf32>
    %c4 = arith.constant 4 : index
    %c0_28 = arith.constant 0 : index
    %c0_29 = arith.constant 0 : index
    %28 = vector.load %arg2[%c4, %c0_28, %c0_29] : memref<9x32x16xbf16, #tpu.memory_space<vmem>>, vector<1x32x16xbf16>
    %29 = vector.shape_cast %28 : vector<1x32x16xbf16> to vector<32x16xbf16>
    %cst_30 = arith.constant dense<0.000000e+00> : vector<32x128xf32>
    %30 = tpu.matmul %29, %7, %cst_30 {dimension_numbers = #tpu.dot_dimension_numbers<[1], [0], [0], [1], [0, 0, 1, 1], [], []>} : vector<32x16xbf16>, vector<16x128xbf16>, vector<32x128xf32> -> vector<32x128xf32>
    %31 = arith.addf %27, %30 : vector<32x128xf32>
    %c5 = arith.constant 5 : index
    %c0_31 = arith.constant 0 : index
    %c0_32 = arith.constant 0 : index
    %32 = vector.load %arg2[%c5, %c0_31, %c0_32] : memref<9x32x16xbf16, #tpu.memory_space<vmem>>, vector<1x32x16xbf16>
    %33 = vector.shape_cast %32 : vector<1x32x16xbf16> to vector<32x16xbf16>
    %34 = vector.extract_strided_slice %5 {offsets = [0, 1], sizes = [16, 127], strides = [1, 1]} : vector<16x128xbf16> to vector<16x127xbf16>
    %35 = vector.extract_strided_slice %5 {offsets = [0, 0], sizes = [16, 1], strides = [1, 1]} : vector<16x128xbf16> to vector<16x1xbf16>
    %36 = tpu.concatenate %34, %35 in 1 : vector<16x127xbf16>, vector<16x1xbf16> -> vector<16x128xbf16>
    %cst_33 = arith.constant dense<0.000000e+00> : vector<32x128xf32>
    %37 = tpu.matmul %33, %36, %cst_33 {dimension_numbers = #tpu.dot_dimension_numbers<[1], [0], [0], [1], [0, 0, 1, 1], [], []>} : vector<32x16xbf16>, vector<16x128xbf16>, vector<32x128xf32> -> vector<32x128xf32>
    %38 = arith.addf %31, %37 : vector<32x128xf32>
    %c6 = arith.constant 6 : index
    %c0_34 = arith.constant 0 : index
    %c0_35 = arith.constant 0 : index
    %39 = vector.load %arg2[%c6, %c0_34, %c0_35] : memref<9x32x16xbf16, #tpu.memory_space<vmem>>, vector<1x32x16xbf16>
    %40 = vector.shape_cast %39 : vector<1x32x16xbf16> to vector<32x16xbf16>
    %41 = vector.extract_strided_slice %1 {offsets = [0, 5], sizes = [16, 123], strides = [1, 1]} : vector<16x128xbf16> to vector<16x123xbf16>
    %42 = vector.extract_strided_slice %1 {offsets = [0, 0], sizes = [16, 5], strides = [1, 1]} : vector<16x128xbf16> to vector<16x5xbf16>
    %43 = tpu.concatenate %41, %42 in 1 : vector<16x123xbf16>, vector<16x5xbf16> -> vector<16x128xbf16>
    %cst_36 = arith.constant dense<0.000000e+00> : vector<32x128xf32>
    %44 = tpu.matmul %40, %43, %cst_36 {dimension_numbers = #tpu.dot_dimension_numbers<[1], [0], [0], [1], [0, 0, 1, 1], [], []>} : vector<32x16xbf16>, vector<16x128xbf16>, vector<32x128xf32> -> vector<32x128xf32>
    %45 = arith.addf %38, %44 : vector<32x128xf32>
    %c7 = arith.constant 7 : index
    %c0_37 = arith.constant 0 : index
    %c0_38 = arith.constant 0 : index
    %46 = vector.load %arg2[%c7, %c0_37, %c0_38] : memref<9x32x16xbf16, #tpu.memory_space<vmem>>, vector<1x32x16xbf16>
    %47 = vector.shape_cast %46 : vector<1x32x16xbf16> to vector<32x16xbf16>
    %48 = vector.extract_strided_slice %3 {offsets = [0, 5], sizes = [16, 123], strides = [1, 1]} : vector<16x128xbf16> to vector<16x123xbf16>
    %49 = vector.extract_strided_slice %3 {offsets = [0, 0], sizes = [16, 5], strides = [1, 1]} : vector<16x128xbf16> to vector<16x5xbf16>
    %50 = tpu.concatenate %48, %49 in 1 : vector<16x123xbf16>, vector<16x5xbf16> -> vector<16x128xbf16>
    %cst_39 = arith.constant dense<0.000000e+00> : vector<32x128xf32>
    %51 = tpu.matmul %47, %50, %cst_39 {dimension_numbers = #tpu.dot_dimension_numbers<[1], [0], [0], [1], [0, 0, 1, 1], [], []>} : vector<32x16xbf16>, vector<16x128xbf16>, vector<32x128xf32> -> vector<32x128xf32>
    %52 = arith.addf %45, %51 : vector<32x128xf32>
    %c8 = arith.constant 8 : index
    %c0_40 = arith.constant 0 : index
    %c0_41 = arith.constant 0 : index
    %53 = vector.load %arg2[%c8, %c0_40, %c0_41] : memref<9x32x16xbf16, #tpu.memory_space<vmem>>, vector<1x32x16xbf16>
    %54 = vector.shape_cast %53 : vector<1x32x16xbf16> to vector<32x16xbf16>
    %55 = vector.extract_strided_slice %1 {offsets = [0, 6], sizes = [16, 122], strides = [1, 1]} : vector<16x128xbf16> to vector<16x122xbf16>
    %56 = vector.extract_strided_slice %1 {offsets = [0, 0], sizes = [16, 6], strides = [1, 1]} : vector<16x128xbf16> to vector<16x6xbf16>
    %57 = tpu.concatenate %55, %56 in 1 : vector<16x122xbf16>, vector<16x6xbf16> -> vector<16x128xbf16>
    %cst_42 = arith.constant dense<0.000000e+00> : vector<32x128xf32>
    %58 = tpu.matmul %54, %57, %cst_42 {dimension_numbers = #tpu.dot_dimension_numbers<[1], [0], [0], [1], [0, 0, 1, 1], [], []>} : vector<32x16xbf16>, vector<16x128xbf16>, vector<32x128xf32> -> vector<32x128xf32>
    %59 = arith.addf %52, %58 : vector<32x128xf32>
    %c0_43 = arith.constant 0 : index
    %c0_44 = arith.constant 0 : index
    %60 = vector.load %arg3[%c0_43, %c0_44] : memref<1x128xf32, #tpu.memory_space<vmem>>, vector<1x128xf32>
    %61 = vector.broadcast %60 : vector<1x128xf32> to vector<32x128xf32>
    %62 = arith.mulf %59, %61 : vector<32x128xf32>
    %cst_45 = arith.constant dense<0.000000e+00> : vector<32xf32>
    %63 = vector.multi_reduction <add>, %62, %cst_45 [1] : vector<32x128xf32> to vector<32xf32>
    %64 = vector.shape_cast %63 : vector<32xf32> to vector<32x1xf32>
    %65 = arith.mulf %62, %59 : vector<32x128xf32>
    %cst_46 = arith.constant dense<0.000000e+00> : vector<32xf32>
    %66 = vector.multi_reduction <add>, %65, %cst_46 [1] : vector<32x128xf32> to vector<32xf32>
    %67 = vector.shape_cast %66 : vector<32xf32> to vector<32x1xf32>
    %cst_47 = arith.constant 6.250000e-02 : f32
    %68 = vector.broadcast %cst_47 : f32 to vector<32x1xf32>
    %69 = arith.mulf %64, %68 : vector<32x1xf32>
    %cst_48 = arith.constant 6.250000e-02 : f32
    %70 = vector.broadcast %cst_48 : f32 to vector<32x1xf32>
    %71 = arith.mulf %67, %70 : vector<32x1xf32>
    %72 = arith.mulf %69, %69 : vector<32x1xf32>
    %73 = arith.subf %71, %72 : vector<32x1xf32>
    %cst_49 = arith.constant 0.000000e+00 : f32
    %74 = vector.broadcast %cst_49 : f32 to vector<32x1xf32>
    %75 = arith.maximumf %73, %74 : vector<32x1xf32>
    %cst_50 = arith.constant 9.99999974E-6 : f32
    %76 = vector.broadcast %cst_50 : f32 to vector<32x1xf32>
    %77 = arith.addf %75, %76 : vector<32x1xf32>
    %78 = math.rsqrt %77 : vector<32x1xf32>
    %79 = vector.broadcast %69 : vector<32x1xf32> to vector<32x128xf32>
    %80 = arith.subf %59, %79 : vector<32x128xf32>
    %81 = vector.broadcast %78 : vector<32x1xf32> to vector<32x128xf32>
    %82 = arith.mulf %80, %81 : vector<32x128xf32>
    %cst_51 = arith.constant 0.000000e+00 : f32
    %83 = vector.broadcast %cst_51 : f32 to vector<32x128xf32>
    %84 = arith.maximumf %82, %83 : vector<32x128xf32>
    %85 = vector.broadcast %60 : vector<1x128xf32> to vector<32x128xf32>
    %86 = arith.mulf %84, %85 : vector<32x128xf32>
    %87 = arith.truncf %86 : vector<32x128xf32> to vector<32x128xbf16>
    %c0_52 = arith.constant 0 : index
    %c0_53 = arith.constant 0 : index
    %c0_54 = arith.constant 0 : index
    %c0_55 = arith.constant 0 : index
    %88 = vector.load %arg4[%c0_52, %c0_53, %c0_54, %c0_55] : memref<1x1x32x128xbf16, #tpu.memory_space<vmem>>, vector<1x1x32x128xbf16>
    %89 = vector.shape_cast %88 : vector<1x1x32x128xbf16> to vector<32x128xbf16>
    %90 = vector.shape_cast %87 : vector<32x128xbf16> to vector<1x1x32x128xbf16>
    tpu.vector_store %arg4[%c0_52, %c0_53, %c0_54, %c0_55], %90 {strides = array<i32>} : memref<1x1x32x128xbf16, #tpu.memory_space<vmem>>, vector<1x1x32x128xbf16>,
    return
  }
  func.func @transform_0(%arg0: i32) -> (i32, i32, i32, i32) {
    %c0_i32 = arith.constant 0 : i32
    %c0_i32_0 = arith.constant 0 : i32
    %c0_i32_1 = arith.constant 0 : i32
    %c0_i32_2 = arith.constant 0 : i32
    return %arg0, %c0_i32, %c0_i32_0, %c0_i32_1 : i32, i32, i32, i32
  }
  func.func @transform_1(%arg0: i32) -> (i32, i32, i32) {
    %c0_i32 = arith.constant 0 : i32
    %c0_i32_0 = arith.constant 0 : i32
    %c0_i32_1 = arith.constant 0 : i32
    %c0_i32_2 = arith.constant 0 : i32
    return %c0_i32, %c0_i32_0, %c0_i32_1 : i32, i32, i32
  }
  func.func @transform_2(%arg0: i32) -> (i32, i32) {
    %c0_i32 = arith.constant 0 : i32
    %c0_i32_0 = arith.constant 0 : i32
    %c0_i32_1 = arith.constant 0 : i32
    return %c0_i32, %c0_i32_0 : i32, i32
  }
  func.func @transform_3(%arg0: i32) -> (i32, i32, i32, i32) {
    %c0_i32 = arith.constant 0 : i32
    %c0_i32_0 = arith.constant 0 : i32
    %c0_i32_1 = arith.constant 0 : i32
    %c0_i32_2 = arith.constant 0 : i32
    return %arg0, %c0_i32, %c0_i32_0, %c0_i32_1 : i32, i32, i32, i32
  }
}

module attributes {stable_mosaic.version = 11 : i64} {
  func.func @kernel(%arg0: i32, %arg1: memref<1x32x128xbf16, #tpu.memory_space<vmem>>, %arg2: memref<4x9x32x32xbf16, #tpu.memory_space<vmem>>, %arg3: memref<9x16x32xbf16, #tpu.memory_space<vmem>>, %arg4: memref<1x128xf32, #tpu.memory_space<vmem>>, %arg5: memref<4x128xf32, #tpu.memory_space<vmem>>, %arg6: memref<1x4x16x128xbf16, #tpu.memory_space<vmem>>) attributes {dimension_semantics = [#tpu.dimension_semantics<parallel>], iteration_bounds = array<i64: 2>, scalar_prefetch = 0 : i64, scratch_operands = 0 : i64, tpu.core_type = #tpu.core_type<tc>, window_params = [{transform_indices = @transform_0, window_bounds = array<i64: 1, 32, 128>}, {pipeline_mode = #tpu.pipeline_mode<synchronous>, transform_indices = @transform_1, window_bounds = array<i64: 4, 9, 32, 32>}, {pipeline_mode = #tpu.pipeline_mode<synchronous>, transform_indices = @transform_2, window_bounds = array<i64: 9, 16, 32>}, {pipeline_mode = #tpu.pipeline_mode<synchronous>, transform_indices = @transform_3, window_bounds = array<i64: 1, 128>}, {pipeline_mode = #tpu.pipeline_mode<synchronous>, transform_indices = @transform_4, window_bounds = array<i64: 4, 128>}, {transform_indices = @transform_5, window_bounds = array<i64: 1, 4, 16, 128>}]} {
    %c0 = arith.constant 0 : index
    %c0_0 = arith.constant 0 : index
    %0 = vector.load %arg4[%c0, %c0_0] : memref<1x128xf32, #tpu.memory_space<vmem>>, vector<1x128xf32>
    %c0_1 = arith.constant 0 : index
    %c0_2 = arith.constant 0 : index
    %c0_3 = arith.constant 0 : index
    %1 = vector.load %arg1[%c0_1, %c0_2, %c0_3] : memref<1x32x128xbf16, #tpu.memory_space<vmem>>, vector<1x32x128xbf16>
    %2 = vector.shape_cast %1 : vector<1x32x128xbf16> to vector<32x128xbf16>
    %3 = arith.extf %2 : vector<32x128xbf16> to vector<32x128xf32>
    %4 = vector.broadcast %0 : vector<1x128xf32> to vector<32x128xf32>
    %5 = arith.mulf %3, %4 : vector<32x128xf32>
    %6 = arith.truncf %5 : vector<32x128xf32> to vector<32x128xbf16>
    %cst = arith.constant 0.000000e+00 : f32
    %7 = vector.broadcast %cst : f32 to vector<32x128xf32>
    %c0_4 = arith.constant 0 : index
    %c0_5 = arith.constant 0 : index
    %c0_6 = arith.constant 0 : index
    %c0_7 = arith.constant 0 : index
    %8 = vector.load %arg2[%c0_4, %c0_5, %c0_6, %c0_7] : memref<4x9x32x32xbf16, #tpu.memory_space<vmem>>, vector<1x1x32x32xbf16>
    %9 = vector.shape_cast %8 : vector<1x1x32x32xbf16> to vector<32x32xbf16>
    %10 = vector.extract_strided_slice %6 {offsets = [0, 121], sizes = [32, 7], strides = [1, 1]} : vector<32x128xbf16> to vector<32x7xbf16>
    %11 = vector.extract_strided_slice %6 {offsets = [0, 0], sizes = [32, 121], strides = [1, 1]} : vector<32x128xbf16> to vector<32x121xbf16>
    %12 = tpu.concatenate %10, %11 in 1 : vector<32x7xbf16>, vector<32x121xbf16> -> vector<32x128xbf16>
    %cst_8 = arith.constant dense<0.000000e+00> : vector<32x128xf32>
    %13 = tpu.matmul %9, %12, %cst_8 {dimension_numbers = #tpu.dot_dimension_numbers<[1], [0], [0], [1], [0, 0, 1, 1], [], []>} : vector<32x32xbf16>, vector<32x128xbf16>, vector<32x128xf32> -> vector<32x128xf32>
    %14 = arith.addf %7, %13 : vector<32x128xf32>
    %c0_9 = arith.constant 0 : index
    %c1 = arith.constant 1 : index
    %c0_10 = arith.constant 0 : index
    %c0_11 = arith.constant 0 : index
    %15 = vector.load %arg2[%c0_9, %c1, %c0_10, %c0_11] : memref<4x9x32x32xbf16, #tpu.memory_space<vmem>>, vector<1x1x32x32xbf16>
    %16 = vector.shape_cast %15 : vector<1x1x32x32xbf16> to vector<32x32xbf16>
    %17 = vector.extract_strided_slice %6 {offsets = [0, 122], sizes = [32, 6], strides = [1, 1]} : vector<32x128xbf16> to vector<32x6xbf16>
    %18 = vector.extract_strided_slice %6 {offsets = [0, 0], sizes = [32, 122], strides = [1, 1]} : vector<32x128xbf16> to vector<32x122xbf16>
    %19 = tpu.concatenate %17, %18 in 1 : vector<32x6xbf16>, vector<32x122xbf16> -> vector<32x128xbf16>
    %cst_12 = arith.constant dense<0.000000e+00> : vector<32x128xf32>
    %20 = tpu.matmul %16, %19, %cst_12 {dimension_numbers = #tpu.dot_dimension_numbers<[1], [0], [0], [1], [0, 0, 1, 1], [], []>} : vector<32x32xbf16>, vector<32x128xbf16>, vector<32x128xf32> -> vector<32x128xf32>
    %21 = arith.addf %14, %20 : vector<32x128xf32>
    %c0_13 = arith.constant 0 : index
    %c2 = arith.constant 2 : index
    %c0_14 = arith.constant 0 : index
    %c0_15 = arith.constant 0 : index
    %22 = vector.load %arg2[%c0_13, %c2, %c0_14, %c0_15] : memref<4x9x32x32xbf16, #tpu.memory_space<vmem>>, vector<1x1x32x32xbf16>
    %23 = vector.shape_cast %22 : vector<1x1x32x32xbf16> to vector<32x32xbf16>
    %24 = vector.extract_strided_slice %6 {offsets = [0, 123], sizes = [32, 5], strides = [1, 1]} : vector<32x128xbf16> to vector<32x5xbf16>
    %25 = vector.extract_strided_slice %6 {offsets = [0, 0], sizes = [32, 123], strides = [1, 1]} : vector<32x128xbf16> to vector<32x123xbf16>
    %26 = tpu.concatenate %24, %25 in 1 : vector<32x5xbf16>, vector<32x123xbf16> -> vector<32x128xbf16>
    %cst_16 = arith.constant dense<0.000000e+00> : vector<32x128xf32>
    %27 = tpu.matmul %23, %26, %cst_16 {dimension_numbers = #tpu.dot_dimension_numbers<[1], [0], [0], [1], [0, 0, 1, 1], [], []>} : vector<32x32xbf16>, vector<32x128xbf16>, vector<32x128xf32> -> vector<32x128xf32>
    %28 = arith.addf %21, %27 : vector<32x128xf32>
    %c0_17 = arith.constant 0 : index
    %c3 = arith.constant 3 : index
    %c0_18 = arith.constant 0 : index
    %c0_19 = arith.constant 0 : index
    %29 = vector.load %arg2[%c0_17, %c3, %c0_18, %c0_19] : memref<4x9x32x32xbf16, #tpu.memory_space<vmem>>, vector<1x1x32x32xbf16>
    %30 = vector.shape_cast %29 : vector<1x1x32x32xbf16> to vector<32x32xbf16>
    %31 = vector.extract_strided_slice %6 {offsets = [0, 127], sizes = [32, 1], strides = [1, 1]} : vector<32x128xbf16> to vector<32x1xbf16>
    %32 = vector.extract_strided_slice %6 {offsets = [0, 0], sizes = [32, 127], strides = [1, 1]} : vector<32x128xbf16> to vector<32x127xbf16>
    %33 = tpu.concatenate %31, %32 in 1 : vector<32x1xbf16>, vector<32x127xbf16> -> vector<32x128xbf16>
    %cst_20 = arith.constant dense<0.000000e+00> : vector<32x128xf32>
    %34 = tpu.matmul %30, %33, %cst_20 {dimension_numbers = #tpu.dot_dimension_numbers<[1], [0], [0], [1], [0, 0, 1, 1], [], []>} : vector<32x32xbf16>, vector<32x128xbf16>, vector<32x128xf32> -> vector<32x128xf32>
    %35 = arith.addf %28, %34 : vector<32x128xf32>
    %c0_21 = arith.constant 0 : index
    %c4 = arith.constant 4 : index
    %c0_22 = arith.constant 0 : index
    %c0_23 = arith.constant 0 : index
    %36 = vector.load %arg2[%c0_21, %c4, %c0_22, %c0_23] : memref<4x9x32x32xbf16, #tpu.memory_space<vmem>>, vector<1x1x32x32xbf16>
    %37 = vector.shape_cast %36 : vector<1x1x32x32xbf16> to vector<32x32xbf16>
    %cst_24 = arith.constant dense<0.000000e+00> : vector<32x128xf32>
    %38 = tpu.matmul %37, %6, %cst_24 {dimension_numbers = #tpu.dot_dimension_numbers<[1], [0], [0], [1], [0, 0, 1, 1], [], []>} : vector<32x32xbf16>, vector<32x128xbf16>, vector<32x128xf32> -> vector<32x128xf32>
    %39 = arith.addf %35, %38 : vector<32x128xf32>
    %c0_25 = arith.constant 0 : index
    %c5 = arith.constant 5 : index
    %c0_26 = arith.constant 0 : index
    %c0_27 = arith.constant 0 : index
    %40 = vector.load %arg2[%c0_25, %c5, %c0_26, %c0_27] : memref<4x9x32x32xbf16, #tpu.memory_space<vmem>>, vector<1x1x32x32xbf16>
    %41 = vector.shape_cast %40 : vector<1x1x32x32xbf16> to vector<32x32xbf16>
    %42 = vector.extract_strided_slice %6 {offsets = [0, 1], sizes = [32, 127], strides = [1, 1]} : vector<32x128xbf16> to vector<32x127xbf16>
    %43 = vector.extract_strided_slice %6 {offsets = [0, 0], sizes = [32, 1], strides = [1, 1]} : vector<32x128xbf16> to vector<32x1xbf16>
    %44 = tpu.concatenate %42, %43 in 1 : vector<32x127xbf16>, vector<32x1xbf16> -> vector<32x128xbf16>
    %cst_28 = arith.constant dense<0.000000e+00> : vector<32x128xf32>
    %45 = tpu.matmul %41, %44, %cst_28 {dimension_numbers = #tpu.dot_dimension_numbers<[1], [0], [0], [1], [0, 0, 1, 1], [], []>} : vector<32x32xbf16>, vector<32x128xbf16>, vector<32x128xf32> -> vector<32x128xf32>
    %46 = arith.addf %39, %45 : vector<32x128xf32>
    %c0_29 = arith.constant 0 : index
    %c6 = arith.constant 6 : index
    %c0_30 = arith.constant 0 : index
    %c0_31 = arith.constant 0 : index
    %47 = vector.load %arg2[%c0_29, %c6, %c0_30, %c0_31] : memref<4x9x32x32xbf16, #tpu.memory_space<vmem>>, vector<1x1x32x32xbf16>
    %48 = vector.shape_cast %47 : vector<1x1x32x32xbf16> to vector<32x32xbf16>
    %49 = vector.extract_strided_slice %6 {offsets = [0, 5], sizes = [32, 123], strides = [1, 1]} : vector<32x128xbf16> to vector<32x123xbf16>
    %50 = vector.extract_strided_slice %6 {offsets = [0, 0], sizes = [32, 5], strides = [1, 1]} : vector<32x128xbf16> to vector<32x5xbf16>
    %51 = tpu.concatenate %49, %50 in 1 : vector<32x123xbf16>, vector<32x5xbf16> -> vector<32x128xbf16>
    %cst_32 = arith.constant dense<0.000000e+00> : vector<32x128xf32>
    %52 = tpu.matmul %48, %51, %cst_32 {dimension_numbers = #tpu.dot_dimension_numbers<[1], [0], [0], [1], [0, 0, 1, 1], [], []>} : vector<32x32xbf16>, vector<32x128xbf16>, vector<32x128xf32> -> vector<32x128xf32>
    %53 = arith.addf %46, %52 : vector<32x128xf32>
    %c0_33 = arith.constant 0 : index
    %c7 = arith.constant 7 : index
    %c0_34 = arith.constant 0 : index
    %c0_35 = arith.constant 0 : index
    %54 = vector.load %arg2[%c0_33, %c7, %c0_34, %c0_35] : memref<4x9x32x32xbf16, #tpu.memory_space<vmem>>, vector<1x1x32x32xbf16>
    %55 = vector.shape_cast %54 : vector<1x1x32x32xbf16> to vector<32x32xbf16>
    %56 = vector.extract_strided_slice %6 {offsets = [0, 6], sizes = [32, 122], strides = [1, 1]} : vector<32x128xbf16> to vector<32x122xbf16>
    %57 = vector.extract_strided_slice %6 {offsets = [0, 0], sizes = [32, 6], strides = [1, 1]} : vector<32x128xbf16> to vector<32x6xbf16>
    %58 = tpu.concatenate %56, %57 in 1 : vector<32x122xbf16>, vector<32x6xbf16> -> vector<32x128xbf16>
    %cst_36 = arith.constant dense<0.000000e+00> : vector<32x128xf32>
    %59 = tpu.matmul %55, %58, %cst_36 {dimension_numbers = #tpu.dot_dimension_numbers<[1], [0], [0], [1], [0, 0, 1, 1], [], []>} : vector<32x32xbf16>, vector<32x128xbf16>, vector<32x128xf32> -> vector<32x128xf32>
    %60 = arith.addf %53, %59 : vector<32x128xf32>
    %c0_37 = arith.constant 0 : index
    %c8 = arith.constant 8 : index
    %c0_38 = arith.constant 0 : index
    %c0_39 = arith.constant 0 : index
    %61 = vector.load %arg2[%c0_37, %c8, %c0_38, %c0_39] : memref<4x9x32x32xbf16, #tpu.memory_space<vmem>>, vector<1x1x32x32xbf16>
    %62 = vector.shape_cast %61 : vector<1x1x32x32xbf16> to vector<32x32xbf16>
    %63 = vector.extract_strided_slice %6 {offsets = [0, 7], sizes = [32, 121], strides = [1, 1]} : vector<32x128xbf16> to vector<32x121xbf16>
    %64 = vector.extract_strided_slice %6 {offsets = [0, 0], sizes = [32, 7], strides = [1, 1]} : vector<32x128xbf16> to vector<32x7xbf16>
    %65 = tpu.concatenate %63, %64 in 1 : vector<32x121xbf16>, vector<32x7xbf16> -> vector<32x128xbf16>
    %cst_40 = arith.constant dense<0.000000e+00> : vector<32x128xf32>
    %66 = tpu.matmul %62, %65, %cst_40 {dimension_numbers = #tpu.dot_dimension_numbers<[1], [0], [0], [1], [0, 0, 1, 1], [], []>} : vector<32x32xbf16>, vector<32x128xbf16>, vector<32x128xf32> -> vector<32x128xf32>
    %67 = arith.addf %60, %66 : vector<32x128xf32>
    %68 = vector.broadcast %0 : vector<1x128xf32> to vector<32x128xf32>
    %69 = arith.mulf %67, %68 : vector<32x128xf32>
    %cst_41 = arith.constant dense<0.000000e+00> : vector<32xf32>
    %70 = vector.multi_reduction <add>, %69, %cst_41 [1] : vector<32x128xf32> to vector<32xf32>
    %71 = vector.shape_cast %70 : vector<32xf32> to vector<32x1xf32>
    %cst_42 = arith.constant 6.250000e-02 : f32
    %72 = vector.broadcast %cst_42 : f32 to vector<32x1xf32>
    %73 = arith.mulf %71, %72 : vector<32x1xf32>
    %74 = arith.mulf %69, %67 : vector<32x128xf32>
    %cst_43 = arith.constant dense<0.000000e+00> : vector<32xf32>
    %75 = vector.multi_reduction <add>, %74, %cst_43 [1] : vector<32x128xf32> to vector<32xf32>
    %76 = vector.shape_cast %75 : vector<32xf32> to vector<32x1xf32>
    %cst_44 = arith.constant 6.250000e-02 : f32
    %77 = vector.broadcast %cst_44 : f32 to vector<32x1xf32>
    %78 = arith.mulf %76, %77 : vector<32x1xf32>
    %79 = arith.mulf %73, %73 : vector<32x1xf32>
    %80 = arith.subf %78, %79 : vector<32x1xf32>
    %cst_45 = arith.constant 0.000000e+00 : f32
    %81 = vector.broadcast %cst_45 : f32 to vector<32x1xf32>
    %82 = arith.maximumf %80, %81 : vector<32x1xf32>
    %83 = vector.broadcast %73 : vector<32x1xf32> to vector<32x128xf32>
    %84 = arith.subf %67, %83 : vector<32x128xf32>
    %cst_46 = arith.constant 9.99999974E-6 : f32
    %85 = vector.broadcast %cst_46 : f32 to vector<32x1xf32>
    %86 = arith.addf %82, %85 : vector<32x1xf32>
    %87 = math.rsqrt %86 : vector<32x1xf32>
    %88 = vector.broadcast %87 : vector<32x1xf32> to vector<32x128xf32>
    %89 = arith.mulf %84, %88 : vector<32x128xf32>
    %cst_47 = arith.constant 0.000000e+00 : f32
    %90 = vector.broadcast %cst_47 : f32 to vector<32x128xf32>
    %91 = arith.maximumf %89, %90 : vector<32x128xf32>
    %92 = vector.broadcast %0 : vector<1x128xf32> to vector<32x128xf32>
    %93 = arith.mulf %91, %92 : vector<32x128xf32>
    %94 = arith.truncf %93 : vector<32x128xf32> to vector<32x128xbf16>
    %cst_48 = arith.constant 0.000000e+00 : f32
    %95 = vector.broadcast %cst_48 : f32 to vector<32x128xf32>
    %c1_49 = arith.constant 1 : index
    %c0_50 = arith.constant 0 : index
    %c0_51 = arith.constant 0 : index
    %c0_52 = arith.constant 0 : index
    %96 = vector.load %arg2[%c1_49, %c0_50, %c0_51, %c0_52] : memref<4x9x32x32xbf16, #tpu.memory_space<vmem>>, vector<1x1x32x32xbf16>
    %97 = vector.shape_cast %96 : vector<1x1x32x32xbf16> to vector<32x32xbf16>
    %98 = vector.extract_strided_slice %94 {offsets = [0, 121], sizes = [32, 7], strides = [1, 1]} : vector<32x128xbf16> to vector<32x7xbf16>
    %99 = vector.extract_strided_slice %94 {offsets = [0, 0], sizes = [32, 121], strides = [1, 1]} : vector<32x128xbf16> to vector<32x121xbf16>
    %100 = tpu.concatenate %98, %99 in 1 : vector<32x7xbf16>, vector<32x121xbf16> -> vector<32x128xbf16>
    %cst_53 = arith.constant dense<0.000000e+00> : vector<32x128xf32>
    %101 = tpu.matmul %97, %100, %cst_53 {dimension_numbers = #tpu.dot_dimension_numbers<[1], [0], [0], [1], [0, 0, 1, 1], [], []>} : vector<32x32xbf16>, vector<32x128xbf16>, vector<32x128xf32> -> vector<32x128xf32>
    %102 = arith.addf %95, %101 : vector<32x128xf32>
    %c1_54 = arith.constant 1 : index
    %c1_55 = arith.constant 1 : index
    %c0_56 = arith.constant 0 : index
    %c0_57 = arith.constant 0 : index
    %103 = vector.load %arg2[%c1_54, %c1_55, %c0_56, %c0_57] : memref<4x9x32x32xbf16, #tpu.memory_space<vmem>>, vector<1x1x32x32xbf16>
    %104 = vector.shape_cast %103 : vector<1x1x32x32xbf16> to vector<32x32xbf16>
    %105 = vector.extract_strided_slice %94 {offsets = [0, 122], sizes = [32, 6], strides = [1, 1]} : vector<32x128xbf16> to vector<32x6xbf16>
    %106 = vector.extract_strided_slice %94 {offsets = [0, 0], sizes = [32, 122], strides = [1, 1]} : vector<32x128xbf16> to vector<32x122xbf16>
    %107 = tpu.concatenate %105, %106 in 1 : vector<32x6xbf16>, vector<32x122xbf16> -> vector<32x128xbf16>
    %cst_58 = arith.constant dense<0.000000e+00> : vector<32x128xf32>
    %108 = tpu.matmul %104, %107, %cst_58 {dimension_numbers = #tpu.dot_dimension_numbers<[1], [0], [0], [1], [0, 0, 1, 1], [], []>} : vector<32x32xbf16>, vector<32x128xbf16>, vector<32x128xf32> -> vector<32x128xf32>
    %109 = arith.addf %102, %108 : vector<32x128xf32>
    %c1_59 = arith.constant 1 : index
    %c2_60 = arith.constant 2 : index
    %c0_61 = arith.constant 0 : index
    %c0_62 = arith.constant 0 : index
    %110 = vector.load %arg2[%c1_59, %c2_60, %c0_61, %c0_62] : memref<4x9x32x32xbf16, #tpu.memory_space<vmem>>, vector<1x1x32x32xbf16>
    %111 = vector.shape_cast %110 : vector<1x1x32x32xbf16> to vector<32x32xbf16>
    %112 = vector.extract_strided_slice %94 {offsets = [0, 123], sizes = [32, 5], strides = [1, 1]} : vector<32x128xbf16> to vector<32x5xbf16>
    %113 = vector.extract_strided_slice %94 {offsets = [0, 0], sizes = [32, 123], strides = [1, 1]} : vector<32x128xbf16> to vector<32x123xbf16>
    %114 = tpu.concatenate %112, %113 in 1 : vector<32x5xbf16>, vector<32x123xbf16> -> vector<32x128xbf16>
    %cst_63 = arith.constant dense<0.000000e+00> : vector<32x128xf32>
    %115 = tpu.matmul %111, %114, %cst_63 {dimension_numbers = #tpu.dot_dimension_numbers<[1], [0], [0], [1], [0, 0, 1, 1], [], []>} : vector<32x32xbf16>, vector<32x128xbf16>, vector<32x128xf32> -> vector<32x128xf32>
    %116 = arith.addf %109, %115 : vector<32x128xf32>
    %c1_64 = arith.constant 1 : index
    %c3_65 = arith.constant 3 : index
    %c0_66 = arith.constant 0 : index
    %c0_67 = arith.constant 0 : index
    %117 = vector.load %arg2[%c1_64, %c3_65, %c0_66, %c0_67] : memref<4x9x32x32xbf16, #tpu.memory_space<vmem>>, vector<1x1x32x32xbf16>
    %118 = vector.shape_cast %117 : vector<1x1x32x32xbf16> to vector<32x32xbf16>
    %119 = vector.extract_strided_slice %94 {offsets = [0, 127], sizes = [32, 1], strides = [1, 1]} : vector<32x128xbf16> to vector<32x1xbf16>
    %120 = vector.extract_strided_slice %94 {offsets = [0, 0], sizes = [32, 127], strides = [1, 1]} : vector<32x128xbf16> to vector<32x127xbf16>
    %121 = tpu.concatenate %119, %120 in 1 : vector<32x1xbf16>, vector<32x127xbf16> -> vector<32x128xbf16>
    %cst_68 = arith.constant dense<0.000000e+00> : vector<32x128xf32>
    %122 = tpu.matmul %118, %121, %cst_68 {dimension_numbers = #tpu.dot_dimension_numbers<[1], [0], [0], [1], [0, 0, 1, 1], [], []>} : vector<32x32xbf16>, vector<32x128xbf16>, vector<32x128xf32> -> vector<32x128xf32>
    %123 = arith.addf %116, %122 : vector<32x128xf32>
    %c1_69 = arith.constant 1 : index
    %c4_70 = arith.constant 4 : index
    %c0_71 = arith.constant 0 : index
    %c0_72 = arith.constant 0 : index
    %124 = vector.load %arg2[%c1_69, %c4_70, %c0_71, %c0_72] : memref<4x9x32x32xbf16, #tpu.memory_space<vmem>>, vector<1x1x32x32xbf16>
    %125 = vector.shape_cast %124 : vector<1x1x32x32xbf16> to vector<32x32xbf16>
    %cst_73 = arith.constant dense<0.000000e+00> : vector<32x128xf32>
    %126 = tpu.matmul %125, %94, %cst_73 {dimension_numbers = #tpu.dot_dimension_numbers<[1], [0], [0], [1], [0, 0, 1, 1], [], []>} : vector<32x32xbf16>, vector<32x128xbf16>, vector<32x128xf32> -> vector<32x128xf32>
    %127 = arith.addf %123, %126 : vector<32x128xf32>
    %c1_74 = arith.constant 1 : index
    %c5_75 = arith.constant 5 : index
    %c0_76 = arith.constant 0 : index
    %c0_77 = arith.constant 0 : index
    %128 = vector.load %arg2[%c1_74, %c5_75, %c0_76, %c0_77] : memref<4x9x32x32xbf16, #tpu.memory_space<vmem>>, vector<1x1x32x32xbf16>
    %129 = vector.shape_cast %128 : vector<1x1x32x32xbf16> to vector<32x32xbf16>
    %130 = vector.extract_strided_slice %94 {offsets = [0, 1], sizes = [32, 127], strides = [1, 1]} : vector<32x128xbf16> to vector<32x127xbf16>
    %131 = vector.extract_strided_slice %94 {offsets = [0, 0], sizes = [32, 1], strides = [1, 1]} : vector<32x128xbf16> to vector<32x1xbf16>
    %132 = tpu.concatenate %130, %131 in 1 : vector<32x127xbf16>, vector<32x1xbf16> -> vector<32x128xbf16>
    %cst_78 = arith.constant dense<0.000000e+00> : vector<32x128xf32>
    %133 = tpu.matmul %129, %132, %cst_78 {dimension_numbers = #tpu.dot_dimension_numbers<[1], [0], [0], [1], [0, 0, 1, 1], [], []>} : vector<32x32xbf16>, vector<32x128xbf16>, vector<32x128xf32> -> vector<32x128xf32>
    %134 = arith.addf %127, %133 : vector<32x128xf32>
    %c1_79 = arith.constant 1 : index
    %c6_80 = arith.constant 6 : index
    %c0_81 = arith.constant 0 : index
    %c0_82 = arith.constant 0 : index
    %135 = vector.load %arg2[%c1_79, %c6_80, %c0_81, %c0_82] : memref<4x9x32x32xbf16, #tpu.memory_space<vmem>>, vector<1x1x32x32xbf16>
    %136 = vector.shape_cast %135 : vector<1x1x32x32xbf16> to vector<32x32xbf16>
    %137 = vector.extract_strided_slice %94 {offsets = [0, 5], sizes = [32, 123], strides = [1, 1]} : vector<32x128xbf16> to vector<32x123xbf16>
    %138 = vector.extract_strided_slice %94 {offsets = [0, 0], sizes = [32, 5], strides = [1, 1]} : vector<32x128xbf16> to vector<32x5xbf16>
    %139 = tpu.concatenate %137, %138 in 1 : vector<32x123xbf16>, vector<32x5xbf16> -> vector<32x128xbf16>
    %cst_83 = arith.constant dense<0.000000e+00> : vector<32x128xf32>
    %140 = tpu.matmul %136, %139, %cst_83 {dimension_numbers = #tpu.dot_dimension_numbers<[1], [0], [0], [1], [0, 0, 1, 1], [], []>} : vector<32x32xbf16>, vector<32x128xbf16>, vector<32x128xf32> -> vector<32x128xf32>
    %141 = arith.addf %134, %140 : vector<32x128xf32>
    %c1_84 = arith.constant 1 : index
    %c7_85 = arith.constant 7 : index
    %c0_86 = arith.constant 0 : index
    %c0_87 = arith.constant 0 : index
    %142 = vector.load %arg2[%c1_84, %c7_85, %c0_86, %c0_87] : memref<4x9x32x32xbf16, #tpu.memory_space<vmem>>, vector<1x1x32x32xbf16>
    %143 = vector.shape_cast %142 : vector<1x1x32x32xbf16> to vector<32x32xbf16>
    %144 = vector.extract_strided_slice %94 {offsets = [0, 6], sizes = [32, 122], strides = [1, 1]} : vector<32x128xbf16> to vector<32x122xbf16>
    %145 = vector.extract_strided_slice %94 {offsets = [0, 0], sizes = [32, 6], strides = [1, 1]} : vector<32x128xbf16> to vector<32x6xbf16>
    %146 = tpu.concatenate %144, %145 in 1 : vector<32x122xbf16>, vector<32x6xbf16> -> vector<32x128xbf16>
    %cst_88 = arith.constant dense<0.000000e+00> : vector<32x128xf32>
    %147 = tpu.matmul %143, %146, %cst_88 {dimension_numbers = #tpu.dot_dimension_numbers<[1], [0], [0], [1], [0, 0, 1, 1], [], []>} : vector<32x32xbf16>, vector<32x128xbf16>, vector<32x128xf32> -> vector<32x128xf32>
    %148 = arith.addf %141, %147 : vector<32x128xf32>
    %c1_89 = arith.constant 1 : index
    %c8_90 = arith.constant 8 : index
    %c0_91 = arith.constant 0 : index
    %c0_92 = arith.constant 0 : index
    %149 = vector.load %arg2[%c1_89, %c8_90, %c0_91, %c0_92] : memref<4x9x32x32xbf16, #tpu.memory_space<vmem>>, vector<1x1x32x32xbf16>
    %150 = vector.shape_cast %149 : vector<1x1x32x32xbf16> to vector<32x32xbf16>
    %151 = vector.extract_strided_slice %94 {offsets = [0, 7], sizes = [32, 121], strides = [1, 1]} : vector<32x128xbf16> to vector<32x121xbf16>
    %152 = vector.extract_strided_slice %94 {offsets = [0, 0], sizes = [32, 7], strides = [1, 1]} : vector<32x128xbf16> to vector<32x7xbf16>
    %153 = tpu.concatenate %151, %152 in 1 : vector<32x121xbf16>, vector<32x7xbf16> -> vector<32x128xbf16>
    %cst_93 = arith.constant dense<0.000000e+00> : vector<32x128xf32>
    %154 = tpu.matmul %150, %153, %cst_93 {dimension_numbers = #tpu.dot_dimension_numbers<[1], [0], [0], [1], [0, 0, 1, 1], [], []>} : vector<32x32xbf16>, vector<32x128xbf16>, vector<32x128xf32> -> vector<32x128xf32>
    %155 = arith.addf %148, %154 : vector<32x128xf32>
    %156 = vector.broadcast %0 : vector<1x128xf32> to vector<32x128xf32>
    %157 = arith.mulf %155, %156 : vector<32x128xf32>
    %cst_94 = arith.constant dense<0.000000e+00> : vector<32xf32>
    %158 = vector.multi_reduction <add>, %157, %cst_94 [1] : vector<32x128xf32> to vector<32xf32>
    %159 = vector.shape_cast %158 : vector<32xf32> to vector<32x1xf32>
    %cst_95 = arith.constant 6.250000e-02 : f32
    %160 = vector.broadcast %cst_95 : f32 to vector<32x1xf32>
    %161 = arith.mulf %159, %160 : vector<32x1xf32>
    %162 = arith.mulf %157, %155 : vector<32x128xf32>
    %cst_96 = arith.constant dense<0.000000e+00> : vector<32xf32>
    %163 = vector.multi_reduction <add>, %162, %cst_96 [1] : vector<32x128xf32> to vector<32xf32>
    %164 = vector.shape_cast %163 : vector<32xf32> to vector<32x1xf32>
    %cst_97 = arith.constant 6.250000e-02 : f32
    %165 = vector.broadcast %cst_97 : f32 to vector<32x1xf32>
    %166 = arith.mulf %164, %165 : vector<32x1xf32>
    %167 = arith.mulf %161, %161 : vector<32x1xf32>
    %168 = arith.subf %166, %167 : vector<32x1xf32>
    %cst_98 = arith.constant 0.000000e+00 : f32
    %169 = vector.broadcast %cst_98 : f32 to vector<32x1xf32>
    %170 = arith.maximumf %168, %169 : vector<32x1xf32>
    %171 = vector.broadcast %161 : vector<32x1xf32> to vector<32x128xf32>
    %172 = arith.subf %155, %171 : vector<32x128xf32>
    %cst_99 = arith.constant 9.99999974E-6 : f32
    %173 = vector.broadcast %cst_99 : f32 to vector<32x1xf32>
    %174 = arith.addf %170, %173 : vector<32x1xf32>
    %175 = math.rsqrt %174 : vector<32x1xf32>
    %176 = vector.broadcast %175 : vector<32x1xf32> to vector<32x128xf32>
    %177 = arith.mulf %172, %176 : vector<32x128xf32>
    %178 = arith.addf %177, %5 : vector<32x128xf32>
    %cst_100 = arith.constant 0.000000e+00 : f32
    %179 = vector.broadcast %cst_100 : f32 to vector<32x128xf32>
    %180 = arith.maximumf %178, %179 : vector<32x128xf32>
    %181 = vector.broadcast %0 : vector<1x128xf32> to vector<32x128xf32>
    %182 = arith.mulf %180, %181 : vector<32x128xf32>
    %183 = arith.truncf %182 : vector<32x128xf32> to vector<32x128xbf16>
    %cst_101 = arith.constant 0.000000e+00 : f32
    %184 = vector.broadcast %cst_101 : f32 to vector<32x128xf32>
    %c2_102 = arith.constant 2 : index
    %c0_103 = arith.constant 0 : index
    %c0_104 = arith.constant 0 : index
    %c0_105 = arith.constant 0 : index
    %185 = vector.load %arg2[%c2_102, %c0_103, %c0_104, %c0_105] : memref<4x9x32x32xbf16, #tpu.memory_space<vmem>>, vector<1x1x32x32xbf16>
    %186 = vector.shape_cast %185 : vector<1x1x32x32xbf16> to vector<32x32xbf16>
    %187 = vector.extract_strided_slice %183 {offsets = [0, 121], sizes = [32, 7], strides = [1, 1]} : vector<32x128xbf16> to vector<32x7xbf16>
    %188 = vector.extract_strided_slice %183 {offsets = [0, 0], sizes = [32, 121], strides = [1, 1]} : vector<32x128xbf16> to vector<32x121xbf16>
    %189 = tpu.concatenate %187, %188 in 1 : vector<32x7xbf16>, vector<32x121xbf16> -> vector<32x128xbf16>
    %cst_106 = arith.constant dense<0.000000e+00> : vector<32x128xf32>
    %190 = tpu.matmul %186, %189, %cst_106 {dimension_numbers = #tpu.dot_dimension_numbers<[1], [0], [0], [1], [0, 0, 1, 1], [], []>} : vector<32x32xbf16>, vector<32x128xbf16>, vector<32x128xf32> -> vector<32x128xf32>
    %191 = arith.addf %184, %190 : vector<32x128xf32>
    %c2_107 = arith.constant 2 : index
    %c1_108 = arith.constant 1 : index
    %c0_109 = arith.constant 0 : index
    %c0_110 = arith.constant 0 : index
    %192 = vector.load %arg2[%c2_107, %c1_108, %c0_109, %c0_110] : memref<4x9x32x32xbf16, #tpu.memory_space<vmem>>, vector<1x1x32x32xbf16>
    %193 = vector.shape_cast %192 : vector<1x1x32x32xbf16> to vector<32x32xbf16>
    %194 = vector.extract_strided_slice %183 {offsets = [0, 122], sizes = [32, 6], strides = [1, 1]} : vector<32x128xbf16> to vector<32x6xbf16>
    %195 = vector.extract_strided_slice %183 {offsets = [0, 0], sizes = [32, 122], strides = [1, 1]} : vector<32x128xbf16> to vector<32x122xbf16>
    %196 = tpu.concatenate %194, %195 in 1 : vector<32x6xbf16>, vector<32x122xbf16> -> vector<32x128xbf16>
    %cst_111 = arith.constant dense<0.000000e+00> : vector<32x128xf32>
    %197 = tpu.matmul %193, %196, %cst_111 {dimension_numbers = #tpu.dot_dimension_numbers<[1], [0], [0], [1], [0, 0, 1, 1], [], []>} : vector<32x32xbf16>, vector<32x128xbf16>, vector<32x128xf32> -> vector<32x128xf32>
    %198 = arith.addf %191, %197 : vector<32x128xf32>
    %c2_112 = arith.constant 2 : index
    %c2_113 = arith.constant 2 : index
    %c0_114 = arith.constant 0 : index
    %c0_115 = arith.constant 0 : index
    %199 = vector.load %arg2[%c2_112, %c2_113, %c0_114, %c0_115] : memref<4x9x32x32xbf16, #tpu.memory_space<vmem>>, vector<1x1x32x32xbf16>
    %200 = vector.shape_cast %199 : vector<1x1x32x32xbf16> to vector<32x32xbf16>
    %201 = vector.extract_strided_slice %183 {offsets = [0, 123], sizes = [32, 5], strides = [1, 1]} : vector<32x128xbf16> to vector<32x5xbf16>
    %202 = vector.extract_strided_slice %183 {offsets = [0, 0], sizes = [32, 123], strides = [1, 1]} : vector<32x128xbf16> to vector<32x123xbf16>
    %203 = tpu.concatenate %201, %202 in 1 : vector<32x5xbf16>, vector<32x123xbf16> -> vector<32x128xbf16>
    %cst_116 = arith.constant dense<0.000000e+00> : vector<32x128xf32>
    %204 = tpu.matmul %200, %203, %cst_116 {dimension_numbers = #tpu.dot_dimension_numbers<[1], [0], [0], [1], [0, 0, 1, 1], [], []>} : vector<32x32xbf16>, vector<32x128xbf16>, vector<32x128xf32> -> vector<32x128xf32>
    %205 = arith.addf %198, %204 : vector<32x128xf32>
    %c2_117 = arith.constant 2 : index
    %c3_118 = arith.constant 3 : index
    %c0_119 = arith.constant 0 : index
    %c0_120 = arith.constant 0 : index
    %206 = vector.load %arg2[%c2_117, %c3_118, %c0_119, %c0_120] : memref<4x9x32x32xbf16, #tpu.memory_space<vmem>>, vector<1x1x32x32xbf16>
    %207 = vector.shape_cast %206 : vector<1x1x32x32xbf16> to vector<32x32xbf16>
    %208 = vector.extract_strided_slice %183 {offsets = [0, 127], sizes = [32, 1], strides = [1, 1]} : vector<32x128xbf16> to vector<32x1xbf16>
    %209 = vector.extract_strided_slice %183 {offsets = [0, 0], sizes = [32, 127], strides = [1, 1]} : vector<32x128xbf16> to vector<32x127xbf16>
    %210 = tpu.concatenate %208, %209 in 1 : vector<32x1xbf16>, vector<32x127xbf16> -> vector<32x128xbf16>
    %cst_121 = arith.constant dense<0.000000e+00> : vector<32x128xf32>
    %211 = tpu.matmul %207, %210, %cst_121 {dimension_numbers = #tpu.dot_dimension_numbers<[1], [0], [0], [1], [0, 0, 1, 1], [], []>} : vector<32x32xbf16>, vector<32x128xbf16>, vector<32x128xf32> -> vector<32x128xf32>
    %212 = arith.addf %205, %211 : vector<32x128xf32>
    %c2_122 = arith.constant 2 : index
    %c4_123 = arith.constant 4 : index
    %c0_124 = arith.constant 0 : index
    %c0_125 = arith.constant 0 : index
    %213 = vector.load %arg2[%c2_122, %c4_123, %c0_124, %c0_125] : memref<4x9x32x32xbf16, #tpu.memory_space<vmem>>, vector<1x1x32x32xbf16>
    %214 = vector.shape_cast %213 : vector<1x1x32x32xbf16> to vector<32x32xbf16>
    %cst_126 = arith.constant dense<0.000000e+00> : vector<32x128xf32>
    %215 = tpu.matmul %214, %183, %cst_126 {dimension_numbers = #tpu.dot_dimension_numbers<[1], [0], [0], [1], [0, 0, 1, 1], [], []>} : vector<32x32xbf16>, vector<32x128xbf16>, vector<32x128xf32> -> vector<32x128xf32>
    %216 = arith.addf %212, %215 : vector<32x128xf32>
    %c2_127 = arith.constant 2 : index
    %c5_128 = arith.constant 5 : index
    %c0_129 = arith.constant 0 : index
    %c0_130 = arith.constant 0 : index
    %217 = vector.load %arg2[%c2_127, %c5_128, %c0_129, %c0_130] : memref<4x9x32x32xbf16, #tpu.memory_space<vmem>>, vector<1x1x32x32xbf16>
    %218 = vector.shape_cast %217 : vector<1x1x32x32xbf16> to vector<32x32xbf16>
    %219 = vector.extract_strided_slice %183 {offsets = [0, 1], sizes = [32, 127], strides = [1, 1]} : vector<32x128xbf16> to vector<32x127xbf16>
    %220 = vector.extract_strided_slice %183 {offsets = [0, 0], sizes = [32, 1], strides = [1, 1]} : vector<32x128xbf16> to vector<32x1xbf16>
    %221 = tpu.concatenate %219, %220 in 1 : vector<32x127xbf16>, vector<32x1xbf16> -> vector<32x128xbf16>
    %cst_131 = arith.constant dense<0.000000e+00> : vector<32x128xf32>
    %222 = tpu.matmul %218, %221, %cst_131 {dimension_numbers = #tpu.dot_dimension_numbers<[1], [0], [0], [1], [0, 0, 1, 1], [], []>} : vector<32x32xbf16>, vector<32x128xbf16>, vector<32x128xf32> -> vector<32x128xf32>
    %223 = arith.addf %216, %222 : vector<32x128xf32>
    %c2_132 = arith.constant 2 : index
    %c6_133 = arith.constant 6 : index
    %c0_134 = arith.constant 0 : index
    %c0_135 = arith.constant 0 : index
    %224 = vector.load %arg2[%c2_132, %c6_133, %c0_134, %c0_135] : memref<4x9x32x32xbf16, #tpu.memory_space<vmem>>, vector<1x1x32x32xbf16>
    %225 = vector.shape_cast %224 : vector<1x1x32x32xbf16> to vector<32x32xbf16>
    %226 = vector.extract_strided_slice %183 {offsets = [0, 5], sizes = [32, 123], strides = [1, 1]} : vector<32x128xbf16> to vector<32x123xbf16>
    %227 = vector.extract_strided_slice %183 {offsets = [0, 0], sizes = [32, 5], strides = [1, 1]} : vector<32x128xbf16> to vector<32x5xbf16>
    %228 = tpu.concatenate %226, %227 in 1 : vector<32x123xbf16>, vector<32x5xbf16> -> vector<32x128xbf16>
    %cst_136 = arith.constant dense<0.000000e+00> : vector<32x128xf32>
    %229 = tpu.matmul %225, %228, %cst_136 {dimension_numbers = #tpu.dot_dimension_numbers<[1], [0], [0], [1], [0, 0, 1, 1], [], []>} : vector<32x32xbf16>, vector<32x128xbf16>, vector<32x128xf32> -> vector<32x128xf32>
    %230 = arith.addf %223, %229 : vector<32x128xf32>
    %c2_137 = arith.constant 2 : index
    %c7_138 = arith.constant 7 : index
    %c0_139 = arith.constant 0 : index
    %c0_140 = arith.constant 0 : index
    %231 = vector.load %arg2[%c2_137, %c7_138, %c0_139, %c0_140] : memref<4x9x32x32xbf16, #tpu.memory_space<vmem>>, vector<1x1x32x32xbf16>
    %232 = vector.shape_cast %231 : vector<1x1x32x32xbf16> to vector<32x32xbf16>
    %233 = vector.extract_strided_slice %183 {offsets = [0, 6], sizes = [32, 122], strides = [1, 1]} : vector<32x128xbf16> to vector<32x122xbf16>
    %234 = vector.extract_strided_slice %183 {offsets = [0, 0], sizes = [32, 6], strides = [1, 1]} : vector<32x128xbf16> to vector<32x6xbf16>
    %235 = tpu.concatenate %233, %234 in 1 : vector<32x122xbf16>, vector<32x6xbf16> -> vector<32x128xbf16>
    %cst_141 = arith.constant dense<0.000000e+00> : vector<32x128xf32>
    %236 = tpu.matmul %232, %235, %cst_141 {dimension_numbers = #tpu.dot_dimension_numbers<[1], [0], [0], [1], [0, 0, 1, 1], [], []>} : vector<32x32xbf16>, vector<32x128xbf16>, vector<32x128xf32> -> vector<32x128xf32>
    %237 = arith.addf %230, %236 : vector<32x128xf32>
    %c2_142 = arith.constant 2 : index
    %c8_143 = arith.constant 8 : index
    %c0_144 = arith.constant 0 : index
    %c0_145 = arith.constant 0 : index
    %238 = vector.load %arg2[%c2_142, %c8_143, %c0_144, %c0_145] : memref<4x9x32x32xbf16, #tpu.memory_space<vmem>>, vector<1x1x32x32xbf16>
    %239 = vector.shape_cast %238 : vector<1x1x32x32xbf16> to vector<32x32xbf16>
    %240 = vector.extract_strided_slice %183 {offsets = [0, 7], sizes = [32, 121], strides = [1, 1]} : vector<32x128xbf16> to vector<32x121xbf16>
    %241 = vector.extract_strided_slice %183 {offsets = [0, 0], sizes = [32, 7], strides = [1, 1]} : vector<32x128xbf16> to vector<32x7xbf16>
    %242 = tpu.concatenate %240, %241 in 1 : vector<32x121xbf16>, vector<32x7xbf16> -> vector<32x128xbf16>
    %cst_146 = arith.constant dense<0.000000e+00> : vector<32x128xf32>
    %243 = tpu.matmul %239, %242, %cst_146 {dimension_numbers = #tpu.dot_dimension_numbers<[1], [0], [0], [1], [0, 0, 1, 1], [], []>} : vector<32x32xbf16>, vector<32x128xbf16>, vector<32x128xf32> -> vector<32x128xf32>
    %244 = arith.addf %237, %243 : vector<32x128xf32>
    %245 = vector.broadcast %0 : vector<1x128xf32> to vector<32x128xf32>
    %246 = arith.mulf %244, %245 : vector<32x128xf32>
    %cst_147 = arith.constant dense<0.000000e+00> : vector<32xf32>
    %247 = vector.multi_reduction <add>, %246, %cst_147 [1] : vector<32x128xf32> to vector<32xf32>
    %248 = vector.shape_cast %247 : vector<32xf32> to vector<32x1xf32>
    %cst_148 = arith.constant 6.250000e-02 : f32
    %249 = vector.broadcast %cst_148 : f32 to vector<32x1xf32>
    %250 = arith.mulf %248, %249 : vector<32x1xf32>
    %251 = arith.mulf %246, %244 : vector<32x128xf32>
    %cst_149 = arith.constant dense<0.000000e+00> : vector<32xf32>
    %252 = vector.multi_reduction <add>, %251, %cst_149 [1] : vector<32x128xf32> to vector<32xf32>
    %253 = vector.shape_cast %252 : vector<32xf32> to vector<32x1xf32>
    %cst_150 = arith.constant 6.250000e-02 : f32
    %254 = vector.broadcast %cst_150 : f32 to vector<32x1xf32>
    %255 = arith.mulf %253, %254 : vector<32x1xf32>
    %256 = arith.mulf %250, %250 : vector<32x1xf32>
    %257 = arith.subf %255, %256 : vector<32x1xf32>
    %cst_151 = arith.constant 0.000000e+00 : f32
    %258 = vector.broadcast %cst_151 : f32 to vector<32x1xf32>
    %259 = arith.maximumf %257, %258 : vector<32x1xf32>
    %260 = vector.broadcast %250 : vector<32x1xf32> to vector<32x128xf32>
    %261 = arith.subf %244, %260 : vector<32x128xf32>
    %cst_152 = arith.constant 9.99999974E-6 : f32
    %262 = vector.broadcast %cst_152 : f32 to vector<32x1xf32>
    %263 = arith.addf %259, %262 : vector<32x1xf32>
    %264 = math.rsqrt %263 : vector<32x1xf32>
    %265 = vector.broadcast %264 : vector<32x1xf32> to vector<32x128xf32>
    %266 = arith.mulf %261, %265 : vector<32x128xf32>
    %cst_153 = arith.constant 0.000000e+00 : f32
    %267 = vector.broadcast %cst_153 : f32 to vector<32x128xf32>
    %268 = arith.maximumf %266, %267 : vector<32x128xf32>
    %269 = vector.broadcast %0 : vector<1x128xf32> to vector<32x128xf32>
    %270 = arith.mulf %268, %269 : vector<32x128xf32>
    %271 = arith.truncf %270 : vector<32x128xf32> to vector<32x128xbf16>
    %cst_154 = arith.constant 0.000000e+00 : f32
    %272 = vector.broadcast %cst_154 : f32 to vector<32x128xf32>
    %c3_155 = arith.constant 3 : index
    %c0_156 = arith.constant 0 : index
    %c0_157 = arith.constant 0 : index
    %c0_158 = arith.constant 0 : index
    %273 = vector.load %arg2[%c3_155, %c0_156, %c0_157, %c0_158] : memref<4x9x32x32xbf16, #tpu.memory_space<vmem>>, vector<1x1x32x32xbf16>
    %274 = vector.shape_cast %273 : vector<1x1x32x32xbf16> to vector<32x32xbf16>
    %275 = vector.extract_strided_slice %271 {offsets = [0, 121], sizes = [32, 7], strides = [1, 1]} : vector<32x128xbf16> to vector<32x7xbf16>
    %276 = vector.extract_strided_slice %271 {offsets = [0, 0], sizes = [32, 121], strides = [1, 1]} : vector<32x128xbf16> to vector<32x121xbf16>
    %277 = tpu.concatenate %275, %276 in 1 : vector<32x7xbf16>, vector<32x121xbf16> -> vector<32x128xbf16>
    %cst_159 = arith.constant dense<0.000000e+00> : vector<32x128xf32>
    %278 = tpu.matmul %274, %277, %cst_159 {dimension_numbers = #tpu.dot_dimension_numbers<[1], [0], [0], [1], [0, 0, 1, 1], [], []>} : vector<32x32xbf16>, vector<32x128xbf16>, vector<32x128xf32> -> vector<32x128xf32>
    %279 = arith.addf %272, %278 : vector<32x128xf32>
    %c3_160 = arith.constant 3 : index
    %c1_161 = arith.constant 1 : index
    %c0_162 = arith.constant 0 : index
    %c0_163 = arith.constant 0 : index
    %280 = vector.load %arg2[%c3_160, %c1_161, %c0_162, %c0_163] : memref<4x9x32x32xbf16, #tpu.memory_space<vmem>>, vector<1x1x32x32xbf16>
    %281 = vector.shape_cast %280 : vector<1x1x32x32xbf16> to vector<32x32xbf16>
    %282 = vector.extract_strided_slice %271 {offsets = [0, 122], sizes = [32, 6], strides = [1, 1]} : vector<32x128xbf16> to vector<32x6xbf16>
    %283 = vector.extract_strided_slice %271 {offsets = [0, 0], sizes = [32, 122], strides = [1, 1]} : vector<32x128xbf16> to vector<32x122xbf16>
    %284 = tpu.concatenate %282, %283 in 1 : vector<32x6xbf16>, vector<32x122xbf16> -> vector<32x128xbf16>
    %cst_164 = arith.constant dense<0.000000e+00> : vector<32x128xf32>
    %285 = tpu.matmul %281, %284, %cst_164 {dimension_numbers = #tpu.dot_dimension_numbers<[1], [0], [0], [1], [0, 0, 1, 1], [], []>} : vector<32x32xbf16>, vector<32x128xbf16>, vector<32x128xf32> -> vector<32x128xf32>
    %286 = arith.addf %279, %285 : vector<32x128xf32>
    %c3_165 = arith.constant 3 : index
    %c2_166 = arith.constant 2 : index
    %c0_167 = arith.constant 0 : index
    %c0_168 = arith.constant 0 : index
    %287 = vector.load %arg2[%c3_165, %c2_166, %c0_167, %c0_168] : memref<4x9x32x32xbf16, #tpu.memory_space<vmem>>, vector<1x1x32x32xbf16>
    %288 = vector.shape_cast %287 : vector<1x1x32x32xbf16> to vector<32x32xbf16>
    %289 = vector.extract_strided_slice %271 {offsets = [0, 123], sizes = [32, 5], strides = [1, 1]} : vector<32x128xbf16> to vector<32x5xbf16>
    %290 = vector.extract_strided_slice %271 {offsets = [0, 0], sizes = [32, 123], strides = [1, 1]} : vector<32x128xbf16> to vector<32x123xbf16>
    %291 = tpu.concatenate %289, %290 in 1 : vector<32x5xbf16>, vector<32x123xbf16> -> vector<32x128xbf16>
    %cst_169 = arith.constant dense<0.000000e+00> : vector<32x128xf32>
    %292 = tpu.matmul %288, %291, %cst_169 {dimension_numbers = #tpu.dot_dimension_numbers<[1], [0], [0], [1], [0, 0, 1, 1], [], []>} : vector<32x32xbf16>, vector<32x128xbf16>, vector<32x128xf32> -> vector<32x128xf32>
    %293 = arith.addf %286, %292 : vector<32x128xf32>
    %c3_170 = arith.constant 3 : index
    %c3_171 = arith.constant 3 : index
    %c0_172 = arith.constant 0 : index
    %c0_173 = arith.constant 0 : index
    %294 = vector.load %arg2[%c3_170, %c3_171, %c0_172, %c0_173] : memref<4x9x32x32xbf16, #tpu.memory_space<vmem>>, vector<1x1x32x32xbf16>
    %295 = vector.shape_cast %294 : vector<1x1x32x32xbf16> to vector<32x32xbf16>
    %296 = vector.extract_strided_slice %271 {offsets = [0, 127], sizes = [32, 1], strides = [1, 1]} : vector<32x128xbf16> to vector<32x1xbf16>
    %297 = vector.extract_strided_slice %271 {offsets = [0, 0], sizes = [32, 127], strides = [1, 1]} : vector<32x128xbf16> to vector<32x127xbf16>
    %298 = tpu.concatenate %296, %297 in 1 : vector<32x1xbf16>, vector<32x127xbf16> -> vector<32x128xbf16>
    %cst_174 = arith.constant dense<0.000000e+00> : vector<32x128xf32>
    %299 = tpu.matmul %295, %298, %cst_174 {dimension_numbers = #tpu.dot_dimension_numbers<[1], [0], [0], [1], [0, 0, 1, 1], [], []>} : vector<32x32xbf16>, vector<32x128xbf16>, vector<32x128xf32> -> vector<32x128xf32>
    %300 = arith.addf %293, %299 : vector<32x128xf32>
    %c3_175 = arith.constant 3 : index
    %c4_176 = arith.constant 4 : index
    %c0_177 = arith.constant 0 : index
    %c0_178 = arith.constant 0 : index
    %301 = vector.load %arg2[%c3_175, %c4_176, %c0_177, %c0_178] : memref<4x9x32x32xbf16, #tpu.memory_space<vmem>>, vector<1x1x32x32xbf16>
    %302 = vector.shape_cast %301 : vector<1x1x32x32xbf16> to vector<32x32xbf16>
    %cst_179 = arith.constant dense<0.000000e+00> : vector<32x128xf32>
    %303 = tpu.matmul %302, %271, %cst_179 {dimension_numbers = #tpu.dot_dimension_numbers<[1], [0], [0], [1], [0, 0, 1, 1], [], []>} : vector<32x32xbf16>, vector<32x128xbf16>, vector<32x128xf32> -> vector<32x128xf32>
    %304 = arith.addf %300, %303 : vector<32x128xf32>
    %c3_180 = arith.constant 3 : index
    %c5_181 = arith.constant 5 : index
    %c0_182 = arith.constant 0 : index
    %c0_183 = arith.constant 0 : index
    %305 = vector.load %arg2[%c3_180, %c5_181, %c0_182, %c0_183] : memref<4x9x32x32xbf16, #tpu.memory_space<vmem>>, vector<1x1x32x32xbf16>
    %306 = vector.shape_cast %305 : vector<1x1x32x32xbf16> to vector<32x32xbf16>
    %307 = vector.extract_strided_slice %271 {offsets = [0, 1], sizes = [32, 127], strides = [1, 1]} : vector<32x128xbf16> to vector<32x127xbf16>
    %308 = vector.extract_strided_slice %271 {offsets = [0, 0], sizes = [32, 1], strides = [1, 1]} : vector<32x128xbf16> to vector<32x1xbf16>
    %309 = tpu.concatenate %307, %308 in 1 : vector<32x127xbf16>, vector<32x1xbf16> -> vector<32x128xbf16>
    %cst_184 = arith.constant dense<0.000000e+00> : vector<32x128xf32>
    %310 = tpu.matmul %306, %309, %cst_184 {dimension_numbers = #tpu.dot_dimension_numbers<[1], [0], [0], [1], [0, 0, 1, 1], [], []>} : vector<32x32xbf16>, vector<32x128xbf16>, vector<32x128xf32> -> vector<32x128xf32>
    %311 = arith.addf %304, %310 : vector<32x128xf32>
    %c3_185 = arith.constant 3 : index
    %c6_186 = arith.constant 6 : index
    %c0_187 = arith.constant 0 : index
    %c0_188 = arith.constant 0 : index
    %312 = vector.load %arg2[%c3_185, %c6_186, %c0_187, %c0_188] : memref<4x9x32x32xbf16, #tpu.memory_space<vmem>>, vector<1x1x32x32xbf16>
    %313 = vector.shape_cast %312 : vector<1x1x32x32xbf16> to vector<32x32xbf16>
    %314 = vector.extract_strided_slice %271 {offsets = [0, 5], sizes = [32, 123], strides = [1, 1]} : vector<32x128xbf16> to vector<32x123xbf16>
    %315 = vector.extract_strided_slice %271 {offsets = [0, 0], sizes = [32, 5], strides = [1, 1]} : vector<32x128xbf16> to vector<32x5xbf16>
    %316 = tpu.concatenate %314, %315 in 1 : vector<32x123xbf16>, vector<32x5xbf16> -> vector<32x128xbf16>
    %cst_189 = arith.constant dense<0.000000e+00> : vector<32x128xf32>
    %317 = tpu.matmul %313, %316, %cst_189 {dimension_numbers = #tpu.dot_dimension_numbers<[1], [0], [0], [1], [0, 0, 1, 1], [], []>} : vector<32x32xbf16>, vector<32x128xbf16>, vector<32x128xf32> -> vector<32x128xf32>
    %318 = arith.addf %311, %317 : vector<32x128xf32>
    %c3_190 = arith.constant 3 : index
    %c7_191 = arith.constant 7 : index
    %c0_192 = arith.constant 0 : index
    %c0_193 = arith.constant 0 : index
    %319 = vector.load %arg2[%c3_190, %c7_191, %c0_192, %c0_193] : memref<4x9x32x32xbf16, #tpu.memory_space<vmem>>, vector<1x1x32x32xbf16>
    %320 = vector.shape_cast %319 : vector<1x1x32x32xbf16> to vector<32x32xbf16>
    %321 = vector.extract_strided_slice %271 {offsets = [0, 6], sizes = [32, 122], strides = [1, 1]} : vector<32x128xbf16> to vector<32x122xbf16>
    %322 = vector.extract_strided_slice %271 {offsets = [0, 0], sizes = [32, 6], strides = [1, 1]} : vector<32x128xbf16> to vector<32x6xbf16>
    %323 = tpu.concatenate %321, %322 in 1 : vector<32x122xbf16>, vector<32x6xbf16> -> vector<32x128xbf16>
    %cst_194 = arith.constant dense<0.000000e+00> : vector<32x128xf32>
    %324 = tpu.matmul %320, %323, %cst_194 {dimension_numbers = #tpu.dot_dimension_numbers<[1], [0], [0], [1], [0, 0, 1, 1], [], []>} : vector<32x32xbf16>, vector<32x128xbf16>, vector<32x128xf32> -> vector<32x128xf32>
    %325 = arith.addf %318, %324 : vector<32x128xf32>
    %c3_195 = arith.constant 3 : index
    %c8_196 = arith.constant 8 : index
    %c0_197 = arith.constant 0 : index
    %c0_198 = arith.constant 0 : index
    %326 = vector.load %arg2[%c3_195, %c8_196, %c0_197, %c0_198] : memref<4x9x32x32xbf16, #tpu.memory_space<vmem>>, vector<1x1x32x32xbf16>
    %327 = vector.shape_cast %326 : vector<1x1x32x32xbf16> to vector<32x32xbf16>
    %328 = vector.extract_strided_slice %271 {offsets = [0, 7], sizes = [32, 121], strides = [1, 1]} : vector<32x128xbf16> to vector<32x121xbf16>
    %329 = vector.extract_strided_slice %271 {offsets = [0, 0], sizes = [32, 7], strides = [1, 1]} : vector<32x128xbf16> to vector<32x7xbf16>
    %330 = tpu.concatenate %328, %329 in 1 : vector<32x121xbf16>, vector<32x7xbf16> -> vector<32x128xbf16>
    %cst_199 = arith.constant dense<0.000000e+00> : vector<32x128xf32>
    %331 = tpu.matmul %327, %330, %cst_199 {dimension_numbers = #tpu.dot_dimension_numbers<[1], [0], [0], [1], [0, 0, 1, 1], [], []>} : vector<32x32xbf16>, vector<32x128xbf16>, vector<32x128xf32> -> vector<32x128xf32>
    %332 = arith.addf %325, %331 : vector<32x128xf32>
    %333 = vector.broadcast %0 : vector<1x128xf32> to vector<32x128xf32>
    %334 = arith.mulf %332, %333 : vector<32x128xf32>
    %cst_200 = arith.constant dense<0.000000e+00> : vector<32xf32>
    %335 = vector.multi_reduction <add>, %334, %cst_200 [1] : vector<32x128xf32> to vector<32xf32>
    %336 = vector.shape_cast %335 : vector<32xf32> to vector<32x1xf32>
    %cst_201 = arith.constant 6.250000e-02 : f32
    %337 = vector.broadcast %cst_201 : f32 to vector<32x1xf32>
    %338 = arith.mulf %336, %337 : vector<32x1xf32>
    %339 = arith.mulf %334, %332 : vector<32x128xf32>
    %cst_202 = arith.constant dense<0.000000e+00> : vector<32xf32>
    %340 = vector.multi_reduction <add>, %339, %cst_202 [1] : vector<32x128xf32> to vector<32xf32>
    %341 = vector.shape_cast %340 : vector<32xf32> to vector<32x1xf32>
    %cst_203 = arith.constant 6.250000e-02 : f32
    %342 = vector.broadcast %cst_203 : f32 to vector<32x1xf32>
    %343 = arith.mulf %341, %342 : vector<32x1xf32>
    %344 = arith.mulf %338, %338 : vector<32x1xf32>
    %345 = arith.subf %343, %344 : vector<32x1xf32>
    %cst_204 = arith.constant 0.000000e+00 : f32
    %346 = vector.broadcast %cst_204 : f32 to vector<32x1xf32>
    %347 = arith.maximumf %345, %346 : vector<32x1xf32>
    %348 = vector.broadcast %338 : vector<32x1xf32> to vector<32x128xf32>
    %349 = arith.subf %332, %348 : vector<32x128xf32>
    %cst_205 = arith.constant 9.99999974E-6 : f32
    %350 = vector.broadcast %cst_205 : f32 to vector<32x1xf32>
    %351 = arith.addf %347, %350 : vector<32x1xf32>
    %352 = math.rsqrt %351 : vector<32x1xf32>
    %353 = vector.broadcast %352 : vector<32x1xf32> to vector<32x128xf32>
    %354 = arith.mulf %349, %353 : vector<32x128xf32>
    %355 = arith.addf %354, %182 : vector<32x128xf32>
    %cst_206 = arith.constant 0.000000e+00 : f32
    %356 = vector.broadcast %cst_206 : f32 to vector<32x128xf32>
    %357 = arith.maximumf %355, %356 : vector<32x128xf32>
    %358 = vector.broadcast %0 : vector<1x128xf32> to vector<32x128xf32>
    %359 = arith.mulf %357, %358 : vector<32x128xf32>
    %360 = arith.truncf %359 : vector<32x128xf32> to vector<32x128xbf16>
    %c0_207 = arith.constant 0 : index
    %c0_208 = arith.constant 0 : index
    %361 = vector.load %arg5[%c0_207, %c0_208] : memref<4x128xf32, #tpu.memory_space<vmem>>, vector<4x128xf32>
    %cst_209 = arith.constant 0.000000e+00 : f32
    %362 = vector.broadcast %cst_209 : f32 to vector<16x128xf32>
    %c0_210 = arith.constant 0 : index
    %c0_211 = arith.constant 0 : index
    %c0_212 = arith.constant 0 : index
    %363 = vector.load %arg3[%c0_210, %c0_211, %c0_212] : memref<9x16x32xbf16, #tpu.memory_space<vmem>>, vector<1x16x32xbf16>
    %364 = vector.shape_cast %363 : vector<1x16x32xbf16> to vector<16x32xbf16>
    %365 = vector.extract_strided_slice %360 {offsets = [0, 7], sizes = [32, 121], strides = [1, 1]} : vector<32x128xbf16> to vector<32x121xbf16>
    %366 = vector.extract_strided_slice %360 {offsets = [0, 0], sizes = [32, 7], strides = [1, 1]} : vector<32x128xbf16> to vector<32x7xbf16>
    %367 = tpu.concatenate %365, %366 in 1 : vector<32x121xbf16>, vector<32x7xbf16> -> vector<32x128xbf16>
    %cst_213 = arith.constant dense<0.000000e+00> : vector<16x128xf32>
    %368 = tpu.matmul %364, %367, %cst_213 {dimension_numbers = #tpu.dot_dimension_numbers<[1], [0], [0], [1], [0, 0, 1, 1], [], []>} : vector<16x32xbf16>, vector<32x128xbf16>, vector<16x128xf32> -> vector<16x128xf32>
    %369 = arith.addf %362, %368 : vector<16x128xf32>
    %c2_214 = arith.constant 2 : index
    %c0_215 = arith.constant 0 : index
    %c0_216 = arith.constant 0 : index
    %370 = vector.load %arg3[%c2_214, %c0_215, %c0_216] : memref<9x16x32xbf16, #tpu.memory_space<vmem>>, vector<1x16x32xbf16>
    %371 = vector.shape_cast %370 : vector<1x16x32xbf16> to vector<16x32xbf16>
    %372 = vector.extract_strided_slice %360 {offsets = [0, 6], sizes = [32, 122], strides = [1, 1]} : vector<32x128xbf16> to vector<32x122xbf16>
    %373 = vector.extract_strided_slice %360 {offsets = [0, 0], sizes = [32, 6], strides = [1, 1]} : vector<32x128xbf16> to vector<32x6xbf16>
    %374 = tpu.concatenate %372, %373 in 1 : vector<32x122xbf16>, vector<32x6xbf16> -> vector<32x128xbf16>
    %cst_217 = arith.constant dense<0.000000e+00> : vector<16x128xf32>
    %375 = tpu.matmul %371, %374, %cst_217 {dimension_numbers = #tpu.dot_dimension_numbers<[1], [0], [0], [1], [0, 0, 1, 1], [], []>} : vector<16x32xbf16>, vector<32x128xbf16>, vector<16x128xf32> -> vector<16x128xf32>
    %376 = arith.addf %369, %375 : vector<16x128xf32>
    %c6_218 = arith.constant 6 : index
    %c0_219 = arith.constant 0 : index
    %c0_220 = arith.constant 0 : index
    %377 = vector.load %arg3[%c6_218, %c0_219, %c0_220] : memref<9x16x32xbf16, #tpu.memory_space<vmem>>, vector<1x16x32xbf16>
    %378 = vector.shape_cast %377 : vector<1x16x32xbf16> to vector<16x32xbf16>
    %379 = vector.extract_strided_slice %360 {offsets = [0, 1], sizes = [32, 127], strides = [1, 1]} : vector<32x128xbf16> to vector<32x127xbf16>
    %380 = vector.extract_strided_slice %360 {offsets = [0, 0], sizes = [32, 1], strides = [1, 1]} : vector<32x128xbf16> to vector<32x1xbf16>
    %381 = tpu.concatenate %379, %380 in 1 : vector<32x127xbf16>, vector<32x1xbf16> -> vector<32x128xbf16>
    %cst_221 = arith.constant dense<0.000000e+00> : vector<16x128xf32>
    %382 = tpu.matmul %378, %381, %cst_221 {dimension_numbers = #tpu.dot_dimension_numbers<[1], [0], [0], [1], [0, 0, 1, 1], [], []>} : vector<16x32xbf16>, vector<32x128xbf16>, vector<16x128xf32> -> vector<16x128xf32>
    %383 = arith.addf %376, %382 : vector<16x128xf32>
    %c8_222 = arith.constant 8 : index
    %c0_223 = arith.constant 0 : index
    %c0_224 = arith.constant 0 : index
    %384 = vector.load %arg3[%c8_222, %c0_223, %c0_224] : memref<9x16x32xbf16, #tpu.memory_space<vmem>>, vector<1x16x32xbf16>
    %385 = vector.shape_cast %384 : vector<1x16x32xbf16> to vector<16x32xbf16>
    %cst_225 = arith.constant dense<0.000000e+00> : vector<16x128xf32>
    %386 = tpu.matmul %385, %360, %cst_225 {dimension_numbers = #tpu.dot_dimension_numbers<[1], [0], [0], [1], [0, 0, 1, 1], [], []>} : vector<16x32xbf16>, vector<32x128xbf16>, vector<16x128xf32> -> vector<16x128xf32>
    %387 = arith.addf %383, %386 : vector<16x128xf32>
    %388 = vector.extract_strided_slice %361 {offsets = [0, 0], sizes = [1, 128], strides = [1, 1]} : vector<4x128xf32> to vector<1x128xf32>
    %389 = vector.broadcast %388 : vector<1x128xf32> to vector<16x128xf32>
    %390 = arith.mulf %387, %389 : vector<16x128xf32>
    %cst_226 = arith.constant dense<0.000000e+00> : vector<16xf32>
    %391 = vector.multi_reduction <add>, %390, %cst_226 [1] : vector<16x128xf32> to vector<16xf32>
    %392 = vector.shape_cast %391 : vector<16xf32> to vector<16x1xf32>
    %393 = arith.mulf %390, %387 : vector<16x128xf32>
    %cst_227 = arith.constant dense<0.000000e+00> : vector<16xf32>
    %394 = vector.multi_reduction <add>, %393, %cst_227 [1] : vector<16x128xf32> to vector<16xf32>
    %395 = vector.shape_cast %394 : vector<16xf32> to vector<16x1xf32>
    %cst_228 = arith.constant 0.000000e+00 : f32
    %396 = vector.broadcast %cst_228 : f32 to vector<16x128xf32>
    %c1_229 = arith.constant 1 : index
    %c0_230 = arith.constant 0 : index
    %c0_231 = arith.constant 0 : index
    %397 = vector.load %arg3[%c1_229, %c0_230, %c0_231] : memref<9x16x32xbf16, #tpu.memory_space<vmem>>, vector<1x16x32xbf16>
    %398 = vector.shape_cast %397 : vector<1x16x32xbf16> to vector<16x32xbf16>
    %399 = vector.extract_strided_slice %360 {offsets = [0, 7], sizes = [32, 121], strides = [1, 1]} : vector<32x128xbf16> to vector<32x121xbf16>
    %400 = vector.extract_strided_slice %360 {offsets = [0, 0], sizes = [32, 7], strides = [1, 1]} : vector<32x128xbf16> to vector<32x7xbf16>
    %401 = tpu.concatenate %399, %400 in 1 : vector<32x121xbf16>, vector<32x7xbf16> -> vector<32x128xbf16>
    %cst_232 = arith.constant dense<0.000000e+00> : vector<16x128xf32>
    %402 = tpu.matmul %398, %401, %cst_232 {dimension_numbers = #tpu.dot_dimension_numbers<[1], [0], [0], [1], [0, 0, 1, 1], [], []>} : vector<16x32xbf16>, vector<32x128xbf16>, vector<16x128xf32> -> vector<16x128xf32>
    %403 = arith.addf %396, %402 : vector<16x128xf32>
    %c7_233 = arith.constant 7 : index
    %c0_234 = arith.constant 0 : index
    %c0_235 = arith.constant 0 : index
    %404 = vector.load %arg3[%c7_233, %c0_234, %c0_235] : memref<9x16x32xbf16, #tpu.memory_space<vmem>>, vector<1x16x32xbf16>
    %405 = vector.shape_cast %404 : vector<1x16x32xbf16> to vector<16x32xbf16>
    %406 = vector.extract_strided_slice %360 {offsets = [0, 1], sizes = [32, 127], strides = [1, 1]} : vector<32x128xbf16> to vector<32x127xbf16>
    %407 = vector.extract_strided_slice %360 {offsets = [0, 0], sizes = [32, 1], strides = [1, 1]} : vector<32x128xbf16> to vector<32x1xbf16>
    %408 = tpu.concatenate %406, %407 in 1 : vector<32x127xbf16>, vector<32x1xbf16> -> vector<32x128xbf16>
    %cst_236 = arith.constant dense<0.000000e+00> : vector<16x128xf32>
    %409 = tpu.matmul %405, %408, %cst_236 {dimension_numbers = #tpu.dot_dimension_numbers<[1], [0], [0], [1], [0, 0, 1, 1], [], []>} : vector<16x32xbf16>, vector<32x128xbf16>, vector<16x128xf32> -> vector<16x128xf32>
    %410 = arith.addf %403, %409 : vector<16x128xf32>
    %411 = vector.extract_strided_slice %361 {offsets = [1, 0], sizes = [1, 128], strides = [1, 1]} : vector<4x128xf32> to vector<1x128xf32>
    %412 = vector.broadcast %411 : vector<1x128xf32> to vector<16x128xf32>
    %413 = arith.mulf %410, %412 : vector<16x128xf32>
    %cst_237 = arith.constant dense<0.000000e+00> : vector<16xf32>
    %414 = vector.multi_reduction <add>, %413, %cst_237 [1] : vector<16x128xf32> to vector<16xf32>
    %415 = vector.shape_cast %414 : vector<16xf32> to vector<16x1xf32>
    %416 = arith.mulf %413, %410 : vector<16x128xf32>
    %cst_238 = arith.constant dense<0.000000e+00> : vector<16xf32>
    %417 = vector.multi_reduction <add>, %416, %cst_238 [1] : vector<16x128xf32> to vector<16xf32>
    %418 = vector.shape_cast %417 : vector<16xf32> to vector<16x1xf32>
    %419 = arith.addf %392, %415 : vector<16x1xf32>
    %420 = arith.addf %395, %418 : vector<16x1xf32>
    %cst_239 = arith.constant 0.000000e+00 : f32
    %421 = vector.broadcast %cst_239 : f32 to vector<16x128xf32>
    %c3_240 = arith.constant 3 : index
    %c0_241 = arith.constant 0 : index
    %c0_242 = arith.constant 0 : index
    %422 = vector.load %arg3[%c3_240, %c0_241, %c0_242] : memref<9x16x32xbf16, #tpu.memory_space<vmem>>, vector<1x16x32xbf16>
    %423 = vector.shape_cast %422 : vector<1x16x32xbf16> to vector<16x32xbf16>
    %424 = vector.extract_strided_slice %360 {offsets = [0, 7], sizes = [32, 121], strides = [1, 1]} : vector<32x128xbf16> to vector<32x121xbf16>
    %425 = vector.extract_strided_slice %360 {offsets = [0, 0], sizes = [32, 7], strides = [1, 1]} : vector<32x128xbf16> to vector<32x7xbf16>
    %426 = tpu.concatenate %424, %425 in 1 : vector<32x121xbf16>, vector<32x7xbf16> -> vector<32x128xbf16>
    %cst_243 = arith.constant dense<0.000000e+00> : vector<16x128xf32>
    %427 = tpu.matmul %423, %426, %cst_243 {dimension_numbers = #tpu.dot_dimension_numbers<[1], [0], [0], [1], [0, 0, 1, 1], [], []>} : vector<16x32xbf16>, vector<32x128xbf16>, vector<16x128xf32> -> vector<16x128xf32>
    %428 = arith.addf %421, %427 : vector<16x128xf32>
    %c5_244 = arith.constant 5 : index
    %c0_245 = arith.constant 0 : index
    %c0_246 = arith.constant 0 : index
    %429 = vector.load %arg3[%c5_244, %c0_245, %c0_246] : memref<9x16x32xbf16, #tpu.memory_space<vmem>>, vector<1x16x32xbf16>
    %430 = vector.shape_cast %429 : vector<1x16x32xbf16> to vector<16x32xbf16>
    %431 = vector.extract_strided_slice %360 {offsets = [0, 6], sizes = [32, 122], strides = [1, 1]} : vector<32x128xbf16> to vector<32x122xbf16>
    %432 = vector.extract_strided_slice %360 {offsets = [0, 0], sizes = [32, 6], strides = [1, 1]} : vector<32x128xbf16> to vector<32x6xbf16>
    %433 = tpu.concatenate %431, %432 in 1 : vector<32x122xbf16>, vector<32x6xbf16> -> vector<32x128xbf16>
    %cst_247 = arith.constant dense<0.000000e+00> : vector<16x128xf32>
    %434 = tpu.matmul %430, %433, %cst_247 {dimension_numbers = #tpu.dot_dimension_numbers<[1], [0], [0], [1], [0, 0, 1, 1], [], []>} : vector<16x32xbf16>, vector<32x128xbf16>, vector<16x128xf32> -> vector<16x128xf32>
    %435 = arith.addf %428, %434 : vector<16x128xf32>
    %436 = vector.extract_strided_slice %361 {offsets = [2, 0], sizes = [1, 128], strides = [1, 1]} : vector<4x128xf32> to vector<1x128xf32>
    %437 = vector.broadcast %436 : vector<1x128xf32> to vector<16x128xf32>
    %438 = arith.mulf %435, %437 : vector<16x128xf32>
    %cst_248 = arith.constant dense<0.000000e+00> : vector<16xf32>
    %439 = vector.multi_reduction <add>, %438, %cst_248 [1] : vector<16x128xf32> to vector<16xf32>
    %440 = vector.shape_cast %439 : vector<16xf32> to vector<16x1xf32>
    %441 = arith.mulf %438, %435 : vector<16x128xf32>
    %cst_249 = arith.constant dense<0.000000e+00> : vector<16xf32>
    %442 = vector.multi_reduction <add>, %441, %cst_249 [1] : vector<16x128xf32> to vector<16xf32>
    %443 = vector.shape_cast %442 : vector<16xf32> to vector<16x1xf32>
    %444 = arith.addf %419, %440 : vector<16x1xf32>
    %445 = arith.addf %420, %443 : vector<16x1xf32>
    %cst_250 = arith.constant 0.000000e+00 : f32
    %446 = vector.broadcast %cst_250 : f32 to vector<16x128xf32>
    %c4_251 = arith.constant 4 : index
    %c0_252 = arith.constant 0 : index
    %c0_253 = arith.constant 0 : index
    %447 = vector.load %arg3[%c4_251, %c0_252, %c0_253] : memref<9x16x32xbf16, #tpu.memory_space<vmem>>, vector<1x16x32xbf16>
    %448 = vector.shape_cast %447 : vector<1x16x32xbf16> to vector<16x32xbf16>
    %449 = vector.extract_strided_slice %360 {offsets = [0, 7], sizes = [32, 121], strides = [1, 1]} : vector<32x128xbf16> to vector<32x121xbf16>
    %450 = vector.extract_strided_slice %360 {offsets = [0, 0], sizes = [32, 7], strides = [1, 1]} : vector<32x128xbf16> to vector<32x7xbf16>
    %451 = tpu.concatenate %449, %450 in 1 : vector<32x121xbf16>, vector<32x7xbf16> -> vector<32x128xbf16>
    %cst_254 = arith.constant dense<0.000000e+00> : vector<16x128xf32>
    %452 = tpu.matmul %448, %451, %cst_254 {dimension_numbers = #tpu.dot_dimension_numbers<[1], [0], [0], [1], [0, 0, 1, 1], [], []>} : vector<16x32xbf16>, vector<32x128xbf16>, vector<16x128xf32> -> vector<16x128xf32>
    %453 = arith.addf %446, %452 : vector<16x128xf32>
    %454 = vector.extract_strided_slice %361 {offsets = [3, 0], sizes = [1, 128], strides = [1, 1]} : vector<4x128xf32> to vector<1x128xf32>
    %455 = vector.broadcast %454 : vector<1x128xf32> to vector<16x128xf32>
    %456 = arith.mulf %453, %455 : vector<16x128xf32>
    %cst_255 = arith.constant dense<0.000000e+00> : vector<16xf32>
    %457 = vector.multi_reduction <add>, %456, %cst_255 [1] : vector<16x128xf32> to vector<16xf32>
    %458 = vector.shape_cast %457 : vector<16xf32> to vector<16x1xf32>
    %459 = arith.mulf %456, %453 : vector<16x128xf32>
    %cst_256 = arith.constant dense<0.000000e+00> : vector<16xf32>
    %460 = vector.multi_reduction <add>, %459, %cst_256 [1] : vector<16x128xf32> to vector<16xf32>
    %461 = vector.shape_cast %460 : vector<16xf32> to vector<16x1xf32>
    %462 = arith.addf %444, %458 : vector<16x1xf32>
    %463 = arith.addf %445, %461 : vector<16x1xf32>
    %cst_257 = arith.constant 0.0123456791 : f32
    %464 = vector.broadcast %cst_257 : f32 to vector<16x1xf32>
    %465 = arith.mulf %462, %464 : vector<16x1xf32>
    %cst_258 = arith.constant 0.0123456791 : f32
    %466 = vector.broadcast %cst_258 : f32 to vector<16x1xf32>
    %467 = arith.mulf %463, %466 : vector<16x1xf32>
    %468 = arith.mulf %465, %465 : vector<16x1xf32>
    %469 = arith.subf %467, %468 : vector<16x1xf32>
    %cst_259 = arith.constant 0.000000e+00 : f32
    %470 = vector.broadcast %cst_259 : f32 to vector<16x1xf32>
    %471 = arith.maximumf %469, %470 : vector<16x1xf32>
    %cst_260 = arith.constant 9.99999974E-6 : f32
    %472 = vector.broadcast %cst_260 : f32 to vector<16x1xf32>
    %473 = arith.addf %471, %472 : vector<16x1xf32>
    %474 = math.rsqrt %473 : vector<16x1xf32>
    %475 = vector.broadcast %465 : vector<16x1xf32> to vector<16x128xf32>
    %476 = arith.subf %387, %475 : vector<16x128xf32>
    %477 = vector.broadcast %474 : vector<16x1xf32> to vector<16x128xf32>
    %478 = arith.mulf %476, %477 : vector<16x128xf32>
    %cst_261 = arith.constant 0.000000e+00 : f32
    %479 = vector.broadcast %cst_261 : f32 to vector<16x128xf32>
    %480 = arith.maximumf %478, %479 : vector<16x128xf32>
    %481 = vector.extract_strided_slice %361 {offsets = [0, 0], sizes = [1, 128], strides = [1, 1]} : vector<4x128xf32> to vector<1x128xf32>
    %482 = vector.broadcast %481 : vector<1x128xf32> to vector<16x128xf32>
    %483 = arith.mulf %480, %482 : vector<16x128xf32>
    %484 = arith.truncf %483 : vector<16x128xf32> to vector<16x128xbf16>
    %c0_262 = arith.constant 0 : index
    %c0_263 = arith.constant 0 : index
    %c0_264 = arith.constant 0 : index
    %c0_265 = arith.constant 0 : index
    %485 = vector.load %arg6[%c0_262, %c0_263, %c0_264, %c0_265] : memref<1x4x16x128xbf16, #tpu.memory_space<vmem>>, vector<1x1x16x128xbf16>
    %486 = vector.shape_cast %485 : vector<1x1x16x128xbf16> to vector<16x128xbf16>
    %487 = vector.shape_cast %484 : vector<16x128xbf16> to vector<1x1x16x128xbf16>
    tpu.vector_store %arg6[%c0_262, %c0_263, %c0_264, %c0_265], %487 {strides = array<i32>} : memref<1x4x16x128xbf16, #tpu.memory_space<vmem>>, vector<1x1x16x128xbf16>,
    %488 = vector.broadcast %465 : vector<16x1xf32> to vector<16x128xf32>
    %489 = arith.subf %410, %488 : vector<16x128xf32>
    %490 = vector.broadcast %474 : vector<16x1xf32> to vector<16x128xf32>
    %491 = arith.mulf %489, %490 : vector<16x128xf32>
    %cst_266 = arith.constant 0.000000e+00 : f32
    %492 = vector.broadcast %cst_266 : f32 to vector<16x128xf32>
    %493 = arith.maximumf %491, %492 : vector<16x128xf32>
    %494 = vector.extract_strided_slice %361 {offsets = [1, 0], sizes = [1, 128], strides = [1, 1]} : vector<4x128xf32> to vector<1x128xf32>
    %495 = vector.broadcast %494 : vector<1x128xf32> to vector<16x128xf32>
    %496 = arith.mulf %493, %495 : vector<16x128xf32>
    %497 = arith.truncf %496 : vector<16x128xf32> to vector<16x128xbf16>
    %c0_267 = arith.constant 0 : index
    %c1_268 = arith.constant 1 : index
    %c0_269 = arith.constant 0 : index
    %c0_270 = arith.constant 0 : index
    %498 = vector.load %arg6[%c0_267, %c1_268, %c0_269, %c0_270] : memref<1x4x16x128xbf16, #tpu.memory_space<vmem>>, vector<1x1x16x128xbf16>
    %499 = vector.shape_cast %498 : vector<1x1x16x128xbf16> to vector<16x128xbf16>
    %500 = vector.shape_cast %497 : vector<16x128xbf16> to vector<1x1x16x128xbf16>
    tpu.vector_store %arg6[%c0_267, %c1_268, %c0_269, %c0_270], %500 {strides = array<i32>} : memref<1x4x16x128xbf16, #tpu.memory_space<vmem>>, vector<1x1x16x128xbf16>,
    %501 = vector.broadcast %465 : vector<16x1xf32> to vector<16x128xf32>
    %502 = arith.subf %435, %501 : vector<16x128xf32>
    %503 = vector.broadcast %474 : vector<16x1xf32> to vector<16x128xf32>
    %504 = arith.mulf %502, %503 : vector<16x128xf32>
    %cst_271 = arith.constant 0.000000e+00 : f32
    %505 = vector.broadcast %cst_271 : f32 to vector<16x128xf32>
    %506 = arith.maximumf %504, %505 : vector<16x128xf32>
    %507 = vector.extract_strided_slice %361 {offsets = [2, 0], sizes = [1, 128], strides = [1, 1]} : vector<4x128xf32> to vector<1x128xf32>
    %508 = vector.broadcast %507 : vector<1x128xf32> to vector<16x128xf32>
    %509 = arith.mulf %506, %508 : vector<16x128xf32>
    %510 = arith.truncf %509 : vector<16x128xf32> to vector<16x128xbf16>
    %c0_272 = arith.constant 0 : index
    %c2_273 = arith.constant 2 : index
    %c0_274 = arith.constant 0 : index
    %c0_275 = arith.constant 0 : index
    %511 = vector.load %arg6[%c0_272, %c2_273, %c0_274, %c0_275] : memref<1x4x16x128xbf16, #tpu.memory_space<vmem>>, vector<1x1x16x128xbf16>
    %512 = vector.shape_cast %511 : vector<1x1x16x128xbf16> to vector<16x128xbf16>
    %513 = vector.shape_cast %510 : vector<16x128xbf16> to vector<1x1x16x128xbf16>
    tpu.vector_store %arg6[%c0_272, %c2_273, %c0_274, %c0_275], %513 {strides = array<i32>} : memref<1x4x16x128xbf16, #tpu.memory_space<vmem>>, vector<1x1x16x128xbf16>,
    %514 = vector.broadcast %465 : vector<16x1xf32> to vector<16x128xf32>
    %515 = arith.subf %453, %514 : vector<16x128xf32>
    %516 = vector.broadcast %474 : vector<16x1xf32> to vector<16x128xf32>
    %517 = arith.mulf %515, %516 : vector<16x128xf32>
    %cst_276 = arith.constant 0.000000e+00 : f32
    %518 = vector.broadcast %cst_276 : f32 to vector<16x128xf32>
    %519 = arith.maximumf %517, %518 : vector<16x128xf32>
    %520 = vector.extract_strided_slice %361 {offsets = [3, 0], sizes = [1, 128], strides = [1, 1]} : vector<4x128xf32> to vector<1x128xf32>
    %521 = vector.broadcast %520 : vector<1x128xf32> to vector<16x128xf32>
    %522 = arith.mulf %519, %521 : vector<16x128xf32>
    %523 = arith.truncf %522 : vector<16x128xf32> to vector<16x128xbf16>
    %c0_277 = arith.constant 0 : index
    %c3_278 = arith.constant 3 : index
    %c0_279 = arith.constant 0 : index
    %c0_280 = arith.constant 0 : index
    %524 = vector.load %arg6[%c0_277, %c3_278, %c0_279, %c0_280] : memref<1x4x16x128xbf16, #tpu.memory_space<vmem>>, vector<1x1x16x128xbf16>
    %525 = vector.shape_cast %524 : vector<1x1x16x128xbf16> to vector<16x128xbf16>
    %526 = vector.shape_cast %523 : vector<16x128xbf16> to vector<1x1x16x128xbf16>
    tpu.vector_store %arg6[%c0_277, %c3_278, %c0_279, %c0_280], %526 {strides = array<i32>} : memref<1x4x16x128xbf16, #tpu.memory_space<vmem>>, vector<1x1x16x128xbf16>,
    return
  }
  func.func @transform_0(%arg0: i32) -> (i32, i32, i32) {
    %c0_i32 = arith.constant 0 : i32
    %c0_i32_0 = arith.constant 0 : i32
    %c0_i32_1 = arith.constant 0 : i32
    return %arg0, %c0_i32, %c0_i32_0 : i32, i32, i32
  }
  func.func @transform_1(%arg0: i32) -> (i32, i32, i32, i32) {
    %c0_i32 = arith.constant 0 : i32
    %c0_i32_0 = arith.constant 0 : i32
    %c0_i32_1 = arith.constant 0 : i32
    %c0_i32_2 = arith.constant 0 : i32
    %c0_i32_3 = arith.constant 0 : i32
    return %c0_i32, %c0_i32_0, %c0_i32_1, %c0_i32_2 : i32, i32, i32, i32
  }
  func.func @transform_2(%arg0: i32) -> (i32, i32, i32) {
    %c0_i32 = arith.constant 0 : i32
    %c0_i32_0 = arith.constant 0 : i32
    %c0_i32_1 = arith.constant 0 : i32
    %c0_i32_2 = arith.constant 0 : i32
    return %c0_i32, %c0_i32_0, %c0_i32_1 : i32, i32, i32
  }
  func.func @transform_3(%arg0: i32) -> (i32, i32) {
    %c0_i32 = arith.constant 0 : i32
    %c0_i32_0 = arith.constant 0 : i32
    %c0_i32_1 = arith.constant 0 : i32
    return %c0_i32, %c0_i32_0 : i32, i32
  }
  func.func @transform_4(%arg0: i32) -> (i32, i32) {
    %c0_i32 = arith.constant 0 : i32
    %c0_i32_0 = arith.constant 0 : i32
    %c0_i32_1 = arith.constant 0 : i32
    return %c0_i32, %c0_i32_0 : i32, i32
  }
  func.func @transform_5(%arg0: i32) -> (i32, i32, i32, i32) {
    %c0_i32 = arith.constant 0 : i32
    %c0_i32_0 = arith.constant 0 : i32
    %c0_i32_1 = arith.constant 0 : i32
    %c0_i32_2 = arith.constant 0 : i32
    return %arg0, %c0_i32, %c0_i32_0, %c0_i32_1 : i32, i32, i32, i32
  }
}

module attributes {stable_mosaic.version = 11 : i64} {
  func.func @kernel(%arg0: i32, %arg1: memref<1x1x16x128xbf16, #tpu.memory_space<vmem>>, %arg2: memref<9x1x16xbf16, #tpu.memory_space<vmem>>, %arg3: memref<1x4x1x128xf32, #tpu.memory_space<vmem>>) attributes {dimension_semantics = [#tpu.dimension_semantics<parallel>], iteration_bounds = array<i64: 2>, scalar_prefetch = 0 : i64, scratch_operands = 0 : i64, tpu.core_type = #tpu.core_type<tc>, window_params = [{transform_indices = @transform_0, window_bounds = array<i64: 1, 1, 16, 128>}, {pipeline_mode = #tpu.pipeline_mode<synchronous>, transform_indices = @transform_1, window_bounds = array<i64: 9, 1, 16>}, {transform_indices = @transform_2, window_bounds = array<i64: 1, 4, 1, 128>}]} {
    %c0 = arith.constant 0 : index
    %c0_0 = arith.constant 0 : index
    %c0_1 = arith.constant 0 : index
    %c0_2 = arith.constant 0 : index
    %0 = vector.load %arg1[%c0, %c0_0, %c0_1, %c0_2] : memref<1x1x16x128xbf16, #tpu.memory_space<vmem>>, vector<1x1x16x128xbf16>
    %1 = vector.shape_cast %0 : vector<1x1x16x128xbf16> to vector<16x128xbf16>
    %cst = arith.constant 0.000000e+00 : f32
    %2 = vector.broadcast %cst : f32 to vector<1x128xf32>
    %c0_3 = arith.constant 0 : index
    %c0_4 = arith.constant 0 : index
    %c0_5 = arith.constant 0 : index
    %3 = vector.load %arg2[%c0_3, %c0_4, %c0_5] : memref<9x1x16xbf16, #tpu.memory_space<vmem>>, vector<1x1x16xbf16>
    %4 = vector.shape_cast %3 : vector<1x1x16xbf16> to vector<1x16xbf16>
    %5 = vector.extract_strided_slice %1 {offsets = [0, 10], sizes = [16, 118], strides = [1, 1]} : vector<16x128xbf16> to vector<16x118xbf16>
    %6 = vector.extract_strided_slice %1 {offsets = [0, 0], sizes = [16, 10], strides = [1, 1]} : vector<16x128xbf16> to vector<16x10xbf16>
    %7 = tpu.concatenate %5, %6 in 1 : vector<16x118xbf16>, vector<16x10xbf16> -> vector<16x128xbf16>
    %cst_6 = arith.constant dense<0.000000e+00> : vector<1x128xf32>
    %8 = tpu.matmul %4, %7, %cst_6 {dimension_numbers = #tpu.dot_dimension_numbers<[1], [0], [0], [1], [0, 0, 1, 1], [], []>} : vector<1x16xbf16>, vector<16x128xbf16>, vector<1x128xf32> -> vector<1x128xf32>
    %9 = arith.addf %2, %8 : vector<1x128xf32>
    %c2 = arith.constant 2 : index
    %c0_7 = arith.constant 0 : index
    %c0_8 = arith.constant 0 : index
    %10 = vector.load %arg2[%c2, %c0_7, %c0_8] : memref<9x1x16xbf16, #tpu.memory_space<vmem>>, vector<1x1x16xbf16>
    %11 = vector.shape_cast %10 : vector<1x1x16xbf16> to vector<1x16xbf16>
    %12 = vector.extract_strided_slice %1 {offsets = [0, 9], sizes = [16, 119], strides = [1, 1]} : vector<16x128xbf16> to vector<16x119xbf16>
    %13 = vector.extract_strided_slice %1 {offsets = [0, 0], sizes = [16, 9], strides = [1, 1]} : vector<16x128xbf16> to vector<16x9xbf16>
    %14 = tpu.concatenate %12, %13 in 1 : vector<16x119xbf16>, vector<16x9xbf16> -> vector<16x128xbf16>
    %cst_9 = arith.constant dense<0.000000e+00> : vector<1x128xf32>
    %15 = tpu.matmul %11, %14, %cst_9 {dimension_numbers = #tpu.dot_dimension_numbers<[1], [0], [0], [1], [0, 0, 1, 1], [], []>} : vector<1x16xbf16>, vector<16x128xbf16>, vector<1x128xf32> -> vector<1x128xf32>
    %16 = arith.addf %9, %15 : vector<1x128xf32>
    %c6 = arith.constant 6 : index
    %c0_10 = arith.constant 0 : index
    %c0_11 = arith.constant 0 : index
    %17 = vector.load %arg2[%c6, %c0_10, %c0_11] : memref<9x1x16xbf16, #tpu.memory_space<vmem>>, vector<1x1x16xbf16>
    %18 = vector.shape_cast %17 : vector<1x1x16xbf16> to vector<1x16xbf16>
    %19 = vector.extract_strided_slice %1 {offsets = [0, 1], sizes = [16, 127], strides = [1, 1]} : vector<16x128xbf16> to vector<16x127xbf16>
    %20 = vector.extract_strided_slice %1 {offsets = [0, 0], sizes = [16, 1], strides = [1, 1]} : vector<16x128xbf16> to vector<16x1xbf16>
    %21 = tpu.concatenate %19, %20 in 1 : vector<16x127xbf16>, vector<16x1xbf16> -> vector<16x128xbf16>
    %cst_12 = arith.constant dense<0.000000e+00> : vector<1x128xf32>
    %22 = tpu.matmul %18, %21, %cst_12 {dimension_numbers = #tpu.dot_dimension_numbers<[1], [0], [0], [1], [0, 0, 1, 1], [], []>} : vector<1x16xbf16>, vector<16x128xbf16>, vector<1x128xf32> -> vector<1x128xf32>
    %23 = arith.addf %16, %22 : vector<1x128xf32>
    %c8 = arith.constant 8 : index
    %c0_13 = arith.constant 0 : index
    %c0_14 = arith.constant 0 : index
    %24 = vector.load %arg2[%c8, %c0_13, %c0_14] : memref<9x1x16xbf16, #tpu.memory_space<vmem>>, vector<1x1x16xbf16>
    %25 = vector.shape_cast %24 : vector<1x1x16xbf16> to vector<1x16xbf16>
    %cst_15 = arith.constant dense<0.000000e+00> : vector<1x128xf32>
    %26 = tpu.matmul %25, %1, %cst_15 {dimension_numbers = #tpu.dot_dimension_numbers<[1], [0], [0], [1], [0, 0, 1, 1], [], []>} : vector<1x16xbf16>, vector<16x128xbf16>, vector<1x128xf32> -> vector<1x128xf32>
    %27 = arith.addf %23, %26 : vector<1x128xf32>
    %cst_16 = arith.constant 0.000000e+00 : f32
    %28 = vector.broadcast %cst_16 : f32 to vector<1x128xf32>
    %c1 = arith.constant 1 : index
    %c0_17 = arith.constant 0 : index
    %c0_18 = arith.constant 0 : index
    %29 = vector.load %arg2[%c1, %c0_17, %c0_18] : memref<9x1x16xbf16, #tpu.memory_space<vmem>>, vector<1x1x16xbf16>
    %30 = vector.shape_cast %29 : vector<1x1x16xbf16> to vector<1x16xbf16>
    %31 = vector.extract_strided_slice %1 {offsets = [0, 10], sizes = [16, 118], strides = [1, 1]} : vector<16x128xbf16> to vector<16x118xbf16>
    %32 = vector.extract_strided_slice %1 {offsets = [0, 0], sizes = [16, 10], strides = [1, 1]} : vector<16x128xbf16> to vector<16x10xbf16>
    %33 = tpu.concatenate %31, %32 in 1 : vector<16x118xbf16>, vector<16x10xbf16> -> vector<16x128xbf16>
    %cst_19 = arith.constant dense<0.000000e+00> : vector<1x128xf32>
    %34 = tpu.matmul %30, %33, %cst_19 {dimension_numbers = #tpu.dot_dimension_numbers<[1], [0], [0], [1], [0, 0, 1, 1], [], []>} : vector<1x16xbf16>, vector<16x128xbf16>, vector<1x128xf32> -> vector<1x128xf32>
    %35 = arith.addf %28, %34 : vector<1x128xf32>
    %c7 = arith.constant 7 : index
    %c0_20 = arith.constant 0 : index
    %c0_21 = arith.constant 0 : index
    %36 = vector.load %arg2[%c7, %c0_20, %c0_21] : memref<9x1x16xbf16, #tpu.memory_space<vmem>>, vector<1x1x16xbf16>
    %37 = vector.shape_cast %36 : vector<1x1x16xbf16> to vector<1x16xbf16>
    %38 = vector.extract_strided_slice %1 {offsets = [0, 1], sizes = [16, 127], strides = [1, 1]} : vector<16x128xbf16> to vector<16x127xbf16>
    %39 = vector.extract_strided_slice %1 {offsets = [0, 0], sizes = [16, 1], strides = [1, 1]} : vector<16x128xbf16> to vector<16x1xbf16>
    %40 = tpu.concatenate %38, %39 in 1 : vector<16x127xbf16>, vector<16x1xbf16> -> vector<16x128xbf16>
    %cst_22 = arith.constant dense<0.000000e+00> : vector<1x128xf32>
    %41 = tpu.matmul %37, %40, %cst_22 {dimension_numbers = #tpu.dot_dimension_numbers<[1], [0], [0], [1], [0, 0, 1, 1], [], []>} : vector<1x16xbf16>, vector<16x128xbf16>, vector<1x128xf32> -> vector<1x128xf32>
    %42 = arith.addf %35, %41 : vector<1x128xf32>
    %cst_23 = arith.constant 0.000000e+00 : f32
    %43 = vector.broadcast %cst_23 : f32 to vector<1x128xf32>
    %c3 = arith.constant 3 : index
    %c0_24 = arith.constant 0 : index
    %c0_25 = arith.constant 0 : index
    %44 = vector.load %arg2[%c3, %c0_24, %c0_25] : memref<9x1x16xbf16, #tpu.memory_space<vmem>>, vector<1x1x16xbf16>
    %45 = vector.shape_cast %44 : vector<1x1x16xbf16> to vector<1x16xbf16>
    %46 = vector.extract_strided_slice %1 {offsets = [0, 10], sizes = [16, 118], strides = [1, 1]} : vector<16x128xbf16> to vector<16x118xbf16>
    %47 = vector.extract_strided_slice %1 {offsets = [0, 0], sizes = [16, 10], strides = [1, 1]} : vector<16x128xbf16> to vector<16x10xbf16>
    %48 = tpu.concatenate %46, %47 in 1 : vector<16x118xbf16>, vector<16x10xbf16> -> vector<16x128xbf16>
    %cst_26 = arith.constant dense<0.000000e+00> : vector<1x128xf32>
    %49 = tpu.matmul %45, %48, %cst_26 {dimension_numbers = #tpu.dot_dimension_numbers<[1], [0], [0], [1], [0, 0, 1, 1], [], []>} : vector<1x16xbf16>, vector<16x128xbf16>, vector<1x128xf32> -> vector<1x128xf32>
    %50 = arith.addf %43, %49 : vector<1x128xf32>
    %c5 = arith.constant 5 : index
    %c0_27 = arith.constant 0 : index
    %c0_28 = arith.constant 0 : index
    %51 = vector.load %arg2[%c5, %c0_27, %c0_28] : memref<9x1x16xbf16, #tpu.memory_space<vmem>>, vector<1x1x16xbf16>
    %52 = vector.shape_cast %51 : vector<1x1x16xbf16> to vector<1x16xbf16>
    %53 = vector.extract_strided_slice %1 {offsets = [0, 9], sizes = [16, 119], strides = [1, 1]} : vector<16x128xbf16> to vector<16x119xbf16>
    %54 = vector.extract_strided_slice %1 {offsets = [0, 0], sizes = [16, 9], strides = [1, 1]} : vector<16x128xbf16> to vector<16x9xbf16>
    %55 = tpu.concatenate %53, %54 in 1 : vector<16x119xbf16>, vector<16x9xbf16> -> vector<16x128xbf16>
    %cst_29 = arith.constant dense<0.000000e+00> : vector<1x128xf32>
    %56 = tpu.matmul %52, %55, %cst_29 {dimension_numbers = #tpu.dot_dimension_numbers<[1], [0], [0], [1], [0, 0, 1, 1], [], []>} : vector<1x16xbf16>, vector<16x128xbf16>, vector<1x128xf32> -> vector<1x128xf32>
    %57 = arith.addf %50, %56 : vector<1x128xf32>
    %cst_30 = arith.constant 0.000000e+00 : f32
    %58 = vector.broadcast %cst_30 : f32 to vector<1x128xf32>
    %c4 = arith.constant 4 : index
    %c0_31 = arith.constant 0 : index
    %c0_32 = arith.constant 0 : index
    %59 = vector.load %arg2[%c4, %c0_31, %c0_32] : memref<9x1x16xbf16, #tpu.memory_space<vmem>>, vector<1x1x16xbf16>
    %60 = vector.shape_cast %59 : vector<1x1x16xbf16> to vector<1x16xbf16>
    %61 = vector.extract_strided_slice %1 {offsets = [0, 10], sizes = [16, 118], strides = [1, 1]} : vector<16x128xbf16> to vector<16x118xbf16>
    %62 = vector.extract_strided_slice %1 {offsets = [0, 0], sizes = [16, 10], strides = [1, 1]} : vector<16x128xbf16> to vector<16x10xbf16>
    %63 = tpu.concatenate %61, %62 in 1 : vector<16x118xbf16>, vector<16x10xbf16> -> vector<16x128xbf16>
    %cst_33 = arith.constant dense<0.000000e+00> : vector<1x128xf32>
    %64 = tpu.matmul %60, %63, %cst_33 {dimension_numbers = #tpu.dot_dimension_numbers<[1], [0], [0], [1], [0, 0, 1, 1], [], []>} : vector<1x16xbf16>, vector<16x128xbf16>, vector<1x128xf32> -> vector<1x128xf32>
    %65 = arith.addf %58, %64 : vector<1x128xf32>
    %66 = math.tanh %27 : vector<1x128xf32>
    %c0_34 = arith.constant 0 : index
    %c0_35 = arith.constant 0 : index
    %c0_36 = arith.constant 0 : index
    %c0_37 = arith.constant 0 : index
    %67 = vector.load %arg3[%c0_34, %c0_35, %c0_36, %c0_37] : memref<1x4x1x128xf32, #tpu.memory_space<vmem>>, vector<1x1x1x128xf32>
    %68 = vector.shape_cast %67 : vector<1x1x1x128xf32> to vector<1x128xf32>
    %69 = vector.shape_cast %66 : vector<1x128xf32> to vector<1x1x1x128xf32>
    tpu.vector_store %arg3[%c0_34, %c0_35, %c0_36, %c0_37], %69 {strides = array<i32>} : memref<1x4x1x128xf32, #tpu.memory_space<vmem>>, vector<1x1x1x128xf32>,
    %70 = math.tanh %42 : vector<1x128xf32>
    %c0_38 = arith.constant 0 : index
    %c1_39 = arith.constant 1 : index
    %c0_40 = arith.constant 0 : index
    %c0_41 = arith.constant 0 : index
    %71 = vector.load %arg3[%c0_38, %c1_39, %c0_40, %c0_41] : memref<1x4x1x128xf32, #tpu.memory_space<vmem>>, vector<1x1x1x128xf32>
    %72 = vector.shape_cast %71 : vector<1x1x1x128xf32> to vector<1x128xf32>
    %73 = vector.shape_cast %70 : vector<1x128xf32> to vector<1x1x1x128xf32>
    tpu.vector_store %arg3[%c0_38, %c1_39, %c0_40, %c0_41], %73 {strides = array<i32>} : memref<1x4x1x128xf32, #tpu.memory_space<vmem>>, vector<1x1x1x128xf32>,
    %74 = math.tanh %57 : vector<1x128xf32>
    %c0_42 = arith.constant 0 : index
    %c2_43 = arith.constant 2 : index
    %c0_44 = arith.constant 0 : index
    %c0_45 = arith.constant 0 : index
    %75 = vector.load %arg3[%c0_42, %c2_43, %c0_44, %c0_45] : memref<1x4x1x128xf32, #tpu.memory_space<vmem>>, vector<1x1x1x128xf32>
    %76 = vector.shape_cast %75 : vector<1x1x1x128xf32> to vector<1x128xf32>
    %77 = vector.shape_cast %74 : vector<1x128xf32> to vector<1x1x1x128xf32>
    tpu.vector_store %arg3[%c0_42, %c2_43, %c0_44, %c0_45], %77 {strides = array<i32>} : memref<1x4x1x128xf32, #tpu.memory_space<vmem>>, vector<1x1x1x128xf32>,
    %78 = math.tanh %65 : vector<1x128xf32>
    %c0_46 = arith.constant 0 : index
    %c3_47 = arith.constant 3 : index
    %c0_48 = arith.constant 0 : index
    %c0_49 = arith.constant 0 : index
    %79 = vector.load %arg3[%c0_46, %c3_47, %c0_48, %c0_49] : memref<1x4x1x128xf32, #tpu.memory_space<vmem>>, vector<1x1x1x128xf32>
    %80 = vector.shape_cast %79 : vector<1x1x1x128xf32> to vector<1x128xf32>
    %81 = vector.shape_cast %78 : vector<1x128xf32> to vector<1x1x1x128xf32>
    tpu.vector_store %arg3[%c0_46, %c3_47, %c0_48, %c0_49], %81 {strides = array<i32>} : memref<1x4x1x128xf32, #tpu.memory_space<vmem>>, vector<1x1x1x128xf32>,
    return
  }
  func.func @transform_0(%arg0: i32) -> (i32, i32, i32, i32) {
    %c0_i32 = arith.constant 0 : i32
    %c0_i32_0 = arith.constant 0 : i32
    %c0_i32_1 = arith.constant 0 : i32
    %c0_i32_2 = arith.constant 0 : i32
    return %arg0, %c0_i32, %c0_i32_0, %c0_i32_1 : i32, i32, i32, i32
  }
  func.func @transform_1(%arg0: i32) -> (i32, i32, i32) {
    %c0_i32 = arith.constant 0 : i32
    %c0_i32_0 = arith.constant 0 : i32
    %c0_i32_1 = arith.constant 0 : i32
    %c0_i32_2 = arith.constant 0 : i32
    return %c0_i32, %c0_i32_0, %c0_i32_1 : i32, i32, i32
  }
  func.func @transform_2(%arg0: i32) -> (i32, i32, i32, i32) {
    %c0_i32 = arith.constant 0 : i32
    %c0_i32_0 = arith.constant 0 : i32
    %c0_i32_1 = arith.constant 0 : i32
    %c0_i32_2 = arith.constant 0 : i32
    return %arg0, %c0_i32, %c0_i32_0, %c0_i32_1 : i32, i32, i32, i32
  }
}

</mosaic_0001>

<bundles_post_ra>
// kernel: squeeze.11
= control target key start
LH: loop header
LB: loop body
LE: loop exit
PB: predicated region body
PF: predicated region fallthrough
CT: control target
= control target key end

     0   :  { %vm98_vm0 = vcmask 146432   ;;  %vm496_vm1 = vcmask 1014784   ;;  %vm547_vm2 = vcmask 1031168   ;;  %s1293_s12 = smov 114   ;;  %s1294_s13 = smov 94   ;;  %vm500_vm3 = vcmask 31744   ;;  %s1552_s0 = inlined_call_operand.vmem [shape: bf16[2,1,8,324], index: 0, kind: input, shape index: {}]   ;;  %s1553_s1 = inlined_call_operand.vmem [shape: bf16[2,8,18,18], index: 1, kind: output, shape index: {}]  }
   0x1   :  { %v1166_v0 = vld [vmem:[%s1552_s0 + $0x8] sm:$0xff]   ;;  %v1042_v1 = vld [vmem:[%s1552_s0] sm:$0xff]   ;;  %v1165_v2 = vld [vmem:[%s1552_s0 + $0x10] sm:$0xff]   ;;  %s1292_s0 = smov 110   ;;  %s1295_s14 = smov 112   ;;  %vm509_vm4 = vcmask 146464  }
   0x2   :  { %v1040_v3 = vunpack.c.h.bf16 %v1166_v0  ;;  %v1043_v4 = vunpack.c.l.bf16 %v1042_v1  ;;  %v1044_v5 = vunpack.c.h.bf16 %v1042_v1  ;;  %v1036_v6 = vunpack.c.h.bf16 %v1165_v2  ;;  %s1296_s15 = smov 4   ;;  %s1297_s16 = smov 96  }
   0x3   :  { %v1039_v7 = vunpack.c.l.bf16 %v1166_v0  ;;  %v1035_v8 = vunpack.c.l.bf16 %v1165_v2  ;;  %s1298_s17 = smov 2   ;;  %s1299_s18 = smov 92   ;;  %vm551_vm5 = vcmask 15360   ;;  %vm560_vm6 = vcmask 146448  }
   0x4   :  { %52 = vst [vmem:[#allocation1 + $0x18] sm:$0xff] %v1040_v3  ;;  %96 = vst [vmem:[#allocation1] sm:$0xff] %v1043_v4  ;;  %s1300_s19 = smov 78   ;;  %s1301_s20 = smov 76  }
   0x5   :  { %83 = vst [vmem:[#allocation1 + $0x8] sm:$0xff] %v1044_v5  ;;  %20 = vst [vmem:[#allocation1 + $0x28] sm:$0xff] %v1036_v6  ;;  %s1302_s21 = smov 74   ;;  %s1303_s22 = smov 58  }
   0x6   :  { %105 = vst.msk [vmem:[#allocation0 + $0xc0] ss:$24 sm:$0xf] %vm98_vm0, %v1040_v3   ;;  %107 = vst.msk [vmem:[#allocation0 + $0xc0] ss:$24 sm:$0xf0] %vm98_vm0, %v1040_v3  }
   0x7   :  { %99 = vst.msk [vmem:[#allocation0] ss:$24 sm:$0xf] %vm98_vm0, %v1043_v4   ;;  %100 = vst.msk [vmem:[#allocation0] ss:$24 sm:$0xf0] %vm98_vm0, %v1043_v4  }
   0x8   :  { %68 = vst [vmem:[#allocation1 + $0x10] sm:$0xff] %v1039_v7  ;;  %36 = vst [vmem:[#allocation1 + $0x20] sm:$0xff] %v1035_v8  ;;  %s1304_s23 = smov 56   ;;  %s1305_s24 = smov 40  }
   0x9   :  { %s1306_s25 = smov 38   ;;  %s1307_s26 = smov 22  }
   0xa   :  { %s1308_s27 = smov 20  }
   0xb   :  { %v160_v9 = vld.sshfl [vmem:[#allocation1] sm:$0xff pattern:$0x56741230]   ;;  %v173_v10 = vld.sshfl [vmem:[#allocation1 + $0x18] sm:$0xff pattern:$0x56741230]  }
   0xc   :  { %v1217_v11 = vpack.i.bf16 %v173_v10, %v160_v9  ;;  %v122_v13 = vld.sshfl [vmem:[#allocation1 + $0x28] sm:$0xff pattern:$0x67452301]  }
   0xd   :  { %v212_v15 = vld.sshfl [vmem:[#allocation1 + $0x8] sm:$0xff pattern:$0x67452301]  }
   0xe   :  { %1218 = vrot.lane.b32.xlu0 %v1217_v11, %s1292_s0  ;;  %v199_v21 = vld.sshfl [vmem:[#allocation1 + $0x28] sm:$0xff pattern:$0x74563012]  }
   0xf   :  { %v109_v12 = vld.sshfl [vmem:[#allocation1 + $0x10] sm:$0xff pattern:$0x67452301]   ;;  %v225_v16 = vld.sshfl [vmem:[#allocation1 + $0x20] sm:$0xff pattern:$0x67452301]  }
  0x10   :  { %v1207_v14 = vpack.i.bf16 %v122_v13, %v109_v12  ;;  %v1227_v17 = vpack.i.bf16 %v225_v16, %v212_v15  ;;  %v497_v18 = vsel %vm496_vm1, %v109_v12, %v212_v15  ;;  %v523_v19 = vsel %vm496_vm1, %v122_v13, %v225_v16  ;;  %v186_v20 = vld.sshfl [vmem:[#allocation1 + $0x10] sm:$0xff pattern:$0x74563012]   ;;  %v546_v22 = vld.sshfl [vmem:[#allocation1 + $0x8] sm:$0xff pattern:$0x56741230]  }
  0x11   :  { %v572_v23 = vld.sshfl [vmem:[#allocation1 + $0x20] sm:$0xff pattern:$0x56741230]   ;;  %v1237_v24 = vpack.i.bf16 %v523_v19, %v497_v18  ;;  %v1222_v25 = vpack.i.bf16 %v199_v21, %v186_v20  ;;  %v548_v26 = vsel %vm547_vm2, %v546_v22, %v160_v9 }
  0x12   :  { %1208 = vrot.lane.b32.xlu1 %v1207_v14, %s1293_s12  ;;  %1228 = vrot.lane.b32.xlu0 %v1227_v17, %s1294_s13  ;;  %v574_v27 = vsel %vm547_vm2, %v572_v23, %v173_v10 }
  0x13   :  { %v1242_v28 = vpack.i.bf16 %v574_v27, %v548_v26 }
  0x16   :  { %1213 = vrot.lane.b32.xlu1 %v1227_v17, %s1295_s14  ;;  %1238 = vrot.lane.b32.xlu0 %v1237_v24, %s1296_s15 }
  0x1a   :  { %1223 = vrot.lane.b32.xlu1 %v1222_v25, %s1297_s16  ;;  %1243 = vrot.lane.b32.xlu0 %v1242_v28, %s1298_s17 }
  0x1e   :  { %1233 = vrot.lane.b32.xlu1 %v1217_v11, %s1299_s18  ;;  %1248 = vrot.lane.b32.xlu0 %v1222_v25, %s1300_s19 }
  0x22   :  { %1253 = vrot.lane.b32.xlu1 %v1227_v17, %s1301_s20  ;;  %1258 = vrot.lane.b32.xlu0 %v1217_v11, %s1302_s21 }
  0x26   :  { %1263 = vrot.lane.b32.xlu1 %v1227_v17, %s1303_s22  ;;  %1268 = vrot.lane.b32.xlu0 %v1217_v11, %s1304_s23 }
  0x2a   :  { %1273 = vrot.lane.b32.xlu1 %v1227_v17, %s1305_s24  ;;  %1278 = vrot.lane.b32.xlu0 %v1217_v11, %s1306_s25 }
  0x2e   :  { %1283 = vrot.lane.b32.xlu1 %v1227_v17, %s1307_s26  ;;  %1288 = vrot.lane.b32.xlu0 %v1217_v11, %s1308_s27 }
  0x80   :  { %v1219_v29 = vpop.permute.xlu0 %1218 }
  0x81   :  { %v1221_v30 = vunpack.i.h.bf16 %v1219_v29  ;;  %v1220_v31 = vunpack.i.l.bf16 %v1219_v29 }
  0x83   :  { %178 = vst.msk [vmem:[#allocation0 + $0xc1] ss:$72 sm:$0x3] %vm98_vm0, %v1221_v30   ;;  %180 = vst.msk [vmem:[#allocation0 + $0x121] ss:$-24 sm:$0xc] %vm98_vm0, %v1221_v30  }
  0x84   :  { %v1209_v32 = vpop.permute.xlu1 %1208  ;;  %182 = vst.msk [vmem:[#allocation0 + $0x1] ss:$72 sm:$0x30] %vm98_vm0, %v1221_v30   ;;  %184 = vst.msk [vmem:[#allocation0 + $0x1e1] ss:$-24 sm:$0xc0] %vm98_vm0, %v1221_v30   ;;  %v1229_v35 = vpop.permute.xlu0 %1228 }
  0x85   :  { %v1211_v33 = vunpack.i.h.bf16 %v1209_v32  ;;  %v1210_v34 = vunpack.i.l.bf16 %v1209_v32  ;;  %165 = vst.msk [vmem:[#allocation0 + $0x1] ss:$72 sm:$0x3] %vm98_vm0, %v1220_v31   ;;  %167 = vst.msk [vmem:[#allocation0 + $0x61] ss:$-24 sm:$0xc] %vm98_vm0, %v1220_v31   ;;  %v1231_v36 = vunpack.i.h.bf16 %v1229_v35  ;;  %v1230_v37 = vunpack.i.l.bf16 %v1229_v35 }
  0x86   :  { %169 = vst.msk [vmem:[#allocation0 - $0xbf] ss:$72 sm:$0x30] %vm98_vm0, %v1220_v31   ;;  %171 = vst.msk [vmem:[#allocation0 + $0x121] ss:$-24 sm:$0xc0] %vm98_vm0, %v1220_v31  }
  0x87   :  { %127 = vst.msk [vmem:[#allocation0 + $0xe7] ss:$-24 sm:$0x3] %vm98_vm0, %v1211_v33   ;;  %129 = vst.msk [vmem:[#allocation0 + $0x147] ss:$-24 sm:$0xc] %vm98_vm0, %v1211_v33  }
  0x88   :  { %131 = vst.msk [vmem:[#allocation0 + $0x1a7] ss:$-24 sm:$0x30] %vm98_vm0, %v1211_v33   ;;  %133 = vst.msk [vmem:[#allocation0 + $0x207] ss:$-24 sm:$0xc0] %vm98_vm0, %v1211_v33   ;;  %v1214_v38 = vpop.permute.xlu1 %1213  ;;  %v1239_v41 = vpop.permute.xlu0 %1238 }
  0x89   :  { %114 = vst.msk [vmem:[#allocation0 + $0x27] ss:$-24 sm:$0x3] %vm98_vm0, %v1210_v34   ;;  %116 = vst.msk [vmem:[#allocation0 + $0x87] ss:$-24 sm:$0xc] %vm98_vm0, %v1210_v34   ;;  %v1216_v39 = vunpack.i.h.bf16 %v1214_v38  ;;  %v1215_v40 = vunpack.i.l.bf16 %v1214_v38  ;;  %v1241_v42 = vunpack.i.h.bf16 %v1239_v41  ;;  %v1240_v43 = vunpack.i.l.bf16 %v1239_v41 }
  0x8a   :  { %118 = vst.msk [vmem:[#allocation0 + $0xe7] ss:$-24 sm:$0x30] %vm98_vm0, %v1210_v34   ;;  %120 = vst.msk [vmem:[#allocation0 + $0x147] ss:$-24 sm:$0xc0] %vm98_vm0, %v1210_v34  }
  0x8b   :  { %230 = vst.msk [vmem:[#allocation0 + $0xe1] ss:$-24 sm:$0x3] %vm98_vm0, %v1231_v36   ;;  %232 = vst.msk [vmem:[#allocation0 + $0x141] ss:$-24 sm:$0xc] %vm98_vm0, %v1231_v36  }
  0x8c   :  { %234 = vst.msk [vmem:[#allocation0 + $0x1a1] ss:$-24 sm:$0x30] %vm98_vm0, %v1231_v36   ;;  %236 = vst.msk [vmem:[#allocation0 + $0x201] ss:$-24 sm:$0xc0] %vm98_vm0, %v1231_v36   ;;  %v1224_v44 = vpop.permute.xlu1 %1223  ;;  %v1244_v47 = vpop.permute.xlu0 %1243 }
  0x8d   :  { %217 = vst.msk [vmem:[#allocation0 + $0x21] ss:$-24 sm:$0x3] %vm98_vm0, %v1230_v37   ;;  %219 = vst.msk [vmem:[#allocation0 + $0x81] ss:$-24 sm:$0xc] %vm98_vm0, %v1230_v37   ;;  %v1226_v45 = vunpack.i.h.bf16 %v1224_v44  ;;  %v1225_v46 = vunpack.i.l.bf16 %v1224_v44  ;;  %v1246_v48 = vunpack.i.h.bf16 %v1244_v47  ;;  %v1245_v49 = vunpack.i.l.bf16 %v1244_v47 }
  0x8e   :  { %221 = vst.msk [vmem:[#allocation0 + $0xe1] ss:$-24 sm:$0x30] %vm98_vm0, %v1230_v37   ;;  %223 = vst.msk [vmem:[#allocation0 + $0x141] ss:$-24 sm:$0xc0] %vm98_vm0, %v1230_v37  }
  0x8f   :  { %153 = vst.msk [vmem:[#allocation0 + $0xe0] ss:$-24 sm:$0x3] %vm98_vm0, %v1216_v39   ;;  %155 = vst.msk [vmem:[#allocation0 + $0x140] ss:$-24 sm:$0xc] %vm98_vm0, %v1216_v39  }
  0x90   :  { %157 = vst.msk [vmem:[#allocation0 + $0x1a0] ss:$-24 sm:$0x30] %vm98_vm0, %v1216_v39   ;;  %159 = vst.msk [vmem:[#allocation0 + $0x200] ss:$-24 sm:$0xc0] %vm98_vm0, %v1216_v39   ;;  %v1234_v50 = vpop.permute.xlu1 %1233  ;;  %v1249_v53 = vpop.permute.xlu0 %1248 }
  0x91   :  { %140 = vst.msk [vmem:[#allocation0 + $0x20] ss:$-24 sm:$0x3] %vm98_vm0, %v1215_v40   ;;  %142 = vst.msk [vmem:[#allocation0 + $0x80] ss:$-24 sm:$0xc] %vm98_vm0, %v1215_v40   ;;  %v1236_v51 = vunpack.i.h.bf16 %v1234_v50  ;;  %v1235_v52 = vunpack.i.l.bf16 %v1234_v50  ;;  %v1251_v54 = vunpack.i.h.bf16 %v1249_v53  ;;  %v1250_v55 = vunpack.i.l.bf16 %v1249_v53 }
  0x92   :  { %144 = vst.msk [vmem:[#allocation0 + $0xe0] ss:$-24 sm:$0x30] %vm98_vm0, %v1215_v40   ;;  %146 = vst.msk [vmem:[#allocation0 + $0x140] ss:$-24 sm:$0xc0] %vm98_vm0, %v1215_v40  }
  0x93   :  { %508 = vst.msk [vmem:[#allocation0 + $0x146] ss:$-24 sm:$0xc0] %vm500_vm3, %v1240_v43   ;;  %528 = vst.msk [vmem:[#allocation0 + $0xe6] ss:$-24 sm:$0x3] %vm500_vm3, %v1241_v42  }
  0x94   :  { %530 = vst.msk [vmem:[#allocation0 + $0x146] ss:$-24 sm:$0xc] %vm500_vm3, %v1241_v42   ;;  %532 = vst.msk [vmem:[#allocation0 + $0x1a6] ss:$-24 sm:$0x30] %vm500_vm3, %v1241_v42   ;;  %v1254_v56 = vpop.permute.xlu1 %1253  ;;  %v1259_v59 = vpop.permute.xlu0 %1258 }
  0x95   :  { %534 = vst.msk [vmem:[#allocation0 + $0x206] ss:$-24 sm:$0xc0] %vm500_vm3, %v1241_v42   ;;  %502 = vst.msk [vmem:[#allocation0 + $0x26] ss:$-24 sm:$0x3] %vm500_vm3, %v1240_v43   ;;  %v1256_v57 = vunpack.i.h.bf16 %v1254_v56  ;;  %v1255_v58 = vunpack.i.l.bf16 %v1254_v56  ;;  %v1261_v60 = vunpack.i.h.bf16 %v1259_v59  ;;  %v1260_v61 = vunpack.i.l.bf16 %v1259_v59 }
  0x96   :  { %504 = vst.msk [vmem:[#allocation0 + $0x86] ss:$-24 sm:$0xc] %vm500_vm3, %v1240_v43   ;;  %506 = vst.msk [vmem:[#allocation0 + $0xe6] ss:$-24 sm:$0x30] %vm500_vm3, %v1240_v43  }
  0x97   :  { %517 = vst.msk [vmem:[#allocation0 + $0x146] ss:$-24 sm:$0xc0] %vm509_vm4, %v1240_v43   ;;  %537 = vst.msk [vmem:[#allocation0 + $0xe6] ss:$-24 sm:$0x3] %vm509_vm4, %v1241_v42  }
  0x98   :  { %539 = vst.msk [vmem:[#allocation0 + $0x146] ss:$-24 sm:$0xc] %vm509_vm4, %v1241_v42   ;;  %541 = vst.msk [vmem:[#allocation0 + $0x1a6] ss:$-24 sm:$0x30] %vm509_vm4, %v1241_v42   ;;  %v1264_v62 = vpop.permute.xlu1 %1263  ;;  %v1269_v1 = vpop.permute.xlu0 %1268 }
  0x99   :  { %543 = vst.msk [vmem:[#allocation0 + $0x206] ss:$-24 sm:$0xc0] %vm509_vm4, %v1241_v42   ;;  %511 = vst.msk [vmem:[#allocation0 + $0x26] ss:$-24 sm:$0x3] %vm509_vm4, %v1240_v43   ;;  %v1266_v63 = vunpack.i.h.bf16 %v1264_v62  ;;  %v1265_v0 = vunpack.i.l.bf16 %v1264_v62  ;;  %v1271_v2 = vunpack.i.h.bf16 %v1269_v1  ;;  %v1270_v3 = vunpack.i.l.bf16 %v1269_v1 }
  0x9a   :  { %204 = vst.msk [vmem:[#allocation0 + $0x100] ss:$-24 sm:$0x7] %vm98_vm0, %v1226_v45   ;;  %206 = vst.msk [vmem:[#allocation0 + $0x40] ss:$72 sm:$0x18] %vm98_vm0, %v1226_v45  }
  0x9b   :  { %208 = vst.msk [vmem:[#allocation0 + $0x1c0] ss:$-24 sm:$0x60] %vm98_vm0, %v1226_v45   ;;  %210 = vst.msk [vmem:[#allocation0 + $0x171] sm:$0x80] %vm98_vm0, %v1226_v45  }
  0x9c   :  { %191 = vst.msk [vmem:[#allocation0 + $0x40] ss:$-24 sm:$0x7] %vm98_vm0, %v1225_v46   ;;  %193 = vst.msk [vmem:[#allocation0 - $0x80] ss:$72 sm:$0x18] %vm98_vm0, %v1225_v46   ;;  %v1274_v4 = vpop.permute.xlu1 %1273  ;;  %v1279_v7 = vpop.permute.xlu0 %1278 }
  0x9d   :  { %195 = vst.msk [vmem:[#allocation0 + $0x100] ss:$-24 sm:$0x60] %vm98_vm0, %v1225_v46   ;;  %197 = vst.msk [vmem:[#allocation0 + $0xb1] sm:$0x80] %vm98_vm0, %v1225_v46   ;;  %v1276_v5 = vunpack.i.h.bf16 %v1274_v4  ;;  %v1275_v6 = vunpack.i.l.bf16 %v1274_v4  ;;  %v1281_v8 = vunpack.i.h.bf16 %v1279_v7  ;;  %v1280_v9 = vunpack.i.l.bf16 %v1279_v7 }
  0x9e   :  { %513 = vst.msk [vmem:[#allocation0 + $0x86] ss:$-24 sm:$0xc] %vm509_vm4, %v1240_v43   ;;  %515 = vst.msk [vmem:[#allocation0 + $0xe6] ss:$-24 sm:$0x30] %vm509_vm4, %v1240_v43  }
  0x9f   :  { %553 = vst.msk [vmem:[#allocation0 + $0x7] ss:$72 sm:$0x3] %vm551_vm5, %v1245_v49   ;;  %555 = vst.msk [vmem:[#allocation0 + $0x67] ss:$-24 sm:$0xc] %vm551_vm5, %v1245_v49  }
  0xa0   :  { %557 = vst.msk [vmem:[#allocation0 - $0xb9] ss:$72 sm:$0x30] %vm551_vm5, %v1245_v49   ;;  %559 = vst.msk [vmem:[#allocation0 + $0x127] ss:$-24 sm:$0xc0] %vm551_vm5, %v1245_v49   ;;  %v1284_v10 = vpop.permute.xlu1 %1283  ;;  %v1289_v13 = vpop.permute.xlu0 %1288 }
  0xa1   :  { %579 = vst.msk [vmem:[#allocation0 + $0xc7] ss:$72 sm:$0x3] %vm551_vm5, %v1246_v48   ;;  %581 = vst.msk [vmem:[#allocation0 + $0x127] ss:$-24 sm:$0xc] %vm551_vm5, %v1246_v48   ;;  %v1286_v11 = vunpack.i.h.bf16 %v1284_v10  ;;  %v1285_v12 = vunpack.i.l.bf16 %v1284_v10  ;;  %v1291_v14 = vunpack.i.h.bf16 %v1289_v13  ;;  %v1290_v15 = vunpack.i.l.bf16 %v1289_v13 }
  0xa2   :  { %583 = vst.msk [vmem:[#allocation0 + $0x7] ss:$72 sm:$0x30] %vm551_vm5, %v1246_v48   ;;  %585 = vst.msk [vmem:[#allocation0 + $0x1e7] ss:$-24 sm:$0xc0] %vm551_vm5, %v1246_v48  }
  0xa3   :  { %255 = vst.msk [vmem:[#allocation0 + $0xc2] ss:$72 sm:$0x3] %vm98_vm0, %v1236_v51   ;;  %257 = vst.msk [vmem:[#allocation0 + $0x122] ss:$-24 sm:$0xc] %vm98_vm0, %v1236_v51  }
  0xa4   :  { %259 = vst.msk [vmem:[#allocation0 + $0x2] ss:$72 sm:$0x30] %vm98_vm0, %v1236_v51   ;;  %261 = vst.msk [vmem:[#allocation0 + $0x1e2] ss:$-24 sm:$0xc0] %vm98_vm0, %v1236_v51  }
  0xa5   :  { %242 = vst.msk [vmem:[#allocation0 + $0x2] ss:$72 sm:$0x3] %vm98_vm0, %v1235_v52   ;;  %244 = vst.msk [vmem:[#allocation0 + $0x62] ss:$-24 sm:$0xc] %vm98_vm0, %v1235_v52  }
  0xa6   :  { %246 = vst.msk [vmem:[#allocation0 - $0xbe] ss:$72 sm:$0x30] %vm98_vm0, %v1235_v52   ;;  %248 = vst.msk [vmem:[#allocation0 + $0x122] ss:$-24 sm:$0xc0] %vm98_vm0, %v1235_v52  }
  0xa7   :  { %562 = vst.msk [vmem:[#allocation0 + $0x7] ss:$72 sm:$0x3] %vm560_vm6, %v1245_v49   ;;  %564 = vst.msk [vmem:[#allocation0 + $0x67] ss:$-24 sm:$0xc] %vm560_vm6, %v1245_v49  }
  0xa8   :  { %566 = vst.msk [vmem:[#allocation0 - $0xb9] ss:$72 sm:$0x30] %vm560_vm6, %v1245_v49   ;;  %568 = vst.msk [vmem:[#allocation0 + $0x127] ss:$-24 sm:$0xc0] %vm560_vm6, %v1245_v49  }
  0xa9   :  { %588 = vst.msk [vmem:[#allocation0 + $0xc7] ss:$72 sm:$0x3] %vm560_vm6, %v1246_v48   ;;  %590 = vst.msk [vmem:[#allocation0 + $0x127] ss:$-24 sm:$0xc] %vm560_vm6, %v1246_v48  }
  0xaa   :  { %592 = vst.msk [vmem:[#allocation0 + $0x7] ss:$72 sm:$0x30] %vm560_vm6, %v1246_v48   ;;  %594 = vst.msk [vmem:[#allocation0 + $0x1e7] ss:$-24 sm:$0xc0] %vm560_vm6, %v1246_v48  }
  0xab   :  { %281 = vst.msk [vmem:[#allocation0 + $0x101] ss:$-24 sm:$0x7] %vm98_vm0, %v1251_v54   ;;  %283 = vst.msk [vmem:[#allocation0 + $0x41] ss:$72 sm:$0x18] %vm98_vm0, %v1251_v54  }
  0xac   :  { %285 = vst.msk [vmem:[#allocation0 + $0x1c1] ss:$-24 sm:$0x60] %vm98_vm0, %v1251_v54   ;;  %287 = vst.msk [vmem:[#allocation0 + $0x172] sm:$0x80] %vm98_vm0, %v1251_v54  }
  0xad   :  { %268 = vst.msk [vmem:[#allocation0 + $0x41] ss:$-24 sm:$0x7] %vm98_vm0, %v1250_v55   ;;  %270 = vst.msk [vmem:[#allocation0 - $0x7f] ss:$72 sm:$0x18] %vm98_vm0, %v1250_v55  }
  0xae   :  { %272 = vst.msk [vmem:[#allocation0 + $0x101] ss:$-24 sm:$0x60] %vm98_vm0, %v1250_v55   ;;  %274 = vst.msk [vmem:[#allocation0 + $0xb2] sm:$0x80] %vm98_vm0, %v1250_v55  }
  0xaf   :  { %307 = vst.msk [vmem:[#allocation0 + $0xe2] ss:$-24 sm:$0x3] %vm98_vm0, %v1256_v57   ;;  %309 = vst.msk [vmem:[#allocation0 + $0x142] ss:$-24 sm:$0xc] %vm98_vm0, %v1256_v57  }
  0xb0   :  { %311 = vst.msk [vmem:[#allocation0 + $0x1a2] ss:$-24 sm:$0x30] %vm98_vm0, %v1256_v57   ;;  %313 = vst.msk [vmem:[#allocation0 + $0x202] ss:$-24 sm:$0xc0] %vm98_vm0, %v1256_v57  }
  0xb1   :  { %294 = vst.msk [vmem:[#allocation0 + $0x22] ss:$-24 sm:$0x3] %vm98_vm0, %v1255_v58   ;;  %296 = vst.msk [vmem:[#allocation0 + $0x82] ss:$-24 sm:$0xc] %vm98_vm0, %v1255_v58  }
  0xb2   :  { %298 = vst.msk [vmem:[#allocation0 + $0xe2] ss:$-24 sm:$0x30] %vm98_vm0, %v1255_v58   ;;  %300 = vst.msk [vmem:[#allocation0 + $0x142] ss:$-24 sm:$0xc0] %vm98_vm0, %v1255_v58  }
  0xb3   :  { %332 = vst.msk [vmem:[#allocation0 + $0xc3] ss:$72 sm:$0x3] %vm98_vm0, %v1261_v60   ;;  %334 = vst.msk [vmem:[#allocation0 + $0x123] ss:$-24 sm:$0xc] %vm98_vm0, %v1261_v60  }
  0xb4   :  { %336 = vst.msk [vmem:[#allocation0 + $0x3] ss:$72 sm:$0x30] %vm98_vm0, %v1261_v60   ;;  %338 = vst.msk [vmem:[#allocation0 + $0x1e3] ss:$-24 sm:$0xc0] %vm98_vm0, %v1261_v60  }
  0xb5   :  { %319 = vst.msk [vmem:[#allocation0 + $0x3] ss:$72 sm:$0x3] %vm98_vm0, %v1260_v61   ;;  %321 = vst.msk [vmem:[#allocation0 + $0x63] ss:$-24 sm:$0xc] %vm98_vm0, %v1260_v61  }
  0xb6   :  { %323 = vst.msk [vmem:[#allocation0 - $0xbd] ss:$72 sm:$0x30] %vm98_vm0, %v1260_v61   ;;  %325 = vst.msk [vmem:[#allocation0 + $0x123] ss:$-24 sm:$0xc0] %vm98_vm0, %v1260_v61  }
  0xb7   :  { %358 = vst.msk [vmem:[#allocation0 + $0xe3] ss:$-24 sm:$0x3] %vm98_vm0, %v1266_v63   ;;  %360 = vst.msk [vmem:[#allocation0 + $0x143] ss:$-24 sm:$0xc] %vm98_vm0, %v1266_v63  }
  0xb8   :  { %362 = vst.msk [vmem:[#allocation0 + $0x1a3] ss:$-24 sm:$0x30] %vm98_vm0, %v1266_v63   ;;  %364 = vst.msk [vmem:[#allocation0 + $0x203] ss:$-24 sm:$0xc0] %vm98_vm0, %v1266_v63  }
  0xb9   :  { %345 = vst.msk [vmem:[#allocation0 + $0x23] ss:$-24 sm:$0x3] %vm98_vm0, %v1265_v0   ;;  %347 = vst.msk [vmem:[#allocation0 + $0x83] ss:$-24 sm:$0xc] %vm98_vm0, %v1265_v0  }
  0xba   :  { %349 = vst.msk [vmem:[#allocation0 + $0xe3] ss:$-24 sm:$0x30] %vm98_vm0, %v1265_v0   ;;  %351 = vst.msk [vmem:[#allocation0 + $0x143] ss:$-24 sm:$0xc0] %vm98_vm0, %v1265_v0  }
  0xbb   :  { %383 = vst.msk [vmem:[#allocation0 + $0xc4] ss:$72 sm:$0x3] %vm98_vm0, %v1271_v2   ;;  %385 = vst.msk [vmem:[#allocation0 + $0x124] ss:$-24 sm:$0xc] %vm98_vm0, %v1271_v2  }
  0xbc   :  { %387 = vst.msk [vmem:[#allocation0 + $0x4] ss:$72 sm:$0x30] %vm98_vm0, %v1271_v2   ;;  %389 = vst.msk [vmem:[#allocation0 + $0x1e4] ss:$-24 sm:$0xc0] %vm98_vm0, %v1271_v2  }
  0xbd   :  { %370 = vst.msk [vmem:[#allocation0 + $0x4] ss:$72 sm:$0x3] %vm98_vm0, %v1270_v3   ;;  %372 = vst.msk [vmem:[#allocation0 + $0x64] ss:$-24 sm:$0xc] %vm98_vm0, %v1270_v3  }
  0xbe   :  { %374 = vst.msk [vmem:[#allocation0 - $0xbc] ss:$72 sm:$0x30] %vm98_vm0, %v1270_v3   ;;  %376 = vst.msk [vmem:[#allocation0 + $0x124] ss:$-24 sm:$0xc0] %vm98_vm0, %v1270_v3  }
  0xbf   :  { %409 = vst.msk [vmem:[#allocation0 + $0xe4] ss:$-24 sm:$0x3] %vm98_vm0, %v1276_v5   ;;  %411 = vst.msk [vmem:[#allocation0 + $0x144] ss:$-24 sm:$0xc] %vm98_vm0, %v1276_v5  }
  0xc0   :  { %413 = vst.msk [vmem:[#allocation0 + $0x1a4] ss:$-24 sm:$0x30] %vm98_vm0, %v1276_v5   ;;  %415 = vst.msk [vmem:[#allocation0 + $0x204] ss:$-24 sm:$0xc0] %vm98_vm0, %v1276_v5  }
  0xc1   :  { %396 = vst.msk [vmem:[#allocation0 + $0x24] ss:$-24 sm:$0x3] %vm98_vm0, %v1275_v6   ;;  %398 = vst.msk [vmem:[#allocation0 + $0x84] ss:$-24 sm:$0xc] %vm98_vm0, %v1275_v6  }
  0xc2   :  { %400 = vst.msk [vmem:[#allocation0 + $0xe4] ss:$-24 sm:$0x30] %vm98_vm0, %v1275_v6   ;;  %402 = vst.msk [vmem:[#allocation0 + $0x144] ss:$-24 sm:$0xc0] %vm98_vm0, %v1275_v6  }
  0xc3   :  { %434 = vst.msk [vmem:[#allocation0 + $0xc5] ss:$72 sm:$0x3] %vm98_vm0, %v1281_v8   ;;  %436 = vst.msk [vmem:[#allocation0 + $0x125] ss:$-24 sm:$0xc] %vm98_vm0, %v1281_v8  }
  0xc4   :  { %438 = vst.msk [vmem:[#allocation0 + $0x5] ss:$72 sm:$0x30] %vm98_vm0, %v1281_v8   ;;  %440 = vst.msk [vmem:[#allocation0 + $0x1e5] ss:$-24 sm:$0xc0] %vm98_vm0, %v1281_v8  }
  0xc5   :  { %421 = vst.msk [vmem:[#allocation0 + $0x5] ss:$72 sm:$0x3] %vm98_vm0, %v1280_v9   ;;  %423 = vst.msk [vmem:[#allocation0 + $0x65] ss:$-24 sm:$0xc] %vm98_vm0, %v1280_v9  }
  0xc6   :  { %425 = vst.msk [vmem:[#allocation0 - $0xbb] ss:$72 sm:$0x30] %vm98_vm0, %v1280_v9   ;;  %427 = vst.msk [vmem:[#allocation0 + $0x125] ss:$-24 sm:$0xc0] %vm98_vm0, %v1280_v9  }
  0xc7   :  { %460 = vst.msk [vmem:[#allocation0 + $0xe5] ss:$-24 sm:$0x3] %vm98_vm0, %v1286_v11   ;;  %462 = vst.msk [vmem:[#allocation0 + $0x145] ss:$-24 sm:$0xc] %vm98_vm0, %v1286_v11  }
  0xc8   :  { %464 = vst.msk [vmem:[#allocation0 + $0x1a5] ss:$-24 sm:$0x30] %vm98_vm0, %v1286_v11   ;;  %466 = vst.msk [vmem:[#allocation0 + $0x205] ss:$-24 sm:$0xc0] %vm98_vm0, %v1286_v11  }
  0xc9   :  { %447 = vst.msk [vmem:[#allocation0 + $0x25] ss:$-24 sm:$0x3] %vm98_vm0, %v1285_v12   ;;  %449 = vst.msk [vmem:[#allocation0 + $0x85] ss:$-24 sm:$0xc] %vm98_vm0, %v1285_v12  }
  0xca   :  { %451 = vst.msk [vmem:[#allocation0 + $0xe5] ss:$-24 sm:$0x30] %vm98_vm0, %v1285_v12   ;;  %453 = vst.msk [vmem:[#allocation0 + $0x145] ss:$-24 sm:$0xc0] %vm98_vm0, %v1285_v12  }
  0xcb   :  { %485 = vst.msk [vmem:[#allocation0 + $0xc6] ss:$72 sm:$0x3] %vm98_vm0, %v1291_v14   ;;  %487 = vst.msk [vmem:[#allocation0 + $0x126] ss:$-24 sm:$0xc] %vm98_vm0, %v1291_v14  }
  0xcc   :  { %489 = vst.msk [vmem:[#allocation0 + $0x6] ss:$72 sm:$0x30] %vm98_vm0, %v1291_v14   ;;  %491 = vst.msk [vmem:[#allocation0 + $0x1e6] ss:$-24 sm:$0xc0] %vm98_vm0, %v1291_v14  }
  0xcd   :  { %472 = vst.msk [vmem:[#allocation0 + $0x6] ss:$72 sm:$0x3] %vm98_vm0, %v1290_v15   ;;  %474 = vst.msk [vmem:[#allocation0 + $0x66] ss:$-24 sm:$0xc] %vm98_vm0, %v1290_v15  }
  0xce   :  { %476 = vst.msk [vmem:[#allocation0 - $0xba] ss:$72 sm:$0x30] %vm98_vm0, %v1290_v15   ;;  %478 = vst.msk [vmem:[#allocation0 + $0x126] ss:$-24 sm:$0xc0] %vm98_vm0, %v1290_v15  }
  0xcf   :  { %v631_v16 = vld [vmem:[#allocation0 + $0x28] sm:$0xff]  ;;  %v673_v17 = vld [vmem:[#allocation0 + $0x58] sm:$0xff]  ;;  %v792_v34 = vld [vmem:[#allocation0 + $0xe0] sm:$0xff] }
  0xd0   :  { %v715_v18 = vld [vmem:[#allocation0 + $0x88] sm:$0xff]  ;;  %v757_v19 = vld [vmem:[#allocation0 + $0xb8] sm:$0xff]  ;;  %v624_v23 = vld [vmem:[#allocation0 + $0x20] sm:$0xff] }
  0xd1   :  { %v799_v20 = vld [vmem:[#allocation0 + $0xe8] sm:$0xff]  ;;  %v841_v21 = vld [vmem:[#allocation0 + $0x118] sm:$0xff]  ;;  %v666_v27 = vld [vmem:[#allocation0 + $0x50] sm:$0xff]  ;;  %v1058_v30 = vpack.c.bf16 %v631_v16, %v624_v23 }
  0xd2   :  { %v883_v22 = vld [vmem:[#allocation0 + $0x148] sm:$0xff]  ;;  %v925_v24 = vld [vmem:[#allocation0 + $0x178] sm:$0xff]  ;;  %v708_v28 = vld [vmem:[#allocation0 + $0x80] sm:$0xff]  ;;  %v1073_v37 = vpack.c.bf16 %v673_v17, %v666_v27  ;;  %v1118_v46 = vpack.c.bf16 %v799_v20, %v792_v34 }
  0xd3   :  { %v604_v25 = vld [vmem:[#allocation0 + $0x8] sm:$0xff]  ;;  %v645_v26 = vld [vmem:[#allocation0 + $0x38] sm:$0xff]  ;;  %v750_v29 = vld [vmem:[#allocation0 + $0xb0] sm:$0xff]  ;;  %v1088_v38 = vpack.c.bf16 %v715_v18, %v708_v28  ;;  %1168 = vst [vmem:[%s1553_s1 + $0x10] sm:$0xff] %v1058_v30  }
  0xd4   :  { %v687_v31 = vld [vmem:[#allocation0 + $0x68] sm:$0xff]  ;;  %v729_v32 = vld [vmem:[#allocation0 + $0x98] sm:$0xff]  ;;  %v834_v35 = vld [vmem:[#allocation0 + $0x110] sm:$0xff]  ;;  %v1103_v39 = vpack.c.bf16 %v757_v19, %v750_v29  ;;  %1171 = vst [vmem:[%s1553_s1 + $0x28] sm:$0xff] %v1073_v37  }
  0xd5   :  { %v771_v33 = vld [vmem:[#allocation0 + $0xc8] sm:$0xff]  ;;  %v876_v36 = vld [vmem:[#allocation0 + $0x140] sm:$0xff]  ;;  %v813_v40 = vld [vmem:[#allocation0 + $0xf8] sm:$0xff]  ;;  %v1133_v47 = vpack.c.bf16 %v841_v21, %v834_v35  ;;  %1174 = vst [vmem:[%s1553_s1 + $0x40] sm:$0xff] %v1088_v38  }
  0xd6   :  { %v855_v41 = vld [vmem:[#allocation0 + $0x128] sm:$0xff]  ;;  %v897_v42 = vld [vmem:[#allocation0 + $0x158] sm:$0xff]  ;;  %v918_v43 = vld [vmem:[#allocation0 + $0x170] sm:$0xff]  ;;  %v1148_v48 = vpack.c.bf16 %v883_v22, %v876_v36  ;;  %1177 = vst [vmem:[%s1553_s1 + $0x58] sm:$0xff] %v1103_v39  }
  0xd7   :  { %v599_v44 = vld [vmem:[#allocation0] sm:$0xff]  ;;  %v638_v45 = vld [vmem:[#allocation0 + $0x30] sm:$0xff]  ;;  %v1163_v57 = vpack.c.bf16 %v925_v24, %v918_v43  ;;  %1180 = vst [vmem:[%s1553_s1 + $0x70] sm:$0xff] %v1118_v46   ;;  %1183 = vst [vmem:[%s1553_s1 + $0x88] sm:$0xff] %v1133_v47  }
  0xd8   :  { %v610_v49 = vld [vmem:[#allocation0 + $0x10] sm:$0xff]  ;;  %v652_v50 = vld [vmem:[#allocation0 + $0x40] sm:$0xff]  ;;  %v1063_v52 = vpack.c.bf16 %v645_v26, %v638_v45  ;;  %v1048_v56 = vpack.c.bf16 %v604_v25, %v599_v44  ;;  %1186 = vst [vmem:[%s1553_s1 + $0xa0] sm:$0xff] %v1148_v48   ;;  %v617_v5 = vld [vmem:[#allocation0 + $0x18] sm:$0xff] }
  0xd9   :  { %v694_v51 = vld [vmem:[#allocation0 + $0x70] sm:$0xff]  ;;  %v680_v53 = vld [vmem:[#allocation0 + $0x60] sm:$0xff]  ;;  %v659_v6 = vld [vmem:[#allocation0 + $0x48] sm:$0xff]  ;;  %1189 = vst [vmem:[%s1553_s1 + $0xb8] sm:$0xff] %v1163_v57   ;;  %v1053_v10 = vpack.c.bf16 %v617_v5, %v610_v49 }
  0xda   :  { %v722_v54 = vld [vmem:[#allocation0 + $0x90] sm:$0xff]  ;;  %v764_v55 = vld [vmem:[#allocation0 + $0xc0] sm:$0xff]  ;;  %v1078_v61 = vpack.c.bf16 %v687_v31, %v680_v53  ;;  %1169 = vst [vmem:[%s1553_s1 + $0x18] sm:$0xff] %v1063_v52   ;;  %1049 = vst [vmem:[%s1553_s1] sm:$0xff] %v1048_v56   ;;  %v1068_v11 = vpack.c.bf16 %v659_v6, %v652_v50 }
  0xdb   :  { %v736_v58 = vld [vmem:[#allocation0 + $0xa0] sm:$0xff]  ;;  %v778_v59 = vld [vmem:[#allocation0 + $0xd0] sm:$0xff]  ;;  %v1108_v62 = vpack.c.bf16 %v771_v33, %v764_v55  ;;  %v1093_v2 = vpack.c.bf16 %v729_v32, %v722_v54  ;;  %v701_v7 = vld [vmem:[#allocation0 + $0x78] sm:$0xff]  ;;  %1167 = vst [vmem:[%s1553_s1 + $0x8] sm:$0xff] %v1053_v10  }
  0xdc   :  { %v820_v60 = vld [vmem:[#allocation0 + $0x100] sm:$0xff]  ;;  %v806_v63 = vld [vmem:[#allocation0 + $0xf0] sm:$0xff]  ;;  %1172 = vst [vmem:[%s1553_s1 + $0x30] sm:$0xff] %v1078_v61   ;;  %v1083_v12 = vpack.c.bf16 %v701_v7, %v694_v51  ;;  %v743_v13 = vld [vmem:[#allocation0 + $0xa8] sm:$0xff] }
  0xdd   :  { %v848_v0 = vld [vmem:[#allocation0 + $0x120] sm:$0xff]  ;;  %v890_v1 = vld [vmem:[#allocation0 + $0x150] sm:$0xff]  ;;  %v1123_v4 = vpack.c.bf16 %v813_v40, %v806_v63  ;;  %1178 = vst [vmem:[%s1553_s1 + $0x60] sm:$0xff] %v1108_v62   ;;  %1175 = vst [vmem:[%s1553_s1 + $0x48] sm:$0xff] %v1093_v2   ;;  %v1098_v17 = vpack.c.bf16 %v743_v13, %v736_v58 }
  0xde   :  { %v862_v3 = vld [vmem:[#allocation0 + $0x130] sm:$0xff]  ;;  %v1138_v8 = vpack.c.bf16 %v855_v41, %v848_v0  ;;  %v1153_v9 = vpack.c.bf16 %v897_v42, %v890_v1  ;;  %v785_v14 = vld [vmem:[#allocation0 + $0xd8] sm:$0xff]  ;;  %v827_v15 = vld [vmem:[#allocation0 + $0x108] sm:$0xff]  ;;  %1170 = vst [vmem:[%s1553_s1 + $0x20] sm:$0xff] %v1068_v11  }
  0xdf   :  { %v904_v16 = vld [vmem:[#allocation0 + $0x160] sm:$0xff]  ;;  %1181 = vst [vmem:[%s1553_s1 + $0x78] sm:$0xff] %v1123_v4   ;;  %v1113_v18 = vpack.c.bf16 %v785_v14, %v778_v59  ;;  %v1128_v19 = vpack.c.bf16 %v827_v15, %v820_v60  ;;  %v869_v20 = vld [vmem:[#allocation0 + $0x138] sm:$0xff]  ;;  %v911_v21 = vld [vmem:[#allocation0 + $0x168] sm:$0xff] }
  0xe0   :  { %1184 = vst [vmem:[%s1553_s1 + $0x90] sm:$0xff] %v1138_v8   ;;  %1187 = vst [vmem:[%s1553_s1 + $0xa8] sm:$0xff] %v1153_v9   ;;  %v1143_v22 = vpack.c.bf16 %v869_v20, %v862_v3  ;;  %v1158_v23 = vpack.c.bf16 %v911_v21, %v904_v16 }
  0xe1   :  { %1173 = vst [vmem:[%s1553_s1 + $0x38] sm:$0xff] %v1083_v12   ;;  %1176 = vst [vmem:[%s1553_s1 + $0x50] sm:$0xff] %v1098_v17  }
  0xe2   :  { %1179 = vst [vmem:[%s1553_s1 + $0x68] sm:$0xff] %v1113_v18   ;;  %1182 = vst [vmem:[%s1553_s1 + $0x80] sm:$0xff] %v1128_v19  }
  0xe3   :  { %1185 = vst [vmem:[%s1553_s1 + $0x98] sm:$0xff] %v1143_v22   ;;  %1188 = vst [vmem:[%s1553_s1 + $0xb0] sm:$0xff] %v1158_v23  }

// kernel: gen_s2m_forward.5
= control target key start
LH: loop header
LB: loop body
LE: loop exit
PB: predicated region body
PF: predicated region fallthrough
CT: control target
= control target key end

     0   :  { %s1528_s12 = smov 0   ;;  %s1718_s0 = inlined_call_operand.vmem [shape: bf16[2,1,3,384], index: 0, kind: input, shape index: {}]   ;;  %s1719_s1 = inlined_call_operand.vmem [shape: bf16[9,8,3], index: 1, kind: input, shape index: {}]   ;;  %s1720_s2 = inlined_call_operand.vmem [shape: f32[1,384], index: 2, kind: input, shape index: {}]   ;;  %s1721_s3 = inlined_call_operand.vmem [shape: bf16[2,1,8,384], index: 3, kind: output, shape index: {}]  }
   0x1 LB: > { %s1286_s13 = sadd.s32 4294967295, %s1493_s12   ;;  %p1290_p0 = scmp.ge.s32.totalorder %s1493_s12, 1  ;;  %s1493_s12 = sphi %s1528_s12, %s13_s12  }
   0x2   : > { %p137_p1 = scmp.lt.s32.totalorder %s1493_s12, 3 }
   0x4   : > { %p138_p2 = pnand %p1290_p0, %p137_p1 }
   0x5   : > { %p161_p3 = scmp.lt.s32.totalorder (!%p138_p2), %s1286_s13, 1  ;;  %v179_v0 = vlaneseq (!%p138_p2)  ;;  %v1495_v1 = vmov (!%p138_p2), 1983009808   ;;  %v1496_v5 = vmov (!%p138_p2), 0.0   ;;  %vm1497_vm0 = vmmov (!%p138_p2), 0   ;;  %s1499_s18 = smov (!%p138_p2), 18  }
   0x6   : > { %141 = sbr.rel (%p138_p2) target bundleno = 633 (0x279), region = 32  ;;  %v177_v2 = vunpack.c.l.s4 (!%p138_p2), %v1495_v1  ;;  %1343 = vmatprep.subr.bf16.mxu1 (!%p138_p2), %v1496_v5  ;;  %1345 = vmatprep.mubr.msk.bf16.mxu1 (!%p138_p2), %vm1497_vm0, %v1496_v5  ;;  %v1498_v8 = vmov (!%p138_p2), 0   ;;  %s1500_s19 = smov (!%p138_p2), 19   ;;  %vm223_vm1 = vcmask (!%p138_p2), 1040384   ;;  %vm212_vm2 = vcmask (!%p138_p2), 146432  }
   0x7   : > { %v1538_v3 = vshrl.u32 (!%p138_p2), %v179_v0, 7  ;;  %267 = vmatprep.mubr.bf16.mxu0 (!%p138_p2), %v1498_v8  ;;  %s1501_s20 = smov (!%p138_p2), 17   ;;  %s1502_s21 = smov (!%p138_p2), 1   ;;  %vm224_vm3 = vcmask (!%p138_p2), 1041408   ;;  %v1507_v14 = vmov (!%p138_p2), 65535   ;;  %vm197_vm4 = vcmask (!%p138_p2), 154624  }
   0x8   : > { %v178_v4 = vunpack.c.0.s8 (!%p138_p2), %v177_v2  ;;  %s1503_s22 = smov (!%p138_p2), 127   ;;  %s1504_s23 = smov (!%p138_p2), 111   ;;  %v225_v15 = vsel (!%p138_p2), %vm223_vm1, 4294967295, %v1507_v14  ;;  %v1293_v27 = vld [vmem:[%s1719_s1 + $0x4] sm:$0xf] (!%p138_p2)  ;;  %vm219_vm5 = vcmask (!%p138_p2), 23552  }
   0x9   : > { %s1505_s24 = smov (!%p138_p2), 110   ;;  %s1506_s25 = smov (!%p138_p2), 109   ;;  %v1581_v19 = vsel (!%p138_p2), %vm224_vm3, %v225_v15, 0  ;;  %vm416_vm6 = vcmask (!%p138_p2), 138240   ;;  %vm526_vm7 = vcmask (!%p138_p2), 7168   ;;  %vm734_vm8 = vcmask (!%p138_p2), 1039360  }
   0xa   : > { %v181_v6 = vsub.s32 (!%p138_p2), %v178_v4, %v1538_v3  ;;  %v173_v43 = vld [vmem:[%s1719_s1] sm:$0xf] (!%p138_p2)  ;;  %v1298_v53 = vld [vmem:[%s1719_s1 + $0x8] sm:$0xf] (!%p138_p2)  ;;  %v1301_v59 = vld [vmem:[%s1719_s1 + $0xc] sm:$0xf] (!%p138_p2) }
   0xb   : > { %vm844_vm9 = vcmask (!%p138_p2), 908288   ;;  %vm954_vm10 = vcmask (!%p138_p2), 900096   ;;  %vm1064_vm11 = vcmask (!%p138_p2), 891904  }
   0xd   : > { %s1723_s13 = smov (!%p161_p3, %s1286_s13), 1 }
   0xe   : > { %s1461_s14 = smul.u32 6, %s1723_s13 }
  0x10   : > { %s165_s17 = scalar_lea.vmem %s1718_s0, %s1461_s14 }
  0x11   : > { %v172_v7 = vld [vmem:[%s165_s17] sm:$0x3f] }
  0x12   : > { %v1549_v9 = vrot.slane %v172_v7, %v181_v6  ;;  %v175_v10 = vcombine.high %v172_v7, %v172_v7 }
  0x14   : > { %208 = vrot.lane.b32.xlu0 %v1549_v9, %s1499_s18  ;;  %v1552_v11 = vrot.slane %v175_v10, %v181_v6  ;;  %v1556_v12 = vcombine.high %v1549_v9, %v1549_v9  ;;  %v634_v61 = vand.u32 %v1581_v19, %v1549_v9 }
  0x16   : > { %206 = vrot.lane.b32.xlu1 %v1552_v11, %s1499_s18  ;;  %v637_v55 = vand.u32 %v1581_v19, %v1556_v12  ;;  %v640_v60 = vand.u32 %v1581_v19, %v1552_v11 }
  0x18   : > { %210 = vrot.lane.b32.xlu0 %v1556_v12, %s1499_s18 }
  0x1a   : > { %193 = vrot.lane.b32.xlu1 %v1549_v9, %s1500_s19 }
  0x1c   : > { %195 = vrot.lane.b32.xlu0 %v1556_v12, %s1500_s19 }
  0x1e   : > { %190 = vrot.lane.b32.xlu1 %v1552_v11, %s1500_s19 }
  0x20   : > { %412 = vrot.lane.b32.xlu0 %v1549_v9, %s1501_s20 }
  0x22   : > { %414 = vrot.lane.b32.xlu1 %v1556_v12, %s1501_s20 }
  0x24   : > { %410 = vrot.lane.b32.xlu0 %v1552_v11, %s1501_s20 }
  0x26   : > { %522 = vrot.lane.b32.xlu1 %v1549_v9, %s1502_s21 }
  0x28   : > { %524 = vrot.lane.b32.xlu0 %v1556_v12, %s1502_s21 }
  0x2a   : > { %520 = vrot.lane.b32.xlu1 %v1552_v11, %s1502_s21  ;;  %s1462_s21 = smul.u32 12, %s1723_s13 }
  0x2c   : > { %730 = vrot.lane.b32.xlu0 %v1556_v12, %s1503_s22 }
  0x2e   : > { %732 = vrot.lane.b32.xlu1 %v1552_v11, %s1503_s22 }
  0x30   : > { %728 = vrot.lane.b32.xlu0 %v1549_v9, %s1503_s22 }
  0x32   : > { %840 = vrot.lane.b32.xlu1 %v1556_v12, %s1504_s23 }
  0x34   : > { %842 = vrot.lane.b32.xlu0 %v1552_v11, %s1504_s23 }
  0x36   : > { %838 = vrot.lane.b32.xlu1 %v1549_v9, %s1504_s23 }
  0x38   : > { %950 = vrot.lane.b32.xlu0 %v1556_v12, %s1505_s24 }
  0x3a   : > { %952 = vrot.lane.b32.xlu1 %v1552_v11, %s1505_s24 }
  0x3c   : > { %948 = vrot.lane.b32.xlu0 %v1549_v9, %s1505_s24  ;;  %s170_s24 = scalar_lea.vmem %s1721_s3, %s1462_s21 }
  0x3e   : > { %1060 = vrot.lane.b32.xlu1 %v1556_v12, %s1506_s25 }
  0x40   : > { %1062 = vrot.lane.b32.xlu0 %v1552_v11, %s1506_s25 }
  0x42   : > { %1058 = vrot.lane.b32.xlu1 %v1549_v9, %s1506_s25  ;;  %v1304_v9 = vld [vmem:[%s1719_s1 + $0x10] sm:$0xf] }
  0x86   : > { %v209_v13 = vpop.permute.xlu0 %208 }
  0x88   : > { %v207_v16 = vpop.permute.xlu1 %206 }
  0x89   : > { %v218_v17 = vsel %vm212_vm2, %v207_v16, %v209_v13 }
  0x8a   : > { %v211_v18 = vpop.permute.xlu0 %210  ;;  %v227_v25 = vand.u32 %v1581_v19, %v218_v17 }
  0x8b   : > { %v214_v20 = vsel %vm212_vm2, %v211_v18, %v207_v16  ;;  %v213_v21 = vsel %vm212_vm2, %v209_v13, %v211_v18 }
  0x8c   : > { %v194_v22 = vpop.permute.xlu1 %193  ;;  %v230_v23 = vand.u32 %v1581_v19, %v213_v21  ;;  %v233_v24 = vand.u32 %v1581_v19, %v214_v20  ;;  %v1307_v20 = vld [vmem:[%s1719_s1 + $0x14] sm:$0xf] }
  0x8e   : > { %235 = vmatprep.subr.bf16.mxu0 %v230_v23  ;;  %v196_v26 = vpop.permute.xlu0 %195  ;;  %1344 = vmatpush3.bf16.msra.mxu1 %v233_v24 }
  0x8f   : > { %v198_v28 = vsel %vm197_vm4, %v194_v22, %v196_v26  ;;  %236 = vmatpush1.bf16.msra.mxu0 %v227_v25  ;;  %1349 = vmatprep.subr.bf16.mxu1 %v1496_v5 }
  0x90   : > { %v322_v29 = vand.u32 %v1581_v19, %v198_v28  ;;  %v191_v30 = vpop.permute.xlu1 %190 }
  0x91   : > { %v199_v31 = vsel %vm197_vm4, %v196_v26, %v191_v30  ;;  %v203_v32 = vsel %vm197_vm4, %v191_v30, %v194_v22  ;;  %1346 = vmatmul.mubr.msk.bf16.vlgmr.msra.gmra.mrb[0].mxu1 %vm219_vm5, %v1293_v27  ;;  %v1310_v30 = vld [vmem:[%s1719_s1 + $0x18] sm:$0xf] }
  0x92   : > { %v319_v33 = vand.u32 %v1581_v19, %v203_v32  ;;  %v325_v34 = vand.u32 %v1581_v19, %v199_v31  ;;  %1294 = vmatmul.mubr.msk.bf16.vlgmr.msra.gmra.mrb[0].mxu0 %vm219_vm5, %v1293_v27  ;;  %327 = vmatprep.subr.bf16.mxu0 %v322_v29  ;;  %v413_v35 = vpop.permute.xlu0 %412 }
  0x93   : > { %1351 = vmatprep.mubr.msk.bf16.mxu1 %vm1497_vm0, %v1496_v5  ;;  %359 = vmatprep.mubr.bf16.mxu0 %v1498_v8 }
  0x94   : > { %328 = vmatpush1.bf16.msra.mxu0 %v319_v33  ;;  %1350 = vmatpush3.bf16.msra.mxu1 %v325_v34  ;;  %v415_v36 = vpop.permute.xlu1 %414 }
  0x95   : > { %v417_v37 = vsel %vm416_vm6, %v413_v35, %v415_v36  ;;  %1355 = vmatprep.subr.bf16.mxu1 %v1496_v5 }
  0x96   : > { %v411_v38 = vpop.permute.xlu0 %410  ;;  %v429_v39 = vand.u32 %v417_v37, %v1581_v19  ;;  %v1313_v37 = vld [vmem:[%s1719_s1 + $0x1c] sm:$0xf] }
  0x97   : > { %v418_v40 = vsel %vm416_vm6, %v415_v36, %v411_v38  ;;  %v422_v41 = vsel %vm416_vm6, %v411_v38, %v413_v35 }
  0x98   : > { %434 = vmatprep.subr.bf16.mxu0 %v429_v39  ;;  %v432_v42 = vand.u32 %v418_v40, %v1581_v19  ;;  %v523_v44 = vpop.permute.xlu1 %522  ;;  %v426_v46 = vand.u32 %v422_v41, %v1581_v19  ;;  %v1316_v39 = vld [vmem:[%s1719_s1 + $0x20] sm:$0xf]  ;;  %v1174_v41 = vsub.s32 1, %v1538_v3 }
  0x99   : > { %v1166_v40 = vld [vmem:[%s1720_s2] sm:$0x7] }
  0x9a   : > { %v525_v45 = vpop.permute.xlu0 %524 }
  0x9b   : > { %v527_v47 = vsel %vm526_vm7, %v523_v44, %v525_v45 }
  0x9c   : > { %v539_v48 = vand.u32 %v527_v47, %v1581_v19  ;;  %v521_v49 = vpop.permute.xlu1 %520 }
  0x9d   : > { %1352 = vmatmul.mubr.msk.bf16.vlgmr.msra.gmra.mrb[0].mxu1 %vm219_vm5, %v173_v43  ;;  %v528_v50 = vsel %vm526_vm7, %v525_v45, %v521_v49  ;;  %v532_v51 = vsel %vm526_vm7, %v521_v49, %v523_v44 }
  0x9e   : > { %1296 = vmatmul.mubr.msk.bf16.vlgmr.msra.gmra.mrb[0].mxu0 %vm219_vm5, %v173_v43  ;;  %1356 = vmatpush3.bf16.msra.mxu1 %v432_v42  ;;  %v542_v52 = vand.u32 %v528_v50, %v1581_v19  ;;  %v536_v54 = vand.u32 %v532_v51, %v1581_v19  ;;  %v731_v57 = vpop.permute.xlu0 %730 }
  0x9f   : > { %435 = vmatpush1.bf16.msra.mxu0 %v426_v46  ;;  %1357 = vmatprep.mubr.msk.bf16.mxu1 %vm1497_vm0, %v1496_v5 }
  0xa0   : > { %544 = vmatprep.subr.bf16.mxu0 %v539_v48  ;;  %466 = vmatprep.mubr.bf16.mxu0 %v1498_v8  ;;  %v733_v56 = vpop.permute.xlu1 %732 }
  0xa1   : > { %1361 = vmatprep.subr.bf16.mxu1 %v1496_v5  ;;  %v736_v58 = vsel %vm734_vm8, %v731_v57, %v733_v56 }
  0xa2   : > { %v748_v62 = vand.u32 %v736_v58, %v1581_v19  ;;  %v729_v63 = vpop.permute.xlu0 %728 }
  0xa3   : > { %v740_v1 = vsel %vm734_vm8, %v733_v56, %v729_v63  ;;  %v735_v2 = vsel %vm734_vm8, %v729_v63, %v731_v57 }
  0xa4   : > { %v841_v4 = vpop.permute.xlu1 %840  ;;  %v750_v7 = vand.u32 %v740_v1, %v1581_v19  ;;  %v745_v10 = vand.u32 %v735_v2, %v1581_v19 }
  0xa6   : > { %v843_v0 = vpop.permute.xlu0 %842 }
  0xa7   : > { %v846_v6 = vsel %vm844_vm9, %v841_v4, %v843_v0 }
  0xa8   : > { %v858_v11 = vand.u32 %v846_v6, %v1581_v19  ;;  %v839_v12 = vpop.permute.xlu1 %838 }
  0xa9   : > { %1358 = vmatmul.mubr.msk.bf16.vlgmr.msra.gmra.mrb[0].mxu1 %vm219_vm5, %v1298_v53  ;;  %v850_v14 = vsel %vm844_vm9, %v843_v0, %v839_v12  ;;  %v845_v15 = vsel %vm844_vm9, %v839_v12, %v841_v4 }
  0xaa   : > { %1299 = vmatmul.mubr.msk.bf16.vlgmr.msra.gmra.mrb[0].mxu0 %vm219_vm5, %v1298_v53  ;;  %1362 = vmatpush3.bf16.msra.mxu1 %v542_v52  ;;  %v951_v16 = vpop.permute.xlu0 %950  ;;  %v860_v18 = vand.u32 %v850_v14, %v1581_v19  ;;  %v855_v21 = vand.u32 %v845_v15, %v1581_v19 }
  0xab   : > { %545 = vmatpush1.bf16.msra.mxu0 %v536_v54  ;;  %1363 = vmatprep.mubr.msk.bf16.mxu1 %vm1497_vm0, %v1496_v5 }
  0xac   : > { %576 = vmatprep.mubr.bf16.mxu0 %v1498_v8  ;;  %642 = vmatprep.subr.bf16.mxu0 %v637_v55  ;;  %v953_v13 = vpop.permute.xlu1 %952 }
  0xad   : > { %1367 = vmatprep.subr.bf16.mxu1 %v1496_v5  ;;  %v956_v17 = vsel %vm954_vm10, %v951_v16, %v953_v13 }
  0xae   : > { %v968_v22 = vand.u32 %v956_v17, %v1581_v19  ;;  %v949_v23 = vpop.permute.xlu0 %948 }
  0xaf   : > { %v960_v25 = vsel %vm954_vm10, %v953_v13, %v949_v23  ;;  %v955_v26 = vsel %vm954_vm10, %v949_v23, %v951_v16 }
  0xb0   : > { %v1061_v27 = vpop.permute.xlu1 %1060  ;;  %v970_v29 = vand.u32 %v960_v25, %v1581_v19  ;;  %v965_v31 = vand.u32 %v955_v26, %v1581_v19 }
  0xb2   : > { %v1063_v24 = vpop.permute.xlu0 %1062 }
  0xb3   : > { %v1066_v28 = vsel %vm1064_vm11, %v1061_v27, %v1063_v24 }
  0xb4   : > { %v1078_v32 = vand.u32 %v1066_v28, %v1581_v19  ;;  %v1059_v33 = vpop.permute.xlu1 %1058 }
  0xb5   : > { %1364 = vmatmul.mubr.msk.bf16.vlgmr.msra.gmra.mrb[0].mxu1 %vm219_vm5, %v1301_v59  ;;  %v1070_v34 = vsel %vm1064_vm11, %v1063_v24, %v1059_v33  ;;  %v1065_v35 = vsel %vm1064_vm11, %v1059_v33, %v1061_v27 }
  0xb6   : > { %1302 = vmatmul.mubr.msk.bf16.vlgmr.msra.gmra.mrb[0].mxu0 %vm219_vm5, %v1301_v59  ;;  %1368 = vmatpush3.bf16.msra.mxu1 %v640_v60  ;;  %v1080_v36 = vand.u32 %v1070_v34, %v1581_v19  ;;  %v1075_v38 = vand.u32 %v1065_v35, %v1581_v19  ;;  %v1170_v19 = vsub.s32 0, %v1538_v3 }
  0xb7   : > { %643 = vmatpush1.bf16.msra.mxu0 %v634_v61  ;;  %1369 = vmatprep.mubr.msk.bf16.mxu1 %vm1497_vm0, %v1496_v5 }
  0xb8   : > { %752 = vmatprep.subr.bf16.mxu0 %v748_v62  ;;  %674 = vmatprep.mubr.bf16.mxu0 %v1498_v8  ;;  %v1171_v42 = vrot.slane %v1166_v40, %v1170_v19 }
  0xb9   : > { %1373 = vmatprep.subr.bf16.mxu1 %v1496_v5 }
  0xc1   : > { %1370 = vmatmul.mubr.msk.bf16.vlgmr.msra.gmra.mrb[0].mxu1 %vm219_vm5, %v1304_v9 }
  0xc2   : > { %1305 = vmatmul.mubr.msk.bf16.vlgmr.msra.gmra.mrb[0].mxu0 %vm219_vm5, %v1304_v9  ;;  %1374 = vmatpush3.bf16.msra.mxu1 %v750_v7 }
  0xc3   : > { %753 = vmatpush1.bf16.msra.mxu0 %v745_v10  ;;  %1375 = vmatprep.mubr.msk.bf16.mxu1 %vm1497_vm0, %v1496_v5 }
  0xc4   : > { %862 = vmatprep.subr.bf16.mxu0 %v858_v11  ;;  %784 = vmatprep.mubr.bf16.mxu0 %v1498_v8 }
  0xc5   : > { %1379 = vmatprep.subr.bf16.mxu1 %v1496_v5 }
  0xcd   : > { %1376 = vmatmul.mubr.msk.bf16.vlgmr.msra.gmra.mrb[0].mxu1 %vm219_vm5, %v1307_v20 }
  0xce   : > { %1308 = vmatmul.mubr.msk.bf16.vlgmr.msra.gmra.mrb[0].mxu0 %vm219_vm5, %v1307_v20  ;;  %1380 = vmatpush3.bf16.msra.mxu1 %v860_v18 }
  0xcf   : > { %863 = vmatpush1.bf16.msra.mxu0 %v855_v21  ;;  %1381 = vmatprep.mubr.msk.bf16.mxu1 %vm1497_vm0, %v1496_v5 }
  0xd0   : > { %972 = vmatprep.subr.bf16.mxu0 %v968_v22  ;;  %894 = vmatprep.mubr.bf16.mxu0 %v1498_v8 }
  0xd1   : > { %1385 = vmatprep.subr.bf16.mxu1 %v1496_v5 }
  0xd9   : > { %1382 = vmatmul.mubr.msk.bf16.vlgmr.msra.gmra.mrb[0].mxu1 %vm219_vm5, %v1310_v30 }
  0xda   : > { %1311 = vmatmul.mubr.msk.bf16.vlgmr.msra.gmra.mrb[0].mxu0 %vm219_vm5, %v1310_v30  ;;  %1386 = vmatpush3.bf16.msra.mxu1 %v970_v29 }
  0xdb   : > { %973 = vmatpush1.bf16.msra.mxu0 %v965_v31  ;;  %1387 = vmatprep.mubr.msk.bf16.mxu1 %vm1497_vm0, %v1496_v5 }
  0xdc   : > { %1082 = vmatprep.subr.bf16.mxu0 %v1078_v32  ;;  %1004 = vmatprep.mubr.bf16.mxu0 %v1498_v8 }
  0xdd   : > { %1391 = vmatprep.subr.bf16.mxu1 %v1496_v5 }
  0xe5   : > { %1388 = vmatmul.mubr.msk.bf16.vlgmr.msra.gmra.mrb[0].mxu1 %vm219_vm5, %v1313_v37 }
  0xe6   : > { %1314 = vmatmul.mubr.msk.bf16.vlgmr.msra.gmra.mrb[0].mxu0 %vm219_vm5, %v1313_v37  ;;  %1392 = vmatpush3.bf16.msra.mxu1 %v1080_v36 }
  0xe7   : > { %1083 = vmatpush1.bf16.msra.mxu0 %v1075_v38  ;;  %1393 = vmatprep.mubr.msk.bf16.mxu1 %vm1497_vm0, %v1496_v5  ;;  %v1178_v5 = vsub.s32 2, %v1538_v3 }
  0xe8   : > { %1114 = vmatprep.mubr.bf16.mxu0 %v1498_v8  ;;  %v1175_v8 = vrot.slane %v1166_v40, %v1174_v41 }
  0xe9   : > { %v1179_v43 = vrot.slane %v1166_v40, %v1178_v5 }
  0xf1   : > { %1394 = vmatmul.mubr.msk.bf16.vlgmr.msra.gmra.mrb[0].mxu1 %vm219_vm5, %v1316_v39 }
  0xf2   : > { %1317 = vmatmul.mubr.msk.bf16.vlgmr.msra.gmra.mrb[0].mxu0 %vm219_vm5, %v1316_v39 }
 0x1c4   : > { %v1157_v44 = vpop.f32.mrb[0].mxu1 }
 0x1c5   : > { %v1116_v45 = vpop.f32.mrb[0].mxu0  ;;  %v1395_v46 = vpop.f32.mrb[1].mxu1  ;;  %v1185_v53 = vmul.f32 %v1179_v43, %v1157_v44 }
 0x1c6   : > { %v1183_v47 = vmul.f32 %v1171_v42, %v1116_v45  ;;  %v1118_v48 = vpop.f32.mrb[1].mxu0  ;;  %v1160_v49 = vpop.f32.mrb[2].mxu1 }
 0x1c7   : > { %v1184_v50 = vmul.f32 %v1175_v8, %v1118_v48  ;;  %v1120_v51 = vpop.f32.mrb[2].mxu0  ;;  %v1396_v52 = vpop.f32.mrb[3].mxu1  ;;  %v1192_v59 = vmul.f32 %v1185_v53, %v1157_v44 }
 0x1c8   : > { %v1190_v54 = vmul.f32 %v1183_v47, %v1116_v45  ;;  %v1121_v55 = vpop.f32.mrb[3].mxu0 }
 0x1c9   : > { %v1191_v56 = vmul.f32 %v1184_v50, %v1118_v48  ;;  %v1186_v57 = vadd.f32 %v1184_v50, %v1183_v47 }
 0x1cb   : > { %v1187_v58 = vadd.f32 %v1186_v57, %v1185_v53  ;;  %v1193_v3 = vadd.f32 %v1191_v56, %v1190_v54 }
 0x1cd   : > { %1188 = vadd.xlane.f32.xlu0 %v1187_v58  ;;  %v1194_v60 = vadd.f32 %v1193_v3, %v1192_v59 }
 0x1cf   : > { %1195 = vadd.xlane.f32.xlu1 %v1194_v60 }
 0x25a   : > { %v1189_v61 = vpop.xlane.xlu0 %1188 }
 0x25b   : > { %v1197_v62 = vmul.f32 0.00390625, %v1189_v61 }
 0x25c   : > { %v1196_v63 = vpop.xlane.xlu1 %1195 }
 0x25d   : > { %v1198_v0 = vmul.f32 0.00390625, %v1196_v63  ;;  %v1199_v1 = vmul.f32 %v1197_v62, %v1197_v62  ;;  %v1204_v7 = vsub.f32 %v1116_v45, %v1197_v62  ;;  %v1205_v9 = vsub.f32 %v1118_v48, %v1197_v62 }
 0x25e   : > { %v1206_v10 = vsub.f32 %v1157_v44, %v1197_v62 }
 0x25f   : > { %v1200_v2 = vsub.f32 %v1198_v0, %v1199_v1 }
 0x261   : > { %v1201_v4 = vmax.f32 %v1200_v2, 0.0 }
 0x263   : > { %v1202_v6 = vadd.f32 1e-05, %v1201_v4 }
 0x265   : > { %1485 = vrsqrt.f32 %v1202_v6 }
 0x26f   : > { %v1486_v11 = vpop.eup %1485 }
 0x270   : > { %v1207_v12 = vmul.f32 %v1486_v11, %v1204_v7  ;;  %v1208_v13 = vmul.f32 %v1486_v11, %v1205_v9  ;;  %v1209_v14 = vmul.f32 %v1486_v11, %v1206_v10 }
 0x272   : > { %v1210_v15 = vmax.f32 %v1207_v12, 0.0  ;;  %v1211_v16 = vmax.f32 %v1208_v13, 0.0  ;;  %v1212_v17 = vmax.f32 %v1209_v14, 0.0 }
 0x274   : > { %v1213_v18 = vmul.f32 %v1210_v15, %v1171_v42  ;;  %v1214_v20 = vmul.f32 %v1211_v16, %v1175_v8  ;;  %v1215_v21 = vmul.f32 %v1212_v17, %v1179_v43 }
 0x276   : > { %v1323_v22 = vpack.c.bf16 %v1214_v20, %v1213_v18  ;;  %v1324_v23 = vpack.c.bf16 %v1215_v21, %v1215_v21 }
 0x278   : > { %1229 = vst [vmem:[%s170_s24] sm:$0xff] %v1323_v22  ;;  %1230 = vst [vmem:[%s170_s24 + $0x8] sm:$0xf] %v1324_v23 }
 0x279 PF: > { %s13_s12 = sadd.s32 1, %s1493_s12  }
 0x27a   : > { %p10_p4 = scmp.ge.s32.totalorder %s13_s12, 4  }
 0x27c   :  { %12 = sbr.rel (!%p10_p4) target bundleno = 1 (0x1), region = 70 }

// kernel: gen_s2m_forward.6
= control target key start
LH: loop header
LB: loop body
LE: loop exit
PB: predicated region body
PF: predicated region fallthrough
CT: control target
= control target key end

     0   :  { %s1041_s12 = smov 0   ;;  %s1137_s0 = inlined_call_operand.vmem [shape: bf16[2,4,8,128], index: 0, kind: input, shape index: {}]   ;;  %s1138_s1 = inlined_call_operand.vmem [shape: bf16[9,16,8], index: 1, kind: input, shape index: {}]   ;;  %s1139_s2 = inlined_call_operand.vmem [shape: f32[1,128], index: 2, kind: input, shape index: {}]   ;;  %s1140_s3 = inlined_call_operand.vmem [shape: bf16[2,1,16,128], index: 3, kind: output, shape index: {}]  }
   0x1 LB: > { %s814_s13 = sadd.s32 4294967295, %s1014_s12   ;;  %p818_p0 = scmp.ge.s32.totalorder %s1014_s12, 1  ;;  %s1014_s12 = sphi %s1041_s12, %s13_s12  }
   0x2   : > { %p137_p1 = scmp.lt.s32.totalorder %s1014_s12, 3 }
   0x4   : > { %p138_p2 = pnand %p818_p0, %p137_p1 }
   0x5   : > { %p161_p3 = scmp.lt.s32.totalorder (!%p138_p2), %s814_s13, 1  ;;  %v1016_v0 = vmov (!%p138_p2), 0.0   ;;  %vm1017_vm0 = vmmov (!%p138_p2), 0   ;;  %vm193_vm1 = vcmask (!%p138_p2), 1043456   ;;  %v995_v7 = vld [vmem:[%s1138_s1 + $0x8] sm:$0xff] (!%p138_p2)   ;;  %vm189_vm2 = vcmask (!%p138_p2), 64512  }
   0x6   : > { %141 = sbr.rel (%p138_p2) target bundleno = 566 (0x236), region = 32  ;;  %895 = vmatprep.subr.bf16.mxu1 (!%p138_p2), %v1016_v0  ;;  %897 = vmatprep.mubr.msk.bf16.mxu1 (!%p138_p2), %vm1017_vm0, %v1016_v0  ;;  %s1018_s20 = smov (!%p138_p2), 127   ;;  %v997_v12 = vld [vmem:[%s1138_s1 + $0x20] sm:$0xff] (!%p138_p2)   ;;  %v998_v18 = vld [vmem:[%s1138_s1 + $0x10] sm:$0xff] (!%p138_p2)   ;;  %v999_v19 = vld [vmem:[%s1138_s1 + $0x28] sm:$0xff] (!%p138_p2)  }
   0x7   : > { %919 = vmatprep.subr.bf16.mxu0 (!%p138_p2), %v1016_v0  ;;  %921 = vmatprep.mubr.msk.bf16.mxu0 (!%p138_p2), %vm1017_vm0, %v1016_v0  ;;  %s1019_s23 = smov (!%p138_p2), 119   ;;  %s1020_s24 = smov (!%p138_p2), 118   ;;  %v996_v13 = vld [vmem:[%s1138_s1] sm:$0xff] (!%p138_p2)   ;;  %v1000_v24 = vld [vmem:[%s1138_s1 + $0x18] sm:$0xff] (!%p138_p2)   ;;  %v1001_v25 = vld [vmem:[%s1138_s1 + $0x30] sm:$0xff] (!%p138_p2)  }
   0x8   : > { %v1002_v28 = vld [vmem:[%s1138_s1 + $0x38] sm:$0xff] (!%p138_p2)   ;;  %v1003_v30 = vld [vmem:[%s1138_s1 + $0x40] sm:$0xff] (!%p138_p2)  }
   0x9   : > { %v863_v36 = vld [vmem:[%s1139_s2] ss:$0 sm:$0xff] (!%p138_p2) }
   0xd   : > { %s1142_s13 = smov (!%p161_p3, %s814_s13), 1 }
   0xe   : > { %s868_s14 = sshll.u32 %s1142_s13, 4  ;;  %s869_s16 = sshll.u32 %s1142_s13, 3 }
   0xf   : > { %s165_s17 = scalar_lea.vmem %s1137_s0, %s868_s14  ;;  %s170_s19 = scalar_lea.vmem %s1140_s3, %s869_s16 }
  0x10   : > { %v824_v1 = vld [vmem:[%s165_s17 + $0x8] sm:$0xf]  ;;  %v172_v2 = vld [vmem:[%s165_s17] sm:$0xf]  ;;  %v823_v3 = vld [vmem:[%s165_s17 + $0x4] sm:$0xf] }
  0x11   : > { %v847_v4 = vcombine.low %v824_v1, %v824_v1  ;;  %v834_v5 = vcombine.low %v172_v2, %v172_v2  ;;  %v195_v6 = vsel %vm193_vm1, %v823_v3, 0  ;;  %v825_v8 = vld [vmem:[%s165_s17 + $0xc] sm:$0xf]  ;;  %v856_v10 = vcombine.low %v823_v3, %v823_v3 }
  0x12   : > { %896 = vmatpush3.bf16.msra.mxu1 %v195_v6  ;;  %v421_v9 = vsel %vm193_vm1, %v825_v8, 0  ;;  %v247_v11 = vsel %vm193_vm1, %v172_v2, 0  ;;  %v364_v20 = vsel %vm193_vm1, %v824_v1, 0 }
  0x13   : > { %472 = vrot.lane.b32.xlu0 %v847_v4, %s1018_s20  ;;  %296 = vrot.lane.b32.xlu1 %v834_v5, %s1018_s20 }
  0x14   : > { %901 = vmatprep.subr.bf16.mxu1 %v1016_v0  ;;  %920 = vmatpush3.bf16.msra.mxu0 %v421_v9 }
  0x15   : > { %898 = vmatmul.mubr.msk.bf16.vlgmr.msra.gmra.mrb[0].mxu1 %vm189_vm2, %v995_v7  ;;  %925 = vmatprep.subr.bf16.mxu0 %v1016_v0 }
  0x16   : > { %902 = vmatpush3.bf16.msra.mxu1 %v247_v11  ;;  %903 = vmatprep.mubr.msk.bf16.mxu1 %vm1017_vm0, %v1016_v0 }
  0x17   : > { %531 = vrot.lane.b32.xlu0 %v834_v5, %s1019_s23  ;;  %593 = vrot.lane.b32.xlu1 %v856_v10, %s1019_s23 }
  0x18   : > { %922 = vmatmul.mubr.msk.bf16.vlgmr.msra.gmra.mrb[0].mxu0 %vm189_vm2, %v997_v12  ;;  %907 = vmatprep.subr.bf16.mxu1 %v1016_v0 }
  0x19   : > { %927 = vmatprep.mubr.msk.bf16.mxu0 %vm1017_vm0, %v1016_v0 }
  0x1b   : > { %652 = vrot.lane.b32.xlu0 %v834_v5, %s1020_s24 }
  0x21   : > { %904 = vmatmul.mubr.msk.bf16.vlgmr.msra.gmra.mrb[0].mxu1 %vm189_vm2, %v996_v13 }
  0x22   : > { %909 = vmatprep.mubr.msk.bf16.mxu1 %vm1017_vm0, %v1016_v0 }
  0x85   : > { %v473_v14 = vpop.permute.xlu0 %472  ;;  %v297_v15 = vpop.permute.xlu1 %296 }
  0x86   : > { %v483_v16 = vsel %vm193_vm1, %v473_v14, 0  ;;  %v307_v17 = vsel %vm193_vm1, %v297_v15, 0 }
  0x87   : > { %908 = vmatpush3.bf16.msra.mxu1 %v307_v17  ;;  %926 = vmatpush3.bf16.msra.mxu0 %v483_v16 }
  0x88   : > { %913 = vmatprep.subr.bf16.mxu1 %v1016_v0  ;;  %931 = vmatprep.subr.bf16.mxu0 %v1016_v0 }
  0x89   : > { %v532_v21 = vpop.permute.xlu0 %531  ;;  %v594_v23 = vpop.permute.xlu1 %593 }
  0x8a   : > { %910 = vmatmul.mubr.msk.bf16.vlgmr.msra.gmra.mrb[0].mxu1 %vm189_vm2, %v998_v18  ;;  %928 = vmatmul.mubr.msk.bf16.vlgmr.msra.gmra.mrb[0].mxu0 %vm189_vm2, %v999_v19  ;;  %v542_v22 = vsel %vm193_vm1, %v532_v21, 0  ;;  %v604_v26 = vsel %vm193_vm1, %v594_v23, 0 }
  0x8b   : > { %914 = vmatpush3.bf16.msra.mxu1 %v364_v20  ;;  %932 = vmatpush3.bf16.msra.mxu0 %v542_v22 }
  0x8c   : > { %915 = vmatprep.mubr.msk.bf16.mxu1 %vm1017_vm0, %v1016_v0  ;;  %933 = vmatprep.mubr.msk.bf16.mxu0 %vm1017_vm0, %v1016_v0 }
  0x8d   : > { %937 = vmatprep.subr.bf16.mxu0 %v1016_v0  ;;  %v653_v27 = vpop.permute.xlu0 %652 }
  0x8e   : > { %v663_v29 = vsel %vm193_vm1, %v653_v27, 0 }
  0x96   : > { %916 = vmatmul.mubr.msk.bf16.vlgmr.msra.gmra.mrb[0].mxu1 %vm189_vm2, %v1000_v24  ;;  %934 = vmatmul.mubr.msk.bf16.vlgmr.msra.gmra.mrb[0].mxu0 %vm189_vm2, %v1001_v25 }
  0x97   : > { %938 = vmatpush3.bf16.msra.mxu0 %v604_v26  ;;  %939 = vmatprep.mubr.msk.bf16.mxu0 %vm1017_vm0, %v1016_v0 }
  0x98   : > { %943 = vmatprep.subr.bf16.mxu0 %v1016_v0 }
  0xa2   : > { %940 = vmatmul.mubr.msk.bf16.vlgmr.msra.gmra.mrb[0].mxu0 %vm189_vm2, %v1002_v28 }
  0xa3   : > { %944 = vmatpush3.bf16.msra.mxu0 %v663_v29  ;;  %945 = vmatprep.mubr.msk.bf16.mxu0 %vm1017_vm0, %v1016_v0 }
  0xae   : > { %946 = vmatmul.mubr.msk.bf16.vlgmr.msra.gmra.mrb[0].mxu0 %vm189_vm2, %v1003_v30 }
 0x169   : > { %v400_v31 = vpop.f32.mrb[0].mxu1 }
 0x16a   : > { %v917_v32 = vpop.f32.mrb[1].mxu1 }
 0x16b   : > { %v403_v33 = vpop.f32.mrb[2].mxu1 }
 0x16c   : > { %v918_v34 = vpop.f32.mrb[3].mxu1 }
 0x181   : > { %v699_v35 = vpop.f32.mrb[0].mxu0 }
 0x182   : > { %v949_v37 = vadd.f32 %v699_v35, %v400_v31  ;;  %v947_v38 = vpop.f32.mrb[1].mxu0 }
 0x183   : > { %v702_v39 = vpop.f32.mrb[2].mxu0 }
 0x184   : > { %v950_v40 = vadd.f32 %v702_v39, %v403_v33  ;;  %v948_v41 = vpop.f32.mrb[3].mxu0  ;;  %v715_v42 = vmul.f32 %v949_v37, %v863_v36 }
 0x186   : > { %717 = vadd.xlane.f32.xlu1 %v715_v42  ;;  %v716_v43 = vmul.f32 %v950_v40, %v863_v36  ;;  %v721_v45 = vmul.f32 %v949_v37, %v715_v42 }
 0x188   : > { %719 = vadd.xlane.f32.xlu0 %v716_v43  ;;  %v722_v44 = vmul.f32 %v950_v40, %v716_v43 }
 0x18a   : > { %725 = vadd.xlane.f32.xlu1 %v722_v44 }
 0x18c   : > { %723 = vadd.xlane.f32.xlu0 %v721_v45 }
 0x213   : > { %v718_v46 = vpop.xlane.xlu1 %717 }
 0x214   : > { %v727_v48 = vmul.f32 0.015625, %v718_v46 }
 0x215   : > { %v720_v47 = vpop.xlane.xlu0 %719 }
 0x216   : > { %v728_v49 = vmul.f32 0.015625, %v720_v47  ;;  %v731_v54 = vmul.f32 %v727_v48, %v727_v48  ;;  %v741_v0 = vsub.f32 %v949_v37, %v727_v48 }
 0x217   : > { %v726_v50 = vpop.xlane.xlu1 %725 }
 0x218   : > { %v732_v51 = vmul.f32 %v728_v49, %v728_v49  ;;  %v730_v52 = vmul.f32 0.015625, %v726_v50  ;;  %v742_v62 = vsub.f32 %v950_v40, %v728_v49 }
 0x219   : > { %v724_v53 = vpop.xlane.xlu0 %723 }
 0x21a   : > { %v734_v55 = vsub.f32 %v730_v52, %v732_v51  ;;  %v729_v56 = vmul.f32 0.015625, %v724_v53 }
 0x21c   : > { %v736_v57 = vmax.f32 %v734_v55, 0.0  ;;  %v733_v58 = vsub.f32 %v729_v56, %v731_v54 }
 0x21e   : > { %v738_v59 = vadd.f32 1e-05, %v736_v57  ;;  %v735_v60 = vmax.f32 %v733_v58, 0.0 }
 0x220   : > { %1004 = vrsqrt.f32 %v738_v59  ;;  %v737_v61 = vadd.f32 1e-05, %v735_v60 }
 0x222   : > { %1006 = vrsqrt.f32 %v737_v61 }
 0x22a   : > { %v1005_v63 = vpop.eup %1004 }
 0x22b   : > { %v744_v1 = vmul.f32 %v1005_v63, %v742_v62 }
 0x22c   : > { %v1007_v2 = vpop.eup %1006 }
 0x22d   : > { %v746_v3 = vmax.f32 %v744_v1, 0.0  ;;  %v743_v4 = vmul.f32 %v1007_v2, %v741_v0 }
 0x22f   : > { %v745_v5 = vmax.f32 %v743_v4, 0.0  ;;  %v748_v6 = vmul.f32 %v863_v36, %v746_v3 }
 0x231   : > { %v747_v7 = vmul.f32 %v863_v36, %v745_v5 }
 0x233   : > { %v875_v8 = vpack.c.bf16 %v748_v6, %v747_v7 }
 0x235   : > { %876 = vst [vmem:[%s170_s19] sm:$0xff] %v875_v8  }
 0x236 PF: > { %s13_s12 = sadd.s32 1, %s1014_s12  }
 0x237   : > { %p10_p4 = scmp.ge.s32.totalorder %s13_s12, 4  }
 0x239   :  { %12 = sbr.rel (!%p10_p4) target bundleno = 1 (0x1), region = 73 }

// kernel: gen_s2m_forward.7
= control target key start
LH: loop header
LB: loop body
LE: loop exit
PB: predicated region body
PF: predicated region fallthrough
CT: control target
= control target key end

     0   :  { %s1331_s12 = smov 0   ;;  %s1447_s0 = inlined_call_operand.vmem [shape: bf16[2,4,16,128], index: 0, kind: input, shape index: {}]   ;;  %s1448_s1 = inlined_call_operand.vmem [shape: bf16[9,32,16], index: 1, kind: input, shape index: {}]   ;;  %s1449_s2 = inlined_call_operand.vmem [shape: f32[1,128], index: 2, kind: input, shape index: {}]   ;;  %s1450_s3 = inlined_call_operand.vmem [shape: bf16[2,1,32,128], index: 3, kind: output, shape index: {}]  }
   0x1 LB: > { %s1035_s13 = sadd.s32 4294967295, %s1306_s12   ;;  %p1039_p0 = scmp.ge.s32.totalorder %s1306_s12, 1  ;;  %s1306_s12 = sphi %s1331_s12, %s13_s12  }
   0x2   : > { %p137_p1 = scmp.lt.s32.totalorder %s1306_s12, 3 }
   0x4   : > { %p138_p2 = pnand %p1039_p0, %p137_p1 }
   0x5   : > { %p161_p3 = scmp.lt.s32.totalorder (!%p138_p2), %s1035_s13, 1  ;;  %v1273_v0 = vld [vmem:[%s1448_s1 + $0x10] sm:$0xff] (!%p138_p2)   ;;  %vm208_vm0 = vcmask (!%p138_p2), 130048   ;;  %v1277_v1 = vld [vmem:[%s1448_s1 + $0x40] sm:$0xff] (!%p138_p2)   ;;  %s1308_s22 = smov (!%p138_p2), 127   ;;  %v1274_v6 = vld [vmem:[%s1448_s1 + $0x18] sm:$0xff] (!%p138_p2)  }
   0x6   : > { %141 = sbr.rel (%p138_p2) target bundleno = 571 (0x23b), region = 32  ;;  %1175 = vmatprep.mubr.msk.bf16.mxu1 (!%p138_p2), %vm208_vm0, %v1273_v0  ;;  %1199 = vmatprep.mubr.msk.bf16.mxu0 (!%p138_p2), %vm208_vm0, %v1277_v1  ;;  %v1276_v7 = vld [vmem:[%s1448_s1] sm:$0xff] (!%p138_p2)   ;;  %s1309_s27 = smov (!%p138_p2), 123   ;;  %v1279_v8 = vld [vmem:[%s1448_s1 + $0x48] sm:$0xff] (!%p138_p2)   ;;  %v1281_v9 = vld [vmem:[%s1448_s1 + $0x50] sm:$0xff] (!%p138_p2)  }
   0x7   : > { %s1310_s5 = smov (!%p138_p2), 122   ;;  %v1278_v10 = vld [vmem:[%s1448_s1 + $0x8] sm:$0xff] (!%p138_p2)   ;;  %v1280_v11 = vld [vmem:[%s1448_s1 + $0x20] sm:$0xff] (!%p138_p2)   ;;  %v1283_v14 = vld [vmem:[%s1448_s1 + $0x58] sm:$0xff] (!%p138_p2)  }
   0x8   : > { %v1282_v15 = vld [vmem:[%s1448_s1 + $0x28] sm:$0xff] (!%p138_p2)   ;;  %v1284_v16 = vld [vmem:[%s1448_s1 + $0x30] sm:$0xff] (!%p138_p2)   ;;  %v1285_v18 = vld [vmem:[%s1448_s1 + $0x60] sm:$0xff] (!%p138_p2)  }
   0x9   : > { %v1287_v20 = vld [vmem:[%s1448_s1 + $0x68] sm:$0xff] (!%p138_p2)   ;;  %v1286_v21 = vld [vmem:[%s1448_s1 + $0x38] sm:$0xff] (!%p138_p2)   ;;  %v1288_v22 = vld [vmem:[%s1448_s1 + $0x70] sm:$0xff] (!%p138_p2)  }
   0xa   : > { %v1289_v24 = vld [vmem:[%s1448_s1 + $0x78] sm:$0xff] (!%p138_p2)   ;;  %v1290_v25 = vld [vmem:[%s1448_s1 + $0x80] sm:$0xff] (!%p138_p2)   ;;  %v1291_v26 = vld [vmem:[%s1448_s1 + $0x88] sm:$0xff] (!%p138_p2)  }
   0xb   : > { %v1420_v32 = vld [vmem:[%s1449_s2] ss:$0 sm:$0xff] (!%p138_p2) }
   0xd   : > { %s1452_s13 = smov (!%p161_p3, %s1035_s13), 1 }
   0xe   : > { %s1129_s16 = sshll.u32 %s1452_s13, 5  ;;  %s1130_s7 = sshll.u32 %s1452_s13, 4 }
   0xf   : > { %s165_s21 = scalar_lea.vmem %s1447_s0, %s1129_s16  ;;  %s170_s10 = scalar_lea.vmem %s1450_s3, %s1130_s7 }
  0x10   : > { %v1270_v2 = vld [vmem:[%s165_s21 + $0x10] sm:$0xff]   ;;  %v1271_v3 = vld [vmem:[%s165_s21] sm:$0xff]   ;;  %v1272_v4 = vld [vmem:[%s165_s21 + $0x8] sm:$0xff]  }
  0x11   : > { %578 = vrot.lane.b32.xlu0 %v1270_v2, %s1308_s22  ;;  %340 = vrot.lane.b32.xlu1 %v1271_v3, %s1308_s22  ;;  %v1275_v5 = vld [vmem:[%s165_s21 + $0x18] sm:$0xff]  }
  0x12   : > { %1173 = vmatprep.subr.bf16.mxu1 %v1272_v4  ;;  %1197 = vmatprep.subr.bf16.mxu0 %v1275_v5 }
  0x13   : > { %1174 = vmatpush3.bf16.msra.mxu1 %v1272_v4  ;;  %1198 = vmatpush3.bf16.msra.mxu0 %v1275_v5 }
  0x14   : > { %1179 = vmatprep.subr.bf16.mxu1 %v1271_v3 }
  0x15   : > { %656 = vrot.lane.b32.xlu0 %v1271_v3, %s1309_s27  ;;  %734 = vrot.lane.b32.xlu1 %v1272_v4, %s1309_s27 }
  0x16   : > { %1176 = vmatmul.mubr.msk.bf16.vlgmr.msra.gmra.mrb[0].mxu1 %vm208_vm0, %v1274_v6  ;;  %1200 = vmatmul.mubr.msk.bf16.vlgmr.msra.gmra.mrb[0].mxu0 %vm208_vm0, %v1279_v8 }
  0x17   : > { %1180 = vmatpush3.bf16.msra.mxu1 %v1271_v3  ;;  %1181 = vmatprep.mubr.msk.bf16.mxu1 %vm208_vm0, %v1276_v7 }
  0x18   : > { %1205 = vmatprep.mubr.msk.bf16.mxu0 %vm208_vm0, %v1281_v9 }
  0x19   : > { %812 = vrot.lane.b32.xlu0 %v1271_v3, %s1310_s5 }
  0x22   : > { %1182 = vmatmul.mubr.msk.bf16.vlgmr.msra.gmra.mrb[0].mxu1 %vm208_vm0, %v1278_v10 }
  0x23   : > { %1187 = vmatprep.mubr.msk.bf16.mxu1 %vm208_vm0, %v1280_v11 }
  0x83   : > { %v579_v12 = vpop.permute.xlu0 %578  ;;  %v341_v13 = vpop.permute.xlu1 %340 }
  0x84   : > { %1203 = vmatprep.subr.bf16.mxu0 %v579_v12  ;;  %1185 = vmatprep.subr.bf16.mxu1 %v341_v13 }
  0x85   : > { %1204 = vmatpush3.bf16.msra.mxu0 %v579_v12  ;;  %1186 = vmatpush3.bf16.msra.mxu1 %v341_v13 }
  0x86   : > { %1191 = vmatprep.subr.bf16.mxu1 %v1270_v2 }
  0x87   : > { %v657_v17 = vpop.permute.xlu0 %656  ;;  %v735_v19 = vpop.permute.xlu1 %734 }
  0x88   : > { %1206 = vmatmul.mubr.msk.bf16.vlgmr.msra.gmra.mrb[0].mxu0 %vm208_vm0, %v1283_v14  ;;  %1209 = vmatprep.subr.bf16.mxu0 %v657_v17 }
  0x89   : > { %1188 = vmatmul.mubr.msk.bf16.vlgmr.msra.gmra.mrb[0].mxu1 %vm208_vm0, %v1282_v15  ;;  %1210 = vmatpush3.bf16.msra.mxu0 %v657_v17 }
  0x8a   : > { %1192 = vmatpush3.bf16.msra.mxu1 %v1270_v2  ;;  %1193 = vmatprep.mubr.msk.bf16.mxu1 %vm208_vm0, %v1284_v16 }
  0x8b   : > { %1211 = vmatprep.mubr.msk.bf16.mxu0 %vm208_vm0, %v1285_v18  ;;  %1215 = vmatprep.subr.bf16.mxu0 %v735_v19  ;;  %v813_v23 = vpop.permute.xlu0 %812 }
  0x94   : > { %1212 = vmatmul.mubr.msk.bf16.vlgmr.msra.gmra.mrb[0].mxu0 %vm208_vm0, %v1287_v20 }
  0x95   : > { %1194 = vmatmul.mubr.msk.bf16.vlgmr.msra.gmra.mrb[0].mxu1 %vm208_vm0, %v1286_v21  ;;  %1216 = vmatpush3.bf16.msra.mxu0 %v735_v19 }
  0x96   : > { %1217 = vmatprep.mubr.msk.bf16.mxu0 %vm208_vm0, %v1288_v22  ;;  %1221 = vmatprep.subr.bf16.mxu0 %v813_v23 }
  0xa0   : > { %1218 = vmatmul.mubr.msk.bf16.vlgmr.msra.gmra.mrb[0].mxu0 %vm208_vm0, %v1289_v24 }
  0xa1   : > { %1222 = vmatpush3.bf16.msra.mxu0 %v813_v23  ;;  %1223 = vmatprep.mubr.msk.bf16.mxu0 %vm208_vm0, %v1290_v25 }
  0xac   : > { %1224 = vmatmul.mubr.msk.bf16.vlgmr.msra.gmra.mrb[0].mxu0 %vm208_vm0, %v1291_v26 }
 0x168   : > { %v1195_v27 = vpop.f32.mrb[0].mxu1 }
 0x169   : > { %v474_v28 = vpop.f32.mrb[1].mxu1 }
 0x16a   : > { %v1196_v29 = vpop.f32.mrb[2].mxu1 }
 0x16b   : > { %v477_v30 = vpop.f32.mrb[3].mxu1 }
 0x17f   : > { %v1225_v31 = vpop.f32.mrb[0].mxu0 }
 0x180   : > { %v1422_v33 = vadd.f32 %v1225_v31, %v1195_v27  ;;  %v866_v34 = vpop.f32.mrb[1].mxu0 }
 0x181   : > { %v1228_v35 = vadd.f32 %v866_v34, %v474_v28  ;;  %v1226_v36 = vpop.f32.mrb[2].mxu0 }
 0x182   : > { %v1424_v37 = vadd.f32 %v1226_v36, %v1196_v29  ;;  %v869_v38 = vpop.f32.mrb[3].mxu0  ;;  %v894_v39 = vmul.f32 %v1422_v33, %v1420_v32 }
 0x183   : > { %v1230_v40 = vadd.f32 %v869_v38, %v477_v30  ;;  %v892_v41 = vmul.f32 %v1228_v35, %v1420_v32 }
 0x184   : > { %900 = vadd.xlane.f32.xlu0 %v894_v39  ;;  %v895_v43 = vmul.f32 %v1424_v37, %v1420_v32  ;;  %v906_v46 = vmul.f32 %v1422_v33, %v894_v39 }
 0x185   : > { %896 = vadd.xlane.f32.xlu1 %v892_v41  ;;  %v893_v42 = vmul.f32 %v1230_v40, %v1420_v32  ;;  %v904_v44 = vmul.f32 %v1228_v35, %v892_v41 }
 0x186   : > { %v907_v47 = vmul.f32 %v1424_v37, %v895_v43 }
 0x187   : > { %v905_v45 = vmul.f32 %v1230_v40, %v893_v42 }
 0x188   : > { %898 = vadd.xlane.f32.xlu0 %v893_v42 }
 0x189   : > { %902 = vadd.xlane.f32.xlu1 %v895_v43 }
 0x18c   : > { %908 = vadd.xlane.f32.xlu0 %v904_v44 }
 0x18d   : > { %910 = vadd.xlane.f32.xlu1 %v905_v45 }
 0x190   : > { %912 = vadd.xlane.f32.xlu0 %v906_v46 }
 0x191   : > { %914 = vadd.xlane.f32.xlu1 %v907_v47 }
 0x211   : > { %v901_v48 = vpop.xlane.xlu0 %900 }
 0x212   : > { %v897_v49 = vpop.xlane.xlu1 %896  ;;  %v918_v55 = vmul.f32 0.0625, %v901_v48 }
 0x213   : > { %v916_v51 = vmul.f32 0.0625, %v897_v49 }
 0x214   : > { %v926_v1 = vmul.f32 %v918_v55, %v918_v55  ;;  %v946_v22 = vsub.f32 %v1422_v33, %v918_v55 }
 0x215   : > { %v899_v50 = vpop.xlane.xlu0 %898  ;;  %v924_v56 = vmul.f32 %v916_v51, %v916_v51  ;;  %v944_v16 = vsub.f32 %v1228_v35, %v916_v51 }
 0x216   : > { %v903_v52 = vpop.xlane.xlu1 %902  ;;  %v917_v53 = vmul.f32 0.0625, %v899_v50 }
 0x217   : > { %v919_v60 = vmul.f32 0.0625, %v903_v52 }
 0x218   : > { %v925_v59 = vmul.f32 %v917_v53, %v917_v53  ;;  %v945_v18 = vsub.f32 %v1230_v40, %v917_v53 }
 0x219   : > { %v909_v54 = vpop.xlane.xlu0 %908  ;;  %v927_v5 = vmul.f32 %v919_v60, %v919_v60  ;;  %v947_v25 = vsub.f32 %v1424_v37, %v919_v60 }
 0x21a   : > { %v920_v57 = vmul.f32 0.0625, %v909_v54  ;;  %v911_v58 = vpop.xlane.xlu1 %910 }
 0x21b   : > { %v921_v61 = vmul.f32 0.0625, %v911_v58 }
 0x21c   : > { %v928_v62 = vsub.f32 %v920_v57, %v924_v56 }
 0x21d   : > { %v929_v63 = vsub.f32 %v921_v61, %v925_v59  ;;  %v913_v0 = vpop.xlane.xlu0 %912 }
 0x21e   : > { %v932_v2 = vmax.f32 %v928_v62, 0.0  ;;  %v922_v3 = vmul.f32 0.0625, %v913_v0  ;;  %v915_v4 = vpop.xlane.xlu1 %914 }
 0x21f   : > { %v933_v6 = vmax.f32 %v929_v63, 0.0  ;;  %v923_v7 = vmul.f32 0.0625, %v915_v4 }
 0x220   : > { %v936_v8 = vadd.f32 1e-05, %v932_v2  ;;  %v930_v9 = vsub.f32 %v922_v3, %v926_v1 }
 0x221   : > { %v937_v10 = vadd.f32 1e-05, %v933_v6  ;;  %v931_v11 = vsub.f32 %v923_v7, %v927_v5 }
 0x222   : > { %1292 = vrsqrt.f32 %v936_v8  ;;  %v934_v12 = vmax.f32 %v930_v9, 0.0 }
 0x223   : > { %1294 = vrsqrt.f32 %v937_v10  ;;  %v935_v13 = vmax.f32 %v931_v11, 0.0 }
 0x224   : > { %v938_v14 = vadd.f32 1e-05, %v934_v12 }
 0x225   : > { %v939_v15 = vadd.f32 1e-05, %v935_v13 }
 0x226   : > { %1296 = vrsqrt.f32 %v938_v14 }
 0x227   : > { %1298 = vrsqrt.f32 %v939_v15 }
 0x22c   : > { %v1293_v17 = vpop.eup %1292 }
 0x22d   : > { %v1295_v19 = vpop.eup %1294  ;;  %v948_v20 = vmul.f32 %v1293_v17, %v944_v16 }
 0x22e   : > { %v949_v21 = vmul.f32 %v1295_v19, %v945_v18 }
 0x22f   : > { %v952_v23 = vmax.f32 %v948_v20, 0.0 }
 0x230   : > { %v1297_v24 = vpop.eup %1296  ;;  %v953_v26 = vmax.f32 %v949_v21, 0.0 }
 0x231   : > { %v1299_v27 = vpop.eup %1298  ;;  %v956_v28 = vmul.f32 %v1420_v32, %v952_v23  ;;  %v950_v29 = vmul.f32 %v1297_v24, %v946_v22 }
 0x232   : > { %v957_v30 = vmul.f32 %v1420_v32, %v953_v26  ;;  %v951_v31 = vmul.f32 %v1299_v27, %v947_v25 }
 0x233   : > { %v954_v34 = vmax.f32 %v950_v29, 0.0 }
 0x234   : > { %v1138_v35 = vpack.c.bf16 %v957_v30, %v956_v28  ;;  %v955_v33 = vmax.f32 %v951_v31, 0.0 }
 0x235   : > { %v958_v36 = vmul.f32 %v1420_v32, %v954_v34 }
 0x236   : > { %1139 = vst [vmem:[%s170_s10] sm:$0xff] %v1138_v35   ;;  %v959_v37 = vmul.f32 %v1420_v32, %v955_v33 }
 0x238   : > { %v1143_v38 = vpack.c.bf16 %v959_v37, %v958_v36 }
 0x23a   : > { %1145 = vst [vmem:[%s170_s10 + $0x8] sm:$0xff] %v1143_v38  }
 0x23b PF: > { %s13_s12 = sadd.s32 1, %s1306_s12  }
 0x23c   : > { %p10_p4 = scmp.ge.s32.totalorder %s13_s12, 4  }
 0x23e   :  { %12 = sbr.rel (!%p10_p4) target bundleno = 1 (0x1), region = 73 }

// kernel: squeeze.18
= control target key start
LH: loop header
LB: loop body
LE: loop exit
PB: predicated region body
PF: predicated region fallthrough
CT: control target
= control target key end

     0   :  { %s74_s8 = smov 119   ;;  %vm7_vm0 = vcmask 72704   ;;  %s75_s11 = smov 92   ;;  %s130_s0 = inlined_call_operand.vmem [shape: f32[2,81], index: 0, kind: input, shape index: {}]   ;;  %s131_s1 = inlined_call_operand.vmem [shape: f32[2,1,9,9], index: 1, kind: output, shape index: {}]  }
   0x1   :  { %v4_v0 = vld [vmem:[%s130_s0] sm:$0x3]  ;;  %s73_s0 = smov 101   ;;  %s76_s12 = smov 110  }
   0x2   :  { %5 = vst [vmem:[#allocation0] sm:$0x3] %v4_v0  ;;  %s77_s13 = smov 74   ;;  %s78_s14 = smov 83  }
   0x3   :  { %s79_s15 = smov 56   ;;  %s80_s16 = smov 65  }
   0x9   :  { %v21_v1 = vld [vmem:[#allocation0] sm:$0x3]  }
   0xa   :  { %v9_v2 = vld [vmem:[#allocation0] sm:$0x3]   ;;  %22 = vrot.lane.b32.xlu1 %v21_v1, %s73_s0 }
   0xb   :  { %10 = vrot.lane.b32.xlu0 %v9_v2, %s74_s8  ;;  %v27_v3 = vld [vmem:[#allocation0] sm:$0x3]  }
   0xc   :  { %v15_v4 = vld [vmem:[#allocation0] sm:$0x3]  }
   0xd   :  { %v6_v5 = vld [vmem:[#allocation0] sm:$0x3]  }
   0xe   :  { %8 = vst.msk [vmem:[%s131_s1] ss:$16 sm:$0x3] %vm7_vm0, %v6_v5   ;;  %28 = vrot.lane.b32.xlu1 %v27_v3, %s75_s11  ;;  %v39_v6 = vld [vmem:[#allocation0] sm:$0x3]  }
   0xf   :  { %16 = vrot.lane.b32.xlu0 %v15_v4, %s76_s12  ;;  %v33_v7 = vld [vmem:[#allocation0] sm:$0x3]  }
  0x10   :  { %v51_v8 = vld [vmem:[#allocation0] sm:$0x3]  }
  0x11   :  { %v45_v9 = vld [vmem:[#allocation0] sm:$0x3]  }
  0x12   :  { %40 = vrot.lane.b32.xlu1 %v39_v6, %s77_s13 }
  0x13   :  { %34 = vrot.lane.b32.xlu0 %v33_v7, %s78_s14 }
  0x16   :  { %52 = vrot.lane.b32.xlu1 %v51_v8, %s79_s15 }
  0x17   :  { %46 = vrot.lane.b32.xlu0 %v45_v9, %s80_s16 }
  0x7c   :  { %v23_v10 = vpop.permute.xlu1 %22  }
  0x7d   :  { %v11_v11 = vpop.permute.xlu0 %10   ;;  %59 = vst.msk [vmem:[%s131_s1 + $0x3] ss:$16 sm:$0x3] %vm7_vm0, %v23_v10  }
  0x7e   :  { %57 = vst.msk [vmem:[%s131_s1 + $0x1] ss:$16 sm:$0x3] %vm7_vm0, %v11_v11  }
  0x80   :  { %v29_v12 = vpop.permute.xlu1 %28  }
  0x81   :  { %v17_v13 = vpop.permute.xlu0 %16   ;;  %60 = vst.msk [vmem:[%s131_s1 + $0x4] ss:$16 sm:$0x3] %vm7_vm0, %v29_v12  }
  0x82   :  { %58 = vst.msk [vmem:[%s131_s1 + $0x2] ss:$16 sm:$0x3] %vm7_vm0, %v17_v13  }
  0x84   :  { %v41_v14 = vpop.permute.xlu1 %40  }
  0x85   :  { %v35_v15 = vpop.permute.xlu0 %34   ;;  %62 = vst.msk [vmem:[%s131_s1 + $0x6] ss:$16 sm:$0x3] %vm7_vm0, %v41_v14  }
  0x86   :  { %61 = vst.msk [vmem:[%s131_s1 + $0x5] ss:$16 sm:$0x3] %vm7_vm0, %v35_v15  }
  0x88   :  { %v53_v16 = vpop.permute.xlu1 %52  }
  0x89   :  { %v47_v17 = vpop.permute.xlu0 %46   ;;  %64 = vst.msk [vmem:[%s131_s1 + $0x8] ss:$16 sm:$0x3] %vm7_vm0, %v53_v16  }
  0x8a   :  { %63 = vst.msk [vmem:[%s131_s1 + $0x7] ss:$16 sm:$0x3] %vm7_vm0, %v47_v17  }

// kernel: gen_s2m_forward.9
= control target key start
LH: loop header
LB: loop body
LE: loop exit
PB: predicated region body
PF: predicated region fallthrough
CT: control target
= control target key end

     0   :  { %s808_s9 = smov 0   ;;  %s874_s0 = inlined_call_operand.vmem [shape: bf16[2,1,16,128], index: 0, kind: input, shape index: {}]   ;;  %s875_s1 = inlined_call_operand.vmem [shape: bf16[9,1,16], index: 1, kind: input, shape index: {}]   ;;  %s876_s2 = inlined_call_operand.vmem [shape: f32[2,4,1,128], index: 2, kind: output, shape index: {}]  }
   0x1 LB: > { %s634_s10 = sadd.s32 4294967295, %s786_s9   ;;  %p638_p0 = scmp.ge.s32.totalorder %s786_s9, 1  ;;  %s786_s9 = sphi %s808_s9, %s12_s9  }
   0x2   : > { %p112_p1 = scmp.lt.s32.totalorder %s786_s9, 3 }
   0x4   : > { %p113_p2 = pnand %p638_p0, %p112_p1 }
   0x5   : > { %p133_p3 = scmp.lt.s32.totalorder (!%p113_p2), %s634_s10, 1  ;;  %v788_v0 = vmov (!%p113_p2), 0.0   ;;  %vm789_vm0 = vmmov (!%p113_p2), 0   ;;  %s790_s15 = smov (!%p113_p2), 127   ;;  %v643_v4 = vld [vmem:[%s875_s1 + $0x2] sm:$0x1] (!%p113_p2) }
   0x6   : > { %116 = sbr.rel (%p113_p2) target bundleno = 403 (0x193), region = 28  ;;  %684 = vmatprep.subr.bf16.mxu0 (!%p113_p2), %v788_v0  ;;  %708 = vmatprep.subr.bf16.mxu1 (!%p113_p2), %v788_v0  ;;  %s791_s16 = smov (!%p113_p2), 119   ;;  %vm161_vm1 = vcmask (!%p113_p2), 130048   ;;  %v651_v5 = vld [vmem:[%s875_s1 + $0x7] sm:$0x1] (!%p113_p2) }
   0x7   : > { %686 = vmatprep.mubr.msk.bf16.mxu0 (!%p113_p2), %vm789_vm0, %v788_v0  ;;  %710 = vmatprep.mubr.msk.bf16.mxu1 (!%p113_p2), %vm789_vm0, %v788_v0  ;;  %s792_s17 = smov (!%p113_p2), 118   ;;  %v145_v7 = vld [vmem:[%s875_s1] sm:$0x1] (!%p113_p2)  ;;  %v650_v8 = vld [vmem:[%s875_s1 + $0x1] sm:$0x1] (!%p113_p2) }
   0x8   : > { %v655_v9 = vld [vmem:[%s875_s1 + $0x5] sm:$0x1] (!%p113_p2)  ;;  %v646_v10 = vld [vmem:[%s875_s1 + $0x6] sm:$0x1] (!%p113_p2)  ;;  %v654_v11 = vld [vmem:[%s875_s1 + $0x3] sm:$0x1] (!%p113_p2) }
   0x9   : > { %v648_v12 = vld [vmem:[%s875_s1 + $0x8] sm:$0x1] (!%p113_p2)  ;;  %v658_v13 = vld [vmem:[%s875_s1 + $0x4] sm:$0x1] (!%p113_p2) }
   0xd   : > { %s878_s10 = smov (!%p133_p3, %s634_s10), 1 }
   0xe   : > { %s665_s11 = sshll.u32 %s878_s10, 3  ;;  %s641_s8 = sshll.u32 %s878_s10, 2 }
   0xf   : > { %s137_s14 = scalar_lea.vmem %s874_s0, %s665_s11  ;;  %s141_s13 = scalar_lea.vmem %s876_s2, %s641_s8 }
  0x10   : > { %v771_v1 = vld [vmem:[%s137_s14] sm:$0xff]  }
  0x11   : > { %250 = vrot.lane.b32.xlu1 %v771_v1, %s790_s15  ;;  %157 = vrot.lane.b32.xlu0 %v771_v1, %s791_s16 }
  0x15   : > { %151 = vrot.lane.b32.xlu0 %v771_v1, %s792_s17 }
  0x83   : > { %v251_v2 = vpop.permute.xlu1 %250  ;;  %v158_v3 = vpop.permute.xlu0 %157 }
  0x84   : > { %685 = vmatpush3.bf16.msra.mxu0 %v158_v3  ;;  %709 = vmatpush3.bf16.msra.mxu1 %v251_v2 }
  0x85   : > { %690 = vmatprep.subr.bf16.mxu0 %v788_v0  ;;  %714 = vmatprep.subr.bf16.mxu1 %v788_v0 }
  0x87   : > { %687 = vmatmul.mubr.msk.bf16.vlgmr.msra.gmra.mrb[0].mxu0 %vm161_vm1, %v643_v4  ;;  %711 = vmatmul.mubr.msk.bf16.vlgmr.msra.gmra.mrb[0].mxu1 %vm161_vm1, %v651_v5  ;;  %v152_v6 = vpop.permute.xlu0 %151 }
  0x88   : > { %691 = vmatpush3.bf16.msra.mxu0 %v152_v6  ;;  %715 = vmatpush3.bf16.msra.mxu1 %v152_v6 }
  0x89   : > { %692 = vmatprep.mubr.msk.bf16.mxu0 %vm789_vm0, %v788_v0  ;;  %696 = vmatprep.subr.bf16.mxu0 %v788_v0 }
  0x8a   : > { %716 = vmatprep.mubr.msk.bf16.mxu1 %vm789_vm0, %v788_v0  ;;  %720 = vmatprep.subr.bf16.mxu1 %v788_v0 }
  0x93   : > { %693 = vmatmul.mubr.msk.bf16.vlgmr.msra.gmra.mrb[0].mxu0 %vm161_vm1, %v145_v7  ;;  %717 = vmatmul.mubr.msk.bf16.vlgmr.msra.gmra.mrb[0].mxu1 %vm161_vm1, %v650_v8 }
  0x94   : > { %697 = vmatpush3.bf16.msra.mxu0 %v251_v2  ;;  %721 = vmatpush3.bf16.msra.mxu1 %v158_v3 }
  0x95   : > { %722 = vmatprep.mubr.msk.bf16.mxu1 %vm789_vm0, %v788_v0  ;;  %726 = vmatprep.subr.bf16.mxu1 %v788_v0 }
  0x96   : > { %698 = vmatprep.mubr.msk.bf16.mxu0 %vm789_vm0, %v788_v0  ;;  %702 = vmatprep.subr.bf16.mxu0 %v788_v0 }
  0x9b   : > { %723 = vmatmul.mubr.msk.bf16.vlgmr.msra.gmra.mrb[4].mxu1 %vm161_vm1, %v655_v9 }
  0x9c   : > { %727 = vmatpush3.bf16.msra.mxu1 %v152_v6  ;;  %728 = vmatprep.mubr.msk.bf16.mxu1 %vm789_vm0, %v788_v0 }
  0x9f   : > { %699 = vmatmul.mubr.msk.bf16.vlgmr.msra.gmra.mrb[0].mxu0 %vm161_vm1, %v646_v10 }
  0xa0   : > { %703 = vmatpush3.bf16.msra.mxu0 %v771_v1  ;;  %704 = vmatprep.mubr.msk.bf16.mxu0 %vm789_vm0, %v788_v0 }
  0xa1   : > { %732 = vmatprep.subr.bf16.mxu0 %v788_v0 }
  0xa7   : > { %729 = vmatmul.mubr.msk.bf16.vlgmr.msra.gmra.mrb[4].mxu1 %vm161_vm1, %v654_v11 }
  0xab   : > { %705 = vmatmul.mubr.msk.bf16.vlgmr.msra.gmra.mrb[0].mxu0 %vm161_vm1, %v648_v12 }
  0xac   : > { %733 = vmatpush3.bf16.msra.mxu0 %v152_v6  ;;  %734 = vmatprep.mubr.msk.bf16.mxu0 %vm789_vm0, %v788_v0 }
  0xb3   : > { %735 = vmatmul.mubr.msk.bf16.vlgmr.msra.gmra.mrb[4].mxu0 %vm161_vm1, %v658_v13 }
 0x166   : > { %v429_v14 = vpop.f32.mrb[0].mxu1 }
 0x167   : > { %772 = vtanh.f32 %v429_v14  ;;  %v718_v15 = vpop.f32.mrb[1].mxu1 }
 0x168   : > { %v432_v16 = vpop.f32.mrb[2].mxu1 }
 0x169   : > { %v719_v17 = vpop.f32.mrb[3].mxu1 }
 0x171   : > { %v773_v18 = vpop.eup %772 }
 0x172   : > { %660 = vst [vmem:[%s141_s13 + $0x1] sm:$0x1] %v773_v18 }
 0x17a   : > { %v519_v19 = vpop.f32.mrb[4].mxu1 }
 0x17b   : > { %774 = vtanh.f32 %v519_v19  ;;  %v730_v20 = vpop.f32.mrb[5].mxu1 }
 0x17c   : > { %v522_v21 = vpop.f32.mrb[6].mxu1 }
 0x17d   : > { %v731_v22 = vpop.f32.mrb[7].mxu1 }
 0x17e   : > { %v338_v23 = vpop.f32.mrb[0].mxu0 }
 0x17f   : > { %776 = vtanh.f32 %v338_v23  ;;  %v706_v24 = vpop.f32.mrb[1].mxu0 }
 0x180   : > { %v341_v25 = vpop.f32.mrb[2].mxu0 }
 0x181   : > { %v707_v26 = vpop.f32.mrb[3].mxu0 }
 0x185   : > { %v775_v27 = vpop.eup %774 }
 0x186   : > { %661 = vst [vmem:[%s141_s13 + $0x2] sm:$0x1] %v775_v27  ;;  %v564_v28 = vpop.f32.mrb[4].mxu0 }
 0x187   : > { %778 = vtanh.f32 %v564_v28  ;;  %v736_v29 = vpop.f32.mrb[5].mxu0 }
 0x188   : > { %v567_v30 = vpop.f32.mrb[6].mxu0 }
 0x189   : > { %v777_v31 = vpop.eup %776  ;;  %v737_v32 = vpop.f32.mrb[7].mxu0 }
 0x18a   : > { %571 = vst [vmem:[%s141_s13] sm:$0x1] %v777_v31 }
 0x191   : > { %v779_v33 = vpop.eup %778 }
 0x192   : > { %662 = vst [vmem:[%s141_s13 + $0x3] sm:$0x1] %v779_v33 }
 0x193 PF: > { %s12_s9 = sadd.s32 1, %s786_s9  }
 0x194   : > { %p9_p4 = scmp.ge.s32.totalorder %s12_s9, 4  }
 0x196   :  { %11 = sbr.rel (!%p9_p4) target bundleno = 1 (0x1), region = 69 }

// kernel: gen_s2m_forward.8
= control target key start
LH: loop header
LB: loop body
LE: loop exit
PB: predicated region body
PF: predicated region fallthrough
CT: control target
= control target key end

     0   :  { %s5398_s18 = smov 0   ;;  %s6063_s0 = inlined_call_operand.vmem [shape: bf16[2,32,128], index: 0, kind: input, shape index: {}]   ;;  %s6064_s1 = inlined_call_operand.vmem [shape: bf16[4,9,32,32], index: 1, kind: input, shape index: {}]   ;;  %s6065_s2 = inlined_call_operand.vmem [shape: bf16[9,16,32], index: 2, kind: input, shape index: {}]   ;;  %s6066_s3 = inlined_call_operand.vmem [shape: f32[1,128], index: 3, kind: input, shape index: {}]   ;;  %s6067_s4 = inlined_call_operand.vmem [shape: f32[4,128], index: 4, kind: input, shape index: {}]   ;;  %s6068_s5 = inlined_call_operand.vmem [shape: bf16[2,4,16,128], index: 5, kind: output, shape index: {}]  }
   0x1 LB: > { %s4149_s19 = sadd.s32 4294967295, %s5356_s18   ;;  %p4153_p0 = scmp.ge.s32.totalorder %s5356_s18, 1  ;;  %s5356_s18 = sphi %s5398_s18, %s15_s18  }
   0x2   : > { %p187_p1 = scmp.lt.s32.totalorder %s5356_s18, 3 }
   0x4   : > { %p188_p2 = pnand %p4153_p0, %p187_p1 }
   0x5   : > { %p215_p3 = scmp.lt.s32.totalorder (!%p188_p2), %s4149_s19, 1  ;;  %v5415_v0 = vld [vmem:[%s6066_s3] ss:$0 sm:$0xff] (!%p188_p2)  ;;  %v5232_v1 = vld [vmem:[%s6064_s1 + $0x10] sm:$0xff] (!%p188_p2)   ;;  %vm284_vm0 = vcmask (!%p188_p2), 261120   ;;  %s5358_s28 = smov (!%p188_p2), 6  }
   0x6   : > { %191 = sbr.rel (%p188_p2) target bundleno = 3054 (0xbee), region = 40  ;;  %4710 = vmatprep.mubr.msk.bf16.mxu0 (!%p188_p2), %vm284_vm0, %v5232_v1  ;;  %s5359_s29 = smov (!%p188_p2), 7   ;;  %v5233_v17 = vld [vmem:[%s6064_s1 + $0x18] sm:$0xff] (!%p188_p2)   ;;  %v5234_v18 = vld [vmem:[%s6064_s1] sm:$0xff] (!%p188_p2)   ;;  %v5235_v21 = vld [vmem:[%s6064_s1 + $0x8] sm:$0xff] (!%p188_p2)   ;;  %vm5367_vm1 = vmmov (!%p188_p2), 0  }
   0x7   : > { %s5360_s30 = smov (!%p188_p2), 5   ;;  %s5361_s6 = smov (!%p188_p2), 1   ;;  %v5236_v22 = vld [vmem:[%s6064_s1 + $0x20] sm:$0xff] (!%p188_p2)   ;;  %v5237_v25 = vld [vmem:[%s6064_s1 + $0x28] sm:$0xff] (!%p188_p2)   ;;  %v5238_v26 = vld [vmem:[%s6064_s1 + $0x30] sm:$0xff] (!%p188_p2)  }
   0x8   : > { %s5362_s7 = smov (!%p188_p2), 127   ;;  %s5363_s8 = smov (!%p188_p2), 123   ;;  %v5239_v28 = vld [vmem:[%s6064_s1 + $0x38] sm:$0xff] (!%p188_p2)   ;;  %v5240_v29 = vld [vmem:[%s6064_s1 + $0x40] sm:$0xff] (!%p188_p2)   ;;  %v5241_v31 = vld [vmem:[%s6064_s1 + $0x48] sm:$0xff] (!%p188_p2)  }
   0x9   : > { %s5364_s9 = smov (!%p188_p2), 122   ;;  %s5365_s10 = smov (!%p188_p2), 121   ;;  %v5242_v32 = vld [vmem:[%s6064_s1 + $0x50] sm:$0xff] (!%p188_p2)   ;;  %v5243_v35 = vld [vmem:[%s6064_s1 + $0x58] sm:$0xff] (!%p188_p2)   ;;  %v5244_v36 = vld [vmem:[%s6064_s1 + $0x60] sm:$0xff] (!%p188_p2)  }
   0xa   : > { %v5245_v39 = vld [vmem:[%s6064_s1 + $0x68] sm:$0xff] (!%p188_p2)   ;;  %v5246_v40 = vld [vmem:[%s6064_s1 + $0x70] sm:$0xff] (!%p188_p2)   ;;  %v5247_v43 = vld [vmem:[%s6064_s1 + $0x78] sm:$0xff] (!%p188_p2)  }
   0xb   : > { %v5248_v44 = vld [vmem:[%s6064_s1 + $0x80] sm:$0xff] (!%p188_p2)   ;;  %v5249_v46 = vld [vmem:[%s6064_s1 + $0x88] sm:$0xff] (!%p188_p2)  }
   0xd   : > { %s6070_s19 = smov (!%p215_p3, %s4149_s19), 1 }
   0xe   : > { %s4493_s20 = sshll.u32 %s6070_s19, 4  ;;  %s4494_s24 = sshll.u32 %s6070_s19, 5 }
   0xf   : > { %s219_s23 = scalar_lea.vmem %s6063_s0, %s4493_s20  ;;  %s224_s26 = scalar_lea.vmem %s6068_s5, %s4494_s24 }
  0x10   : > { %v4504_v2 = vld [vmem:[%s219_s23] sm:$0xff]   ;;  %v4531_v3 = vld [vmem:[%s219_s23 + $0x8] sm:$0xff]  }
  0x11   : > { %v4505_v4 = vunpack.c.l.bf16 %v4504_v2  ;;  %v4506_v5 = vunpack.c.h.bf16 %v4504_v2  ;;  %v4509_v6 = vunpack.c.l.bf16 %v4531_v3  ;;  %v4510_v7 = vunpack.c.h.bf16 %v4531_v3 }
  0x13   : > { %v5422_v8 = vmul.f32 %v4505_v4, %v5415_v0  ;;  %v5425_v9 = vmul.f32 %v4506_v5, %v5415_v0  ;;  %v5428_v10 = vmul.f32 %v4509_v6, %v5415_v0  ;;  %v5431_v11 = vmul.f32 %v4510_v7, %v5415_v0 }
  0x15   : > { %v5435_v12 = vpack.c.bf16 %v5425_v9, %v5422_v8  ;;  %v5441_v13 = vpack.c.bf16 %v5431_v11, %v5428_v10 }
  0x17   : > { %266 = vrot.lane.b32.xlu0 %v5435_v12, %s5358_s28  ;;  %253 = vrot.lane.b32.xlu1 %v5435_v12, %s5359_s29 }
  0x1b   : > { %268 = vrot.lane.b32.xlu0 %v5441_v13, %s5358_s28  ;;  %255 = vrot.lane.b32.xlu1 %v5441_v13, %s5359_s29 }
  0x1f   : > { %410 = vrot.lane.b32.xlu0 %v5435_v12, %s5360_s30  ;;  %412 = vrot.lane.b32.xlu1 %v5441_v13, %s5360_s30 }
  0x23   : > { %492 = vrot.lane.b32.xlu0 %v5435_v12, %s5361_s6  ;;  %494 = vrot.lane.b32.xlu1 %v5441_v13, %s5361_s6 }
  0x27   : > { %648 = vrot.lane.b32.xlu0 %v5435_v12, %s5362_s7  ;;  %650 = vrot.lane.b32.xlu1 %v5441_v13, %s5362_s7 }
  0x2b   : > { %730 = vrot.lane.b32.xlu0 %v5435_v12, %s5363_s8  ;;  %732 = vrot.lane.b32.xlu1 %v5441_v13, %s5363_s8 }
  0x2f   : > { %812 = vrot.lane.b32.xlu0 %v5435_v12, %s5364_s9  ;;  %814 = vrot.lane.b32.xlu1 %v5441_v13, %s5364_s9 }
  0x33   : > { %894 = vrot.lane.b32.xlu0 %v5435_v12, %s5365_s10  ;;  %896 = vrot.lane.b32.xlu1 %v5441_v13, %s5365_s10 }
  0x89   : > { %v267_v14 = vpop.permute.xlu0 %266  ;;  %v254_v15 = vpop.permute.xlu1 %253 }
  0x8a   : > { %4706 = vmatprep.subr.bf16.mxu0 %v267_v14 }
  0x8b   : > { %4707 = vmatpush3.bf16.msra.mxu0 %v267_v14 }
  0x8d   : > { %v269_v16 = vpop.permute.xlu0 %268  ;;  %v256_v19 = vpop.permute.xlu1 %255 }
  0x8e   : > { %4708 = vmatprep.subr.bf16.mxu0 %v269_v16 }
  0x8f   : > { %4709 = vmatpush3.bf16.msra.mxu0 %v269_v16 }
  0x90   : > { %4714 = vmatprep.subr.bf16.mxu0 %v254_v15 }
  0x91   : > { %v411_v20 = vpop.permute.xlu0 %410  ;;  %v413_v23 = vpop.permute.xlu1 %412 }
  0x92   : > { %4711 = vmatmul.mubr.msk.bf16.vlgmr.msra.gmra.mrb[0].mxu0 %vm284_vm0, %v5233_v17 }
  0x93   : > { %4715 = vmatpush3.bf16.msra.mxu0 %v254_v15  ;;  %4718 = vmatprep.mubr.msk.bf16.mxu0 %vm284_vm0, %v5234_v18 }
  0x94   : > { %4716 = vmatprep.subr.bf16.mxu0 %v256_v19 }
  0x95   : > { %v493_v24 = vpop.permute.xlu0 %492  ;;  %v495_v27 = vpop.permute.xlu1 %494 }
  0x97   : > { %4717 = vmatpush3.bf16.msra.mxu0 %v256_v19 }
  0x98   : > { %4722 = vmatprep.subr.bf16.mxu0 %v411_v20 }
  0x99   : > { %v649_v30 = vpop.permute.xlu0 %648  ;;  %v651_v33 = vpop.permute.xlu1 %650 }
  0x9d   : > { %v731_v34 = vpop.permute.xlu0 %730  ;;  %v733_v37 = vpop.permute.xlu1 %732 }
  0x9e   : > { %4719 = vmatmul.mubr.msk.bf16.vlgmr.msra.gmra.mrb[0].mxu0 %vm284_vm0, %v5235_v21 }
  0x9f   : > { %4723 = vmatpush3.bf16.msra.mxu0 %v411_v20  ;;  %4726 = vmatprep.mubr.msk.bf16.mxu0 %vm284_vm0, %v5236_v22 }
  0xa0   : > { %4724 = vmatprep.subr.bf16.mxu0 %v413_v23 }
  0xa1   : > { %v813_v38 = vpop.permute.xlu0 %812  ;;  %v815_v41 = vpop.permute.xlu1 %814 }
  0xa3   : > { %4725 = vmatpush3.bf16.msra.mxu0 %v413_v23 }
  0xa4   : > { %4730 = vmatprep.subr.bf16.mxu0 %v493_v24 }
  0xa5   : > { %v895_v42 = vpop.permute.xlu0 %894  ;;  %v897_v45 = vpop.permute.xlu1 %896 }
  0xaa   : > { %4727 = vmatmul.mubr.msk.bf16.vlgmr.msra.gmra.mrb[0].mxu0 %vm284_vm0, %v5237_v25 }
  0xab   : > { %4731 = vmatpush3.bf16.msra.mxu0 %v493_v24  ;;  %4734 = vmatprep.mubr.msk.bf16.mxu0 %vm284_vm0, %v5238_v26 }
  0xac   : > { %4732 = vmatprep.subr.bf16.mxu0 %v495_v27 }
  0xaf   : > { %4733 = vmatpush3.bf16.msra.mxu0 %v495_v27 }
  0xb0   : > { %4738 = vmatprep.subr.bf16.mxu0 %v5435_v12 }
  0xb6   : > { %4735 = vmatmul.mubr.msk.bf16.vlgmr.msra.gmra.mrb[0].mxu0 %vm284_vm0, %v5239_v28 }
  0xb7   : > { %4739 = vmatpush3.bf16.msra.mxu0 %v5435_v12  ;;  %4742 = vmatprep.mubr.msk.bf16.mxu0 %vm284_vm0, %v5240_v29 }
  0xb8   : > { %4740 = vmatprep.subr.bf16.mxu0 %v5441_v13 }
  0xbb   : > { %4741 = vmatpush3.bf16.msra.mxu0 %v5441_v13 }
  0xbc   : > { %4746 = vmatprep.subr.bf16.mxu0 %v649_v30 }
  0xc2   : > { %4743 = vmatmul.mubr.msk.bf16.vlgmr.msra.gmra.mrb[0].mxu0 %vm284_vm0, %v5241_v31 }
  0xc3   : > { %4747 = vmatpush3.bf16.msra.mxu0 %v649_v30  ;;  %4750 = vmatprep.mubr.msk.bf16.mxu0 %vm284_vm0, %v5242_v32 }
  0xc4   : > { %4748 = vmatprep.subr.bf16.mxu0 %v651_v33 }
  0xc7   : > { %4749 = vmatpush3.bf16.msra.mxu0 %v651_v33 }
  0xc8   : > { %4754 = vmatprep.subr.bf16.mxu0 %v731_v34 }
  0xce   : > { %4751 = vmatmul.mubr.msk.bf16.vlgmr.msra.gmra.mrb[0].mxu0 %vm284_vm0, %v5243_v35 }
  0xcf   : > { %4755 = vmatpush3.bf16.msra.mxu0 %v731_v34  ;;  %4758 = vmatprep.mubr.msk.bf16.mxu0 %vm284_vm0, %v5244_v36 }
  0xd0   : > { %4756 = vmatprep.subr.bf16.mxu0 %v733_v37 }
  0xd3   : > { %4757 = vmatpush3.bf16.msra.mxu0 %v733_v37 }
  0xd4   : > { %4762 = vmatprep.subr.bf16.mxu0 %v813_v38 }
  0xda   : > { %4759 = vmatmul.mubr.msk.bf16.vlgmr.msra.gmra.mrb[0].mxu0 %vm284_vm0, %v5245_v39 }
  0xdb   : > { %4763 = vmatpush3.bf16.msra.mxu0 %v813_v38  ;;  %4766 = vmatprep.mubr.msk.bf16.mxu0 %vm284_vm0, %v5246_v40 }
  0xdc   : > { %4764 = vmatprep.subr.bf16.mxu0 %v815_v41 }
  0xdf   : > { %4765 = vmatpush3.bf16.msra.mxu0 %v815_v41 }
  0xe0   : > { %4770 = vmatprep.subr.bf16.mxu0 %v895_v42 }
  0xe6   : > { %4767 = vmatmul.mubr.msk.bf16.vlgmr.msra.gmra.mrb[0].mxu0 %vm284_vm0, %v5247_v43 }
  0xe7   : > { %4771 = vmatpush3.bf16.msra.mxu0 %v895_v42  ;;  %4774 = vmatprep.mubr.msk.bf16.mxu0 %vm284_vm0, %v5248_v44  ;;  %v5250_v42 = vld [vmem:[%s6064_s1 + $0xa0] sm:$0xff]  }
  0xe8   : > { %4772 = vmatprep.subr.bf16.mxu0 %v897_v45  ;;  %4782 = vmatprep.mubr.msk.bf16.mxu1 %vm284_vm0, %v5250_v42 }
  0xeb   : > { %4773 = vmatpush3.bf16.msra.mxu0 %v897_v45 }
  0xf2   : > { %4775 = vmatmul.mubr.msk.bf16.vlgmr.msra.gmra.mrb[0].mxu0 %vm284_vm0, %v5249_v46 }
 0x1c5   : > { %v5545_v47 = vpop.f32.mrb[0].mxu0 }
 0x1c6   : > { %v952_v48 = vpop.f32.mrb[1].mxu0  ;;  %v973_v54 = vmul.f32 %v5545_v47, %v5415_v0 }
 0x1c7   : > { %v5547_v49 = vpop.f32.mrb[2].mxu0  ;;  %v971_v50 = vmul.f32 %v5415_v0, %v952_v48 }
 0x1c8   : > { %v955_v51 = vpop.f32.mrb[3].mxu0  ;;  %v974_v53 = vmul.f32 %v5547_v49, %v5415_v0  ;;  %v989_v56 = vmul.f32 %v5545_v47, %v973_v54 }
 0x1c9   : > { %975 = vadd.xlane.f32.xlu0 %v971_v50  ;;  %v972_v52 = vmul.f32 %v5415_v0, %v955_v51  ;;  %v987_v55 = vmul.f32 %v971_v50, %v952_v48 }
 0x1ca   : > { %v990_v58 = vmul.f32 %v5547_v49, %v974_v53 }
 0x1cb   : > { %977 = vadd.xlane.f32.xlu1 %v972_v52  ;;  %v988_v57 = vmul.f32 %v972_v52, %v955_v51 }
 0x1cd   : > { %981 = vadd.xlane.f32.xlu0 %v974_v53 }
 0x1cf   : > { %979 = vadd.xlane.f32.xlu1 %v973_v54 }
 0x1d1   : > { %991 = vadd.xlane.f32.xlu0 %v987_v55 }
 0x1d3   : > { %995 = vadd.xlane.f32.xlu1 %v989_v56 }
 0x1d5   : > { %993 = vadd.xlane.f32.xlu0 %v988_v57 }
 0x1d9   : > { %997 = vadd.xlane.f32.xlu0 %v990_v58  ;;  %v5251_v58 = vld [vmem:[%s6064_s1 + $0xa8] sm:$0xff]  }
 0x256   : > { %v976_v59 = vpop.xlane.xlu0 %975 }
 0x257   : > { %v983_v62 = vmul.f32 0.0625, %v976_v59  ;;  %v5252_v59 = vld [vmem:[%s6064_s1 + $0x90] sm:$0xff]  }
 0x258   : > { %v978_v60 = vpop.xlane.xlu1 %977 }
 0x259   : > { %v1003_v3 = vmul.f32 %v983_v62, %v983_v62  ;;  %v984_v4 = vmul.f32 0.0625, %v978_v60  ;;  %v1015_v32 = vsub.f32 %v952_v48, %v983_v62  ;;  %v5253_v62 = vld [vmem:[%s6064_s1 + $0x98] sm:$0xff]  }
 0x25a   : > { %v982_v61 = vpop.xlane.xlu0 %981 }
 0x25b   : > { %v986_v14 = vmul.f32 0.0625, %v982_v61  ;;  %v1004_v16 = vmul.f32 %v984_v4, %v984_v4  ;;  %v1016_v36 = vsub.f32 %v955_v51, %v984_v4  ;;  %v5256_v4 = vld [vmem:[%s6064_s1 + $0xc0] sm:$0xff]  }
 0x25c   : > { %v980_v63 = vpop.xlane.xlu1 %979 }
 0x25d   : > { %v985_v1 = vmul.f32 0.0625, %v980_v63  ;;  %v1006_v23 = vmul.f32 %v986_v14, %v986_v14  ;;  %v1018_v43 = vsub.f32 %v5547_v49, %v986_v14  ;;  %v5254_v63 = vld [vmem:[%s6064_s1 + $0xb0] sm:$0xff]   ;;  %v5260_v14 = vld [vmem:[%s6064_s1 + $0xe0] sm:$0xff]  }
 0x25e   : > { %v992_v2 = vpop.xlane.xlu0 %991 }
 0x25f   : > { %v999_v5 = vmul.f32 0.0625, %v992_v2  ;;  %v1005_v7 = vmul.f32 %v985_v1, %v985_v1  ;;  %v1017_v37 = vsub.f32 %v5545_v47, %v985_v1 }
 0x260   : > { %v996_v6 = vpop.xlane.xlu1 %995 }
 0x261   : > { %v1007_v12 = vsub.f32 %v999_v5, %v1003_v3  ;;  %v1001_v13 = vmul.f32 0.0625, %v996_v6  ;;  %v5255_v3 = vld [vmem:[%s6064_s1 + $0xb8] sm:$0xff]   ;;  %v5257_v6 = vld [vmem:[%s6064_s1 + $0xc8] sm:$0xff]  }
 0x262   : > { %v994_v15 = vpop.xlane.xlu0 %993 }
 0x263   : > { %v1011_v17 = vmax.f32 %v1007_v12, 0.0  ;;  %v1009_v18 = vsub.f32 %v1001_v13, %v1005_v7  ;;  %v1000_v19 = vmul.f32 0.0625, %v994_v15  ;;  %v5258_v7 = vld [vmem:[%s6064_s1 + $0xd0] sm:$0xff]   ;;  %v5259_v13 = vld [vmem:[%s6064_s1 + $0xd8] sm:$0xff]  }
 0x265   : > { %v1019_v20 = vadd.f32 1e-05, %v1011_v17  ;;  %v1013_v21 = vmax.f32 %v1009_v18, 0.0  ;;  %v1008_v22 = vsub.f32 %v1000_v19, %v1004_v16  ;;  %v5261_v17 = vld [vmem:[%s6064_s1 + $0xe8] sm:$0xff]   ;;  %v5262_v18 = vld [vmem:[%s6064_s1 + $0xf0] sm:$0xff]  }
 0x266   : > { %v998_v24 = vpop.xlane.xlu0 %997 }
 0x267   : > { %5313 = vrsqrt.f32 %v1019_v20  ;;  %v1021_v25 = vadd.f32 1e-05, %v1013_v21  ;;  %v1012_v26 = vmax.f32 %v1008_v22, 0.0  ;;  %v1002_v27 = vmul.f32 0.0625, %v998_v24  ;;  %v5263_v21 = vld [vmem:[%s6064_s1 + $0xf8] sm:$0xff]   ;;  %v5264_v22 = vld [vmem:[%s6064_s1 + $0x100] sm:$0xff]  }
 0x269   : > { %5315 = vrsqrt.f32 %v1021_v25  ;;  %v1020_v28 = vadd.f32 1e-05, %v1012_v26  ;;  %v1010_v29 = vsub.f32 %v1002_v27, %v1006_v23  ;;  %v5265_v25 = vld [vmem:[%s6064_s1 + $0x108] sm:$0xff]   ;;  %v5266_v26 = vld [vmem:[%s6064_s1 + $0x110] sm:$0xff]  }
 0x26b   : > { %5317 = vrsqrt.f32 %v1020_v28  ;;  %v1014_v30 = vmax.f32 %v1010_v29, 0.0  ;;  %v5267_v28 = vld [vmem:[%s6064_s1 + $0x118] sm:$0xff]  }
 0x26d   : > { %v1022_v31 = vadd.f32 1e-05, %v1014_v30 }
 0x26f   : > { %5319 = vrsqrt.f32 %v1022_v31 }
 0x271   : > { %v5314_v33 = vpop.eup %5313 }
 0x272   : > { %v1027_v34 = vmul.f32 %v5314_v33, %v1015_v32 }
 0x273   : > { %v5316_v35 = vpop.eup %5315 }
 0x274   : > { %v1031_v39 = vmax.f32 %v1027_v34, 0.0  ;;  %v1029_v40 = vmul.f32 %v5316_v35, %v1017_v37 }
 0x275   : > { %v5318_v38 = vpop.eup %5317 }
 0x276   : > { %v1028_v41 = vmul.f32 %v5318_v38, %v1016_v36  ;;  %v1035_v46 = vmul.f32 %v5415_v0, %v1031_v39  ;;  %v1033_v48 = vmax.f32 %v1029_v40, 0.0 }
 0x278   : > { %v1032_v44 = vmax.f32 %v1028_v41, 0.0  ;;  %v1037_v53 = vmul.f32 %v5415_v0, %v1033_v48 }
 0x279   : > { %v5320_v45 = vpop.eup %5319 }
 0x27a   : > { %v1036_v50 = vmul.f32 %v5415_v0, %v1032_v44  ;;  %v1030_v47 = vmul.f32 %v5320_v45, %v1018_v43 }
 0x27c   : > { %v1039_v51 = vpack.c.bf16 %v1036_v50, %v1035_v46  ;;  %v1034_v52 = vmax.f32 %v1030_v47, 0.0 }
 0x27e   : > { %v1038_v54 = vmul.f32 %v5415_v0, %v1034_v52  ;;  %1061 = vrot.lane.b32.xlu1 %v1039_v51, %s5358_s28 }
 0x280   : > { %v1040_v55 = vpack.c.bf16 %v1038_v54, %v1037_v53 }
 0x282   : > { %1048 = vrot.lane.b32.xlu1 %v1039_v51, %s5359_s29  ;;  %1063 = vrot.lane.b32.xlu0 %v1040_v55, %s5358_s28 }
 0x286   : > { %1050 = vrot.lane.b32.xlu1 %v1040_v55, %s5359_s29  ;;  %1204 = vrot.lane.b32.xlu0 %v1039_v51, %s5360_s30 }
 0x28a   : > { %1206 = vrot.lane.b32.xlu1 %v1040_v55, %s5360_s30  ;;  %1286 = vrot.lane.b32.xlu0 %v1039_v51, %s5361_s6 }
 0x28e   : > { %1288 = vrot.lane.b32.xlu1 %v1040_v55, %s5361_s6  ;;  %1442 = vrot.lane.b32.xlu0 %v1039_v51, %s5362_s7 }
 0x292   : > { %1444 = vrot.lane.b32.xlu1 %v1040_v55, %s5362_s7  ;;  %1524 = vrot.lane.b32.xlu0 %v1039_v51, %s5363_s8 }
 0x296   : > { %1526 = vrot.lane.b32.xlu1 %v1040_v55, %s5363_s8  ;;  %1606 = vrot.lane.b32.xlu0 %v1039_v51, %s5364_s9 }
 0x29a   : > { %1608 = vrot.lane.b32.xlu1 %v1040_v55, %s5364_s9  ;;  %1688 = vrot.lane.b32.xlu0 %v1039_v51, %s5365_s10 }
 0x29e   : > { %1690 = vrot.lane.b32.xlu1 %v1040_v55, %s5365_s10 }
 0x2f0   : > { %v1062_v49 = vpop.permute.xlu1 %1061 }
 0x2f1   : > { %4778 = vmatprep.subr.bf16.mxu1 %v1062_v49 }
 0x2f2   : > { %4779 = vmatpush3.bf16.msra.mxu1 %v1062_v49 }
 0x2f4   : > { %v1049_v56 = vpop.permute.xlu1 %1048  ;;  %v1064_v57 = vpop.permute.xlu0 %1063 }
 0x2f5   : > { %4780 = vmatprep.subr.bf16.mxu1 %v1064_v57 }
 0x2f6   : > { %4781 = vmatpush3.bf16.msra.mxu1 %v1064_v57 }
 0x2f7   : > { %4786 = vmatprep.subr.bf16.mxu1 %v1049_v56 }
 0x2f8   : > { %v1051_v60 = vpop.permute.xlu1 %1050  ;;  %v1205_v61 = vpop.permute.xlu0 %1204 }
 0x2f9   : > { %4783 = vmatmul.mubr.msk.bf16.vlgmr.msra.gmra.mrb[0].mxu1 %vm284_vm0, %v5251_v58 }
 0x2fa   : > { %4787 = vmatpush3.bf16.msra.mxu1 %v1049_v56  ;;  %4790 = vmatprep.mubr.msk.bf16.mxu1 %vm284_vm0, %v5252_v59 }
 0x2fb   : > { %4788 = vmatprep.subr.bf16.mxu1 %v1051_v60 }
 0x2fc   : > { %v1207_v1 = vpop.permute.xlu1 %1206  ;;  %v1287_v2 = vpop.permute.xlu0 %1286 }
 0x2fe   : > { %4789 = vmatpush3.bf16.msra.mxu1 %v1051_v60 }
 0x2ff   : > { %4794 = vmatprep.subr.bf16.mxu1 %v1205_v61 }
 0x300   : > { %v1289_v5 = vpop.permute.xlu1 %1288  ;;  %v1443_v12 = vpop.permute.xlu0 %1442 }
 0x304   : > { %v1445_v15 = vpop.permute.xlu1 %1444  ;;  %v1525_v16 = vpop.permute.xlu0 %1524 }
 0x305   : > { %4791 = vmatmul.mubr.msk.bf16.vlgmr.msra.gmra.mrb[0].mxu1 %vm284_vm0, %v5253_v62 }
 0x306   : > { %4795 = vmatpush3.bf16.msra.mxu1 %v1205_v61  ;;  %4798 = vmatprep.mubr.msk.bf16.mxu1 %vm284_vm0, %v5254_v63 }
 0x307   : > { %4796 = vmatprep.subr.bf16.mxu1 %v1207_v1 }
 0x308   : > { %v1527_v19 = vpop.permute.xlu1 %1526  ;;  %v1607_v20 = vpop.permute.xlu0 %1606 }
 0x30a   : > { %4797 = vmatpush3.bf16.msra.mxu1 %v1207_v1 }
 0x30b   : > { %4802 = vmatprep.subr.bf16.mxu1 %v1287_v2 }
 0x30c   : > { %v1609_v23 = vpop.permute.xlu1 %1608  ;;  %v1689_v24 = vpop.permute.xlu0 %1688 }
 0x310   : > { %v1691_v27 = vpop.permute.xlu1 %1690 }
 0x311   : > { %4799 = vmatmul.mubr.msk.bf16.vlgmr.msra.gmra.mrb[0].mxu1 %vm284_vm0, %v5255_v3 }
 0x312   : > { %4803 = vmatpush3.bf16.msra.mxu1 %v1287_v2  ;;  %4806 = vmatprep.mubr.msk.bf16.mxu1 %vm284_vm0, %v5256_v4 }
 0x313   : > { %4804 = vmatprep.subr.bf16.mxu1 %v1289_v5 }
 0x316   : > { %4805 = vmatpush3.bf16.msra.mxu1 %v1289_v5 }
 0x317   : > { %4810 = vmatprep.subr.bf16.mxu1 %v1039_v51 }
 0x31d   : > { %4807 = vmatmul.mubr.msk.bf16.vlgmr.msra.gmra.mrb[0].mxu1 %vm284_vm0, %v5257_v6 }
 0x31e   : > { %4811 = vmatpush3.bf16.msra.mxu1 %v1039_v51  ;;  %4814 = vmatprep.mubr.msk.bf16.mxu1 %vm284_vm0, %v5258_v7 }
 0x31f   : > { %4812 = vmatprep.subr.bf16.mxu1 %v1040_v55 }
 0x322   : > { %4813 = vmatpush3.bf16.msra.mxu1 %v1040_v55 }
 0x323   : > { %4818 = vmatprep.subr.bf16.mxu1 %v1443_v12 }
 0x329   : > { %4815 = vmatmul.mubr.msk.bf16.vlgmr.msra.gmra.mrb[0].mxu1 %vm284_vm0, %v5259_v13 }
 0x32a   : > { %4819 = vmatpush3.bf16.msra.mxu1 %v1443_v12  ;;  %4822 = vmatprep.mubr.msk.bf16.mxu1 %vm284_vm0, %v5260_v14 }
 0x32b   : > { %4820 = vmatprep.subr.bf16.mxu1 %v1445_v15 }
 0x32e   : > { %4821 = vmatpush3.bf16.msra.mxu1 %v1445_v15 }
 0x32f   : > { %4826 = vmatprep.subr.bf16.mxu1 %v1525_v16 }
 0x335   : > { %4823 = vmatmul.mubr.msk.bf16.vlgmr.msra.gmra.mrb[0].mxu1 %vm284_vm0, %v5261_v17 }
 0x336   : > { %4827 = vmatpush3.bf16.msra.mxu1 %v1525_v16  ;;  %4830 = vmatprep.mubr.msk.bf16.mxu1 %vm284_vm0, %v5262_v18 }
 0x337   : > { %4828 = vmatprep.subr.bf16.mxu1 %v1527_v19 }
 0x33a   : > { %4829 = vmatpush3.bf16.msra.mxu1 %v1527_v19 }
 0x33b   : > { %4834 = vmatprep.subr.bf16.mxu1 %v1607_v20 }
 0x341   : > { %4831 = vmatmul.mubr.msk.bf16.vlgmr.msra.gmra.mrb[0].mxu1 %vm284_vm0, %v5263_v21 }
 0x342   : > { %4835 = vmatpush3.bf16.msra.mxu1 %v1607_v20  ;;  %4838 = vmatprep.mubr.msk.bf16.mxu1 %vm284_vm0, %v5264_v22 }
 0x343   : > { %4836 = vmatprep.subr.bf16.mxu1 %v1609_v23 }
 0x346   : > { %4837 = vmatpush3.bf16.msra.mxu1 %v1609_v23 }
 0x347   : > { %4842 = vmatprep.subr.bf16.mxu1 %v1689_v24 }
 0x34d   : > { %4839 = vmatmul.mubr.msk.bf16.vlgmr.msra.gmra.mrb[0].mxu1 %vm284_vm0, %v5265_v25 }
 0x34e   : > { %4843 = vmatpush3.bf16.msra.mxu1 %v1689_v24  ;;  %4846 = vmatprep.mubr.msk.bf16.mxu1 %vm284_vm0, %v5266_v26 }
 0x34f   : > { %4844 = vmatprep.subr.bf16.mxu1 %v1691_v27 }
 0x352   : > { %4845 = vmatpush3.bf16.msra.mxu1 %v1691_v27 }
 0x359   : > { %4847 = vmatmul.mubr.msk.bf16.vlgmr.msra.gmra.mrb[0].mxu1 %vm284_vm0, %v5267_v28  ;;  %v5268_v28 = vld [vmem:[%s6064_s1 + $0x130] sm:$0xff]  }
 0x35a   : > { %4854 = vmatprep.mubr.msk.bf16.mxu0 %vm284_vm0, %v5268_v28 }
 0x42c   : > { %v5651_v29 = vpop.f32.mrb[0].mxu1 }
 0x42d   : > { %v1746_v30 = vpop.f32.mrb[1].mxu1  ;;  %v1767_v36 = vmul.f32 %v5651_v29, %v5415_v0 }
 0x42e   : > { %v5653_v31 = vpop.f32.mrb[2].mxu1  ;;  %v1765_v32 = vmul.f32 %v5415_v0, %v1746_v30 }
 0x42f   : > { %v1749_v33 = vpop.f32.mrb[3].mxu1  ;;  %v1768_v35 = vmul.f32 %v5653_v31, %v5415_v0  ;;  %v1783_v38 = vmul.f32 %v5651_v29, %v1767_v36 }
 0x430   : > { %1769 = vadd.xlane.f32.xlu0 %v1765_v32  ;;  %v1766_v34 = vmul.f32 %v5415_v0, %v1749_v33  ;;  %v1781_v37 = vmul.f32 %v1765_v32, %v1746_v30 }
 0x431   : > { %v1784_v40 = vmul.f32 %v5653_v31, %v1768_v35 }
 0x432   : > { %1771 = vadd.xlane.f32.xlu1 %v1766_v34  ;;  %v1782_v39 = vmul.f32 %v1766_v34, %v1749_v33 }
 0x434   : > { %1775 = vadd.xlane.f32.xlu0 %v1768_v35 }
 0x436   : > { %1773 = vadd.xlane.f32.xlu1 %v1767_v36 }
 0x438   : > { %1785 = vadd.xlane.f32.xlu0 %v1781_v37 }
 0x43a   : > { %1789 = vadd.xlane.f32.xlu1 %v1783_v38 }
 0x43c   : > { %1787 = vadd.xlane.f32.xlu0 %v1782_v39 }
 0x440   : > { %1791 = vadd.xlane.f32.xlu0 %v1784_v40  ;;  %v5269_v40 = vld [vmem:[%s6064_s1 + $0x138] sm:$0xff]  }
 0x4bd   : > { %v1770_v41 = vpop.xlane.xlu0 %1769 }
 0x4be   : > { %v1777_v44 = vmul.f32 0.0625, %v1770_v41  ;;  %v5270_v41 = vld [vmem:[%s6064_s1 + $0x120] sm:$0xff]  }
 0x4bf   : > { %v1772_v42 = vpop.xlane.xlu1 %1771 }
 0x4c0   : > { %v1797_v50 = vmul.f32 %v1777_v44, %v1777_v44  ;;  %v1778_v0 = vmul.f32 0.0625, %v1772_v42  ;;  %v1809_v13 = vsub.f32 %v1746_v30, %v1777_v44  ;;  %v5271_v44 = vld [vmem:[%s6064_s1 + $0x128] sm:$0xff]  }
 0x4c1   : > { %v1776_v43 = vpop.xlane.xlu0 %1775 }
 0x4c2   : > { %v1780_v55 = vmul.f32 0.0625, %v1776_v43  ;;  %v1798_v56 = vmul.f32 %v1778_v0, %v1778_v0  ;;  %v1810_v18 = vsub.f32 %v1749_v33, %v1778_v0  ;;  %v5274_v0 = vld [vmem:[%s6064_s1 + $0x150] sm:$0xff]  }
 0x4c3   : > { %v1774_v45 = vpop.xlane.xlu1 %1773 }
 0x4c4   : > { %v1779_v46 = vmul.f32 0.0625, %v1774_v45  ;;  %v1800_v63 = vmul.f32 %v1780_v55, %v1780_v55  ;;  %v1812_v23 = vsub.f32 %v5653_v31, %v1780_v55  ;;  %v5272_v45 = vld [vmem:[%s6064_s1 + $0x140] sm:$0xff]   ;;  %v5278_v55 = vld [vmem:[%s6064_s1 + $0x170] sm:$0xff]  }
 0x4c5   : > { %v1786_v48 = vpop.xlane.xlu0 %1785 }
 0x4c6   : > { %v1793_v47 = vmul.f32 0.0625, %v1786_v48  ;;  %v1799_v52 = vmul.f32 %v1779_v46, %v1779_v46  ;;  %v1811_v15 = vsub.f32 %v5651_v29, %v1779_v46 }
 0x4c7   : > { %v1790_v51 = vpop.xlane.xlu1 %1789 }
 0x4c8   : > { %v1801_v53 = vsub.f32 %v1793_v47, %v1797_v50  ;;  %v1795_v54 = vmul.f32 0.0625, %v1790_v51  ;;  %v5273_v50 = vld [vmem:[%s6064_s1 + $0x148] sm:$0xff]   ;;  %v5275_v51 = vld [vmem:[%s6064_s1 + $0x158] sm:$0xff]  }
 0x4c9   : > { %v1788_v49 = vpop.xlane.xlu0 %1787 }
 0x4ca   : > { %v1805_v57 = vmax.f32 %v1801_v53, 0.0  ;;  %v1803_v58 = vsub.f32 %v1795_v54, %v1799_v52  ;;  %v1794_v59 = vmul.f32 0.0625, %v1788_v49  ;;  %v5276_v52 = vld [vmem:[%s6064_s1 + $0x160] sm:$0xff]   ;;  %v5277_v54 = vld [vmem:[%s6064_s1 + $0x168] sm:$0xff]  }
 0x4cc   : > { %v1813_v60 = vadd.f32 1e-05, %v1805_v57  ;;  %v1807_v61 = vmax.f32 %v1803_v58, 0.0  ;;  %v1802_v62 = vsub.f32 %v1794_v59, %v1798_v56  ;;  %v5279_v57 = vld [vmem:[%s6064_s1 + $0x178] sm:$0xff]   ;;  %v5280_v58 = vld [vmem:[%s6064_s1 + $0x180] sm:$0xff]  }
 0x4cd   : > { %v1792_v1 = vpop.xlane.xlu0 %1791 }
 0x4ce   : > { %5321 = vrsqrt.f32 %v1813_v60  ;;  %v1815_v2 = vadd.f32 1e-05, %v1807_v61  ;;  %v1806_v3 = vmax.f32 %v1802_v62, 0.0  ;;  %v1796_v4 = vmul.f32 0.0625, %v1792_v1  ;;  %v5281_v61 = vld [vmem:[%s6064_s1 + $0x188] sm:$0xff]   ;;  %v5282_v62 = vld [vmem:[%s6064_s1 + $0x190] sm:$0xff]  }
 0x4d0   : > { %5323 = vrsqrt.f32 %v1815_v2  ;;  %v1814_v5 = vadd.f32 1e-05, %v1806_v3  ;;  %v1804_v6 = vsub.f32 %v1796_v4, %v1800_v63  ;;  %v5283_v2 = vld [vmem:[%s6064_s1 + $0x198] sm:$0xff]   ;;  %v5284_v3 = vld [vmem:[%s6064_s1 + $0x1a0] sm:$0xff]  }
 0x4d2   : > { %5325 = vrsqrt.f32 %v1814_v5  ;;  %v1808_v7 = vmax.f32 %v1804_v6, 0.0  ;;  %v5285_v5 = vld [vmem:[%s6064_s1 + $0x1a8] sm:$0xff]  }
 0x4d4   : > { %v1816_v12 = vadd.f32 1e-05, %v1808_v7 }
 0x4d6   : > { %5327 = vrsqrt.f32 %v1816_v12 }
 0x4d8   : > { %v5322_v14 = vpop.eup %5321 }
 0x4d9   : > { %v1821_v16 = vmul.f32 %v5322_v14, %v1809_v13 }
 0x4da   : > { %v5324_v17 = vpop.eup %5323 }
 0x4db   : > { %v1825_v19 = vadd.f32 %v1821_v16, %v5422_v8  ;;  %v1823_v20 = vmul.f32 %v5324_v17, %v1811_v15  ;;  %v5675_v8 = vld [vmem:[%s6066_s3] ss:$0 sm:$0xff] }
 0x4dc   : > { %v5326_v21 = vpop.eup %5325 }
 0x4dd   : > { %v1822_v22 = vmul.f32 %v5326_v21, %v1810_v18  ;;  %v1829_v24 = vmax.f32 %v1825_v19, 0.0  ;;  %v1827_v25 = vadd.f32 %v1823_v20, %v5428_v10 }
 0x4df   : > { %v1826_v26 = vadd.f32 %v1822_v22, %v5425_v9  ;;  %v5678_v31 = vmul.f32 %v5675_v8, %v1829_v24  ;;  %v1831_v10 = vmax.f32 %v1827_v25, 0.0 }
 0x4e0   : > { %v5328_v27 = vpop.eup %5327 }
 0x4e1   : > { %v1830_v29 = vmax.f32 %v1826_v26, 0.0  ;;  %v1824_v30 = vmul.f32 %v5328_v27, %v1812_v23  ;;  %v5687_v35 = vmul.f32 %v5675_v8, %v1831_v10 }
 0x4e3   : > { %v5681_v9 = vmul.f32 %v5675_v8, %v1830_v29  ;;  %v1828_v32 = vadd.f32 %v1824_v30, %v5431_v11 }
 0x4e5   : > { %v1837_v33 = vpack.c.bf16 %v5681_v9, %v5678_v31  ;;  %v1832_v34 = vmax.f32 %v1828_v32, 0.0 }
 0x4e7   : > { %v5690_v36 = vmul.f32 %v5675_v8, %v1832_v34  ;;  %1859 = vrot.lane.b32.xlu1 %v1837_v33, %s5358_s28 }
 0x4e9   : > { %v1838_v37 = vpack.c.bf16 %v5690_v36, %v5687_v35 }
 0x4eb   : > { %1846 = vrot.lane.b32.xlu1 %v1837_v33, %s5359_s29  ;;  %1861 = vrot.lane.b32.xlu0 %v1838_v37, %s5358_s28 }
 0x4ef   : > { %1848 = vrot.lane.b32.xlu1 %v1838_v37, %s5359_s29  ;;  %2002 = vrot.lane.b32.xlu0 %v1837_v33, %s5360_s30 }
 0x4f3   : > { %2004 = vrot.lane.b32.xlu1 %v1838_v37, %s5360_s30  ;;  %2084 = vrot.lane.b32.xlu0 %v1837_v33, %s5361_s6 }
 0x4f7   : > { %2086 = vrot.lane.b32.xlu1 %v1838_v37, %s5361_s6  ;;  %2240 = vrot.lane.b32.xlu0 %v1837_v33, %s5362_s7 }
 0x4fb   : > { %2242 = vrot.lane.b32.xlu1 %v1838_v37, %s5362_s7  ;;  %2322 = vrot.lane.b32.xlu0 %v1837_v33, %s5363_s8 }
 0x4ff   : > { %2324 = vrot.lane.b32.xlu1 %v1838_v37, %s5363_s8  ;;  %2404 = vrot.lane.b32.xlu0 %v1837_v33, %s5364_s9 }
 0x503   : > { %2406 = vrot.lane.b32.xlu1 %v1838_v37, %s5364_s9  ;;  %2486 = vrot.lane.b32.xlu0 %v1837_v33, %s5365_s10 }
 0x507   : > { %2488 = vrot.lane.b32.xlu1 %v1838_v37, %s5365_s10 }
 0x559   : > { %v1860_v11 = vpop.permute.xlu1 %1859 }
 0x55a   : > { %4850 = vmatprep.subr.bf16.mxu0 %v1860_v11 }
 0x55b   : > { %4851 = vmatpush3.bf16.msra.mxu0 %v1860_v11 }
 0x55d   : > { %v1847_v38 = vpop.permute.xlu1 %1846  ;;  %v1862_v39 = vpop.permute.xlu0 %1861 }
 0x55e   : > { %4852 = vmatprep.subr.bf16.mxu0 %v1862_v39 }
 0x55f   : > { %4853 = vmatpush3.bf16.msra.mxu0 %v1862_v39 }
 0x560   : > { %4858 = vmatprep.subr.bf16.mxu0 %v1847_v38 }
 0x561   : > { %v1849_v42 = vpop.permute.xlu1 %1848  ;;  %v2003_v43 = vpop.permute.xlu0 %2002 }
 0x562   : > { %4855 = vmatmul.mubr.msk.bf16.vlgmr.msra.gmra.mrb[4].mxu0 %vm284_vm0, %v5269_v40 }
 0x563   : > { %4859 = vmatpush3.bf16.msra.mxu0 %v1847_v38  ;;  %4862 = vmatprep.mubr.msk.bf16.mxu0 %vm284_vm0, %v5270_v41 }
 0x564   : > { %4860 = vmatprep.subr.bf16.mxu0 %v1849_v42 }
 0x565   : > { %v2005_v46 = vpop.permute.xlu1 %2004  ;;  %v2085_v48 = vpop.permute.xlu0 %2084 }
 0x567   : > { %4861 = vmatpush3.bf16.msra.mxu0 %v1849_v42 }
 0x568   : > { %4866 = vmatprep.subr.bf16.mxu0 %v2003_v43 }
 0x569   : > { %v2087_v47 = vpop.permute.xlu1 %2086  ;;  %v2241_v53 = vpop.permute.xlu0 %2240 }
 0x56d   : > { %v2243_v49 = vpop.permute.xlu1 %2242  ;;  %v2323_v56 = vpop.permute.xlu0 %2322 }
 0x56e   : > { %4863 = vmatmul.mubr.msk.bf16.vlgmr.msra.gmra.mrb[4].mxu0 %vm284_vm0, %v5271_v44 }
 0x56f   : > { %4867 = vmatpush3.bf16.msra.mxu0 %v2003_v43  ;;  %4870 = vmatprep.mubr.msk.bf16.mxu0 %vm284_vm0, %v5272_v45 }
 0x570   : > { %4868 = vmatprep.subr.bf16.mxu0 %v2005_v46 }
 0x571   : > { %v2325_v59 = vpop.permute.xlu1 %2324  ;;  %v2405_v60 = vpop.permute.xlu0 %2404 }
 0x573   : > { %4869 = vmatpush3.bf16.msra.mxu0 %v2005_v46 }
 0x574   : > { %4874 = vmatprep.subr.bf16.mxu0 %v2085_v48 }
 0x575   : > { %v2407_v63 = vpop.permute.xlu1 %2406  ;;  %v2487_v1 = vpop.permute.xlu0 %2486 }
 0x579   : > { %v2489_v4 = vpop.permute.xlu1 %2488 }
 0x57a   : > { %4871 = vmatmul.mubr.msk.bf16.vlgmr.msra.gmra.mrb[4].mxu0 %vm284_vm0, %v5273_v50 }
 0x57b   : > { %4875 = vmatpush3.bf16.msra.mxu0 %v2085_v48  ;;  %4878 = vmatprep.mubr.msk.bf16.mxu0 %vm284_vm0, %v5274_v0 }
 0x57c   : > { %4876 = vmatprep.subr.bf16.mxu0 %v2087_v47 }
 0x57f   : > { %4877 = vmatpush3.bf16.msra.mxu0 %v2087_v47 }
 0x580   : > { %4882 = vmatprep.subr.bf16.mxu0 %v1837_v33 }
 0x586   : > { %4879 = vmatmul.mubr.msk.bf16.vlgmr.msra.gmra.mrb[4].mxu0 %vm284_vm0, %v5275_v51 }
 0x587   : > { %4883 = vmatpush3.bf16.msra.mxu0 %v1837_v33  ;;  %4886 = vmatprep.mubr.msk.bf16.mxu0 %vm284_vm0, %v5276_v52 }
 0x588   : > { %4884 = vmatprep.subr.bf16.mxu0 %v1838_v37 }
 0x58b   : > { %4885 = vmatpush3.bf16.msra.mxu0 %v1838_v37 }
 0x58c   : > { %4890 = vmatprep.subr.bf16.mxu0 %v2241_v53 }
 0x592   : > { %4887 = vmatmul.mubr.msk.bf16.vlgmr.msra.gmra.mrb[4].mxu0 %vm284_vm0, %v5277_v54 }
 0x593   : > { %4891 = vmatpush3.bf16.msra.mxu0 %v2241_v53  ;;  %4894 = vmatprep.mubr.msk.bf16.mxu0 %vm284_vm0, %v5278_v55 }
 0x594   : > { %4892 = vmatprep.subr.bf16.mxu0 %v2243_v49 }
 0x597   : > { %4893 = vmatpush3.bf16.msra.mxu0 %v2243_v49 }
 0x598   : > { %4898 = vmatprep.subr.bf16.mxu0 %v2323_v56 }
 0x59e   : > { %4895 = vmatmul.mubr.msk.bf16.vlgmr.msra.gmra.mrb[4].mxu0 %vm284_vm0, %v5279_v57 }
 0x59f   : > { %4899 = vmatpush3.bf16.msra.mxu0 %v2323_v56  ;;  %4902 = vmatprep.mubr.msk.bf16.mxu0 %vm284_vm0, %v5280_v58 }
 0x5a0   : > { %4900 = vmatprep.subr.bf16.mxu0 %v2325_v59 }
 0x5a3   : > { %4901 = vmatpush3.bf16.msra.mxu0 %v2325_v59 }
 0x5a4   : > { %4906 = vmatprep.subr.bf16.mxu0 %v2405_v60 }
 0x5aa   : > { %4903 = vmatmul.mubr.msk.bf16.vlgmr.msra.gmra.mrb[4].mxu0 %vm284_vm0, %v5281_v61 }
 0x5ab   : > { %4907 = vmatpush3.bf16.msra.mxu0 %v2405_v60  ;;  %4910 = vmatprep.mubr.msk.bf16.mxu0 %vm284_vm0, %v5282_v62 }
 0x5ac   : > { %4908 = vmatprep.subr.bf16.mxu0 %v2407_v63 }
 0x5af   : > { %4909 = vmatpush3.bf16.msra.mxu0 %v2407_v63 }
 0x5b0   : > { %4914 = vmatprep.subr.bf16.mxu0 %v2487_v1 }
 0x5b6   : > { %4911 = vmatmul.mubr.msk.bf16.vlgmr.msra.gmra.mrb[4].mxu0 %vm284_vm0, %v5283_v2 }
 0x5b7   : > { %4915 = vmatpush3.bf16.msra.mxu0 %v2487_v1  ;;  %4918 = vmatprep.mubr.msk.bf16.mxu0 %vm284_vm0, %v5284_v3  ;;  %v5286_v1 = vld [vmem:[%s6064_s1 + $0x1c0] sm:$0xff]  }
 0x5b8   : > { %4916 = vmatprep.subr.bf16.mxu0 %v2489_v4  ;;  %4926 = vmatprep.mubr.msk.bf16.mxu1 %vm284_vm0, %v5286_v1 }
 0x5bb   : > { %4917 = vmatpush3.bf16.msra.mxu0 %v2489_v4 }
 0x5c2   : > { %4919 = vmatmul.mubr.msk.bf16.vlgmr.msra.gmra.mrb[4].mxu0 %vm284_vm0, %v5285_v5 }
 0x695   : > { %v5778_v6 = vpop.f32.mrb[4].mxu0 }
 0x696   : > { %v2544_v7 = vpop.f32.mrb[5].mxu0  ;;  %v2565_v17 = vmul.f32 %v5675_v8, %v5778_v6 }
 0x697   : > { %v5780_v12 = vpop.f32.mrb[6].mxu0  ;;  %v2563_v13 = vmul.f32 %v5675_v8, %v2544_v7 }
 0x698   : > { %v2547_v14 = vpop.f32.mrb[7].mxu0  ;;  %v2566_v16 = vmul.f32 %v5675_v8, %v5780_v12  ;;  %v2581_v19 = vmul.f32 %v5778_v6, %v2565_v17 }
 0x699   : > { %2567 = vadd.xlane.f32.xlu0 %v2563_v13  ;;  %v2564_v15 = vmul.f32 %v5675_v8, %v2547_v14  ;;  %v2579_v18 = vmul.f32 %v2563_v13, %v2544_v7 }
 0x69a   : > { %v2582_v21 = vmul.f32 %v5780_v12, %v2566_v16 }
 0x69b   : > { %2569 = vadd.xlane.f32.xlu1 %v2564_v15  ;;  %v2580_v20 = vmul.f32 %v2564_v15, %v2547_v14 }
 0x69d   : > { %2573 = vadd.xlane.f32.xlu0 %v2566_v16 }
 0x69f   : > { %2571 = vadd.xlane.f32.xlu1 %v2565_v17 }
 0x6a1   : > { %2583 = vadd.xlane.f32.xlu0 %v2579_v18 }
 0x6a3   : > { %2587 = vadd.xlane.f32.xlu1 %v2581_v19 }
 0x6a5   : > { %2585 = vadd.xlane.f32.xlu0 %v2580_v20 }
 0x6a9   : > { %2589 = vadd.xlane.f32.xlu0 %v2582_v21  ;;  %v5287_v21 = vld [vmem:[%s6064_s1 + $0x1c8] sm:$0xff]  }
 0x726   : > { %v2568_v22 = vpop.xlane.xlu0 %2567 }
 0x727   : > { %v2575_v25 = vmul.f32 0.0625, %v2568_v22  ;;  %v5288_v22 = vld [vmem:[%s6064_s1 + $0x1b0] sm:$0xff]  }
 0x728   : > { %v2570_v23 = vpop.xlane.xlu1 %2569 }
 0x729   : > { %v2595_v29 = vmul.f32 %v2575_v25, %v2575_v25  ;;  %v2576_v30 = vmul.f32 0.0625, %v2570_v23  ;;  %v2607_v55 = vsub.f32 %v2544_v7, %v2575_v25  ;;  %v5289_v25 = vld [vmem:[%s6064_s1 + $0x1b8] sm:$0xff]  }
 0x72a   : > { %v2574_v24 = vpop.xlane.xlu0 %2573 }
 0x72b   : > { %v2578_v11 = vmul.f32 0.0625, %v2574_v24  ;;  %v2596_v39 = vmul.f32 %v2576_v30, %v2576_v30  ;;  %v2608_v58 = vsub.f32 %v2547_v14, %v2576_v30  ;;  %v5292_v30 = vld [vmem:[%s6064_s1 + $0x1e0] sm:$0xff]  }
 0x72c   : > { %v2572_v26 = vpop.xlane.xlu1 %2571 }
 0x72d   : > { %v2577_v27 = vmul.f32 0.0625, %v2572_v26  ;;  %v2598_v46 = vmul.f32 %v2578_v11, %v2578_v11  ;;  %v2610_v2 = vsub.f32 %v5780_v12, %v2578_v11  ;;  %v5290_v26 = vld [vmem:[%s6064_s1 + $0x1d0] sm:$0xff]   ;;  %v5296_v11 = vld [vmem:[%s6064_s1 + $0x200] sm:$0xff]  }
 0x72e   : > { %v2584_v28 = vpop.xlane.xlu0 %2583 }
 0x72f   : > { %v2591_v10 = vmul.f32 0.0625, %v2584_v28  ;;  %v2597_v33 = vmul.f32 %v2577_v27, %v2577_v27  ;;  %v2609_v59 = vsub.f32 %v5778_v6, %v2577_v27 }
 0x730   : > { %v2588_v32 = vpop.xlane.xlu1 %2587 }
 0x731   : > { %v2599_v34 = vsub.f32 %v2591_v10, %v2595_v29  ;;  %v2593_v37 = vmul.f32 0.0625, %v2588_v32  ;;  %v5291_v29 = vld [vmem:[%s6064_s1 + $0x1d8] sm:$0xff]   ;;  %v5293_v32 = vld [vmem:[%s6064_s1 + $0x1e8] sm:$0xff]  }
 0x732   : > { %v2586_v38 = vpop.xlane.xlu0 %2585 }
 0x733   : > { %v2603_v40 = vmax.f32 %v2599_v34, 0.0  ;;  %v2601_v41 = vsub.f32 %v2593_v37, %v2597_v33  ;;  %v2592_v42 = vmul.f32 0.0625, %v2586_v38  ;;  %v5294_v33 = vld [vmem:[%s6064_s1 + $0x1f0] sm:$0xff]   ;;  %v5295_v37 = vld [vmem:[%s6064_s1 + $0x1f8] sm:$0xff]  }
 0x735   : > { %v2611_v43 = vadd.f32 1e-05, %v2603_v40  ;;  %v2605_v44 = vmax.f32 %v2601_v41, 0.0  ;;  %v2600_v45 = vsub.f32 %v2592_v42, %v2596_v39  ;;  %v5297_v40 = vld [vmem:[%s6064_s1 + $0x208] sm:$0xff]   ;;  %v5298_v41 = vld [vmem:[%s6064_s1 + $0x210] sm:$0xff]  }
 0x736   : > { %v2590_v48 = vpop.xlane.xlu0 %2589 }
 0x737   : > { %5329 = vrsqrt.f32 %v2611_v43  ;;  %v2613_v50 = vadd.f32 1e-05, %v2605_v44  ;;  %v2604_v0 = vmax.f32 %v2600_v45, 0.0  ;;  %v2594_v47 = vmul.f32 0.0625, %v2590_v48  ;;  %v5299_v44 = vld [vmem:[%s6064_s1 + $0x218] sm:$0xff]   ;;  %v5300_v45 = vld [vmem:[%s6064_s1 + $0x220] sm:$0xff]  }
 0x739   : > { %5331 = vrsqrt.f32 %v2613_v50  ;;  %v2612_v51 = vadd.f32 1e-05, %v2604_v0  ;;  %v2602_v52 = vsub.f32 %v2594_v47, %v2598_v46  ;;  %v5301_v50 = vld [vmem:[%s6064_s1 + $0x228] sm:$0xff]   ;;  %v5302_v0 = vld [vmem:[%s6064_s1 + $0x230] sm:$0xff]  }
 0x73b   : > { %5333 = vrsqrt.f32 %v2612_v51  ;;  %v2606_v53 = vmax.f32 %v2602_v52, 0.0  ;;  %v5303_v51 = vld [vmem:[%s6064_s1 + $0x238] sm:$0xff]  }
 0x73d   : > { %v2614_v54 = vadd.f32 1e-05, %v2606_v53 }
 0x73f   : > { %5335 = vrsqrt.f32 %v2614_v54 }
 0x741   : > { %v5330_v49 = vpop.eup %5329 }
 0x742   : > { %v2619_v56 = vmul.f32 %v5330_v49, %v2607_v55 }
 0x743   : > { %v5332_v57 = vpop.eup %5331 }
 0x744   : > { %v2623_v61 = vmax.f32 %v2619_v56, 0.0  ;;  %v2621_v62 = vmul.f32 %v5332_v57, %v2609_v59 }
 0x745   : > { %v5334_v60 = vpop.eup %5333 }
 0x746   : > { %v2620_v63 = vmul.f32 %v5334_v60, %v2608_v58  ;;  %v2627_v5 = vmul.f32 %v5675_v8, %v2623_v61  ;;  %v2625_v7 = vmax.f32 %v2621_v62, 0.0 }
 0x748   : > { %v2624_v3 = vmax.f32 %v2620_v63, 0.0  ;;  %v2629_v16 = vmul.f32 %v5675_v8, %v2625_v7  ;;  %v5366_v63 = vmov 0.0  }
 0x749   : > { %v5336_v4 = vpop.eup %5335  ;;  %4994 = vmatprep.subr.bf16.mxu0 %v5366_v63  ;;  %4998 = vmatprep.mubr.msk.bf16.mxu0 %vm5367_vm1, %v5366_v63 }
 0x74a   : > { %v2628_v13 = vmul.f32 %v5675_v8, %v2624_v3  ;;  %v2622_v6 = vmul.f32 %v5336_v4, %v2610_v2 }
 0x74c   : > { %v2631_v14 = vpack.c.bf16 %v2628_v13, %v2627_v5  ;;  %v2626_v15 = vmax.f32 %v2622_v6, 0.0 }
 0x74e   : > { %v2630_v17 = vmul.f32 %v5675_v8, %v2626_v15  ;;  %2653 = vrot.lane.b32.xlu1 %v2631_v14, %s5358_s28 }
 0x750   : > { %v2632_v18 = vpack.c.bf16 %v2630_v17, %v2629_v16 }
 0x752   : > { %2640 = vrot.lane.b32.xlu1 %v2631_v14, %s5359_s29  ;;  %2655 = vrot.lane.b32.xlu0 %v2632_v18, %s5358_s28 }
 0x756   : > { %2642 = vrot.lane.b32.xlu1 %v2632_v18, %s5359_s29  ;;  %2796 = vrot.lane.b32.xlu0 %v2631_v14, %s5360_s30 }
 0x75a   : > { %2798 = vrot.lane.b32.xlu1 %v2632_v18, %s5360_s30  ;;  %2878 = vrot.lane.b32.xlu0 %v2631_v14, %s5361_s6 }
 0x75e   : > { %2880 = vrot.lane.b32.xlu1 %v2632_v18, %s5361_s6  ;;  %3034 = vrot.lane.b32.xlu0 %v2631_v14, %s5362_s7 }
 0x762   : > { %3036 = vrot.lane.b32.xlu1 %v2632_v18, %s5362_s7  ;;  %3116 = vrot.lane.b32.xlu0 %v2631_v14, %s5363_s8 }
 0x766   : > { %3118 = vrot.lane.b32.xlu1 %v2632_v18, %s5363_s8  ;;  %3198 = vrot.lane.b32.xlu0 %v2631_v14, %s5364_s9 }
 0x76a   : > { %3200 = vrot.lane.b32.xlu1 %v2632_v18, %s5364_s9  ;;  %3280 = vrot.lane.b32.xlu0 %v2631_v14, %s5365_s10 }
 0x76e   : > { %3282 = vrot.lane.b32.xlu1 %v2632_v18, %s5365_s10 }
 0x7c0   : > { %v2654_v12 = vpop.permute.xlu1 %2653 }
 0x7c1   : > { %4922 = vmatprep.subr.bf16.mxu1 %v2654_v12 }
 0x7c2   : > { %4923 = vmatpush3.bf16.msra.mxu1 %v2654_v12 }
 0x7c4   : > { %v2641_v19 = vpop.permute.xlu1 %2640  ;;  %v2656_v20 = vpop.permute.xlu0 %2655 }
 0x7c5   : > { %4924 = vmatprep.subr.bf16.mxu1 %v2656_v20 }
 0x7c6   : > { %4925 = vmatpush3.bf16.msra.mxu1 %v2656_v20 }
 0x7c7   : > { %4930 = vmatprep.subr.bf16.mxu1 %v2641_v19 }
 0x7c8   : > { %v2643_v23 = vpop.permute.xlu1 %2642  ;;  %v2797_v24 = vpop.permute.xlu0 %2796 }
 0x7c9   : > { %4927 = vmatmul.mubr.msk.bf16.vlgmr.msra.gmra.mrb[4].mxu1 %vm284_vm0, %v5287_v21 }
 0x7ca   : > { %4931 = vmatpush3.bf16.msra.mxu1 %v2641_v19  ;;  %4934 = vmatprep.mubr.msk.bf16.mxu1 %vm284_vm0, %v5288_v22 }
 0x7cb   : > { %4932 = vmatprep.subr.bf16.mxu1 %v2643_v23 }
 0x7cc   : > { %v2799_v27 = vpop.permute.xlu1 %2798  ;;  %v2879_v28 = vpop.permute.xlu0 %2878 }
 0x7ce   : > { %4933 = vmatpush3.bf16.msra.mxu1 %v2643_v23 }
 0x7cf   : > { %4938 = vmatprep.subr.bf16.mxu1 %v2797_v24 }
 0x7d0   : > { %v2881_v10 = vpop.permute.xlu1 %2880  ;;  %v3035_v34 = vpop.permute.xlu0 %3034 }
 0x7d4   : > { %v3037_v38 = vpop.permute.xlu1 %3036  ;;  %v3117_v39 = vpop.permute.xlu0 %3116 }
 0x7d5   : > { %4935 = vmatmul.mubr.msk.bf16.vlgmr.msra.gmra.mrb[4].mxu1 %vm284_vm0, %v5289_v25 }
 0x7d6   : > { %4939 = vmatpush3.bf16.msra.mxu1 %v2797_v24  ;;  %4942 = vmatprep.mubr.msk.bf16.mxu1 %vm284_vm0, %v5290_v26 }
 0x7d7   : > { %4940 = vmatprep.subr.bf16.mxu1 %v2799_v27 }
 0x7d8   : > { %v3119_v42 = vpop.permute.xlu1 %3118  ;;  %v3199_v43 = vpop.permute.xlu0 %3198 }
 0x7da   : > { %4941 = vmatpush3.bf16.msra.mxu1 %v2799_v27 }
 0x7db   : > { %4946 = vmatprep.subr.bf16.mxu1 %v2879_v28 }
 0x7dc   : > { %v3201_v46 = vpop.permute.xlu1 %3200  ;;  %v3281_v48 = vpop.permute.xlu0 %3280 }
 0x7e0   : > { %v3283_v47 = vpop.permute.xlu1 %3282 }
 0x7e1   : > { %4943 = vmatmul.mubr.msk.bf16.vlgmr.msra.gmra.mrb[4].mxu1 %vm284_vm0, %v5291_v29 }
 0x7e2   : > { %4947 = vmatpush3.bf16.msra.mxu1 %v2879_v28  ;;  %4950 = vmatprep.mubr.msk.bf16.mxu1 %vm284_vm0, %v5292_v30 }
 0x7e3   : > { %4948 = vmatprep.subr.bf16.mxu1 %v2881_v10 }
 0x7e6   : > { %4949 = vmatpush3.bf16.msra.mxu1 %v2881_v10 }
 0x7e7   : > { %4954 = vmatprep.subr.bf16.mxu1 %v2631_v14 }
 0x7ed   : > { %4951 = vmatmul.mubr.msk.bf16.vlgmr.msra.gmra.mrb[4].mxu1 %vm284_vm0, %v5293_v32 }
 0x7ee   : > { %4955 = vmatpush3.bf16.msra.mxu1 %v2631_v14  ;;  %4958 = vmatprep.mubr.msk.bf16.mxu1 %vm284_vm0, %v5294_v33 }
 0x7ef   : > { %4956 = vmatprep.subr.bf16.mxu1 %v2632_v18 }
 0x7f2   : > { %4957 = vmatpush3.bf16.msra.mxu1 %v2632_v18 }
 0x7f3   : > { %4962 = vmatprep.subr.bf16.mxu1 %v3035_v34 }
 0x7f9   : > { %4959 = vmatmul.mubr.msk.bf16.vlgmr.msra.gmra.mrb[4].mxu1 %vm284_vm0, %v5295_v37 }
 0x7fa   : > { %4963 = vmatpush3.bf16.msra.mxu1 %v3035_v34  ;;  %4966 = vmatprep.mubr.msk.bf16.mxu1 %vm284_vm0, %v5296_v11 }
 0x7fb   : > { %4964 = vmatprep.subr.bf16.mxu1 %v3037_v38 }
 0x7fe   : > { %4965 = vmatpush3.bf16.msra.mxu1 %v3037_v38 }
 0x7ff   : > { %4970 = vmatprep.subr.bf16.mxu1 %v3117_v39 }
 0x805   : > { %4967 = vmatmul.mubr.msk.bf16.vlgmr.msra.gmra.mrb[4].mxu1 %vm284_vm0, %v5297_v40 }
 0x806   : > { %4971 = vmatpush3.bf16.msra.mxu1 %v3117_v39  ;;  %4974 = vmatprep.mubr.msk.bf16.mxu1 %vm284_vm0, %v5298_v41 }
 0x807   : > { %4972 = vmatprep.subr.bf16.mxu1 %v3119_v42 }
 0x80a   : > { %4973 = vmatpush3.bf16.msra.mxu1 %v3119_v42 }
 0x80b   : > { %4978 = vmatprep.subr.bf16.mxu1 %v3199_v43 }
 0x811   : > { %4975 = vmatmul.mubr.msk.bf16.vlgmr.msra.gmra.mrb[4].mxu1 %vm284_vm0, %v5299_v44 }
 0x812   : > { %4979 = vmatpush3.bf16.msra.mxu1 %v3199_v43  ;;  %4982 = vmatprep.mubr.msk.bf16.mxu1 %vm284_vm0, %v5300_v45 }
 0x813   : > { %4980 = vmatprep.subr.bf16.mxu1 %v3201_v46 }
 0x816   : > { %4981 = vmatpush3.bf16.msra.mxu1 %v3201_v46 }
 0x817   : > { %4986 = vmatprep.subr.bf16.mxu1 %v3281_v48 }
 0x81d   : > { %4983 = vmatmul.mubr.msk.bf16.vlgmr.msra.gmra.mrb[4].mxu1 %vm284_vm0, %v5301_v50 }
 0x81e   : > { %4987 = vmatpush3.bf16.msra.mxu1 %v3281_v48  ;;  %4990 = vmatprep.mubr.msk.bf16.mxu1 %vm284_vm0, %v5302_v0 }
 0x81f   : > { %4988 = vmatprep.subr.bf16.mxu1 %v3283_v47 }
 0x822   : > { %4989 = vmatpush3.bf16.msra.mxu1 %v3283_v47 }
 0x823   : > { %5026 = vmatprep.subr.bf16.mxu1 %v5366_v63 }
 0x829   : > { %4991 = vmatmul.mubr.msk.bf16.vlgmr.msra.gmra.mrb[4].mxu1 %vm284_vm0, %v5303_v51 }
 0x82a   : > { %5030 = vmatprep.mubr.msk.bf16.mxu1 %vm5367_vm1, %v5366_v63 }
 0x8fc   : > { %v5884_v52 = vpop.f32.mrb[4].mxu1 }
 0x8fd   : > { %v3338_v53 = vpop.f32.mrb[5].mxu1  ;;  %v3359_v58 = vmul.f32 %v5675_v8, %v5884_v52 }
 0x8fe   : > { %v5886_v54 = vpop.f32.mrb[6].mxu1  ;;  %v3357_v55 = vmul.f32 %v5675_v8, %v3338_v53 }
 0x8ff   : > { %v5889_v49 = vpop.f32.mrb[7].mxu1  ;;  %v3360_v57 = vmul.f32 %v5675_v8, %v5886_v54  ;;  %v3375_v60 = vmul.f32 %v5884_v52, %v3359_v58 }
 0x900   : > { %3361 = vadd.xlane.f32.xlu0 %v3357_v55  ;;  %v3358_v56 = vmul.f32 %v5675_v8, %v5889_v49  ;;  %v3373_v59 = vmul.f32 %v3357_v55, %v3338_v53 }
 0x901   : > { %v3376_v62 = vmul.f32 %v5886_v54, %v3360_v57 }
 0x902   : > { %3363 = vadd.xlane.f32.xlu1 %v3358_v56  ;;  %v3374_v61 = vmul.f32 %v3358_v56, %v5889_v49 }
 0x904   : > { %3367 = vadd.xlane.f32.xlu0 %v3360_v57 }
 0x906   : > { %3365 = vadd.xlane.f32.xlu1 %v3359_v58 }
 0x908   : > { %3377 = vadd.xlane.f32.xlu0 %v3373_v59 }
 0x90a   : > { %3381 = vadd.xlane.f32.xlu1 %v3375_v60 }
 0x90c   : > { %3379 = vadd.xlane.f32.xlu0 %v3374_v61 }
 0x910   : > { %3383 = vadd.xlane.f32.xlu0 %v3376_v62 }
 0x98d   : > { %v3362_v1 = vpop.xlane.xlu0 %3361 }
 0x98e   : > { %v3369_v4 = vmul.f32 0.0625, %v3362_v1 }
 0x98f   : > { %v3364_v2 = vpop.xlane.xlu1 %3363 }
 0x990   : > { %v3389_v6 = vmul.f32 %v3369_v4, %v3369_v4  ;;  %v3370_v14 = vmul.f32 0.0625, %v3364_v2  ;;  %v3401_v38 = vsub.f32 %v3338_v53, %v3369_v4  ;;  %v5305_v2 = vld [vmem:[%s6065_s2 + $0x38] sm:$0xff]   ;;  %v5306_v4 = vld [vmem:[%s6065_s2] sm:$0xff]  }
 0x991   : > { %v3368_v3 = vpop.xlane.xlu0 %3367 }
 0x992   : > { %v3372_v19 = vmul.f32 0.0625, %v3368_v3  ;;  %v3390_v21 = vmul.f32 %v3370_v14, %v3370_v14  ;;  %v3402_v43 = vsub.f32 %v5889_v49, %v3370_v14  ;;  %v5311_v14 = vld [vmem:[%s6065_s2 + $0x18] sm:$0xff]  }
 0x993   : > { %v3366_v5 = vpop.xlane.xlu1 %3365 }
 0x994   : > { %v3371_v7 = vmul.f32 0.0625, %v3366_v5  ;;  %v3392_v28 = vmul.f32 %v3372_v19, %v3372_v19  ;;  %v3404_v50 = vsub.f32 %v5886_v54, %v3372_v19  ;;  %v5307_v5 = vld [vmem:[%s6065_s2 + $0x8] sm:$0xff]  }
 0x995   : > { %v3378_v13 = vpop.xlane.xlu0 %3377 }
 0x996   : > { %v3385_v15 = vmul.f32 0.0625, %v3378_v13  ;;  %v3391_v17 = vmul.f32 %v3371_v7, %v3371_v7  ;;  %v3403_v40 = vsub.f32 %v5884_v52, %v3371_v7  ;;  %v5308_v7 = vld [vmem:[%s6065_s2 + $0x30] sm:$0xff]   ;;  %v5309_v13 = vld [vmem:[%s6065_s2 + $0x28] sm:$0xff]  }
 0x997   : > { %v3382_v16 = vpop.xlane.xlu1 %3381 }
 0x998   : > { %v3393_v18 = vsub.f32 %v3385_v15, %v3389_v6  ;;  %v3387_v12 = vmul.f32 0.0625, %v3382_v16  ;;  %v5310_v6 = vld [vmem:[%s6065_s2 + $0x40] sm:$0xff]   ;;  %v3669_v16 = vlaneseq }
 0x999   : > { %v3380_v20 = vpop.xlane.xlu0 %3379  ;;  %v5312_v15 = vld [vmem:[%s6065_s2 + $0x20] sm:$0xff]  }
 0x99a   : > { %v3397_v22 = vmax.f32 %v3393_v18, 0.0  ;;  %v3395_v23 = vsub.f32 %v3387_v12, %v3391_v17  ;;  %v3386_v24 = vmul.f32 0.0625, %v3380_v20  ;;  %v3670_v17 = vshrl.u32 %v3669_v16, 7  ;;  %v3431_v12 = vld [vmem:[%s6067_s4] sm:$0xf] }
 0x99c   : > { %v3405_v25 = vadd.f32 1e-05, %v3397_v22  ;;  %v3399_v26 = vmax.f32 %v3395_v23, 0.0  ;;  %v3394_v27 = vsub.f32 %v3386_v24, %v3390_v21  ;;  %v3791_v18 = vsub.s32 1, %v3670_v17 }
 0x99d   : > { %v3384_v29 = vpop.xlane.xlu0 %3383 }
 0x99e   : > { %5337 = vrsqrt.f32 %v3405_v25  ;;  %v3407_v30 = vadd.f32 1e-05, %v3399_v26  ;;  %v3398_v10 = vmax.f32 %v3394_v27, 0.0  ;;  %v3388_v32 = vmul.f32 0.0625, %v3384_v29 }
 0x99f   : > { %v5992_v19 = vrot.slane %v3431_v12, %v3791_v18  ;;  %v3915_v27 = vsub.s32 2, %v3670_v17  ;;  %v3671_v29 = vsub.s32 0, %v3670_v17 }
 0x9a0   : > { %5339 = vrsqrt.f32 %v3407_v30  ;;  %v3406_v33 = vadd.f32 1e-05, %v3398_v10  ;;  %v3396_v34 = vsub.f32 %v3388_v32, %v3392_v28 }
 0x9a1   : > { %v6004_v28 = vrot.slane %v3431_v12, %v3915_v27 }
 0x9a2   : > { %5341 = vrsqrt.f32 %v3406_v33  ;;  %v3400_v37 = vmax.f32 %v3396_v34, 0.0 }
 0x9a4   : > { %v3408_v11 = vadd.f32 1e-05, %v3400_v37 }
 0x9a6   : > { %5343 = vrsqrt.f32 %v3408_v11 }
 0x9a8   : > { %v5338_v39 = vpop.eup %5337 }
 0x9a9   : > { %v3413_v41 = vmul.f32 %v5338_v39, %v3401_v38  ;;  %v6016_v38 = vrot.slane %v3431_v12, %v3671_v29 }
 0x9aa   : > { %v5340_v42 = vpop.eup %5339 }
 0x9ab   : > { %v3417_v44 = vadd.f32 %v3413_v41, %v5678_v31  ;;  %v3415_v45 = vmul.f32 %v5340_v42, %v3403_v40 }
 0x9ac   : > { %v5342_v46 = vpop.eup %5341 }
 0x9ad   : > { %v3414_v48 = vmul.f32 %v5342_v46, %v3402_v43  ;;  %v3421_v47 = vmax.f32 %v3417_v44, 0.0  ;;  %v3419_v51 = vadd.f32 %v3415_v45, %v5687_v35  ;;  %v3987_v46 = vsub.s32 3, %v3670_v17 }
 0x9af   : > { %v3418_v0 = vadd.f32 %v3414_v48, %v5681_v9  ;;  %v3425_v55 = vmul.f32 %v5675_v8, %v3421_v47  ;;  %v3423_v9 = vmax.f32 %v3419_v51, 0.0 }
 0x9b0   : > { %v5344_v52 = vpop.eup %5343 }
 0x9b1   : > { %v3422_v53 = vmax.f32 %v3418_v0, 0.0  ;;  %v3416_v31 = vmul.f32 %v5344_v52, %v3404_v50  ;;  %v3427_v35 = vmul.f32 %v5675_v8, %v3423_v9  ;;  %v6031_v52 = vrot.slane %v3431_v12, %v3987_v46 }
 0x9b3   : > { %v3426_v49 = vmul.f32 %v5675_v8, %v3422_v53  ;;  %v3420_v54 = vadd.f32 %v3416_v31, %v5690_v36 }
 0x9b5   : > { %v3429_v56 = vpack.c.bf16 %v3426_v49, %v3425_v55  ;;  %v3424_v57 = vmax.f32 %v3420_v54, 0.0 }
 0x9b7   : > { %3447 = vrot.lane.b32.xlu1 %v3429_v56, %s5364_s9  ;;  %v3428_v58 = vmul.f32 %v5675_v8, %v3424_v57  ;;  %v5304_v8 = vld [vmem:[%s6065_s2 + $0x10] sm:$0xff]  }
 0x9b9   : > { %v3430_v59 = vpack.c.bf16 %v3428_v58, %v3427_v35 }
 0x9bb   : > { %3556 = vrot.lane.b32.xlu1 %v3429_v56, %s5362_s7  ;;  %3449 = vrot.lane.b32.xlu0 %v3430_v59, %s5364_s9 }
 0x9bf   : > { %3436 = vrot.lane.b32.xlu1 %v3429_v56, %s5365_s10  ;;  %3558 = vrot.lane.b32.xlu0 %v3430_v59, %s5362_s7 }
 0x9c3   : > { %3438 = vrot.lane.b32.xlu1 %v3430_v59, %s5365_s10 }
 0xa29   : > { %v3448_v36 = vpop.permute.xlu1 %3447 }
 0xa2a   : > { %4995 = vmatpush3.bf16.msra.mxu0 %v3448_v36 }
 0xa2b   : > { %4996 = vmatprep.subr.bf16.mxu0 %v5366_v63 }
 0xa2d   : > { %v3557_v60 = vpop.permute.xlu1 %3556  ;;  %v3450_v61 = vpop.permute.xlu0 %3449 }
 0xa2e   : > { %4997 = vmatpush3.bf16.msra.mxu0 %v3450_v61  ;;  %5027 = vmatpush3.bf16.msra.mxu1 %v3557_v60 }
 0xa2f   : > { %5028 = vmatprep.subr.bf16.mxu1 %v5366_v63  ;;  %5002 = vmatprep.subr.bf16.mxu0 %v5366_v63 }
 0xa31   : > { %v3437_v62 = vpop.permute.xlu1 %3436  ;;  %4999 = vmatmul.mubr.msk.bf16.vlgmr.msra.gmra.mrb[8].mxu0 %vm284_vm0, %v5304_v8  ;;  %v3559_v1 = vpop.permute.xlu0 %3558 }
 0xa32   : > { %5003 = vmatpush3.bf16.msra.mxu0 %v3437_v62  ;;  %5029 = vmatpush3.bf16.msra.mxu1 %v3559_v1 }
 0xa33   : > { %5004 = vmatprep.subr.bf16.mxu0 %v5366_v63  ;;  %5034 = vmatprep.subr.bf16.mxu1 %v5366_v63 }
 0xa34   : > { %5006 = vmatprep.mubr.msk.bf16.mxu0 %vm5367_vm1, %v5366_v63 }
 0xa35   : > { %v3439_v3 = vpop.permute.xlu1 %3438  ;;  %5031 = vmatmul.mubr.msk.bf16.vlgmr.msra.gmra.mrb[8].mxu1 %vm284_vm0, %v5305_v2 }
 0xa36   : > { %5005 = vmatpush3.bf16.msra.mxu0 %v3439_v3  ;;  %5035 = vmatpush3.bf16.msra.mxu1 %v3437_v62 }
 0xa37   : > { %5036 = vmatprep.subr.bf16.mxu1 %v5366_v63  ;;  %5010 = vmatprep.subr.bf16.mxu0 %v5366_v63 }
 0xa38   : > { %5038 = vmatprep.mubr.msk.bf16.mxu1 %vm5367_vm1, %v5366_v63 }
 0xa3a   : > { %5037 = vmatpush3.bf16.msra.mxu1 %v3439_v3 }
 0xa3b   : > { %5042 = vmatprep.subr.bf16.mxu1 %v5366_v63 }
 0xa3d   : > { %5007 = vmatmul.mubr.msk.bf16.vlgmr.msra.gmra.mrb[8].mxu0 %vm284_vm0, %v5306_v4 }
 0xa3e   : > { %5011 = vmatpush3.bf16.msra.mxu0 %v3557_v60  ;;  %5014 = vmatprep.mubr.msk.bf16.mxu0 %vm5367_vm1, %v5366_v63 }
 0xa3f   : > { %5012 = vmatprep.subr.bf16.mxu0 %v5366_v63 }
 0xa41   : > { %5039 = vmatmul.mubr.msk.bf16.vlgmr.msra.gmra.mrb[8].mxu1 %vm284_vm0, %v5307_v5 }
 0xa42   : > { %5013 = vmatpush3.bf16.msra.mxu0 %v3559_v1  ;;  %5043 = vmatpush3.bf16.msra.mxu1 %v3448_v36 }
 0xa43   : > { %5044 = vmatprep.subr.bf16.mxu1 %v5366_v63  ;;  %5018 = vmatprep.subr.bf16.mxu0 %v5366_v63 }
 0xa44   : > { %5046 = vmatprep.mubr.msk.bf16.mxu1 %vm5367_vm1, %v5366_v63 }
 0xa46   : > { %5045 = vmatpush3.bf16.msra.mxu1 %v3450_v61 }
 0xa47   : > { %5050 = vmatprep.subr.bf16.mxu1 %v5366_v63 }
 0xa49   : > { %5015 = vmatmul.mubr.msk.bf16.vlgmr.msra.gmra.mrb[8].mxu0 %vm284_vm0, %v5308_v7  ;;  %5047 = vmatmul.mubr.msk.bf16.vlgmr.msra.gmra.mrb[12].mxu1 %vm284_vm0, %v5309_v13 }
 0xa4a   : > { %5019 = vmatpush3.bf16.msra.mxu0 %v3429_v56  ;;  %5051 = vmatpush3.bf16.msra.mxu1 %v3437_v62 }
 0xa4b   : > { %5020 = vmatprep.subr.bf16.mxu0 %v5366_v63  ;;  %5052 = vmatprep.subr.bf16.mxu1 %v5366_v63 }
 0xa4c   : > { %5022 = vmatprep.mubr.msk.bf16.mxu0 %vm5367_vm1, %v5366_v63  ;;  %5054 = vmatprep.mubr.msk.bf16.mxu1 %vm5367_vm1, %v5366_v63 }
 0xa4e   : > { %5021 = vmatpush3.bf16.msra.mxu0 %v3430_v59  ;;  %5053 = vmatpush3.bf16.msra.mxu1 %v3439_v3 }
 0xa4f   : > { %5058 = vmatprep.subr.bf16.mxu0 %v5366_v63 }
 0xa55   : > { %5023 = vmatmul.mubr.msk.bf16.vlgmr.msra.gmra.mrb[8].mxu0 %vm284_vm0, %v5310_v6  ;;  %5055 = vmatmul.mubr.msk.bf16.vlgmr.msra.gmra.mrb[12].mxu1 %vm284_vm0, %v5311_v14 }
 0xa56   : > { %5059 = vmatpush3.bf16.msra.mxu0 %v3437_v62  ;;  %5062 = vmatprep.mubr.msk.bf16.mxu0 %vm5367_vm1, %v5366_v63 }
 0xa57   : > { %5060 = vmatprep.subr.bf16.mxu0 %v5366_v63 }
 0xa5a   : > { %5061 = vmatpush3.bf16.msra.mxu0 %v3439_v3 }
 0xa5d   : > { %5063 = vmatmul.mubr.msk.bf16.vlgmr.msra.gmra.mrb[12].mxu0 %vm284_vm0, %v5312_v15 }
 0xb14   : > { %v5994_v20 = vpop.f32.mrb[8].mxu1 }
 0xb15   : > { %v3793_v63 = vmul.f32 %v5992_v19, %v5994_v20  ;;  %v5040_v21 = vpop.f32.mrb[9].mxu1 }
 0xb16   : > { %v5998_v22 = vpop.f32.mrb[10].mxu1 }
 0xb17   : > { %v3799_v23 = vmul.f32 %v3793_v63, %v5994_v20  ;;  %3795 = vadd.xlane.f32.xlu0 %v3793_v63  ;;  %v5041_v24 = vpop.f32.mrb[11].mxu1  ;;  %v3794_v25 = vmul.f32 %v5992_v19, %v5998_v22 }
 0xb19   : > { %3801 = vadd.xlane.f32.xlu1 %v3799_v23  ;;  %v3800_v26 = vmul.f32 %v3794_v25, %v5998_v22 }
 0xb1b   : > { %3797 = vadd.xlane.f32.xlu0 %v3794_v25 }
 0xb1f   : > { %3803 = vadd.xlane.f32.xlu0 %v3800_v26 }
 0xb28   : > { %v6006_v30 = vpop.f32.mrb[8].mxu0  ;;  %v6008_v10 = vpop.f32.mrb[12].mxu1 }
 0xb29   : > { %v3917_v32 = vmul.f32 %v6004_v28, %v6008_v10  ;;  %v5024_v33 = vpop.f32.mrb[9].mxu0  ;;  %v5056_v34 = vpop.f32.mrb[13].mxu1  ;;  %v3673_v43 = vmul.f32 %v6016_v38, %v6006_v30 }
 0xb2a   : > { %v6012_v37 = vpop.f32.mrb[10].mxu0  ;;  %v6014_v11 = vpop.f32.mrb[14].mxu1 }
 0xb2b   : > { %v3918_v39 = vmul.f32 %v6004_v28, %v6014_v11  ;;  %3919 = vadd.xlane.f32.xlu1 %v3917_v32  ;;  %v5025_v40 = vpop.f32.mrb[11].mxu0  ;;  %v5057_v41 = vpop.f32.mrb[15].mxu1  ;;  %v3923_v42 = vmul.f32 %v3917_v32, %v6008_v10  ;;  %v3674_v45 = vmul.f32 %v6016_v38, %v6012_v37  ;;  %v3679_v51 = vmul.f32 %v3673_v43, %v6006_v30 }
 0xb2d   : > { %3921 = vadd.xlane.f32.xlu0 %v3918_v39  ;;  %v3924_v0 = vmul.f32 %v3918_v39, %v6014_v11  ;;  %v3680_v53 = vmul.f32 %v3674_v45, %v6012_v37 }
 0xb2f   : > { %3925 = vadd.xlane.f32.xlu1 %v3923_v42 }
 0xb30   : > { %v6023_v44 = vpop.f32.mrb[12].mxu0 }
 0xb31   : > { %3675 = vadd.xlane.f32.xlu0 %v3673_v43  ;;  %v5064_v48 = vpop.f32.mrb[13].mxu0  ;;  %v3989_v31 = vmul.f32 %v6031_v52, %v6023_v44 }
 0xb32   : > { %v6027_v50 = vpop.f32.mrb[14].mxu0 }
 0xb33   : > { %3677 = vadd.xlane.f32.xlu1 %v3674_v45  ;;  %v5065_v47 = vpop.f32.mrb[15].mxu0  ;;  %v3990_v55 = vmul.f32 %v6031_v52, %v6027_v50  ;;  %v3995_v49 = vmul.f32 %v3989_v31, %v6023_v44 }
 0xb35   : > { %3927 = vadd.xlane.f32.xlu0 %v3924_v0  ;;  %v3996_v54 = vmul.f32 %v3990_v55, %v6027_v50 }
 0xb37   : > { %3681 = vadd.xlane.f32.xlu1 %v3679_v51 }
 0xb39   : > { %3683 = vadd.xlane.f32.xlu0 %v3680_v53 }
 0xb3b   : > { %3991 = vadd.xlane.f32.xlu1 %v3989_v31 }
 0xb3d   : > { %3993 = vadd.xlane.f32.xlu0 %v3990_v55 }
 0xb3f   : > { %3997 = vadd.xlane.f32.xlu1 %v3995_v49 }
 0xb41   : > { %3999 = vadd.xlane.f32.xlu0 %v3996_v54 }
 0xba4   : > { %v3796_v9 = vpop.xlane.xlu0 %3795 }
 0xba6   : > { %v3802_v57 = vpop.xlane.xlu1 %3801 }
 0xba8   : > { %v3798_v56 = vpop.xlane.xlu0 %3797 }
 0xbac   : > { %v3804_v35 = vpop.xlane.xlu0 %3803 }
 0xbb8   : > { %v3920_v58 = vpop.xlane.xlu1 %3919 }
 0xbba   : > { %v3922_v59 = vpop.xlane.xlu0 %3921 }
 0xbbc   : > { %v3926_v36 = vpop.xlane.xlu1 %3925 }
 0xbbe   : > { %v3676_v60 = vpop.xlane.xlu0 %3675 }
 0xbbf   : > { %v3805_v62 = vadd.f32 %v3796_v9, %v3676_v60 }
 0xbc0   : > { %v3678_v61 = vpop.xlane.xlu1 %3677 }
 0xbc1   : > { %v3806_v2 = vadd.f32 %v3798_v56, %v3678_v61  ;;  %v3929_v4 = vadd.f32 %v3920_v58, %v3805_v62 }
 0xbc2   : > { %v3928_v8 = vpop.xlane.xlu0 %3927 }
 0xbc3   : > { %v3930_v14 = vadd.f32 %v3922_v59, %v3806_v2 }
 0xbc4   : > { %v3682_v1 = vpop.xlane.xlu1 %3681 }
 0xbc5   : > { %v3807_v5 = vadd.f32 %v3802_v57, %v3682_v1 }
 0xbc6   : > { %v3684_v3 = vpop.xlane.xlu0 %3683 }
 0xbc7   : > { %v3808_v13 = vadd.f32 %v3804_v35, %v3684_v3  ;;  %v3931_v17 = vadd.f32 %v3926_v36, %v3807_v5 }
 0xbc8   : > { %v3992_v7 = vpop.xlane.xlu1 %3991 }
 0xbc9   : > { %v4001_v6 = vadd.f32 %v3992_v7, %v3929_v4  ;;  %v3932_v63 = vadd.f32 %v3928_v8, %v3808_v13 }
 0xbca   : > { %v3994_v15 = vpop.xlane.xlu0 %3993 }
 0xbcb   : > { %v4002_v16 = vadd.f32 %v3994_v15, %v3930_v14  ;;  %v4005_v12 = vmul.f32 0.012345679, %v4001_v6 }
 0xbcc   : > { %v3998_v18 = vpop.xlane.xlu1 %3997 }
 0xbcd   : > { %v4006_v21 = vmul.f32 0.012345679, %v4002_v16  ;;  %v4003_v23 = vadd.f32 %v3998_v18, %v3931_v17  ;;  %v4009_v26 = vmul.f32 %v4005_v12, %v4005_v12  ;;  %v4019_v43 = vsub.f32 %v6006_v30, %v4005_v12 }
 0xbce   : > { %v4000_v24 = vpop.xlane.xlu0 %3999  ;;  %v4037_v45 = vsub.f32 %v5994_v20, %v4005_v12  ;;  %v4056_v46 = vsub.f32 %v6008_v10, %v4005_v12  ;;  %v4075_v48 = vsub.f32 %v6023_v44, %v4005_v12 }
 0xbcf   : > { %v4004_v25 = vadd.f32 %v4000_v24, %v3932_v63  ;;  %v4007_v27 = vmul.f32 0.012345679, %v4003_v23  ;;  %v4010_v29 = vmul.f32 %v4006_v21, %v4006_v21  ;;  %v4020_v47 = vsub.f32 %v6012_v37, %v4006_v21 }
 0xbd0   : > { %v4038_v51 = vsub.f32 %v5998_v22, %v4006_v21  ;;  %v4057_v53 = vsub.f32 %v6014_v11, %v4006_v21  ;;  %v4076_v31 = vsub.f32 %v6027_v50, %v4006_v21 }
 0xbd1   : > { %v4008_v32 = vmul.f32 0.012345679, %v4004_v25  ;;  %v4011_v33 = vsub.f32 %v4007_v27, %v4009_v26 }
 0xbd3   : > { %v4012_v34 = vsub.f32 %v4008_v32, %v4010_v29  ;;  %v4013_v39 = vmax.f32 %v4011_v33, 0.0 }
 0xbd5   : > { %v4014_v40 = vmax.f32 %v4012_v34, 0.0  ;;  %v4015_v41 = vadd.f32 1e-05, %v4013_v39 }
 0xbd7   : > { %v4016_v42 = vadd.f32 1e-05, %v4014_v40  ;;  %5345 = vrsqrt.f32 %v4015_v41 }
 0xbd9   : > { %5347 = vrsqrt.f32 %v4016_v42 }
 0xbe1   : > { %v5346_v0 = vpop.eup %5345 }
 0xbe2   : > { %v4021_v49 = vmul.f32 %v5346_v0, %v4019_v43  ;;  %v4039_v54 = vmul.f32 %v5346_v0, %v4037_v45  ;;  %v4058_v30 = vmul.f32 %v5346_v0, %v4056_v46  ;;  %v4077_v9 = vmul.f32 %v5346_v0, %v4075_v48 }
 0xbe3   : > { %v5348_v55 = vpop.eup %5347 }
 0xbe4   : > { %v4022_v20 = vmul.f32 %v5348_v55, %v4020_v47  ;;  %v4040_v56 = vmul.f32 %v5348_v55, %v4038_v51  ;;  %v4059_v10 = vmul.f32 %v5348_v55, %v4057_v53  ;;  %v4078_v57 = vmul.f32 %v5348_v55, %v4076_v31 }
 0xbe5   : > { %v4023_v44 = vmax.f32 %v4021_v49, 0.0  ;;  %v4041_v35 = vmax.f32 %v4039_v54, 0.0  ;;  %v4060_v58 = vmax.f32 %v4058_v30, 0.0  ;;  %v4079_v37 = vmax.f32 %v4077_v9, 0.0 }
 0xbe6   : > { %v4024_v22 = vmax.f32 %v4022_v20, 0.0  ;;  %v4042_v59 = vmax.f32 %v4040_v56, 0.0  ;;  %v4061_v36 = vmax.f32 %v4059_v10, 0.0  ;;  %v4080_v11 = vmax.f32 %v4078_v57, 0.0 }
 0xbe7   : > { %v4025_v50 = vmul.f32 %v4023_v44, %v6016_v38  ;;  %v4043_v60 = vmul.f32 %v4041_v35, %v5992_v19  ;;  %v4062_v61 = vmul.f32 %v4060_v58, %v6004_v28  ;;  %v4081_v8 = vmul.f32 %v4079_v37, %v6031_v52 }
 0xbe8   : > { %v4026_v62 = vmul.f32 %v4024_v22, %v6016_v38  ;;  %v4044_v1 = vmul.f32 %v4042_v59, %v5992_v19  ;;  %v4063_v2 = vmul.f32 %v4061_v36, %v6004_v28  ;;  %v4082_v3 = vmul.f32 %v4080_v11, %v6031_v52 }
 0xbea   : > { %v4514_v4 = vpack.c.bf16 %v4026_v62, %v4025_v50  ;;  %v4519_v5 = vpack.c.bf16 %v4044_v1, %v4043_v60  ;;  %v4524_v7 = vpack.c.bf16 %v4063_v2, %v4062_v61  ;;  %v4529_v13 = vpack.c.bf16 %v4082_v3, %v4081_v8 }
 0xbec   : > { %4515 = vst [vmem:[%s224_s26] sm:$0xff] %v4514_v4   ;;  %4532 = vst [vmem:[%s224_s26 + $0x8] sm:$0xff] %v4519_v5  }
 0xbed   : > { %4533 = vst [vmem:[%s224_s26 + $0x10] sm:$0xff] %v4524_v7   ;;  %4534 = vst [vmem:[%s224_s26 + $0x18] sm:$0xff] %v4529_v13  }
 0xbee PF: > { %s15_s18 = sadd.s32 1, %s5356_s18  }
 0xbef   : > { %p12_p4 = scmp.ge.s32.totalorder %s15_s18, 4  }
 0xbf1   :  { %14 = sbr.rel (!%p12_p4) target bundleno = 1 (0x1), region = 116 }

</bundles_post_ra>
